<compile_context>
chip_gen: v7x
topology: tpu7x:2x2x1
jax: 0.10.0
libtpu: 0.0.40
codegen_flags: <defaults>
</compile_context>

<pallas_src>
import jax
import jax.numpy as jnp
from jax import lax
from jax.experimental import pallas as pl
from jax.experimental.pallas import tpu as pltpu

D = 64      # vector_dim (d_model)
FF = 128    # dim_feedforward
L = 2       # num_layers (encoder and decoder)
EPS = 1e-5  # nn.LayerNorm default eps

# vec_d row layout (every row is a length-D vector):
#   encoder layer l (l=0,1), base = 6*l:
#     +0 fused attn bias, +1 ln1 gamma, +2 ln1 beta,
#     +3 ffn out bias,    +4 ln2 gamma, +5 ln2 beta
#   decoder layer l, base = 12 + 8*l:
#     +0 fused self-attn bias, +1 ln1 gamma, +2 ln1 beta,
#     +3 ln2 gamma, +4 ln2 beta, +5 ffn out bias, +6 ln3 gamma, +7 ln3 beta
#   28: fc weight row (fc_w.T), 29: fc bias (broadcast across the row)
_ENC_BASE = 0
_DEC_BASE = 12
_FC_W_ROW = 28
_FC_B_ROW = 29
_N_VEC_D = 30

# vec_ff rows (length FF == 128):
#   0,1: encoder FFN hidden bias (layer 0,1); 2,3: decoder FFN hidden bias;
#   4:   both decoder cross-attn fused biases concatenated (2*D == FF)
_N_VEC_FF = 5


def _layernorm_1pass(x, g, b):
    """One-pass LayerNorm: independent sum / sum-of-squares reductions (kernel)."""
    inv_d = 1.0 / x.shape[-1]
    s1 = jnp.sum(x, axis=-1, keepdims=True)
    s2 = jnp.sum(x * x, axis=-1, keepdims=True)
    mu = s1 * inv_d
    var = s2 * inv_d - mu * mu
    return (x - mu) * lax.rsqrt(var + EPS) * g + b


def _layernorm_2pass(x, g, b):
    """Two-pass LayerNorm (reference path; numerically independent check)."""
    mu = jnp.mean(x, axis=-1, keepdims=True)
    var = jnp.mean(jnp.square(x - mu), axis=-1, keepdims=True)
    return (x - mu) * lax.rsqrt(var + EPS) * g + b


def recommender_kernel(uv_ref,       # (TB, 2D)  [user | article] lane-concat
                       w_l0_ref,     # (2D, 2D)  block-diag fused layer-0 self-attn
                       w_att_ref,    # (2, D, D) fused Wv@Wo: enc l1, dec-self l1
                       w_ca_ref,     # (D, 2D)   both decoder cross-attn fused
                       w_ff1_ref,    # (4, D, FF) enc l0,l1, dec l0,l1
                       w_ff2_ref,    # (4, FF, D)
                       vec_d_ref,    # (30, D)   packed biases / gammas / betas / fc
                       vec_ff_ref,   # (5, FF)
                       out_ref):     # (1, TB)   lane-dense sigmoid output
    vd = lambda i: vec_d_ref[i:i + 1, :]    # (1, D)
    vf = lambda i: vec_ff_ref[i:i + 1, :]   # (1, FF)
    ln = _layernorm_1pass

    def attn(kv, idx, b_row):
        # seq_len == 1 => exact single-matmul attention (projections pre-fused).
        return jnp.dot(kv, w_att_ref[idx], preferred_element_type=jnp.float32) + b_row

    def ffn(x, idx, b1_row, b2_row):
        h = jnp.maximum(
            jnp.dot(x, w_ff1_ref[idx], preferred_element_type=jnp.float32) + b1_row,
            0.0)
        return jnp.dot(h, w_ff2_ref[idx], preferred_element_type=jnp.float32) + b2_row

    uv = uv_ref[...]                 # (TB, 2D)
    user = uv[:, :D]
    article = uv[:, D:]

    # Fused layer-0 self-attn: encoder-l0 and decoder-l0 share one K=128 matmul
    # against a block-diagonal weight (both depend only on the raw inputs).
    a0 = jnp.dot(uv, w_l0_ref[...], preferred_element_type=jnp.float32)

    # ---- TransformerEncoder: 2 x (post-norm self-attn + ReLU FFN) ----
    x = ln(user + a0[:, :D] + vd(_ENC_BASE + 0), vd(_ENC_BASE + 1), vd(_ENC_BASE + 2))
    x = ln(x + ffn(x, 0, vf(0), vd(_ENC_BASE + 3)), vd(_ENC_BASE + 4), vd(_ENC_BASE + 5))
    x = ln(x + attn(x, 0, vd(_ENC_BASE + 6)), vd(_ENC_BASE + 7), vd(_ENC_BASE + 8))
    x = ln(x + ffn(x, 1, vf(1), vd(_ENC_BASE + 9)), vd(_ENC_BASE + 10), vd(_ENC_BASE + 11))
    memory = x

    # ---- Decoder cross-attention, hoisted: depends only on `memory`. ----
    # Both layers at once: one (TB,64) @ (64,128) matmul, then static lane slices.
    ca = jnp.dot(memory, w_ca_ref[...], preferred_element_type=jnp.float32) + vf(4)

    # ---- TransformerDecoder: 2 x (self-attn + cross-attn + FFN), post-norm ----
    b0 = _DEC_BASE
    y = ln(article + a0[:, D:] + vd(b0 + 0), vd(b0 + 1), vd(b0 + 2))
    y = ln(y + ca[:, :D], vd(b0 + 3), vd(b0 + 4))
    y = ln(y + ffn(y, 2, vf(2), vd(b0 + 5)), vd(b0 + 6), vd(b0 + 7))
    b1 = _DEC_BASE + 8
    y = ln(y + attn(y, 1, vd(b1 + 0)), vd(b1 + 1), vd(b1 + 2))
    y = ln(y + ca[:, D:], vd(b1 + 3), vd(b1 + 4))
    y = ln(y + ffn(y, 3, vf(3), vd(b1 + 5)), vd(b1 + 6), vd(b1 + 7))

    # ---- Final linear + sigmoid, lane-dense output (1, TB). ----
    # Trans-B dot_general contracts D and leaves batch on the lane axis so the
    # store is a lane-dense vst; the fc row is replicated to 8 sublanes to keep
    # the MXU LHS operand sublane-aligned.
    fc_rows = jnp.broadcast_to(vd(_FC_W_ROW), (8, D))
    fc_b = vd(_FC_B_ROW)[:, 0:1]
    logits = lax.dot_general(fc_rows, y, (((1,), (1,)), ((), ())),
                             preferred_element_type=jnp.float32)
    out_ref[...] = jax.nn.sigmoid(logits[0:1, :] + fc_b)


def pack_params(p):
    """Host/XLA-side: fuse each attention's V-proj/out-proj (exact for S==1),
    build the block-diagonal layer-0 weight, and pack the 34 raw parameter
    arrays into 7 stacked VMEM-friendly arrays."""
    (e_wv, e_bv, e_wo, e_bo, e_w1, e_b1, e_w2, e_b2, e_g1, e_be1, e_g2, e_be2,
     d_wv_sa, d_bv_sa, d_wo_sa, d_bo_sa,
     d_wv_ca, d_bv_ca, d_wo_ca, d_bo_ca,
     d_w1, d_b1, d_w2, d_b2,
     d_g1, d_be1, d_g2, d_be2, d_g3, d_be3, fc_w, fc_b) = p

    def fuse(wv, bv, wo, bo):
        # MHA with seq_len==1:  kv @ (Wv @ Wo) + (bv @ Wo + bo)
        return (jnp.einsum('lij,ljk->lik', wv, wo),
                jnp.einsum('lij,ljk->lik', bv, wo) + bo)

    ew, eb = fuse(e_wv, e_bv, e_wo, e_bo)               # encoder self-attn
    sw, sb = fuse(d_wv_sa, d_bv_sa, d_wo_sa, d_bo_sa)   # decoder self-attn
    cw, cb = fuse(d_wv_ca, d_bv_ca, d_wo_ca, d_bo_ca)   # decoder cross-attn

    zero = jnp.zeros((D, D), jnp.float32)
    w_l0 = jnp.concatenate(                             # (2D, 2D) block-diagonal
        [jnp.concatenate([ew[0], zero], axis=1),
         jnp.concatenate([zero, sw[0]], axis=1)], axis=0)

    w_att = jnp.stack([ew[1], sw[1]], axis=0)           # (2, D, D) layer-1 attns
    w_ca = jnp.concatenate([cw[0], cw[1]], axis=1)      # (D, 2D)
    w_ff1 = jnp.concatenate([e_w1, d_w1], axis=0)       # (4, D, FF)
    w_ff2 = jnp.concatenate([e_w2, d_w2], axis=0)       # (4, FF, D)

    rows = []
    for l in range(L):   # encoder: 6 rows per layer
        rows += [eb[l], e_g1[l], e_be1[l], e_b2[l], e_g2[l], e_be2[l]]
    for l in range(L):   # decoder: 8 rows per layer
        rows += [sb[l], d_g1[l], d_be1[l], d_g2[l], d_be2[l], d_b2[l],
                 d_g3[l], d_be3[l]]
    rows += [fc_w.T, jnp.full((1, D), fc_b[0, 0], jnp.float32)]
    vec_d = jnp.concatenate(rows, axis=0)                          # (30, D)

    vec_ff = jnp.concatenate(
        [e_b1[0], e_b1[1], d_b1[0], d_b1[1],
         jnp.concatenate([cb[0], cb[1]], axis=1)], axis=0)         # (5, FF)

    return (w_l0, w_att, w_ca, w_ff1, w_ff2, vec_d, vec_ff)


def _round_up(x, m):
    return (x + m - 1) // m * m


def transformer_recommender(user_vec, article_vec, packed, *, tb=1024):
    """packed = pack_params(raw_params). Returns sigmoid scores, shape (B,)."""
    B = user_vec.shape[0]
    # Lane-concatenate the two D-wide inputs into one lane-dense (B, 2D) slab:
    # one input DMA stream and K=128 for the fused layer-0 matmul.
    uv = jnp.concatenate([user_vec, article_vec], axis=1)

    if B <= 128:
        TB = 128                       # full 128-lane tile even for tiny B
    else:
        # Lane-dense tiles (multiple of 128), capped at tb, and capped at
        # ceil(B/2) so the grid has >=2 steps (both v7x TensorCores get work).
        TB = min(_round_up(tb, 128), _round_up((B + 1) // 2, 128))
    Bp = _round_up(B, TB)
    if Bp != B:
        uv = jnp.pad(uv, ((0, Bp - B), (0, 0)))

    w_l0, w_att, w_ca, w_ff1, w_ff2, vec_d, vec_ff = packed
    weight_bytes = 4 * sum(int(a.size) for a in packed)
    flops_per_row = (2 * (2 * D) * (2 * D)                 # fused layer-0 self-attn
                     + 2 * 2 * D * D                       # enc l1 + dec l1 self-attn
                     + 2 * D * (L * D)                     # hoisted cross-attn
                     + 2 * L * (2 * D * FF + 2 * FF * D)   # 4 FFNs
                     + 2 * D)                              # final fc
    cost = pl.CostEstimate(
        flops=Bp * flops_per_row,
        transcendentals=Bp * (5 * L + 1),                  # rsqrt per LN + sigmoid
        bytes_accessed=4 * (Bp * 2 * D + Bp) + weight_bytes)

    # VMEM budget: double-buffered resident weights + input/output tiles + a
    # generous per-row allowance for in-kernel intermediates.  Stays well under
    # v7x's 64 MiB even at TB = 2048.
    vmem_limit = int(min(96 * 1024 * 1024,
                         6 * 1024 * 1024 + 2 * weight_bytes + TB * 16 * 1024))

    const2 = lambda i: (0, 0)
    const3 = lambda i: (0, 0, 0)

    out = pl.pallas_call(
        recommender_kernel,
        out_shape=jax.ShapeDtypeStruct((1, Bp), jnp.float32),
        grid_spec=pltpu.PrefetchScalarGridSpec(
            num_scalar_prefetch=0,
            grid=(Bp // TB,),
            in_specs=[
                pl.BlockSpec((TB, 2 * D), lambda i: (i, 0)),   # batch tile
                pl.BlockSpec((2 * D, 2 * D), const2),          # weights: resident
                pl.BlockSpec((2, D, D), const3),
                pl.BlockSpec((D, 2 * D), const2),
                pl.BlockSpec((2 * L, D, FF), const3),
                pl.BlockSpec((2 * L, FF, D), const3),
                pl.BlockSpec((_N_VEC_D, D), const2),
                pl.BlockSpec((_N_VEC_FF, FF), const2),
            ],
            out_specs=pl.BlockSpec((1, TB), lambda i: (0, i)),
        ),
        compiler_params=pltpu.CompilerParams(
            dimension_semantics=("parallel",),                 # megacore / v7x 2-TC
            vmem_limit_bytes=vmem_limit,
        ),
        cost_estimate=cost,
    )(uv, w_l0, w_att, w_ca, w_ff1, w_ff2, vec_d, vec_ff)
    return out[0, :B]   # matches PyTorch .squeeze(-1) -> shape (B,)


def init_params(key):
    """Deterministic synthetic parameters (shapes follow nn.Transformer*Layer)."""
    keys = iter(jax.random.split(key, 32))

    def w(shape, scale=0.08):
        return scale * jax.random.normal(next(keys), shape, dtype=jnp.float32)

    ones = lambda shape: jnp.ones(shape, jnp.float32)
    zeros = lambda shape: jnp.zeros(shape, jnp.float32)

    enc = [
        w((L, D, D)), w((L, 1, D), 0.02), w((L, D, D)), w((L, 1, D), 0.02),
        w((L, D, FF)), w((L, 1, FF), 0.02), w((L, FF, D)), w((L, 1, D), 0.02),
        ones((L, 1, D)), zeros((L, 1, D)), ones((L, 1, D)), zeros((L, 1, D)),
    ]
    dec = [
        w((L, D, D)), w((L, 1, D), 0.02), w((L, D, D)), w((L, 1, D), 0.02),
        w((L, D, D)), w((L, 1, D), 0.02), w((L, D, D)), w((L, 1, D), 0.02),
        w((L, D, FF)), w((L, 1, FF), 0.02), w((L, FF, D)), w((L, 1, D), 0.02),
        ones((L, 1, D)), zeros((L, 1, D)), ones((L, 1, D)), zeros((L, 1, D)),
        ones((L, 1, D)), zeros((L, 1, D)),
    ]
    fc = [w((D, 1)), w((1, 1), 0.02)]
    return tuple(enc + dec + fc)


def reference(user_vec, article_vec, p):
    """Pure-JAX reference of the same (seq_len==1) forward pass, UNFUSED params,
    two-pass LayerNorm (independent numeric path)."""
    (e_wv, e_bv, e_wo, e_bo, e_w1, e_b1, e_w2, e_b2, e_g1, e_be1, e_g2, e_be2,
     d_wv_sa, d_bv_sa, d_wo_sa, d_bo_sa,
     d_wv_ca, d_bv_ca, d_wo_ca, d_bo_ca,
     d_w1, d_b1, d_w2, d_b2,
     d_g1, d_be1, d_g2, d_be2, d_g3, d_be3, fc_w, fc_b) = p

    attn = lambda kv, wv, bv, wo, bo: (kv @ wv + bv) @ wo + bo
    ffn = lambda x, w1, b1, w2, b2: jnp.maximum(x @ w1 + b1, 0.0) @ w2 + b2

    x = user_vec
    for l in range(L):
        x = _layernorm_2pass(x + attn(x, e_wv[l], e_bv[l], e_wo[l], e_bo[l]),
                             e_g1[l], e_be1[l])
        x = _layernorm_2pass(x + ffn(x, e_w1[l], e_b1[l], e_w2[l], e_b2[l]),
                             e_g2[l], e_be2[l])
    mem = x
    y = article_vec
    for l in range(L):
        y = _layernorm_2pass(y + attn(y, d_wv_sa[l], d_bv_sa[l], d_wo_sa[l], d_bo_sa[l]),
                             d_g1[l], d_be1[l])
        y = _layernorm_2pass(y + attn(mem, d_wv_ca[l], d_bv_ca[l], d_wo_ca[l], d_bo_ca[l]),
                             d_g2[l], d_be2[l])
        y = _layernorm_2pass(y + ffn(y, d_w1[l], d_b1[l], d_w2[l], d_b2[l]),
                             d_g3[l], d_be3[l])
    return jax.nn.sigmoid((y @ fc_w + fc_b)[:, 0])


if __name__ == "__main__":
    key = jax.random.PRNGKey(0)
    k_u, k_a, k_p = jax.random.split(key, 3)
    params = init_params(k_p)
    packed = pack_params(params)

    # --- small-batch path: single 128-row lane-dense tile ---
    B = 8
    user_vec = jax.random.normal(k_u, (B, D), dtype=jnp.float32)
    article_vec = jax.random.normal(k_a, (B, D), dtype=jnp.float32)
    out = jax.block_until_ready(transformer_recommender(user_vec, article_vec, packed))
    ref = reference(user_vec, article_vec, params)
    assert out.shape == (B,)
    assert bool(jnp.all(jnp.isfinite(out)))
    err = float(jnp.max(jnp.abs(out - ref)))
    assert err < 1e-3, f"small-batch mismatch vs reference: {err}"

    # --- multi-tile path: >=2 grid steps (megacore) + padded tail ---
    B2 = 200
    k_u2, k_a2 = jax.random.split(jax.random.PRNGKey(1), 2)
    user2 = jax.random.normal(k_u2, (B2, D), dtype=jnp.float32)
    article2 = jax.random.normal(k_a2, (B2, D), dtype=jnp.float32)
    out2 = jax.block_until_ready(transformer_recommender(user2, article2, packed))
    ref2 = reference(user2, article2, params)
    assert out2.shape == (B2,)
    assert bool(jnp.all(jnp.isfinite(out2)))
    err2 = float(jnp.max(jnp.abs(out2 - ref2)))
    assert err2 < 1e-3, f"multi-tile mismatch vs reference: {err2}"

    print("KERNEL_OK")
</pallas_src>

<mosaic_0001>
module attributes {stable_mosaic.version = 11 : i64} {
  func.func @recommender_kernel(%arg0: i32, %arg1: memref<128x128xf32, #tpu.memory_space<vmem>>, %arg2: memref<128x128xf32, #tpu.memory_space<vmem>>, %arg3: memref<2x64x64xf32, #tpu.memory_space<vmem>>, %arg4: memref<64x128xf32, #tpu.memory_space<vmem>>, %arg5: memref<4x64x128xf32, #tpu.memory_space<vmem>>, %arg6: memref<4x128x64xf32, #tpu.memory_space<vmem>>, %arg7: memref<30x64xf32, #tpu.memory_space<vmem>>, %arg8: memref<5x128xf32, #tpu.memory_space<vmem>>, %arg9: memref<1x128xf32, #tpu.memory_space<vmem>>) attributes {dimension_semantics = [#tpu.dimension_semantics<parallel>], iteration_bounds = array<i64: 1>, scalar_prefetch = 0 : i64, scratch_operands = 0 : i64, tpu.core_type = #tpu.core_type<tc>, window_params = [{transform_indices = @transform_0, window_bounds = array<i64: 128, 128>}, {pipeline_mode = #tpu.pipeline_mode<synchronous>, transform_indices = @transform_1, window_bounds = array<i64: 128, 128>}, {pipeline_mode = #tpu.pipeline_mode<synchronous>, transform_indices = @transform_2, window_bounds = array<i64: 2, 64, 64>}, {pipeline_mode = #tpu.pipeline_mode<synchronous>, transform_indices = @transform_3, window_bounds = array<i64: 64, 128>}, {pipeline_mode = #tpu.pipeline_mode<synchronous>, transform_indices = @transform_4, window_bounds = array<i64: 4, 64, 128>}, {pipeline_mode = #tpu.pipeline_mode<synchronous>, transform_indices = @transform_5, window_bounds = array<i64: 4, 128, 64>}, {pipeline_mode = #tpu.pipeline_mode<synchronous>, transform_indices = @transform_6, window_bounds = array<i64: 30, 64>}, {pipeline_mode = #tpu.pipeline_mode<synchronous>, transform_indices = @transform_7, window_bounds = array<i64: 5, 128>}, {transform_indices = @transform_8, window_bounds = array<i64: 1, 128>}]} {
    %c0 = arith.constant 0 : index
    %c0_0 = arith.constant 0 : index
    %0 = vector.load %arg1[%c0, %c0_0] : memref<128x128xf32, #tpu.memory_space<vmem>>, vector<128x128xf32>
    %1 = vector.extract_strided_slice %0 {offsets = [0, 0], sizes = [128, 64], strides = [1, 1]} : vector<128x128xf32> to vector<128x64xf32>
    %2 = vector.extract_strided_slice %0 {offsets = [0, 64], sizes = [128, 64], strides = [1, 1]} : vector<128x128xf32> to vector<128x64xf32>
    %c0_1 = arith.constant 0 : index
    %c0_2 = arith.constant 0 : index
    %3 = vector.load %arg2[%c0_1, %c0_2] : memref<128x128xf32, #tpu.memory_space<vmem>>, vector<128x128xf32>
    %cst = arith.constant dense<0.000000e+00> : vector<128x128xf32>
    %4 = tpu.matmul %0, %3, %cst {dimension_numbers = #tpu.dot_dimension_numbers<[1], [0], [0], [1], [0, 0, 1, 1], [], []>} : vector<128x128xf32>, vector<128x128xf32>, vector<128x128xf32> -> vector<128x128xf32>
    %5 = vector.extract_strided_slice %4 {offsets = [0, 0], sizes = [128, 64], strides = [1, 1]} : vector<128x128xf32> to vector<128x64xf32>
    %6 = arith.addf %1, %5 : vector<128x64xf32>
    %c0_3 = arith.constant 0 : index
    %c0_4 = arith.constant 0 : index
    %7 = vector.load %arg7[%c0_3, %c0_4] : memref<30x64xf32, #tpu.memory_space<vmem>>, vector<1x64xf32>
    %8 = vector.broadcast %7 : vector<1x64xf32> to vector<128x64xf32>
    %9 = arith.addf %6, %8 : vector<128x64xf32>
    %c1 = arith.constant 1 : index
    %c0_5 = arith.constant 0 : index
    %10 = vector.load %arg7[%c1, %c0_5] : memref<30x64xf32, #tpu.memory_space<vmem>>, vector<1x64xf32>
    %c2 = arith.constant 2 : index
    %c0_6 = arith.constant 0 : index
    %11 = vector.load %arg7[%c2, %c0_6] : memref<30x64xf32, #tpu.memory_space<vmem>>, vector<1x64xf32>
    %cst_7 = arith.constant dense<0.000000e+00> : vector<128xf32>
    %12 = vector.multi_reduction <add>, %9, %cst_7 [1] : vector<128x64xf32> to vector<128xf32>
    %13 = vector.shape_cast %12 : vector<128xf32> to vector<128x1xf32>
    %14 = arith.mulf %9, %9 : vector<128x64xf32>
    %cst_8 = arith.constant dense<0.000000e+00> : vector<128xf32>
    %15 = vector.multi_reduction <add>, %14, %cst_8 [1] : vector<128x64xf32> to vector<128xf32>
    %16 = vector.shape_cast %15 : vector<128xf32> to vector<128x1xf32>
    %cst_9 = arith.constant 1.562500e-02 : f32
    %17 = vector.broadcast %cst_9 : f32 to vector<128x1xf32>
    %18 = arith.mulf %13, %17 : vector<128x1xf32>
    %cst_10 = arith.constant 1.562500e-02 : f32
    %19 = vector.broadcast %cst_10 : f32 to vector<128x1xf32>
    %20 = arith.mulf %16, %19 : vector<128x1xf32>
    %21 = arith.mulf %18, %18 : vector<128x1xf32>
    %22 = arith.subf %20, %21 : vector<128x1xf32>
    %23 = vector.broadcast %18 : vector<128x1xf32> to vector<128x64xf32>
    %24 = arith.subf %9, %23 : vector<128x64xf32>
    %cst_11 = arith.constant 9.99999974E-6 : f32
    %25 = vector.broadcast %cst_11 : f32 to vector<128x1xf32>
    %26 = arith.addf %22, %25 : vector<128x1xf32>
    %27 = math.rsqrt %26 : vector<128x1xf32>
    %28 = vector.broadcast %27 : vector<128x1xf32> to vector<128x64xf32>
    %29 = arith.mulf %24, %28 : vector<128x64xf32>
    %30 = vector.broadcast %10 : vector<1x64xf32> to vector<128x64xf32>
    %31 = arith.mulf %29, %30 : vector<128x64xf32>
    %32 = vector.broadcast %11 : vector<1x64xf32> to vector<128x64xf32>
    %33 = arith.addf %31, %32 : vector<128x64xf32>
    %c0_12 = arith.constant 0 : index
    %c0_13 = arith.constant 0 : index
    %34 = vector.load %arg8[%c0_12, %c0_13] : memref<5x128xf32, #tpu.memory_space<vmem>>, vector<1x128xf32>
    %c3 = arith.constant 3 : index
    %c0_14 = arith.constant 0 : index
    %35 = vector.load %arg7[%c3, %c0_14] : memref<30x64xf32, #tpu.memory_space<vmem>>, vector<1x64xf32>
    %c0_15 = arith.constant 0 : index
    %c0_16 = arith.constant 0 : index
    %c0_17 = arith.constant 0 : index
    %36 = vector.load %arg5[%c0_15, %c0_16, %c0_17] : memref<4x64x128xf32, #tpu.memory_space<vmem>>, vector<1x64x128xf32>
    %37 = vector.shape_cast %36 : vector<1x64x128xf32> to vector<64x128xf32>
    %cst_18 = arith.constant dense<0.000000e+00> : vector<128x128xf32>
    %38 = tpu.matmul %33, %37, %cst_18 {dimension_numbers = #tpu.dot_dimension_numbers<[1], [0], [0], [1], [0, 0, 1, 1], [], []>} : vector<128x64xf32>, vector<64x128xf32>, vector<128x128xf32> -> vector<128x128xf32>
    %39 = vector.broadcast %34 : vector<1x128xf32> to vector<128x128xf32>
    %40 = arith.addf %38, %39 : vector<128x128xf32>
    %cst_19 = arith.constant 0.000000e+00 : f32
    %41 = vector.broadcast %cst_19 : f32 to vector<128x128xf32>
    %42 = arith.maximumf %40, %41 : vector<128x128xf32>
    %c0_20 = arith.constant 0 : index
    %c0_21 = arith.constant 0 : index
    %c0_22 = arith.constant 0 : index
    %43 = vector.load %arg6[%c0_20, %c0_21, %c0_22] : memref<4x128x64xf32, #tpu.memory_space<vmem>>, vector<1x128x64xf32>
    %44 = vector.shape_cast %43 : vector<1x128x64xf32> to vector<128x64xf32>
    %cst_23 = arith.constant dense<0.000000e+00> : vector<128x64xf32>
    %45 = tpu.matmul %42, %44, %cst_23 {dimension_numbers = #tpu.dot_dimension_numbers<[1], [0], [0], [1], [0, 0, 1, 1], [], []>} : vector<128x128xf32>, vector<128x64xf32>, vector<128x64xf32> -> vector<128x64xf32>
    %46 = vector.broadcast %35 : vector<1x64xf32> to vector<128x64xf32>
    %47 = arith.addf %45, %46 : vector<128x64xf32>
    %48 = arith.addf %33, %47 : vector<128x64xf32>
    %c4 = arith.constant 4 : index
    %c0_24 = arith.constant 0 : index
    %49 = vector.load %arg7[%c4, %c0_24] : memref<30x64xf32, #tpu.memory_space<vmem>>, vector<1x64xf32>
    %c5 = arith.constant 5 : index
    %c0_25 = arith.constant 0 : index
    %50 = vector.load %arg7[%c5, %c0_25] : memref<30x64xf32, #tpu.memory_space<vmem>>, vector<1x64xf32>
    %cst_26 = arith.constant dense<0.000000e+00> : vector<128xf32>
    %51 = vector.multi_reduction <add>, %48, %cst_26 [1] : vector<128x64xf32> to vector<128xf32>
    %52 = vector.shape_cast %51 : vector<128xf32> to vector<128x1xf32>
    %53 = arith.mulf %48, %48 : vector<128x64xf32>
    %cst_27 = arith.constant dense<0.000000e+00> : vector<128xf32>
    %54 = vector.multi_reduction <add>, %53, %cst_27 [1] : vector<128x64xf32> to vector<128xf32>
    %55 = vector.shape_cast %54 : vector<128xf32> to vector<128x1xf32>
    %cst_28 = arith.constant 1.562500e-02 : f32
    %56 = vector.broadcast %cst_28 : f32 to vector<128x1xf32>
    %57 = arith.mulf %52, %56 : vector<128x1xf32>
    %cst_29 = arith.constant 1.562500e-02 : f32
    %58 = vector.broadcast %cst_29 : f32 to vector<128x1xf32>
    %59 = arith.mulf %55, %58 : vector<128x1xf32>
    %60 = arith.mulf %57, %57 : vector<128x1xf32>
    %61 = arith.subf %59, %60 : vector<128x1xf32>
    %62 = vector.broadcast %57 : vector<128x1xf32> to vector<128x64xf32>
    %63 = arith.subf %48, %62 : vector<128x64xf32>
    %cst_30 = arith.constant 9.99999974E-6 : f32
    %64 = vector.broadcast %cst_30 : f32 to vector<128x1xf32>
    %65 = arith.addf %61, %64 : vector<128x1xf32>
    %66 = math.rsqrt %65 : vector<128x1xf32>
    %67 = vector.broadcast %66 : vector<128x1xf32> to vector<128x64xf32>
    %68 = arith.mulf %63, %67 : vector<128x64xf32>
    %69 = vector.broadcast %49 : vector<1x64xf32> to vector<128x64xf32>
    %70 = arith.mulf %68, %69 : vector<128x64xf32>
    %71 = vector.broadcast %50 : vector<1x64xf32> to vector<128x64xf32>
    %72 = arith.addf %70, %71 : vector<128x64xf32>
    %c6 = arith.constant 6 : index
    %c0_31 = arith.constant 0 : index
    %73 = vector.load %arg7[%c6, %c0_31] : memref<30x64xf32, #tpu.memory_space<vmem>>, vector<1x64xf32>
    %c0_32 = arith.constant 0 : index
    %c0_33 = arith.constant 0 : index
    %c0_34 = arith.constant 0 : index
    %74 = vector.load %arg3[%c0_32, %c0_33, %c0_34] : memref<2x64x64xf32, #tpu.memory_space<vmem>>, vector<1x64x64xf32>
    %75 = vector.shape_cast %74 : vector<1x64x64xf32> to vector<64x64xf32>
    %cst_35 = arith.constant dense<0.000000e+00> : vector<128x64xf32>
    %76 = tpu.matmul %72, %75, %cst_35 {dimension_numbers = #tpu.dot_dimension_numbers<[1], [0], [0], [1], [0, 0, 1, 1], [], []>} : vector<128x64xf32>, vector<64x64xf32>, vector<128x64xf32> -> vector<128x64xf32>
    %77 = vector.broadcast %73 : vector<1x64xf32> to vector<128x64xf32>
    %78 = arith.addf %76, %77 : vector<128x64xf32>
    %79 = arith.addf %72, %78 : vector<128x64xf32>
    %c7 = arith.constant 7 : index
    %c0_36 = arith.constant 0 : index
    %80 = vector.load %arg7[%c7, %c0_36] : memref<30x64xf32, #tpu.memory_space<vmem>>, vector<1x64xf32>
    %c8 = arith.constant 8 : index
    %c0_37 = arith.constant 0 : index
    %81 = vector.load %arg7[%c8, %c0_37] : memref<30x64xf32, #tpu.memory_space<vmem>>, vector<1x64xf32>
    %cst_38 = arith.constant dense<0.000000e+00> : vector<128xf32>
    %82 = vector.multi_reduction <add>, %79, %cst_38 [1] : vector<128x64xf32> to vector<128xf32>
    %83 = vector.shape_cast %82 : vector<128xf32> to vector<128x1xf32>
    %84 = arith.mulf %79, %79 : vector<128x64xf32>
    %cst_39 = arith.constant dense<0.000000e+00> : vector<128xf32>
    %85 = vector.multi_reduction <add>, %84, %cst_39 [1] : vector<128x64xf32> to vector<128xf32>
    %86 = vector.shape_cast %85 : vector<128xf32> to vector<128x1xf32>
    %cst_40 = arith.constant 1.562500e-02 : f32
    %87 = vector.broadcast %cst_40 : f32 to vector<128x1xf32>
    %88 = arith.mulf %83, %87 : vector<128x1xf32>
    %cst_41 = arith.constant 1.562500e-02 : f32
    %89 = vector.broadcast %cst_41 : f32 to vector<128x1xf32>
    %90 = arith.mulf %86, %89 : vector<128x1xf32>
    %91 = arith.mulf %88, %88 : vector<128x1xf32>
    %92 = arith.subf %90, %91 : vector<128x1xf32>
    %93 = vector.broadcast %88 : vector<128x1xf32> to vector<128x64xf32>
    %94 = arith.subf %79, %93 : vector<128x64xf32>
    %cst_42 = arith.constant 9.99999974E-6 : f32
    %95 = vector.broadcast %cst_42 : f32 to vector<128x1xf32>
    %96 = arith.addf %92, %95 : vector<128x1xf32>
    %97 = math.rsqrt %96 : vector<128x1xf32>
    %98 = vector.broadcast %97 : vector<128x1xf32> to vector<128x64xf32>
    %99 = arith.mulf %94, %98 : vector<128x64xf32>
    %100 = vector.broadcast %80 : vector<1x64xf32> to vector<128x64xf32>
    %101 = arith.mulf %99, %100 : vector<128x64xf32>
    %102 = vector.broadcast %81 : vector<1x64xf32> to vector<128x64xf32>
    %103 = arith.addf %101, %102 : vector<128x64xf32>
    %c1_43 = arith.constant 1 : index
    %c0_44 = arith.constant 0 : index
    %104 = vector.load %arg8[%c1_43, %c0_44] : memref<5x128xf32, #tpu.memory_space<vmem>>, vector<1x128xf32>
    %c9 = arith.constant 9 : index
    %c0_45 = arith.constant 0 : index
    %105 = vector.load %arg7[%c9, %c0_45] : memref<30x64xf32, #tpu.memory_space<vmem>>, vector<1x64xf32>
    %c1_46 = arith.constant 1 : index
    %c0_47 = arith.constant 0 : index
    %c0_48 = arith.constant 0 : index
    %106 = vector.load %arg5[%c1_46, %c0_47, %c0_48] : memref<4x64x128xf32, #tpu.memory_space<vmem>>, vector<1x64x128xf32>
    %107 = vector.shape_cast %106 : vector<1x64x128xf32> to vector<64x128xf32>
    %cst_49 = arith.constant dense<0.000000e+00> : vector<128x128xf32>
    %108 = tpu.matmul %103, %107, %cst_49 {dimension_numbers = #tpu.dot_dimension_numbers<[1], [0], [0], [1], [0, 0, 1, 1], [], []>} : vector<128x64xf32>, vector<64x128xf32>, vector<128x128xf32> -> vector<128x128xf32>
    %109 = vector.broadcast %104 : vector<1x128xf32> to vector<128x128xf32>
    %110 = arith.addf %108, %109 : vector<128x128xf32>
    %cst_50 = arith.constant 0.000000e+00 : f32
    %111 = vector.broadcast %cst_50 : f32 to vector<128x128xf32>
    %112 = arith.maximumf %110, %111 : vector<128x128xf32>
    %c1_51 = arith.constant 1 : index
    %c0_52 = arith.constant 0 : index
    %c0_53 = arith.constant 0 : index
    %113 = vector.load %arg6[%c1_51, %c0_52, %c0_53] : memref<4x128x64xf32, #tpu.memory_space<vmem>>, vector<1x128x64xf32>
    %114 = vector.shape_cast %113 : vector<1x128x64xf32> to vector<128x64xf32>
    %cst_54 = arith.constant dense<0.000000e+00> : vector<128x64xf32>
    %115 = tpu.matmul %112, %114, %cst_54 {dimension_numbers = #tpu.dot_dimension_numbers<[1], [0], [0], [1], [0, 0, 1, 1], [], []>} : vector<128x128xf32>, vector<128x64xf32>, vector<128x64xf32> -> vector<128x64xf32>
    %116 = vector.broadcast %105 : vector<1x64xf32> to vector<128x64xf32>
    %117 = arith.addf %115, %116 : vector<128x64xf32>
    %118 = arith.addf %103, %117 : vector<128x64xf32>
    %c10 = arith.constant 10 : index
    %c0_55 = arith.constant 0 : index
    %119 = vector.load %arg7[%c10, %c0_55] : memref<30x64xf32, #tpu.memory_space<vmem>>, vector<1x64xf32>
    %c11 = arith.constant 11 : index
    %c0_56 = arith.constant 0 : index
    %120 = vector.load %arg7[%c11, %c0_56] : memref<30x64xf32, #tpu.memory_space<vmem>>, vector<1x64xf32>
    %cst_57 = arith.constant dense<0.000000e+00> : vector<128xf32>
    %121 = vector.multi_reduction <add>, %118, %cst_57 [1] : vector<128x64xf32> to vector<128xf32>
    %122 = vector.shape_cast %121 : vector<128xf32> to vector<128x1xf32>
    %123 = arith.mulf %118, %118 : vector<128x64xf32>
    %cst_58 = arith.constant dense<0.000000e+00> : vector<128xf32>
    %124 = vector.multi_reduction <add>, %123, %cst_58 [1] : vector<128x64xf32> to vector<128xf32>
    %125 = vector.shape_cast %124 : vector<128xf32> to vector<128x1xf32>
    %cst_59 = arith.constant 1.562500e-02 : f32
    %126 = vector.broadcast %cst_59 : f32 to vector<128x1xf32>
    %127 = arith.mulf %122, %126 : vector<128x1xf32>
    %cst_60 = arith.constant 1.562500e-02 : f32
    %128 = vector.broadcast %cst_60 : f32 to vector<128x1xf32>
    %129 = arith.mulf %125, %128 : vector<128x1xf32>
    %130 = arith.mulf %127, %127 : vector<128x1xf32>
    %131 = arith.subf %129, %130 : vector<128x1xf32>
    %132 = vector.broadcast %127 : vector<128x1xf32> to vector<128x64xf32>
    %133 = arith.subf %118, %132 : vector<128x64xf32>
    %cst_61 = arith.constant 9.99999974E-6 : f32
    %134 = vector.broadcast %cst_61 : f32 to vector<128x1xf32>
    %135 = arith.addf %131, %134 : vector<128x1xf32>
    %136 = math.rsqrt %135 : vector<128x1xf32>
    %137 = vector.broadcast %136 : vector<128x1xf32> to vector<128x64xf32>
    %138 = arith.mulf %133, %137 : vector<128x64xf32>
    %139 = vector.broadcast %119 : vector<1x64xf32> to vector<128x64xf32>
    %140 = arith.mulf %138, %139 : vector<128x64xf32>
    %141 = vector.broadcast %120 : vector<1x64xf32> to vector<128x64xf32>
    %142 = arith.addf %140, %141 : vector<128x64xf32>
    %c0_62 = arith.constant 0 : index
    %c0_63 = arith.constant 0 : index
    %143 = vector.load %arg4[%c0_62, %c0_63] : memref<64x128xf32, #tpu.memory_space<vmem>>, vector<64x128xf32>
    %cst_64 = arith.constant dense<0.000000e+00> : vector<128x128xf32>
    %144 = tpu.matmul %142, %143, %cst_64 {dimension_numbers = #tpu.dot_dimension_numbers<[1], [0], [0], [1], [0, 0, 1, 1], [], []>} : vector<128x64xf32>, vector<64x128xf32>, vector<128x128xf32> -> vector<128x128xf32>
    %c4_65 = arith.constant 4 : index
    %c0_66 = arith.constant 0 : index
    %145 = vector.load %arg8[%c4_65, %c0_66] : memref<5x128xf32, #tpu.memory_space<vmem>>, vector<1x128xf32>
    %146 = vector.broadcast %145 : vector<1x128xf32> to vector<128x128xf32>
    %147 = arith.addf %144, %146 : vector<128x128xf32>
    %148 = vector.extract_strided_slice %4 {offsets = [0, 64], sizes = [128, 64], strides = [1, 1]} : vector<128x128xf32> to vector<128x64xf32>
    %149 = arith.addf %2, %148 : vector<128x64xf32>
    %c12 = arith.constant 12 : index
    %c0_67 = arith.constant 0 : index
    %150 = vector.load %arg7[%c12, %c0_67] : memref<30x64xf32, #tpu.memory_space<vmem>>, vector<1x64xf32>
    %151 = vector.broadcast %150 : vector<1x64xf32> to vector<128x64xf32>
    %152 = arith.addf %149, %151 : vector<128x64xf32>
    %c13 = arith.constant 13 : index
    %c0_68 = arith.constant 0 : index
    %153 = vector.load %arg7[%c13, %c0_68] : memref<30x64xf32, #tpu.memory_space<vmem>>, vector<1x64xf32>
    %c14 = arith.constant 14 : index
    %c0_69 = arith.constant 0 : index
    %154 = vector.load %arg7[%c14, %c0_69] : memref<30x64xf32, #tpu.memory_space<vmem>>, vector<1x64xf32>
    %cst_70 = arith.constant dense<0.000000e+00> : vector<128xf32>
    %155 = vector.multi_reduction <add>, %152, %cst_70 [1] : vector<128x64xf32> to vector<128xf32>
    %156 = vector.shape_cast %155 : vector<128xf32> to vector<128x1xf32>
    %157 = arith.mulf %152, %152 : vector<128x64xf32>
    %cst_71 = arith.constant dense<0.000000e+00> : vector<128xf32>
    %158 = vector.multi_reduction <add>, %157, %cst_71 [1] : vector<128x64xf32> to vector<128xf32>
    %159 = vector.shape_cast %158 : vector<128xf32> to vector<128x1xf32>
    %cst_72 = arith.constant 1.562500e-02 : f32
    %160 = vector.broadcast %cst_72 : f32 to vector<128x1xf32>
    %161 = arith.mulf %156, %160 : vector<128x1xf32>
    %cst_73 = arith.constant 1.562500e-02 : f32
    %162 = vector.broadcast %cst_73 : f32 to vector<128x1xf32>
    %163 = arith.mulf %159, %162 : vector<128x1xf32>
    %164 = arith.mulf %161, %161 : vector<128x1xf32>
    %165 = arith.subf %163, %164 : vector<128x1xf32>
    %166 = vector.broadcast %161 : vector<128x1xf32> to vector<128x64xf32>
    %167 = arith.subf %152, %166 : vector<128x64xf32>
    %cst_74 = arith.constant 9.99999974E-6 : f32
    %168 = vector.broadcast %cst_74 : f32 to vector<128x1xf32>
    %169 = arith.addf %165, %168 : vector<128x1xf32>
    %170 = math.rsqrt %169 : vector<128x1xf32>
    %171 = vector.broadcast %170 : vector<128x1xf32> to vector<128x64xf32>
    %172 = arith.mulf %167, %171 : vector<128x64xf32>
    %173 = vector.broadcast %153 : vector<1x64xf32> to vector<128x64xf32>
    %174 = arith.mulf %172, %173 : vector<128x64xf32>
    %175 = vector.broadcast %154 : vector<1x64xf32> to vector<128x64xf32>
    %176 = arith.addf %174, %175 : vector<128x64xf32>
    %177 = vector.extract_strided_slice %147 {offsets = [0, 0], sizes = [128, 64], strides = [1, 1]} : vector<128x128xf32> to vector<128x64xf32>
    %178 = arith.addf %176, %177 : vector<128x64xf32>
    %c15 = arith.constant 15 : index
    %c0_75 = arith.constant 0 : index
    %179 = vector.load %arg7[%c15, %c0_75] : memref<30x64xf32, #tpu.memory_space<vmem>>, vector<1x64xf32>
    %c16 = arith.constant 16 : index
    %c0_76 = arith.constant 0 : index
    %180 = vector.load %arg7[%c16, %c0_76] : memref<30x64xf32, #tpu.memory_space<vmem>>, vector<1x64xf32>
    %cst_77 = arith.constant dense<0.000000e+00> : vector<128xf32>
    %181 = vector.multi_reduction <add>, %178, %cst_77 [1] : vector<128x64xf32> to vector<128xf32>
    %182 = vector.shape_cast %181 : vector<128xf32> to vector<128x1xf32>
    %183 = arith.mulf %178, %178 : vector<128x64xf32>
    %cst_78 = arith.constant dense<0.000000e+00> : vector<128xf32>
    %184 = vector.multi_reduction <add>, %183, %cst_78 [1] : vector<128x64xf32> to vector<128xf32>
    %185 = vector.shape_cast %184 : vector<128xf32> to vector<128x1xf32>
    %cst_79 = arith.constant 1.562500e-02 : f32
    %186 = vector.broadcast %cst_79 : f32 to vector<128x1xf32>
    %187 = arith.mulf %182, %186 : vector<128x1xf32>
    %cst_80 = arith.constant 1.562500e-02 : f32
    %188 = vector.broadcast %cst_80 : f32 to vector<128x1xf32>
    %189 = arith.mulf %185, %188 : vector<128x1xf32>
    %190 = arith.mulf %187, %187 : vector<128x1xf32>
    %191 = arith.subf %189, %190 : vector<128x1xf32>
    %192 = vector.broadcast %187 : vector<128x1xf32> to vector<128x64xf32>
    %193 = arith.subf %178, %192 : vector<128x64xf32>
    %cst_81 = arith.constant 9.99999974E-6 : f32
    %194 = vector.broadcast %cst_81 : f32 to vector<128x1xf32>
    %195 = arith.addf %191, %194 : vector<128x1xf32>
    %196 = math.rsqrt %195 : vector<128x1xf32>
    %197 = vector.broadcast %196 : vector<128x1xf32> to vector<128x64xf32>
    %198 = arith.mulf %193, %197 : vector<128x64xf32>
    %199 = vector.broadcast %179 : vector<1x64xf32> to vector<128x64xf32>
    %200 = arith.mulf %198, %199 : vector<128x64xf32>
    %201 = vector.broadcast %180 : vector<1x64xf32> to vector<128x64xf32>
    %202 = arith.addf %200, %201 : vector<128x64xf32>
    %c2_82 = arith.constant 2 : index
    %c0_83 = arith.constant 0 : index
    %203 = vector.load %arg8[%c2_82, %c0_83] : memref<5x128xf32, #tpu.memory_space<vmem>>, vector<1x128xf32>
    %c17 = arith.constant 17 : index
    %c0_84 = arith.constant 0 : index
    %204 = vector.load %arg7[%c17, %c0_84] : memref<30x64xf32, #tpu.memory_space<vmem>>, vector<1x64xf32>
    %c2_85 = arith.constant 2 : index
    %c0_86 = arith.constant 0 : index
    %c0_87 = arith.constant 0 : index
    %205 = vector.load %arg5[%c2_85, %c0_86, %c0_87] : memref<4x64x128xf32, #tpu.memory_space<vmem>>, vector<1x64x128xf32>
    %206 = vector.shape_cast %205 : vector<1x64x128xf32> to vector<64x128xf32>
    %cst_88 = arith.constant dense<0.000000e+00> : vector<128x128xf32>
    %207 = tpu.matmul %202, %206, %cst_88 {dimension_numbers = #tpu.dot_dimension_numbers<[1], [0], [0], [1], [0, 0, 1, 1], [], []>} : vector<128x64xf32>, vector<64x128xf32>, vector<128x128xf32> -> vector<128x128xf32>
    %208 = vector.broadcast %203 : vector<1x128xf32> to vector<128x128xf32>
    %209 = arith.addf %207, %208 : vector<128x128xf32>
    %cst_89 = arith.constant 0.000000e+00 : f32
    %210 = vector.broadcast %cst_89 : f32 to vector<128x128xf32>
    %211 = arith.maximumf %209, %210 : vector<128x128xf32>
    %c2_90 = arith.constant 2 : index
    %c0_91 = arith.constant 0 : index
    %c0_92 = arith.constant 0 : index
    %212 = vector.load %arg6[%c2_90, %c0_91, %c0_92] : memref<4x128x64xf32, #tpu.memory_space<vmem>>, vector<1x128x64xf32>
    %213 = vector.shape_cast %212 : vector<1x128x64xf32> to vector<128x64xf32>
    %cst_93 = arith.constant dense<0.000000e+00> : vector<128x64xf32>
    %214 = tpu.matmul %211, %213, %cst_93 {dimension_numbers = #tpu.dot_dimension_numbers<[1], [0], [0], [1], [0, 0, 1, 1], [], []>} : vector<128x128xf32>, vector<128x64xf32>, vector<128x64xf32> -> vector<128x64xf32>
    %215 = vector.broadcast %204 : vector<1x64xf32> to vector<128x64xf32>
    %216 = arith.addf %214, %215 : vector<128x64xf32>
    %217 = arith.addf %202, %216 : vector<128x64xf32>
    %c18 = arith.constant 18 : index
    %c0_94 = arith.constant 0 : index
    %218 = vector.load %arg7[%c18, %c0_94] : memref<30x64xf32, #tpu.memory_space<vmem>>, vector<1x64xf32>
    %c19 = arith.constant 19 : index
    %c0_95 = arith.constant 0 : index
    %219 = vector.load %arg7[%c19, %c0_95] : memref<30x64xf32, #tpu.memory_space<vmem>>, vector<1x64xf32>
    %cst_96 = arith.constant dense<0.000000e+00> : vector<128xf32>
    %220 = vector.multi_reduction <add>, %217, %cst_96 [1] : vector<128x64xf32> to vector<128xf32>
    %221 = vector.shape_cast %220 : vector<128xf32> to vector<128x1xf32>
    %222 = arith.mulf %217, %217 : vector<128x64xf32>
    %cst_97 = arith.constant dense<0.000000e+00> : vector<128xf32>
    %223 = vector.multi_reduction <add>, %222, %cst_97 [1] : vector<128x64xf32> to vector<128xf32>
    %224 = vector.shape_cast %223 : vector<128xf32> to vector<128x1xf32>
    %cst_98 = arith.constant 1.562500e-02 : f32
    %225 = vector.broadcast %cst_98 : f32 to vector<128x1xf32>
    %226 = arith.mulf %221, %225 : vector<128x1xf32>
    %cst_99 = arith.constant 1.562500e-02 : f32
    %227 = vector.broadcast %cst_99 : f32 to vector<128x1xf32>
    %228 = arith.mulf %224, %227 : vector<128x1xf32>
    %229 = arith.mulf %226, %226 : vector<128x1xf32>
    %230 = arith.subf %228, %229 : vector<128x1xf32>
    %231 = vector.broadcast %226 : vector<128x1xf32> to vector<128x64xf32>
    %232 = arith.subf %217, %231 : vector<128x64xf32>
    %cst_100 = arith.constant 9.99999974E-6 : f32
    %233 = vector.broadcast %cst_100 : f32 to vector<128x1xf32>
    %234 = arith.addf %230, %233 : vector<128x1xf32>
    %235 = math.rsqrt %234 : vector<128x1xf32>
    %236 = vector.broadcast %235 : vector<128x1xf32> to vector<128x64xf32>
    %237 = arith.mulf %232, %236 : vector<128x64xf32>
    %238 = vector.broadcast %218 : vector<1x64xf32> to vector<128x64xf32>
    %239 = arith.mulf %237, %238 : vector<128x64xf32>
    %240 = vector.broadcast %219 : vector<1x64xf32> to vector<128x64xf32>
    %241 = arith.addf %239, %240 : vector<128x64xf32>
    %c20 = arith.constant 20 : index
    %c0_101 = arith.constant 0 : index
    %242 = vector.load %arg7[%c20, %c0_101] : memref<30x64xf32, #tpu.memory_space<vmem>>, vector<1x64xf32>
    %c1_102 = arith.constant 1 : index
    %c0_103 = arith.constant 0 : index
    %c0_104 = arith.constant 0 : index
    %243 = vector.load %arg3[%c1_102, %c0_103, %c0_104] : memref<2x64x64xf32, #tpu.memory_space<vmem>>, vector<1x64x64xf32>
    %244 = vector.shape_cast %243 : vector<1x64x64xf32> to vector<64x64xf32>
    %cst_105 = arith.constant dense<0.000000e+00> : vector<128x64xf32>
    %245 = tpu.matmul %241, %244, %cst_105 {dimension_numbers = #tpu.dot_dimension_numbers<[1], [0], [0], [1], [0, 0, 1, 1], [], []>} : vector<128x64xf32>, vector<64x64xf32>, vector<128x64xf32> -> vector<128x64xf32>
    %246 = vector.broadcast %242 : vector<1x64xf32> to vector<128x64xf32>
    %247 = arith.addf %245, %246 : vector<128x64xf32>
    %248 = arith.addf %241, %247 : vector<128x64xf32>
    %c21 = arith.constant 21 : index
    %c0_106 = arith.constant 0 : index
    %249 = vector.load %arg7[%c21, %c0_106] : memref<30x64xf32, #tpu.memory_space<vmem>>, vector<1x64xf32>
    %c22 = arith.constant 22 : index
    %c0_107 = arith.constant 0 : index
    %250 = vector.load %arg7[%c22, %c0_107] : memref<30x64xf32, #tpu.memory_space<vmem>>, vector<1x64xf32>
    %cst_108 = arith.constant dense<0.000000e+00> : vector<128xf32>
    %251 = vector.multi_reduction <add>, %248, %cst_108 [1] : vector<128x64xf32> to vector<128xf32>
    %252 = vector.shape_cast %251 : vector<128xf32> to vector<128x1xf32>
    %253 = arith.mulf %248, %248 : vector<128x64xf32>
    %cst_109 = arith.constant dense<0.000000e+00> : vector<128xf32>
    %254 = vector.multi_reduction <add>, %253, %cst_109 [1] : vector<128x64xf32> to vector<128xf32>
    %255 = vector.shape_cast %254 : vector<128xf32> to vector<128x1xf32>
    %cst_110 = arith.constant 1.562500e-02 : f32
    %256 = vector.broadcast %cst_110 : f32 to vector<128x1xf32>
    %257 = arith.mulf %252, %256 : vector<128x1xf32>
    %cst_111 = arith.constant 1.562500e-02 : f32
    %258 = vector.broadcast %cst_111 : f32 to vector<128x1xf32>
    %259 = arith.mulf %255, %258 : vector<128x1xf32>
    %260 = arith.mulf %257, %257 : vector<128x1xf32>
    %261 = arith.subf %259, %260 : vector<128x1xf32>
    %262 = vector.broadcast %257 : vector<128x1xf32> to vector<128x64xf32>
    %263 = arith.subf %248, %262 : vector<128x64xf32>
    %cst_112 = arith.constant 9.99999974E-6 : f32
    %264 = vector.broadcast %cst_112 : f32 to vector<128x1xf32>
    %265 = arith.addf %261, %264 : vector<128x1xf32>
    %266 = math.rsqrt %265 : vector<128x1xf32>
    %267 = vector.broadcast %266 : vector<128x1xf32> to vector<128x64xf32>
    %268 = arith.mulf %263, %267 : vector<128x64xf32>
    %269 = vector.broadcast %249 : vector<1x64xf32> to vector<128x64xf32>
    %270 = arith.mulf %268, %269 : vector<128x64xf32>
    %271 = vector.broadcast %250 : vector<1x64xf32> to vector<128x64xf32>
    %272 = arith.addf %270, %271 : vector<128x64xf32>
    %273 = vector.extract_strided_slice %147 {offsets = [0, 64], sizes = [128, 64], strides = [1, 1]} : vector<128x128xf32> to vector<128x64xf32>
    %274 = arith.addf %272, %273 : vector<128x64xf32>
    %c23 = arith.constant 23 : index
    %c0_113 = arith.constant 0 : index
    %275 = vector.load %arg7[%c23, %c0_113] : memref<30x64xf32, #tpu.memory_space<vmem>>, vector<1x64xf32>
    %c24 = arith.constant 24 : index
    %c0_114 = arith.constant 0 : index
    %276 = vector.load %arg7[%c24, %c0_114] : memref<30x64xf32, #tpu.memory_space<vmem>>, vector<1x64xf32>
    %cst_115 = arith.constant dense<0.000000e+00> : vector<128xf32>
    %277 = vector.multi_reduction <add>, %274, %cst_115 [1] : vector<128x64xf32> to vector<128xf32>
    %278 = vector.shape_cast %277 : vector<128xf32> to vector<128x1xf32>
    %279 = arith.mulf %274, %274 : vector<128x64xf32>
    %cst_116 = arith.constant dense<0.000000e+00> : vector<128xf32>
    %280 = vector.multi_reduction <add>, %279, %cst_116 [1] : vector<128x64xf32> to vector<128xf32>
    %281 = vector.shape_cast %280 : vector<128xf32> to vector<128x1xf32>
    %cst_117 = arith.constant 1.562500e-02 : f32
    %282 = vector.broadcast %cst_117 : f32 to vector<128x1xf32>
    %283 = arith.mulf %278, %282 : vector<128x1xf32>
    %cst_118 = arith.constant 1.562500e-02 : f32
    %284 = vector.broadcast %cst_118 : f32 to vector<128x1xf32>
    %285 = arith.mulf %281, %284 : vector<128x1xf32>
    %286 = arith.mulf %283, %283 : vector<128x1xf32>
    %287 = arith.subf %285, %286 : vector<128x1xf32>
    %288 = vector.broadcast %283 : vector<128x1xf32> to vector<128x64xf32>
    %289 = arith.subf %274, %288 : vector<128x64xf32>
    %cst_119 = arith.constant 9.99999974E-6 : f32
    %290 = vector.broadcast %cst_119 : f32 to vector<128x1xf32>
    %291 = arith.addf %287, %290 : vector<128x1xf32>
    %292 = math.rsqrt %291 : vector<128x1xf32>
    %293 = vector.broadcast %292 : vector<128x1xf32> to vector<128x64xf32>
    %294 = arith.mulf %289, %293 : vector<128x64xf32>
    %295 = vector.broadcast %275 : vector<1x64xf32> to vector<128x64xf32>
    %296 = arith.mulf %294, %295 : vector<128x64xf32>
    %297 = vector.broadcast %276 : vector<1x64xf32> to vector<128x64xf32>
    %298 = arith.addf %296, %297 : vector<128x64xf32>
    %c3_120 = arith.constant 3 : index
    %c0_121 = arith.constant 0 : index
    %299 = vector.load %arg8[%c3_120, %c0_121] : memref<5x128xf32, #tpu.memory_space<vmem>>, vector<1x128xf32>
    %c25 = arith.constant 25 : index
    %c0_122 = arith.constant 0 : index
    %300 = vector.load %arg7[%c25, %c0_122] : memref<30x64xf32, #tpu.memory_space<vmem>>, vector<1x64xf32>
    %c3_123 = arith.constant 3 : index
    %c0_124 = arith.constant 0 : index
    %c0_125 = arith.constant 0 : index
    %301 = vector.load %arg5[%c3_123, %c0_124, %c0_125] : memref<4x64x128xf32, #tpu.memory_space<vmem>>, vector<1x64x128xf32>
    %302 = vector.shape_cast %301 : vector<1x64x128xf32> to vector<64x128xf32>
    %cst_126 = arith.constant dense<0.000000e+00> : vector<128x128xf32>
    %303 = tpu.matmul %298, %302, %cst_126 {dimension_numbers = #tpu.dot_dimension_numbers<[1], [0], [0], [1], [0, 0, 1, 1], [], []>} : vector<128x64xf32>, vector<64x128xf32>, vector<128x128xf32> -> vector<128x128xf32>
    %304 = vector.broadcast %299 : vector<1x128xf32> to vector<128x128xf32>
    %305 = arith.addf %303, %304 : vector<128x128xf32>
    %cst_127 = arith.constant 0.000000e+00 : f32
    %306 = vector.broadcast %cst_127 : f32 to vector<128x128xf32>
    %307 = arith.maximumf %305, %306 : vector<128x128xf32>
    %c3_128 = arith.constant 3 : index
    %c0_129 = arith.constant 0 : index
    %c0_130 = arith.constant 0 : index
    %308 = vector.load %arg6[%c3_128, %c0_129, %c0_130] : memref<4x128x64xf32, #tpu.memory_space<vmem>>, vector<1x128x64xf32>
    %309 = vector.shape_cast %308 : vector<1x128x64xf32> to vector<128x64xf32>
    %cst_131 = arith.constant dense<0.000000e+00> : vector<128x64xf32>
    %310 = tpu.matmul %307, %309, %cst_131 {dimension_numbers = #tpu.dot_dimension_numbers<[1], [0], [0], [1], [0, 0, 1, 1], [], []>} : vector<128x128xf32>, vector<128x64xf32>, vector<128x64xf32> -> vector<128x64xf32>
    %311 = vector.broadcast %300 : vector<1x64xf32> to vector<128x64xf32>
    %312 = arith.addf %310, %311 : vector<128x64xf32>
    %313 = arith.addf %298, %312 : vector<128x64xf32>
    %c26 = arith.constant 26 : index
    %c0_132 = arith.constant 0 : index
    %314 = vector.load %arg7[%c26, %c0_132] : memref<30x64xf32, #tpu.memory_space<vmem>>, vector<1x64xf32>
    %c27 = arith.constant 27 : index
    %c0_133 = arith.constant 0 : index
    %315 = vector.load %arg7[%c27, %c0_133] : memref<30x64xf32, #tpu.memory_space<vmem>>, vector<1x64xf32>
    %cst_134 = arith.constant dense<0.000000e+00> : vector<128xf32>
    %316 = vector.multi_reduction <add>, %313, %cst_134 [1] : vector<128x64xf32> to vector<128xf32>
    %317 = vector.shape_cast %316 : vector<128xf32> to vector<128x1xf32>
    %318 = arith.mulf %313, %313 : vector<128x64xf32>
    %cst_135 = arith.constant dense<0.000000e+00> : vector<128xf32>
    %319 = vector.multi_reduction <add>, %318, %cst_135 [1] : vector<128x64xf32> to vector<128xf32>
    %320 = vector.shape_cast %319 : vector<128xf32> to vector<128x1xf32>
    %cst_136 = arith.constant 1.562500e-02 : f32
    %321 = vector.broadcast %cst_136 : f32 to vector<128x1xf32>
    %322 = arith.mulf %317, %321 : vector<128x1xf32>
    %cst_137 = arith.constant 1.562500e-02 : f32
    %323 = vector.broadcast %cst_137 : f32 to vector<128x1xf32>
    %324 = arith.mulf %320, %323 : vector<128x1xf32>
    %325 = arith.mulf %322, %322 : vector<128x1xf32>
    %326 = arith.subf %324, %325 : vector<128x1xf32>
    %327 = vector.broadcast %322 : vector<128x1xf32> to vector<128x64xf32>
    %328 = arith.subf %313, %327 : vector<128x64xf32>
    %cst_138 = arith.constant 9.99999974E-6 : f32
    %329 = vector.broadcast %cst_138 : f32 to vector<128x1xf32>
    %330 = arith.addf %326, %329 : vector<128x1xf32>
    %331 = math.rsqrt %330 : vector<128x1xf32>
    %332 = vector.broadcast %331 : vector<128x1xf32> to vector<128x64xf32>
    %333 = arith.mulf %328, %332 : vector<128x64xf32>
    %334 = vector.broadcast %314 : vector<1x64xf32> to vector<128x64xf32>
    %335 = arith.mulf %333, %334 : vector<128x64xf32>
    %336 = vector.broadcast %315 : vector<1x64xf32> to vector<128x64xf32>
    %337 = arith.addf %335, %336 : vector<128x64xf32>
    %c28 = arith.constant 28 : index
    %c0_139 = arith.constant 0 : index
    %338 = vector.load %arg7[%c28, %c0_139] : memref<30x64xf32, #tpu.memory_space<vmem>>, vector<1x64xf32>
    %339 = vector.shape_cast %338 : vector<1x64xf32> to vector<1x64xf32>
    %340 = vector.broadcast %339 : vector<1x64xf32> to vector<8x64xf32>
    %c29 = arith.constant 29 : index
    %c0_140 = arith.constant 0 : index
    %341 = vector.load %arg7[%c29, %c0_140] : memref<30x64xf32, #tpu.memory_space<vmem>>, vector<1x64xf32>
    %342 = vector.extract_strided_slice %341 {offsets = [0, 0], sizes = [1, 1], strides = [1, 1]} : vector<1x64xf32> to vector<1x1xf32>
    %cst_141 = arith.constant dense<0.000000e+00> : vector<8x128xf32>
    %343 = tpu.matmul %340, %337, %cst_141 {dimension_numbers = #tpu.dot_dimension_numbers<[1], [1], [0], [0], [0, 0, 1, 0], [], []>} : vector<8x64xf32>, vector<128x64xf32>, vector<8x128xf32> -> vector<8x128xf32>
    %344 = vector.extract_strided_slice %343 {offsets = [0, 0], sizes = [1, 128], strides = [1, 1]} : vector<8x128xf32> to vector<1x128xf32>
    %345 = vector.broadcast %342 : vector<1x1xf32> to vector<1x128xf32>
    %346 = arith.addf %344, %345 : vector<1x128xf32>
    %347 = arith.negf %346 : vector<1x128xf32>
    %348 = math.exp %347 : vector<1x128xf32>
    %cst_142 = arith.constant 1.000000e+00 : f32
    %349 = vector.broadcast %cst_142 : f32 to vector<1x128xf32>
    %350 = arith.addf %349, %348 : vector<1x128xf32>
    %351 = arith.divf %349, %350 : vector<1x128xf32>
    %c0_143 = arith.constant 0 : index
    %c0_144 = arith.constant 0 : index
    %352 = vector.load %arg9[%c0_143, %c0_144] : memref<1x128xf32, #tpu.memory_space<vmem>>, vector<1x128xf32>
    tpu.vector_store %arg9[%c0_143, %c0_144], %351 {strides = array<i32>} : memref<1x128xf32, #tpu.memory_space<vmem>>, vector<1x128xf32>,
    return
  }
  func.func @transform_0(%arg0: i32) -> (i32, i32) {
    %c0_i32 = arith.constant 0 : i32
    %c0_i32_0 = arith.constant 0 : i32
    return %arg0, %c0_i32 : i32, i32
  }
  func.func @transform_1(%arg0: i32) -> (i32, i32) {
    %c0_i32 = arith.constant 0 : i32
    %c0_i32_0 = arith.constant 0 : i32
    %c0_i32_1 = arith.constant 0 : i32
    return %c0_i32, %c0_i32_0 : i32, i32
  }
  func.func @transform_2(%arg0: i32) -> (i32, i32, i32) {
    %c0_i32 = arith.constant 0 : i32
    %c0_i32_0 = arith.constant 0 : i32
    %c0_i32_1 = arith.constant 0 : i32
    %c0_i32_2 = arith.constant 0 : i32
    return %c0_i32, %c0_i32_0, %c0_i32_1 : i32, i32, i32
  }
  func.func @transform_3(%arg0: i32) -> (i32, i32) {
    %c0_i32 = arith.constant 0 : i32
    %c0_i32_0 = arith.constant 0 : i32
    %c0_i32_1 = arith.constant 0 : i32
    return %c0_i32, %c0_i32_0 : i32, i32
  }
  func.func @transform_4(%arg0: i32) -> (i32, i32, i32) {
    %c0_i32 = arith.constant 0 : i32
    %c0_i32_0 = arith.constant 0 : i32
    %c0_i32_1 = arith.constant 0 : i32
    %c0_i32_2 = arith.constant 0 : i32
    return %c0_i32, %c0_i32_0, %c0_i32_1 : i32, i32, i32
  }
  func.func @transform_5(%arg0: i32) -> (i32, i32, i32) {
    %c0_i32 = arith.constant 0 : i32
    %c0_i32_0 = arith.constant 0 : i32
    %c0_i32_1 = arith.constant 0 : i32
    %c0_i32_2 = arith.constant 0 : i32
    return %c0_i32, %c0_i32_0, %c0_i32_1 : i32, i32, i32
  }
  func.func @transform_6(%arg0: i32) -> (i32, i32) {
    %c0_i32 = arith.constant 0 : i32
    %c0_i32_0 = arith.constant 0 : i32
    %c0_i32_1 = arith.constant 0 : i32
    return %c0_i32, %c0_i32_0 : i32, i32
  }
  func.func @transform_7(%arg0: i32) -> (i32, i32) {
    %c0_i32 = arith.constant 0 : i32
    %c0_i32_0 = arith.constant 0 : i32
    %c0_i32_1 = arith.constant 0 : i32
    return %c0_i32, %c0_i32_0 : i32, i32
  }
  func.func @transform_8(%arg0: i32) -> (i32, i32) {
    %c0_i32 = arith.constant 0 : i32
    %c0_i32_0 = arith.constant 0 : i32
    return %c0_i32, %arg0 : i32, i32
  }
}

</mosaic_0001>

<bundles_post_ra>
// kernel: tpu_custom_call.1
= control target key start
LH: loop header
LB: loop body
LE: loop exit
PB: predicated region body
PF: predicated region fallthrough
CT: control target
= control target key end

     0   :  { %s12659_s0 = inlined_call_operand.vmem [shape: f32[128,128], index: 0, kind: input, shape index: {}]   ;;  %s12660_s1 = inlined_call_operand.vmem [shape: f32[128,128], index: 1, kind: input, shape index: {}]   ;;  %s12661_s2 = inlined_call_operand.vmem [shape: f32[2,64,64], index: 2, kind: input, shape index: {}]   ;;  %s12662_s3 = inlined_call_operand.vmem [shape: f32[64,128], index: 3, kind: input, shape index: {}]   ;;  %s12663_s4 = inlined_call_operand.vmem [shape: f32[4,64,128], index: 4, kind: input, shape index: {}]   ;;  %s12664_s5 = inlined_call_operand.vmem [shape: f32[4,128,64], index: 5, kind: input, shape index: {}]   ;;  %s12665_s6 = inlined_call_operand.vmem [shape: f32[30,64], index: 6, kind: input, shape index: {}]   ;;  %s12666_s7 = inlined_call_operand.vmem [shape: f32[5,128], index: 7, kind: input, shape index: {}]   ;;  %s12667_s8 = inlined_call_operand.hbm [shape: f32[1,128], index: 8, kind: output, shape index: {}]  }
   0x1   :  { %v46_v0 = vld [vmem:[%s12660_s1] sm:$0xff]  ;;  %v47_v1 = vld [vmem:[%s12660_s1 + $0x8] sm:$0xff]  ;;  %v48_v2 = vld [vmem:[%s12660_s1 + $0x10] sm:$0xff] }
   0x2   :  { %v7933_v3 = vpack.c.bf16 %v47_v1, %v46_v0  ;;  %v49_v4 = vld [vmem:[%s12660_s1 + $0x18] sm:$0xff]  ;;  %v50_v6 = vld [vmem:[%s12660_s1 + $0x20] sm:$0xff]  ;;  %v51_v7 = vld [vmem:[%s12660_s1 + $0x28] sm:$0xff] }
   0x3   :  { %v7937_v5 = vpack.c.bf16 %v49_v4, %v48_v2  ;;  %v7941_v8 = vpack.c.bf16 %v51_v7, %v50_v6  ;;  %v8721_v9 = vld [vmem:[%s12659_s0] sm:$0xff]  ;;  %v52_v10 = vld [vmem:[%s12660_s1 + $0x30] sm:$0xff]  ;;  %v53_v11 = vld [vmem:[%s12660_s1 + $0x38] sm:$0xff] }
   0x4   :  { %7934 = vmatprep.subr.bf16.mxu0 %v7933_v3  ;;  %7370 = vmatprep.mubr.f32.mxu0 %v8721_v9  ;;  %v7945_v12 = vpack.c.bf16 %v53_v11, %v52_v10  ;;  %v54_v13 = vld [vmem:[%s12660_s1 + $0x40] sm:$0xff]  ;;  %v55_v14 = vld [vmem:[%s12660_s1 + $0x48] sm:$0xff] }
   0x5   :  { %7936 = vmatpush3.bf16.msra.mxu0 %v7933_v3 }
   0x6   :  { %7938 = vmatprep.subr.bf16.mxu0 %v7937_v5 }
   0x9   :  { %7940 = vmatpush3.bf16.msra.mxu0 %v7937_v5 }
   0xa   :  { %7942 = vmatprep.subr.bf16.mxu0 %v7941_v8 }
   0xb   :  { %13 = vsyncpa [#allocation3], 0  ;;  %v7949_v15 = vpack.c.bf16 %v55_v14, %v54_v13  ;;  %v56_v16 = vld [vmem:[%s12660_s1 + $0x50] sm:$0xff]  ;;  %v57_v17 = vld [vmem:[%s12660_s1 + $0x58] sm:$0xff]  ;;  %vm246_vm0 = vcmask 523264   ;;  %s8649_s9 = smov 64  }
   0xc   :  { %v7953_v18 = vpack.c.bf16 %v57_v17, %v56_v16  ;;  %v58_v19 = vld [vmem:[%s12660_s1 + $0x60] sm:$0xff]  ;;  %v59_v20 = vld [vmem:[%s12660_s1 + $0x68] sm:$0xff]  ;;  %v60_v22 = vld [vmem:[%s12660_s1 + $0x70] sm:$0xff]  ;;  %vm8651_vm1 = vmmov 0   ;;  %s8654_s14 = smov [#allocation2]  }
   0xd   :  { %7944 = vmatpush3.bf16.msra.mxu0 %v7941_v8  ;;  %v7957_v21 = vpack.c.bf16 %v59_v20, %v58_v19  ;;  %v61_v23 = vld [vmem:[%s12660_s1 + $0x78] sm:$0xff]  ;;  %v31_v25 = vld [vmem:[%s12659_s0 + $0x8] sm:$0xff]  ;;  %v32_v26 = vld [vmem:[%s12659_s0 + $0x10] sm:$0xff]  ;;  %s6741_s15 = sshll.u32 %s8654_s14, 4  ;;  %s6742_s15 = int_to_ptr.vmem [resolvable:$true] %s6741_s15 }
   0xe   :  { %7946 = vmatprep.subr.bf16.mxu0 %v7945_v12  ;;  %v7961_v24 = vpack.c.bf16 %v61_v23, %v60_v22  ;;  %v33_v27 = vld [vmem:[%s12659_s0 + $0x18] sm:$0xff]  ;;  %v34_v28 = vld [vmem:[%s12659_s0 + $0x20] sm:$0xff]  ;;  %v35_v29 = vld [vmem:[%s12659_s0 + $0x28] sm:$0xff]  ;;  %s8625_s16 = scalar_lea.vmem %s6742_s15, 16  ;;  %s8629_s17 = scalar_lea.vmem %s6742_s15, 32 }
   0xf   :  { %v8772_v30 = vld [vmem:[%s12659_s0 + $0x30] sm:$0xff]  ;;  %v8778_v31 = vld [vmem:[%s12659_s0 + $0x38] sm:$0xff]  ;;  %v8783_v32 = vld [vmem:[%s12659_s0 + $0x40] sm:$0xff]  ;;  %p8626_p0 = scmp.ne.s32.totalorder %s6742_s15, %s8625_s16  ;;  %p8630_p1 = scmp.lt.s32.totalorder %s6742_s15, %s6742_s15 }
  0x10   :  { %v8790_v33 = vld [vmem:[%s12659_s0 + $0x48] sm:$0xff]  ;;  %v8795_v34 = vld [vmem:[%s12659_s0 + $0x50] sm:$0xff]  ;;  %v8802_v35 = vld [vmem:[%s12659_s0 + $0x58] sm:$0xff]  ;;  %p8631_p2 = scmp.lt.s32.totalorder %s8629_s17, %s8625_s16 }
  0x11   :  { %7948 = vmatpush3.bf16.msra.mxu0 %v7945_v12  ;;  %v8807_v36 = vld [vmem:[%s12659_s0 + $0x60] sm:$0xff]  ;;  %v8814_v37 = vld [vmem:[%s12659_s0 + $0x68] sm:$0xff]  ;;  %v8819_v38 = vld [vmem:[%s12659_s0 + $0x70] sm:$0xff] }
  0x12   :  { %7950 = vmatprep.subr.bf16.mxu0 %v7949_v15  ;;  %v8826_v39 = vld [vmem:[%s12659_s0 + $0x78] sm:$0xff]  ;;  %v8834_v42 = vld [vmem:[%s12665_s6] ss:$0 sm:$0xff]  ;;  %vm12616_vm2 = vmpackc.low %vm246_vm0, %vm246_vm0  ;;  %p8632_p3 = por %p8631_p2, %p8630_p1 }
  0x14   :  { %p8633_p4 = pnand %p8632_p3, %p8626_p0 }
  0x15   :  { %7952 = vmatpush3.bf16.msra.mxu0 %v7949_v15 }
  0x16   :  { %7954 = vmatprep.subr.bf16.mxu0 %v7953_v18 }
  0x19   :  { %7956 = vmatpush3.bf16.msra.mxu0 %v7953_v18 }
  0x1a   :  { %7958 = vmatprep.subr.bf16.mxu0 %v7957_v21 }
  0x1d   :  { %7960 = vmatpush3.bf16.msra.mxu0 %v7957_v21 }
  0x1e   :  { %7962 = vmatprep.subr.bf16.mxu0 %v7961_v24 }
  0x21   :  { %7964 = vmatpush3.bf16.msra.mxu0 %v7961_v24 }
  0x24   :  { %7371 = vmatmul.mubr.f32.vlgmr.msra.gmra.mrb[0].mxu0 %v31_v25 }
  0x25   :  { %7373 = vmatprep.mubr.f32.mxu0 %v32_v26 }
  0x28   :  { %7374 = vmatmul.mubr.f32.gmra.mrb[2].mxu0 %v33_v27 }
  0x29   :  { %7376 = vmatprep.mubr.f32.mxu0 %v34_v28 }
  0x2c   :  { %7377 = vmatmul.mubr.f32.gmra.mrb[4].mxu0 %v35_v29 }
  0x2d   :  { %7379 = vmatprep.mubr.f32.mxu0 %v8772_v30 }
  0x30   :  { %7380 = vmatmul.mubr.f32.gmra.mrb[6].mxu0 %v8778_v31 }
  0x31   :  { %7382 = vmatprep.mubr.f32.mxu0 %v8783_v32 }
  0x34   :  { %7383 = vmatmul.mubr.f32.gmra.mrb[8].mxu0 %v8790_v33 }
  0x35   :  { %7385 = vmatprep.mubr.f32.mxu0 %v8795_v34 }
  0x38   :  { %7386 = vmatmul.mubr.f32.gmra.mrb[10].mxu0 %v8802_v35 }
  0x39   :  { %7388 = vmatprep.mubr.f32.mxu0 %v8807_v36 }
  0x3c   :  { %7389 = vmatmul.mubr.f32.gmra.mrb[12].mxu0 %v8814_v37 }
  0x3d   :  { %7391 = vmatprep.mubr.f32.mxu0 %v8819_v38 }
  0x40   :  { %7392 = vmatmul.mubr.f32.gmra.mrb[14].mxu0 %v8826_v39 }
  0xf7   :  { %v7372_v40 = vpop.f32.mrb[0].mxu0 }
  0xf8   :  { %v8829_v41 = vadd.f32 %v7372_v40, %v31_v25  ;;  %v128_v43 = vpop.f32.mrb[1].mxu0 }
  0xf9   :  { %v8837_v44 = vadd.f32 %v128_v43, %v8721_v9 }
  0xfa   :  { %v8841_v45 = vadd.f32 %v8834_v42, %v8829_v41 }
  0xfb   :  { %v8845_v46 = vadd.f32 %v8834_v42, %v8837_v44  ;;  %v7375_v47 = vpop.f32.mrb[2].mxu0 }
  0xfc   :  { %v138_v48 = vpop.f32.mrb[3].mxu0  ;;  %v8853_v52 = vadd.f32 %v7375_v47, %v33_v27  ;;  %v296_v55 = vmul.f32 %v8841_v45, %v8841_v45  ;;  %v250_v58 = vsel %vm246_vm0, %v8841_v45, 0.0 }
  0xfd   :  { %v247_v49 = vsel %vm246_vm0, %v8845_v46, 0.0  ;;  %v295_v50 = vmul.f32 %v8845_v46, %v8845_v46  ;;  %v8851_v51 = vadd.f32 %v138_v48, %v32_v26 }
  0xfe   :  { %248 = vadd.xlane.f32.xlu0 %v247_v49  ;;  %v8866_v59 = vadd.f32 %v8834_v42, %v8853_v52  ;;  %v314_v60 = vsel %vm246_vm0, %v296_v55, 0.0 }
  0xff   :  { %v311_v53 = vsel %vm246_vm0, %v295_v50, 0.0  ;;  %v8858_v54 = vadd.f32 %v8834_v42, %v8851_v51  ;;  %v7378_v56 = vpop.f32.mrb[4].mxu0  ;;  %v531_v50 = vld [vmem:[%s12663_s4 + $0x10] sm:$0xff] }
 0x100   :  { %312 = vadd.xlane.f32.xlu1 %v311_v53  ;;  %v148_v57 = vpop.f32.mrb[5].mxu0  ;;  %v8875_v2 = vadd.f32 %v7378_v56, %v35_v29  ;;  %v256_v3 = vsel %vm246_vm0, %v8866_v59, 0.0  ;;  %v298_v5 = vmul.f32 %v8866_v59, %v8866_v59  ;;  %v532_v53 = vld [vmem:[%s12663_s4 + $0x18] sm:$0xff] }
 0x101   :  { %v253_v61 = vsel %vm246_vm0, %v8858_v54, 0.0  ;;  %v8871_v62 = vadd.f32 %v148_v57, %v34_v28  ;;  %v297_v1 = vmul.f32 %v8858_v54, %v8858_v54 }
 0x102   :  { %251 = vadd.xlane.f32.xlu0 %v250_v58  ;;  %v8888_v9 = vadd.f32 %v8834_v42, %v8875_v2  ;;  %v320_v10 = vsel %vm246_vm0, %v298_v5, 0.0  ;;  %v7969_v58 = vpack.c.bf16 %v532_v53, %v531_v50 }
 0x103   :  { %v7381_v63 = vpop.f32.mrb[6].mxu0  ;;  %v8881_v4 = vadd.f32 %v8834_v42, %v8871_v62  ;;  %v317_v8 = vsel %vm246_vm0, %v297_v1, 0.0  ;;  %v533_v1 = vld [vmem:[%s12663_s4 + $0x20] sm:$0xff] }
 0x104   :  { %315 = vadd.xlane.f32.xlu1 %v314_v60  ;;  %v158_v0 = vpop.f32.mrb[7].mxu0  ;;  %v8899_v16 = vadd.f32 %v7381_v63, %v8778_v31  ;;  %v262_v17 = vsel %vm246_vm0, %v8888_v9, 0.0  ;;  %v300_v19 = vmul.f32 %v8888_v9, %v8888_v9  ;;  %v529_v31 = vld [vmem:[%s12663_s4] sm:$0xff] }
 0x105   :  { %v259_v11 = vsel %vm246_vm0, %v8881_v4, 0.0  ;;  %v8894_v12 = vadd.f32 %v158_v0, %v8772_v30  ;;  %v299_v15 = vmul.f32 %v8881_v4, %v8881_v4 }
 0x106   :  { %254 = vadd.xlane.f32.xlu0 %v253_v61  ;;  %v8912_v23 = vadd.f32 %v8834_v42, %v8899_v16  ;;  %v326_v24 = vsel %vm246_vm0, %v300_v19, 0.0 }
 0x107   :  { %v7384_v6 = vpop.f32.mrb[8].mxu0  ;;  %v8905_v18 = vadd.f32 %v8834_v42, %v8894_v12  ;;  %v323_v22 = vsel %vm246_vm0, %v299_v15, 0.0 }
 0x108   :  { %257 = vadd.xlane.f32.xlu1 %v256_v3  ;;  %v168_v7 = vpop.f32.mrb[9].mxu0  ;;  %v8925_v30 = vadd.f32 %v7384_v6, %v8790_v33  ;;  %v268_v40 = vsel %vm246_vm0, %v8912_v23, 0.0  ;;  %v302_v47 = vmul.f32 %v8912_v23, %v8912_v23  ;;  %v534_v3 = vld [vmem:[%s12663_s4 + $0x28] sm:$0xff] }
 0x109   :  { %v265_v25 = vsel %vm246_vm0, %v8905_v18, 0.0  ;;  %v8918_v26 = vadd.f32 %v168_v7, %v8783_v32  ;;  %v301_v29 = vmul.f32 %v8905_v18, %v8905_v18  ;;  %v530_v32 = vld [vmem:[%s12663_s4 + $0x8] sm:$0xff] }
 0x10a   :  { %318 = vadd.xlane.f32.xlu0 %v317_v8  ;;  %v7965_v33 = vpack.c.bf16 %v530_v32, %v529_v31  ;;  %v8944_v49 = vadd.f32 %v8834_v42, %v8925_v30  ;;  %v332_v55 = vsel %vm246_vm0, %v302_v47, 0.0 }
 0x10b   :  { %v7387_v13 = vpop.f32.mrb[10].mxu0  ;;  %v8937_v43 = vadd.f32 %v8834_v42, %v8918_v26  ;;  %v329_v48 = vsel %vm246_vm0, %v301_v29, 0.0 }
 0x10c   :  { %321 = vadd.xlane.f32.xlu1 %v320_v10  ;;  %v178_v14 = vpop.f32.mrb[11].mxu0  ;;  %7966 = vmatprep.subr.bf16.mxu1 %v7965_v33  ;;  %v8961_v61 = vadd.f32 %v7387_v13, %v8802_v35  ;;  %v274_v63 = vsel %vm246_vm0, %v8944_v49, 0.0  ;;  %v7973_v35 = vpack.c.bf16 %v534_v3, %v533_v1  ;;  %v536_v13 = vld [vmem:[%s12663_s4 + $0x38] sm:$0xff]  ;;  %v754_v1 = vld [vmem:[%s12664_s5 + $0x20] sm:$0xff]  ;;  %v755_v3 = vld [vmem:[%s12664_s5 + $0x28] sm:$0xff] }
 0x10d   :  { %7968 = vmatpush3.bf16.msra.mxu1 %v7965_v33  ;;  %v271_v56 = vsel %vm246_vm0, %v8937_v43, 0.0  ;;  %v8956_v57 = vadd.f32 %v178_v14, %v8795_v34  ;;  %v303_v60 = vmul.f32 %v8937_v43, %v8937_v43  ;;  %v304_v34 = vmul.f32 %v8944_v49, %v8944_v49 }
 0x10e   :  { %260 = vadd.xlane.f32.xlu0 %v259_v11  ;;  %7970 = vmatprep.subr.bf16.mxu1 %v7969_v58  ;;  %v8980_v6 = vadd.f32 %v8834_v42, %v8961_v61  ;;  %v535_v11 = vld [vmem:[%s12663_s4 + $0x30] sm:$0xff] }
 0x10f   :  { %v7390_v20 = vpop.f32.mrb[12].mxu0  ;;  %v8967_v0 = vadd.f32 %v8834_v42, %v8956_v57  ;;  %v335_v5 = vsel %vm246_vm0, %v303_v60, 0.0  ;;  %v338_v7 = vsel %vm246_vm0, %v304_v34, 0.0  ;;  %v7977_v14 = vpack.c.bf16 %v536_v13, %v535_v11  ;;  %v758_v11 = vld [vmem:[%s12664_s5 + $0x40] sm:$0xff]  ;;  %v759_v13 = vld [vmem:[%s12664_s5 + $0x48] sm:$0xff] }
 0x110   :  { %263 = vadd.xlane.f32.xlu1 %v262_v17  ;;  %v188_v21 = vpop.f32.mrb[13].mxu0  ;;  %v8997_v17 = vadd.f32 %v7390_v20, %v8814_v37 }
 0x111   :  { %7972 = vmatpush3.bf16.msra.mxu1 %v7969_v58  ;;  %v277_v8 = vsel %vm246_vm0, %v8967_v0, 0.0  ;;  %v8986_v10 = vadd.f32 %v188_v21, %v8807_v36  ;;  %v305_v15 = vmul.f32 %v8967_v0, %v8967_v0  ;;  %v280_v36 = vsel %vm246_vm0, %v8980_v6, 0.0  ;;  %v752_v58 = vld [vmem:[%s12664_s5 + $0x10] sm:$0xff] }
 0x112   :  { %324 = vadd.xlane.f32.xlu0 %v323_v22  ;;  %7974 = vmatprep.subr.bf16.mxu1 %v7973_v35  ;;  %v306_v21 = vmul.f32 %v8980_v6, %v8980_v6 }
 0x113   :  { %v8920_v27 = vpop.f32.mrb[14].mxu0  ;;  %v9003_v19 = vadd.f32 %v8834_v42, %v8986_v10  ;;  %v341_v22 = vsel %vm246_vm0, %v305_v15, 0.0  ;;  %v760_v15 = vld [vmem:[%s12664_s5 + $0x50] sm:$0xff] }
 0x114   :  { %327 = vadd.xlane.f32.xlu1 %v326_v24  ;;  %v198_v28 = vpop.f32.mrb[15].mxu0  ;;  %v9010_v24 = vadd.f32 %v8834_v42, %v8997_v17  ;;  %v344_v37 = vsel %vm246_vm0, %v306_v21, 0.0  ;;  %v9022_v31 = vadd.f32 %v8920_v27, %v8826_v39 }
 0x115   :  { %7976 = vmatpush3.bf16.msra.mxu1 %v7973_v35  ;;  %v283_v20 = vsel %vm246_vm0, %v9003_v19, 0.0  ;;  %v307_v29 = vmul.f32 %v9003_v19, %v9003_v19  ;;  %v9074_v35 = vpack.c.bf16 %v755_v3, %v754_v1 }
 0x116   :  { %266 = vadd.xlane.f32.xlu0 %v265_v25  ;;  %7978 = vmatprep.subr.bf16.mxu1 %v7977_v14  ;;  %v9016_v25 = vadd.f32 %v198_v28, %v8819_v38  ;;  %v286_v32 = vsel %vm246_vm0, %v9010_v24, 0.0  ;;  %v308_v38 = vmul.f32 %v9010_v24, %v9010_v24  ;;  %v9035_v47 = vadd.f32 %v8834_v42, %v9022_v31 }
 0x117   :  { %v347_v28 = vsel %vm246_vm0, %v307_v29, 0.0 }
 0x118   :  { %269 = vadd.xlane.f32.xlu1 %v268_v40  ;;  %v9028_v40 = vadd.f32 %v8834_v42, %v9016_v25  ;;  %v350_v39 = vsel %vm246_vm0, %v308_v38, 0.0  ;;  %v310_v50 = vmul.f32 %v9035_v47, %v9035_v47 }
 0x119   :  { %7980 = vmatpush3.bf16.msra.mxu1 %v7977_v14  ;;  %v9094_v14 = vpack.c.bf16 %v759_v13, %v758_v11 }
 0x11a   :  { %330 = vadd.xlane.f32.xlu0 %v329_v48  ;;  %v289_v27 = vsel %vm246_vm0, %v9028_v40, 0.0  ;;  %v309_v33 = vmul.f32 %v9028_v40, %v9028_v40  ;;  %v292_v48 = vsel %vm246_vm0, %v9035_v47, 0.0  ;;  %v356_v53 = vsel %vm246_vm0, %v310_v50, 0.0 }
 0x11c   :  { %333 = vadd.xlane.f32.xlu1 %v332_v55  ;;  %v353_v42 = vsel %vm246_vm0, %v309_v33, 0.0  ;;  %v750_v55 = vld [vmem:[%s12664_s5] sm:$0xff] }
 0x11e   :  { %272 = vadd.xlane.f32.xlu0 %v271_v56  ;;  %v751_v56 = vld [vmem:[%s12664_s5 + $0x8] sm:$0xff] }
 0x11f   :  { %v9057_v60 = vpack.c.bf16 %v751_v56, %v750_v55 }
 0x120   :  { %275 = vadd.xlane.f32.xlu1 %v274_v63  ;;  %v753_v63 = vld [vmem:[%s12664_s5 + $0x18] sm:$0xff] }
 0x121   :  { %v9062_v34 = vpack.c.bf16 %v753_v63, %v752_v58  ;;  %7982 = vmatprep.subr.bf16.mxu0 %v9057_v60  ;;  %8237 = vmatprep.subr.bf16.mxu1 %v9057_v60 }
 0x122   :  { %336 = vadd.xlane.f32.xlu0 %v335_v5  ;;  %7984 = vmatpush3.bf16.msra.mxu0 %v9057_v60  ;;  %v756_v5 = vld [vmem:[%s12664_s5 + $0x30] sm:$0xff] }
 0x123   :  { %7986 = vmatprep.subr.bf16.mxu0 %v9062_v34 }
 0x124   :  { %339 = vadd.xlane.f32.xlu1 %v338_v7  ;;  %v757_v7 = vld [vmem:[%s12664_s5 + $0x38] sm:$0xff] }
 0x126   :  { %278 = vadd.xlane.f32.xlu0 %v277_v8  ;;  %7988 = vmatpush3.bf16.msra.mxu0 %v9062_v34  ;;  %v9084_v8 = vpack.c.bf16 %v757_v7, %v756_v5 }
 0x127   :  { %7990 = vmatprep.subr.bf16.mxu0 %v9074_v35 }
 0x128   :  { %281 = vadd.xlane.f32.xlu1 %v280_v36  ;;  %v761_v36 = vld [vmem:[%s12664_s5 + $0x58] sm:$0xff] }
 0x129   :  { %v9104_v21 = vpack.c.bf16 %v761_v36, %v760_v15 }
 0x12a   :  { %342 = vadd.xlane.f32.xlu0 %v341_v22  ;;  %7992 = vmatpush3.bf16.msra.mxu0 %v9074_v35  ;;  %v762_v22 = vld [vmem:[%s12664_s5 + $0x60] sm:$0xff] }
 0x12b   :  { %7994 = vmatprep.subr.bf16.mxu0 %v9084_v8 }
 0x12c   :  { %345 = vadd.xlane.f32.xlu1 %v344_v37  ;;  %v763_v37 = vld [vmem:[%s12664_s5 + $0x68] sm:$0xff] }
 0x12e   :  { %284 = vadd.xlane.f32.xlu0 %v283_v20  ;;  %7996 = vmatpush3.bf16.msra.mxu0 %v9084_v8  ;;  %v9114_v20 = vpack.c.bf16 %v763_v37, %v762_v22 }
 0x12f   :  { %7998 = vmatprep.subr.bf16.mxu0 %v9094_v14 }
 0x130   :  { %287 = vadd.xlane.f32.xlu1 %v286_v32 }
 0x132   :  { %348 = vadd.xlane.f32.xlu0 %v347_v28  ;;  %8000 = vmatpush3.bf16.msra.mxu0 %v9094_v14 }
 0x133   :  { %8002 = vmatprep.subr.bf16.mxu0 %v9104_v21 }
 0x134   :  { %351 = vadd.xlane.f32.xlu1 %v350_v39 }
 0x136   :  { %290 = vadd.xlane.f32.xlu0 %v289_v27  ;;  %8004 = vmatpush3.bf16.msra.mxu0 %v9104_v21 }
 0x137   :  { %8006 = vmatprep.subr.bf16.mxu0 %v9114_v20 }
 0x138   :  { %293 = vadd.xlane.f32.xlu1 %v292_v48 }
 0x13a   :  { %354 = vadd.xlane.f32.xlu0 %v353_v42  ;;  %8008 = vmatpush3.bf16.msra.mxu0 %v9114_v20 }
 0x13c   :  { %357 = vadd.xlane.f32.xlu1 %v356_v53 }
 0x18b   :  { %v249_v29 = vpop.xlane.xlu0 %248 }
 0x18c   :  { %v359_v32 = vmul.f32 0.015625, %v249_v29 }
 0x18d   :  { %v313_v38 = vpop.xlane.xlu1 %312 }
 0x18e   :  { %v391_v28 = vmul.f32 %v359_v32, %v359_v32  ;;  %v375_v39 = vmul.f32 0.015625, %v313_v38 }
 0x18f   :  { %v252_v27 = vpop.xlane.xlu0 %251 }
 0x190   :  { %v407_v33 = vsub.f32 %v375_v39, %v391_v28  ;;  %v360_v48 = vmul.f32 0.015625, %v252_v27  ;;  %v423_v27 = vsub.f32 %v8845_v46, %v359_v32  ;;  %v9138_v46 = vld [vmem:[%s12665_s6 + $0x2] ss:$0 sm:$0xff] }
 0x191   :  { %v316_v50 = vpop.xlane.xlu1 %315 }
 0x192   :  { %v439_v42 = vadd.f32 1e-05, %v407_v33  ;;  %v392_v53 = vmul.f32 %v360_v48, %v360_v48  ;;  %v376_v55 = vmul.f32 0.015625, %v316_v50  ;;  %v424_v32 = vsub.f32 %v8841_v45, %v360_v48 }
 0x193   :  { %v255_v56 = vpop.xlane.xlu0 %254 }
 0x194   :  { %8301 = vrsqrt.f32 %v439_v42  ;;  %v408_v58 = vsub.f32 %v376_v55, %v392_v53  ;;  %v361_v63 = vmul.f32 0.015625, %v255_v56  ;;  %v9129_v53 = vld [vmem:[%s12665_s6 + $0x1] ss:$0 sm:$0xff] }
 0x195   :  { %v258_v1 = vpop.xlane.xlu1 %257 }
 0x196   :  { %v440_v3 = vadd.f32 1e-05, %v408_v58  ;;  %v9119_v5 = vmul.f32 0.015625, %v258_v1  ;;  %v393_v11 = vmul.f32 %v361_v63, %v361_v63 }
 0x197   :  { %v319_v7 = vpop.xlane.xlu0 %318 }
 0x198   :  { %8303 = vrsqrt.f32 %v440_v3  ;;  %v377_v13 = vmul.f32 0.015625, %v319_v7  ;;  %v394_v36 = vmul.f32 %v9119_v5, %v9119_v5 }
 0x199   :  { %v322_v15 = vpop.xlane.xlu1 %321 }
 0x19a   :  { %v409_v22 = vsub.f32 %v377_v13, %v393_v11  ;;  %v378_v37 = vmul.f32 0.015625, %v322_v15 }
 0x19b   :  { %v261_v29 = vpop.xlane.xlu0 %260 }
 0x19c   :  { %v441_v38 = vadd.f32 1e-05, %v409_v22  ;;  %v410_v28 = vsub.f32 %v378_v37, %v394_v36  ;;  %v9123_v39 = vmul.f32 0.015625, %v261_v29 }
 0x19d   :  { %v264_v33 = vpop.xlane.xlu1 %263 }
 0x19e   :  { %v8302_v50 = vpop.eup %8301  ;;  %8305 = vrsqrt.f32 %v441_v38  ;;  %v442_v42 = vadd.f32 1e-05, %v410_v28  ;;  %v9131_v55 = vmul.f32 0.015625, %v264_v33  ;;  %v395_v1 = vmul.f32 %v9123_v39, %v9123_v39 }
 0x19f   :  { %v325_v56 = vpop.xlane.xlu0 %324  ;;  %v471_v58 = vmul.f32 %v8302_v50, %v423_v27 }
 0x1a0   :  { %8307 = vrsqrt.f32 %v442_v42  ;;  %v379_v3 = vmul.f32 0.015625, %v325_v56  ;;  %v396_v15 = vmul.f32 %v9131_v55, %v9131_v55  ;;  %v425_v42 = vsub.f32 %v8858_v54, %v361_v63 }
 0x1a1   :  { %v328_v7 = vpop.xlane.xlu1 %327  ;;  %v491_v11 = vmul.f32 %v9129_v53, %v471_v58 }
 0x1a2   :  { %v8304_v13 = vpop.eup %8303  ;;  %v411_v36 = vsub.f32 %v379_v3, %v395_v1  ;;  %v380_v22 = vmul.f32 0.015625, %v328_v7 }
 0x1a3   :  { %v267_v37 = vpop.xlane.xlu0 %266  ;;  %v9145_v29 = vadd.f32 %v9138_v46, %v491_v11  ;;  %v472_v38 = vmul.f32 %v8304_v13, %v424_v32  ;;  %v426_v11 = vsub.f32 %v8866_v59, %v9119_v5 }
 0x1a4   :  { %v443_v28 = vadd.f32 1e-05, %v411_v36  ;;  %v412_v27 = vsub.f32 %v380_v22, %v396_v15  ;;  %v9147_v33 = vmul.f32 0.015625, %v267_v37 }
 0x1a5   :  { %7410 = vmatprep.mubr.msk.f32.mxu1 %vm246_vm0, %v9145_v29  ;;  %v270_v45 = vpop.xlane.xlu1 %269  ;;  %v492_v48 = vmul.f32 %v9129_v53, %v472_v38 }
 0x1a6   :  { %8309 = vrsqrt.f32 %v443_v28  ;;  %v444_v50 = vadd.f32 1e-05, %v412_v27  ;;  %v9153_v56 = vmul.f32 0.015625, %v270_v45  ;;  %v397_v32 = vmul.f32 %v9147_v33, %v9147_v33 }
 0x1a7   :  { %v331_v58 = vpop.xlane.xlu0 %330  ;;  %v9156_v1 = vadd.f32 %v9138_v46, %v492_v48 }
 0x1a8   :  { %v8306_v3 = vpop.eup %8305  ;;  %8311 = vrsqrt.f32 %v444_v50  ;;  %v381_v7 = vmul.f32 0.015625, %v331_v58  ;;  %v398_v15 = vmul.f32 %v9153_v56, %v9153_v56 }
 0x1a9   :  { %7411 = vmatmul.mubr.msk.f32.vlgmr.msra.gmra.mrb[0].mxu1 %vm246_vm0, %v9156_v1  ;;  %v334_v13 = vpop.xlane.xlu1 %333  ;;  %v473_v54 = vmul.f32 %v8306_v3, %v425_v42 }
 0x1aa   :  { %v8308_v63 = vpop.eup %8307  ;;  %v413_v36 = vsub.f32 %v381_v7, %v397_v32  ;;  %v382_v22 = vmul.f32 0.015625, %v334_v13  ;;  %8245 = vmatpush3.bf16.msra.mxu1 %v9057_v60  ;;  %v427_v60 = vsub.f32 %v8881_v4, %v9123_v39  ;;  %v428_v4 = vsub.f32 %v8888_v9, %v9131_v55 }
 0x1ab   :  { %v273_v37 = vpop.xlane.xlu0 %272  ;;  %v493_v38 = vmul.f32 %v9129_v53, %v473_v54  ;;  %v474_v28 = vmul.f32 %v8308_v63, %v426_v11  ;;  %8238 = vmatprep.subr.bf16.mxu1 %v9062_v34 }
 0x1ac   :  { %v445_v59 = vadd.f32 1e-05, %v413_v36  ;;  %v414_v5 = vsub.f32 %v382_v22, %v398_v15  ;;  %v9169_v27 = vmul.f32 0.015625, %v273_v37 }
 0x1ad   :  { %v276_v45 = vpop.xlane.xlu1 %275  ;;  %v9172_v48 = vadd.f32 %v9138_v46, %v493_v38  ;;  %v494_v50 = vmul.f32 %v9129_v53, %v474_v28 }
 0x1ae   :  { %8313 = vrsqrt.f32 %v445_v59  ;;  %v446_v42 = vadd.f32 1e-05, %v414_v5  ;;  %8246 = vmatpush3.bf16.msra.mxu1 %v9062_v34  ;;  %v9178_v58 = vmul.f32 0.015625, %v276_v45  ;;  %v399_v11 = vmul.f32 %v9169_v27, %v9169_v27 }
 0x1af   :  { %7413 = vmatprep.mubr.msk.f32.mxu1 %vm246_vm0, %v9172_v48  ;;  %v337_v3 = vpop.xlane.xlu0 %336  ;;  %v9183_v32 = vadd.f32 %v9138_v46, %v494_v50  ;;  %8239 = vmatprep.subr.bf16.mxu1 %v9074_v35 }
 0x1b0   :  { %v8310_v7 = vpop.eup %8309  ;;  %8315 = vrsqrt.f32 %v446_v42  ;;  %v383_v34 = vmul.f32 0.015625, %v337_v3  ;;  %v400_v63 = vmul.f32 %v9178_v58, %v9178_v58 }
 0x1b1   :  { %7414 = vmatmul.mubr.msk.f32.gmra.mrb[2].mxu1 %vm246_vm0, %v9183_v32  ;;  %v340_v39 = vpop.xlane.xlu1 %339  ;;  %v475_v13 = vmul.f32 %v8310_v7, %v427_v60 }
 0x1b2   :  { %v8312_v54 = vpop.eup %8311  ;;  %v415_v15 = vsub.f32 %v383_v34, %v399_v11  ;;  %v384_v36 = vmul.f32 0.015625, %v340_v39  ;;  %8247 = vmatpush3.bf16.msra.mxu1 %v9074_v35  ;;  %v429_v35 = vsub.f32 %v8905_v18, %v9147_v33  ;;  %v430_v18 = vsub.f32 %v8912_v23, %v9153_v56 }
 0x1b3   :  { %v279_v22 = vpop.xlane.xlu0 %278  ;;  %v495_v37 = vmul.f32 %v9129_v53, %v475_v13  ;;  %v476_v38 = vmul.f32 %v8312_v54, %v428_v4  ;;  %8240 = vmatprep.subr.bf16.mxu1 %v9084_v8 }
 0x1b4   :  { %v447_v9 = vadd.f32 1e-05, %v415_v15  ;;  %v416_v55 = vsub.f32 %v384_v36, %v400_v63  ;;  %v9197_v28 = vmul.f32 0.015625, %v279_v22 }
 0x1b5   :  { %v282_v59 = vpop.xlane.xlu1 %281  ;;  %v9200_v5 = vadd.f32 %v9138_v46, %v495_v37  ;;  %v496_v45 = vmul.f32 %v9129_v53, %v476_v38 }
 0x1b6   :  { %8317 = vrsqrt.f32 %v447_v9  ;;  %v448_v50 = vadd.f32 1e-05, %v416_v55  ;;  %8248 = vmatpush3.bf16.msra.mxu1 %v9084_v8  ;;  %v9206_v42 = vmul.f32 0.015625, %v282_v59  ;;  %v401_v11 = vmul.f32 %v9197_v28, %v9197_v28 }
 0x1b7   :  { %7416 = vmatprep.mubr.msk.f32.mxu1 %vm246_vm0, %v9200_v5  ;;  %v343_v60 = vpop.xlane.xlu0 %342  ;;  %v9211_v3 = vadd.f32 %v9138_v46, %v496_v45  ;;  %8241 = vmatprep.subr.bf16.mxu1 %v9094_v14 }
 0x1b8   :  { %v8314_v7 = vpop.eup %8313  ;;  %8319 = vrsqrt.f32 %v448_v50  ;;  %v385_v8 = vmul.f32 0.015625, %v343_v60  ;;  %v402_v39 = vmul.f32 %v9206_v42, %v9206_v42 }
 0x1b9   :  { %7417 = vmatmul.mubr.msk.f32.gmra.mrb[4].mxu1 %vm246_vm0, %v9211_v3  ;;  %v346_v33 = vpop.xlane.xlu1 %345  ;;  %v477_v34 = vmul.f32 %v8314_v7, %v429_v35 }
 0x1ba   :  { %v8316_v4 = vpop.eup %8315  ;;  %v417_v13 = vsub.f32 %v385_v8, %v401_v11  ;;  %v386_v54 = vmul.f32 0.015625, %v346_v33  ;;  %8249 = vmatpush3.bf16.msra.mxu1 %v9094_v14  ;;  %v431_v14 = vsub.f32 %v8937_v43, %v9169_v27  ;;  %v432_v43 = vsub.f32 %v8944_v49, %v9178_v58 }
 0x1bb   :  { %v285_v63 = vpop.xlane.xlu0 %284  ;;  %v497_v15 = vmul.f32 %v9129_v53, %v477_v34  ;;  %v478_v36 = vmul.f32 %v8316_v4, %v430_v18  ;;  %8242 = vmatprep.subr.bf16.mxu1 %v9104_v21 }
 0x1bc   :  { %v449_v23 = vadd.f32 1e-05, %v417_v13  ;;  %v418_v56 = vsub.f32 %v386_v54, %v402_v39  ;;  %v9225_v22 = vmul.f32 0.015625, %v285_v63 }
 0x1bd   :  { %v288_v37 = vpop.xlane.xlu1 %287  ;;  %v9228_v38 = vadd.f32 %v9138_v46, %v497_v15  ;;  %v498_v9 = vmul.f32 %v9129_v53, %v478_v36 }
 0x1be   :  { %8321 = vrsqrt.f32 %v449_v23  ;;  %v450_v55 = vadd.f32 1e-05, %v418_v56  ;;  %8250 = vmatpush3.bf16.msra.mxu1 %v9104_v21  ;;  %v9234_v59 = vmul.f32 0.015625, %v288_v37  ;;  %v403_v60 = vmul.f32 %v9225_v22, %v9225_v22 }
 0x1bf   :  { %7419 = vmatprep.mubr.msk.f32.mxu1 %vm246_vm0, %v9228_v38  ;;  %v349_v45 = vpop.xlane.xlu0 %348  ;;  %v9239_v50 = vadd.f32 %v9138_v46, %v498_v9  ;;  %8243 = vmatprep.subr.bf16.mxu1 %v9114_v20  ;;  %v433_v23 = vsub.f32 %v8967_v0, %v9197_v28 }
 0x1c0   :  { %v8318_v35 = vpop.eup %8317  ;;  %8323 = vrsqrt.f32 %v450_v55  ;;  %v387_v21 = vmul.f32 0.015625, %v349_v45  ;;  %v404_v8 = vmul.f32 %v9234_v59, %v9234_v59  ;;  %v434_v45 = vsub.f32 %v8980_v6, %v9206_v42 }
 0x1c1   :  { %7420 = vmatmul.mubr.msk.f32.gmra.mrb[6].mxu1 %vm246_vm0, %v9239_v50  ;;  %v352_v27 = vpop.xlane.xlu1 %351  ;;  %v479_v7 = vmul.f32 %v8318_v35, %v431_v14  ;;  %v435_v42 = vsub.f32 %v9003_v19, %v9225_v22 }
 0x1c2   :  { %v8320_v11 = vpop.eup %8319  ;;  %v419_v18 = vsub.f32 %v387_v21, %v403_v60  ;;  %v388_v33 = vmul.f32 0.015625, %v352_v27  ;;  %8251 = vmatpush3.bf16.msra.mxu1 %v9114_v20 }
 0x1c3   :  { %v291_v34 = vpop.xlane.xlu0 %290  ;;  %v499_v4 = vmul.f32 %v9129_v53, %v479_v7  ;;  %v480_v39 = vmul.f32 %v8320_v11, %v432_v43 }
 0x1c4   :  { %v451_v13 = vadd.f32 1e-05, %v419_v18  ;;  %v420_v54 = vsub.f32 %v388_v33, %v404_v8  ;;  %v373_v49 = vmul.f32 0.015625, %v291_v34 }
 0x1c5   :  { %v294_v58 = vpop.xlane.xlu1 %293  ;;  %v9253_v63 = vadd.f32 %v9138_v46, %v499_v4  ;;  %v500_v15 = vmul.f32 %v9129_v53, %v480_v39  ;;  %v436_v39 = vsub.f32 %v9010_v24, %v9234_v59 }
 0x1c6   :  { %8325 = vrsqrt.f32 %v451_v13  ;;  %v452_v36 = vadd.f32 1e-05, %v420_v54  ;;  %v374_v56 = vmul.f32 0.015625, %v294_v58  ;;  %v405_v55 = vmul.f32 %v373_v49, %v373_v49 }
 0x1c7   :  { %7422 = vmatprep.mubr.msk.f32.mxu1 %vm246_vm0, %v9253_v63  ;;  %v355_v20 = vpop.xlane.xlu0 %354  ;;  %v9261_v37 = vadd.f32 %v9138_v46, %v500_v15 }
 0x1c8   :  { %v8322_v9 = vpop.eup %8321  ;;  %8327 = vrsqrt.f32 %v452_v36  ;;  %v389_v14 = vmul.f32 0.015625, %v355_v20  ;;  %v406_v60 = vmul.f32 %v374_v56, %v374_v56  ;;  %v437_v36 = vsub.f32 %v9028_v40, %v373_v49 }
 0x1c9   :  { %7423 = vmatmul.mubr.msk.f32.gmra.mrb[8].mxu1 %vm246_vm0, %v9261_v37  ;;  %v358_v35 = vpop.xlane.xlu1 %357  ;;  %v481_v0 = vmul.f32 %v8322_v9, %v433_v23  ;;  %v438_v23 = vsub.f32 %v9035_v47, %v374_v56  ;;  %v764_v47 = vld [vmem:[%s12664_s5 + $0x70] sm:$0xff]  ;;  %v765_v56 = vld [vmem:[%s12664_s5 + $0x78] sm:$0xff] }
 0x1ca   :  { %v8324_v28 = vpop.eup %8323  ;;  %v421_v21 = vsub.f32 %v389_v14, %v405_v55  ;;  %v390_v43 = vmul.f32 0.015625, %v358_v35  ;;  %v8009_v35 = vpack.c.bf16 %v765_v56, %v764_v47 }
 0x1cb   :  { %v501_v27 = vmul.f32 %v9129_v53, %v481_v0  ;;  %v482_v7 = vmul.f32 %v8324_v28, %v434_v45 }
 0x1cc   :  { %v453_v11 = vadd.f32 1e-05, %v421_v21  ;;  %v422_v8 = vsub.f32 %v390_v43, %v406_v60  ;;  %8010 = vmatprep.subr.bf16.mxu0 %v8009_v35  ;;  %8244 = vmatprep.subr.bf16.mxu1 %v8009_v35 }
 0x1cd   :  { %v9269_v18 = vadd.f32 %v9138_v46, %v501_v27  ;;  %v502_v33 = vmul.f32 %v9129_v53, %v482_v7  ;;  %8012 = vmatpush3.bf16.msra.mxu0 %v8009_v35  ;;  %8252 = vmatpush3.bf16.msra.mxu1 %v8009_v35 }
 0x1ce   :  { %8329 = vrsqrt.f32 %v453_v11  ;;  %v454_v6 = vadd.f32 1e-05, %v422_v8 }
 0x1cf   :  { %7425 = vmatprep.mubr.msk.f32.mxu1 %vm246_vm0, %v9269_v18  ;;  %v9277_v34 = vadd.f32 %v9138_v46, %v502_v33 }
 0x1d0   :  { %v8326_v4 = vpop.eup %8325  ;;  %8331 = vrsqrt.f32 %v454_v6 }
 0x1d1   :  { %7426 = vmatmul.mubr.msk.f32.gmra.mrb[10].mxu1 %vm246_vm0, %v9277_v34  ;;  %v483_v13 = vmul.f32 %v8326_v4, %v435_v42 }
 0x1d2   :  { %v8328_v54 = vpop.eup %8327 }
 0x1d3   :  { %v503_v58 = vmul.f32 %v9129_v53, %v483_v13  ;;  %v484_v15 = vmul.f32 %v8328_v54, %v436_v39 }
 0x1d5   :  { %v9285_v19 = vadd.f32 %v9138_v46, %v503_v58  ;;  %v504_v22 = vmul.f32 %v9129_v53, %v484_v15 }
 0x1d7   :  { %7428 = vmatprep.mubr.msk.f32.mxu1 %vm246_vm0, %v9285_v19  ;;  %v9292_v24 = vadd.f32 %v9138_v46, %v504_v22 }
 0x1d8   :  { %v8330_v59 = vpop.eup %8329 }
 0x1d9   :  { %7429 = vmatmul.mubr.msk.f32.gmra.mrb[12].mxu1 %vm246_vm0, %v9292_v24  ;;  %v485_v20 = vmul.f32 %v8330_v59, %v437_v36 }
 0x1da   :  { %v8332_v9 = vpop.eup %8331 }
 0x1db   :  { %v505_v55 = vmul.f32 %v9129_v53, %v485_v20  ;;  %v486_v14 = vmul.f32 %v8332_v9, %v438_v23 }
 0x1dd   :  { %v9299_v45 = vadd.f32 %v9138_v46, %v505_v55  ;;  %v506_v40 = vmul.f32 %v9129_v53, %v486_v14  ;;  %v6752_v53 = vld [vmem:[%s12666_s7] ss:$0 sm:$0xff] }
 0x1df   :  { %7431 = vmatprep.mubr.msk.f32.mxu1 %vm246_vm0, %v9299_v45  ;;  %v9305_v49 = vadd.f32 %v9138_v46, %v506_v40 }
 0x1e1   :  { %7432 = vmatmul.mubr.msk.f32.gmra.mrb[14].mxu1 %vm246_vm0, %v9305_v49 }
 0x27c   :  { %v7412_v46 = vpop.f32.mrb[0].mxu1 }
 0x27d   :  { %v661_v0 = vadd.f32 %v7412_v46, %v6752_v53  ;;  %v655_v28 = vpop.f32.mrb[1].mxu1 }
 0x27e   :  { %v656_v60 = vadd.f32 %v6752_v53, %v655_v28 }
 0x27f   :  { %v735_v43 = vmax.f32 %v661_v0, 0.0 }
 0x280   :  { %v734_v21 = vmax.f32 %v656_v60, 0.0 }
 0x282   :  { %7466 = vmatprep.mubr.f32.mxu0 %v734_v21 }
 0x283   :  { %7467 = vmatmul.mubr.f32.vlgmr.msra.gmra.mrb[16].mxu0 %v735_v43 }
 0x284   :  { %v7415_v27 = vpop.f32.mrb[2].mxu1 }
 0x285   :  { %v671_v7 = vadd.f32 %v7415_v27, %v6752_v53  ;;  %v665_v11 = vpop.f32.mrb[3].mxu1 }
 0x286   :  { %v666_v8 = vadd.f32 %v6752_v53, %v665_v11 }
 0x287   :  { %v737_v6 = vmax.f32 %v671_v7, 0.0 }
 0x288   :  { %v736_v33 = vmax.f32 %v666_v8, 0.0 }
 0x28a   :  { %7469 = vmatprep.mubr.f32.mxu0 %v736_v33 }
 0x28b   :  { %7470 = vmatmul.mubr.f32.gmra.mrb[18].mxu0 %v737_v6 }
 0x28c   :  { %v7418_v42 = vpop.f32.mrb[4].mxu1 }
 0x28d   :  { %v681_v4 = vadd.f32 %v7418_v42, %v6752_v53  ;;  %v675_v39 = vpop.f32.mrb[5].mxu1 }
 0x28e   :  { %v676_v13 = vadd.f32 %v6752_v53, %v675_v39 }
 0x28f   :  { %v739_v58 = vmax.f32 %v681_v4, 0.0 }
 0x290   :  { %v738_v54 = vmax.f32 %v676_v13, 0.0 }
 0x292   :  { %7472 = vmatprep.mubr.f32.mxu0 %v738_v54 }
 0x293   :  { %7473 = vmatmul.mubr.f32.gmra.mrb[20].mxu0 %v739_v58  ;;  %v9321_v58 = vld [vmem:[%s12665_s6 + $0x3] ss:$0 sm:$0xff] }
 0x294   :  { %v7421_v15 = vpop.f32.mrb[6].mxu1 }
 0x295   :  { %v691_v22 = vadd.f32 %v7421_v15, %v6752_v53  ;;  %v685_v36 = vpop.f32.mrb[7].mxu1 }
 0x296   :  { %v686_v59 = vadd.f32 %v6752_v53, %v685_v36 }
 0x297   :  { %v741_v20 = vmax.f32 %v691_v22, 0.0 }
 0x298   :  { %v740_v23 = vmax.f32 %v686_v59, 0.0 }
 0x29a   :  { %7475 = vmatprep.mubr.f32.mxu0 %v740_v23 }
 0x29b   :  { %7476 = vmatmul.mubr.f32.gmra.mrb[22].mxu0 %v741_v20 }
 0x29c   :  { %v7424_v9 = vpop.f32.mrb[8].mxu1 }
 0x29d   :  { %v701_v55 = vadd.f32 %v7424_v9, %v6752_v53  ;;  %v695_v14 = vpop.f32.mrb[9].mxu1 }
 0x29e   :  { %v696_v40 = vadd.f32 %v6752_v53, %v695_v14 }
 0x29f   :  { %v743_v56 = vmax.f32 %v701_v55, 0.0 }
 0x2a0   :  { %v742_v47 = vmax.f32 %v696_v40, 0.0 }
 0x2a2   :  { %7478 = vmatprep.mubr.f32.mxu1 %v742_v47 }
 0x2a3   :  { %7479 = vmatmul.mubr.f32.vlgmr.msra.gmra.mrb[16].mxu1 %v743_v56 }
 0x2a4   :  { %v7427_v35 = vpop.f32.mrb[10].mxu1 }
 0x2a5   :  { %v711_v46 = vadd.f32 %v7427_v35, %v6752_v53  ;;  %v705_v0 = vpop.f32.mrb[11].mxu1 }
 0x2a6   :  { %v706_v28 = vadd.f32 %v6752_v53, %v705_v0 }
 0x2a7   :  { %v745_v21 = vmax.f32 %v711_v46, 0.0 }
 0x2a8   :  { %v744_v60 = vmax.f32 %v706_v28, 0.0 }
 0x2aa   :  { %7481 = vmatprep.mubr.f32.mxu1 %v744_v60 }
 0x2ab   :  { %7482 = vmatmul.mubr.f32.gmra.mrb[18].mxu1 %v745_v21 }
 0x2ac   :  { %v7430_v43 = vpop.f32.mrb[12].mxu1 }
 0x2ad   :  { %v721_v27 = vadd.f32 %v7430_v43, %v6752_v53  ;;  %v715_v7 = vpop.f32.mrb[13].mxu1 }
 0x2ae   :  { %v716_v11 = vadd.f32 %v6752_v53, %v715_v7 }
 0x2af   :  { %v747_v33 = vmax.f32 %v721_v27, 0.0 }
 0x2b0   :  { %v746_v8 = vmax.f32 %v716_v11, 0.0 }
 0x2b2   :  { %7484 = vmatprep.mubr.f32.mxu1 %v746_v8 }
 0x2b3   :  { %7485 = vmatmul.mubr.f32.gmra.mrb[20].mxu1 %v747_v33 }
 0x2b4   :  { %v7433_v6 = vpop.f32.mrb[14].mxu1 }
 0x2b5   :  { %v731_v42 = vadd.f32 %v7433_v6, %v6752_v53  ;;  %v725_v4 = vpop.f32.mrb[15].mxu1 }
 0x2b6   :  { %v726_v39 = vadd.f32 %v6752_v53, %v725_v4 }
 0x2b7   :  { %v749_v54 = vmax.f32 %v731_v42, 0.0 }
 0x2b8   :  { %v748_v13 = vmax.f32 %v726_v39, 0.0 }
 0x2ba   :  { %7487 = vmatprep.mubr.f32.mxu1 %v748_v13 }
 0x2bb   :  { %7488 = vmatmul.mubr.f32.gmra.mrb[22].mxu1 %v749_v54 }
 0x356   :  { %v7468_v15 = vpop.f32.mrb[16].mxu0 }
 0x357   :  { %v842_v22 = vadd.f32 %v7468_v15, %v9321_v58  ;;  %v836_v36 = vpop.f32.mrb[17].mxu0 }
 0x358   :  { %v837_v59 = vadd.f32 %v9321_v58, %v836_v36 }
 0x359   :  { %v9326_v23 = vadd.f32 %v842_v22, %v9156_v1 }
 0x35a   :  { %v9329_v53 = vadd.f32 %v837_v59, %v9145_v29 }
 0x35b   :  { %v936_v20 = vsel %vm246_vm0, %v9326_v23, 0.0  ;;  %v982_v9 = vmul.f32 %v9326_v23, %v9326_v23 }
 0x35c   :  { %937 = vadd.xlane.f32.xlu1 %v936_v20  ;;  %v933_v55 = vsel %vm246_vm0, %v9329_v53, 0.0  ;;  %v981_v14 = vmul.f32 %v9329_v53, %v9329_v53 }
 0x35d   :  { %934 = vadd.xlane.f32.xlu0 %v933_v55  ;;  %v1000_v29 = vsel %vm246_vm0, %v982_v9, 0.0 }
 0x35e   :  { %v7471_v40 = vpop.f32.mrb[18].mxu0  ;;  %v997_v35 = vsel %vm246_vm0, %v981_v14, 0.0 }
 0x35f   :  { %v852_v1 = vadd.f32 %v7471_v40, %v9321_v58  ;;  %v846_v47 = vpop.f32.mrb[19].mxu0 }
 0x360   :  { %v847_v56 = vadd.f32 %v9321_v58, %v846_v47  ;;  %1001 = vadd.xlane.f32.xlu1 %v1000_v29 }
 0x361   :  { %v9344_v46 = vadd.f32 %v852_v1, %v9183_v32  ;;  %998 = vadd.xlane.f32.xlu0 %v997_v35 }
 0x362   :  { %v9347_v0 = vadd.f32 %v847_v56, %v9172_v48 }
 0x363   :  { %v942_v28 = vsel %vm246_vm0, %v9344_v46, 0.0  ;;  %v984_v60 = vmul.f32 %v9344_v46, %v9344_v46 }
 0x364   :  { %943 = vadd.xlane.f32.xlu1 %v942_v28  ;;  %v939_v21 = vsel %vm246_vm0, %v9347_v0, 0.0  ;;  %v983_v43 = vmul.f32 %v9347_v0, %v9347_v0 }
 0x365   :  { %940 = vadd.xlane.f32.xlu0 %v939_v21  ;;  %v1006_v48 = vsel %vm246_vm0, %v984_v60, 0.0 }
 0x366   :  { %v7474_v32 = vpop.f32.mrb[20].mxu0  ;;  %v1003_v8 = vsel %vm246_vm0, %v983_v43, 0.0  ;;  %v1216_v43 = vld [vmem:[%s12661_s2 + $0x10] sm:$0xff] }
 0x367   :  { %v862_v27 = vadd.f32 %v7474_v32, %v9321_v58  ;;  %v856_v7 = vpop.f32.mrb[21].mxu0  ;;  %v1217_v32 = vld [vmem:[%s12661_s2 + $0x18] sm:$0xff] }
 0x368   :  { %v857_v11 = vadd.f32 %v9321_v58, %v856_v7  ;;  %1007 = vadd.xlane.f32.xlu1 %v1006_v48  ;;  %v8017_v7 = vpack.c.bf16 %v1217_v32, %v1216_v43 }
 0x369   :  { %v9362_v33 = vadd.f32 %v862_v27, %v9211_v3  ;;  %1004 = vadd.xlane.f32.xlu0 %v1003_v8 }
 0x36a   :  { %v9365_v6 = vadd.f32 %v857_v11, %v9200_v5 }
 0x36b   :  { %v948_v42 = vsel %vm246_vm0, %v9362_v33, 0.0  ;;  %v986_v4 = vmul.f32 %v9362_v33, %v9362_v33 }
 0x36c   :  { %949 = vadd.xlane.f32.xlu1 %v948_v42  ;;  %v945_v39 = vsel %vm246_vm0, %v9365_v6, 0.0  ;;  %v985_v13 = vmul.f32 %v9365_v6, %v9365_v6  ;;  %v1219_v42 = vld [vmem:[%s12661_s2 + $0x28] sm:$0xff] }
 0x36d   :  { %946 = vadd.xlane.f32.xlu0 %v945_v39  ;;  %v1012_v5 = vsel %vm246_vm0, %v986_v4, 0.0 }
 0x36e   :  { %v7477_v3 = vpop.f32.mrb[22].mxu0  ;;  %v1009_v36 = vsel %vm246_vm0, %v985_v13, 0.0 }
 0x36f   :  { %v872_v54 = vadd.f32 %v7477_v3, %v9321_v58  ;;  %v866_v15 = vpop.f32.mrb[23].mxu0 }
 0x370   :  { %v867_v22 = vadd.f32 %v9321_v58, %v866_v15  ;;  %1013 = vadd.xlane.f32.xlu1 %v1012_v5 }
 0x371   :  { %v9380_v59 = vadd.f32 %v872_v54, %v9239_v50  ;;  %1010 = vadd.xlane.f32.xlu0 %v1009_v36  ;;  %v1214_v50 = vld [vmem:[%s12661_s2] sm:$0xff]  ;;  %v1220_v36 = vld [vmem:[%s12661_s2 + $0x30] sm:$0xff] }
 0x372   :  { %v9383_v20 = vadd.f32 %v867_v22, %v9228_v38  ;;  %v1215_v38 = vld [vmem:[%s12661_s2 + $0x8] sm:$0xff] }
 0x373   :  { %v954_v9 = vsel %vm246_vm0, %v9380_v59, 0.0  ;;  %v988_v55 = vmul.f32 %v9380_v59, %v9380_v59  ;;  %v8013_v47 = vpack.c.bf16 %v1215_v38, %v1214_v50 }
 0x374   :  { %955 = vadd.xlane.f32.xlu1 %v954_v9  ;;  %v951_v14 = vsel %vm246_vm0, %v9383_v20, 0.0  ;;  %v987_v40 = vmul.f32 %v9383_v20, %v9383_v20  ;;  %v1221_v9 = vld [vmem:[%s12661_s2 + $0x38] sm:$0xff] }
 0x375   :  { %952 = vadd.xlane.f32.xlu0 %v951_v14  ;;  %v1018_v35 = vsel %vm246_vm0, %v988_v55, 0.0  ;;  %8014 = vmatprep.subr.bf16.mxu0 %v8013_v47  ;;  %v8025_v14 = vpack.c.bf16 %v1221_v9, %v1220_v36 }
 0x376   :  { %v7480_v1 = vpop.f32.mrb[16].mxu1  ;;  %v1015_v60 = vsel %vm246_vm0, %v987_v40, 0.0  ;;  %8016 = vmatpush3.bf16.msra.mxu0 %v8013_v47 }
 0x377   :  { %v882_v29 = vadd.f32 %v7480_v1, %v9321_v58  ;;  %v876_v56 = vpop.f32.mrb[17].mxu1  ;;  %8018 = vmatprep.subr.bf16.mxu0 %v8017_v7 }
 0x378   :  { %v877_v28 = vadd.f32 %v9321_v58, %v876_v56  ;;  %1019 = vadd.xlane.f32.xlu1 %v1018_v35 }
 0x379   :  { %v9404_v21 = vadd.f32 %v882_v29, %v9261_v37  ;;  %1016 = vadd.xlane.f32.xlu0 %v1015_v60 }
 0x37a   :  { %v9413_v27 = vadd.f32 %v877_v28, %v9253_v63  ;;  %8020 = vmatpush3.bf16.msra.mxu0 %v8017_v7  ;;  %v1218_v63 = vld [vmem:[%s12661_s2 + $0x20] sm:$0xff] }
 0x37b   :  { %v960_v48 = vsel %vm246_vm0, %v9404_v21, 0.0  ;;  %v990_v37 = vmul.f32 %v9404_v21, %v9404_v21  ;;  %v8021_v39 = vpack.c.bf16 %v1219_v42, %v1218_v63 }
 0x37c   :  { %961 = vadd.xlane.f32.xlu1 %v960_v48  ;;  %v957_v11 = vsel %vm246_vm0, %v9413_v27, 0.0  ;;  %v989_v8 = vmul.f32 %v9413_v27, %v9413_v27 }
 0x37d   :  { %958 = vadd.xlane.f32.xlu0 %v957_v11  ;;  %v1024_v54 = vsel %vm246_vm0, %v990_v37, 0.0  ;;  %8022 = vmatprep.subr.bf16.mxu0 %v8021_v39 }
 0x37e   :  { %v7483_v4 = vpop.f32.mrb[18].mxu1  ;;  %v1021_v5 = vsel %vm246_vm0, %v989_v8, 0.0  ;;  %8024 = vmatpush3.bf16.msra.mxu0 %v8021_v39 }
 0x37f   :  { %v892_v13 = vadd.f32 %v7483_v4, %v9321_v58  ;;  %v886_v3 = vpop.f32.mrb[19].mxu1  ;;  %8026 = vmatprep.subr.bf16.mxu0 %v8025_v14 }
 0x380   :  { %v887_v15 = vadd.f32 %v9321_v58, %v886_v3  ;;  %1025 = vadd.xlane.f32.xlu1 %v1024_v54 }
 0x381   :  { %v9434_v22 = vadd.f32 %v892_v13, %v9277_v34  ;;  %1022 = vadd.xlane.f32.xlu0 %v1021_v5 }
 0x382   :  { %v9443_v55 = vadd.f32 %v887_v15, %v9269_v18  ;;  %8028 = vmatpush3.bf16.msra.mxu0 %v8025_v14 }
 0x383   :  { %v966_v40 = vsel %vm246_vm0, %v9434_v22, 0.0  ;;  %v992_v34 = vmul.f32 %v9434_v22, %v9434_v22 }
 0x384   :  { %967 = vadd.xlane.f32.xlu1 %v966_v40  ;;  %v963_v50 = vsel %vm246_vm0, %v9443_v55, 0.0  ;;  %v991_v38 = vmul.f32 %v9443_v55, %v9443_v55 }
 0x385   :  { %964 = vadd.xlane.f32.xlu0 %v963_v50  ;;  %v1030_v29 = vsel %vm246_vm0, %v992_v34, 0.0 }
 0x386   :  { %v7486_v1 = vpop.f32.mrb[20].mxu1  ;;  %v1027_v35 = vsel %vm246_vm0, %v991_v38, 0.0 }
 0x387   :  { %v902_v18 = vadd.f32 %v7486_v1, %v9321_v58  ;;  %v896_v47 = vpop.f32.mrb[21].mxu1 }
 0x388   :  { %v897_v56 = vadd.f32 %v9321_v58, %v896_v47  ;;  %1031 = vadd.xlane.f32.xlu1 %v1030_v29 }
 0x389   :  { %v9458_v28 = vadd.f32 %v902_v18, %v9292_v24  ;;  %1028 = vadd.xlane.f32.xlu0 %v1027_v35 }
 0x38a   :  { %v9461_v60 = vadd.f32 %v897_v56, %v9285_v19 }
 0x38b   :  { %v972_v43 = vsel %vm246_vm0, %v9458_v28, 0.0  ;;  %v994_v32 = vmul.f32 %v9458_v28, %v9458_v28 }
 0x38c   :  { %973 = vadd.xlane.f32.xlu1 %v972_v43  ;;  %v969_v7 = vsel %vm246_vm0, %v9461_v60, 0.0  ;;  %v993_v48 = vmul.f32 %v9461_v60, %v9461_v60 }
 0x38d   :  { %970 = vadd.xlane.f32.xlu0 %v969_v7  ;;  %v1036_v19 = vsel %vm246_vm0, %v994_v32, 0.0 }
 0x38e   :  { %v7489_v24 = vpop.f32.mrb[22].mxu1  ;;  %v1033_v63 = vsel %vm246_vm0, %v993_v48, 0.0 }
 0x38f   :  { %v912_v37 = vadd.f32 %v7489_v24, %v9321_v58  ;;  %v906_v11 = vpop.f32.mrb[23].mxu1 }
 0x390   :  { %v907_v8 = vadd.f32 %v9321_v58, %v906_v11  ;;  %1037 = vadd.xlane.f32.xlu1 %v1036_v19 }
 0x391   :  { %v9476_v42 = vadd.f32 %v912_v37, %v9305_v49  ;;  %1034 = vadd.xlane.f32.xlu0 %v1033_v63 }
 0x392   :  { %v9479_v4 = vadd.f32 %v907_v8, %v9299_v45 }
 0x393   :  { %v978_v39 = vsel %vm246_vm0, %v9476_v42, 0.0  ;;  %v996_v13 = vmul.f32 %v9476_v42, %v9476_v42 }
 0x394   :  { %979 = vadd.xlane.f32.xlu1 %v978_v39  ;;  %v975_v58 = vsel %vm246_vm0, %v9479_v4, 0.0  ;;  %v995_v3 = vmul.f32 %v9479_v4, %v9479_v4 }
 0x395   :  { %976 = vadd.xlane.f32.xlu0 %v975_v58  ;;  %v1042_v49 = vsel %vm246_vm0, %v996_v13, 0.0 }
 0x396   :  { %v1039_v45 = vsel %vm246_vm0, %v995_v3, 0.0 }
 0x398   :  { %1043 = vadd.xlane.f32.xlu1 %v1042_v49 }
 0x399   :  { %1040 = vadd.xlane.f32.xlu0 %v1039_v45 }
 0x3e9   :  { %v938_v54 = vpop.xlane.xlu1 %937 }
 0x3ea   :  { %v1046_v15 = vmul.f32 0.015625, %v938_v54  ;;  %v935_v5 = vpop.xlane.xlu0 %934 }
 0x3eb   :  { %v1045_v36 = vmul.f32 0.015625, %v935_v5 }
 0x3ec   :  { %v1078_v14 = vmul.f32 %v1046_v15, %v1046_v15  ;;  %v1110_v54 = vsub.f32 %v9326_v23, %v1046_v15 }
 0x3ed   :  { %v1002_v9 = vpop.xlane.xlu1 %1001  ;;  %v1077_v50 = vmul.f32 %v1045_v36, %v1045_v36 }
 0x3ee   :  { %v1062_v40 = vmul.f32 0.015625, %v1002_v9  ;;  %v999_v34 = vpop.xlane.xlu0 %998 }
 0x3ef   :  { %v1061_v38 = vmul.f32 0.015625, %v999_v34 }
 0x3f0   :  { %v1094_v1 = vsub.f32 %v1062_v40, %v1078_v14  ;;  %v1109_v14 = vsub.f32 %v9329_v53, %v1045_v36  ;;  %v9504_v40 = vld [vmem:[%s12665_s6 + $0x4] ss:$0 sm:$0xff] }
 0x3f1   :  { %v1093_v18 = vsub.f32 %v1061_v38, %v1077_v50  ;;  %v944_v47 = vpop.xlane.xlu1 %943 }
 0x3f2   :  { %v1126_v29 = vadd.f32 1e-05, %v1094_v1  ;;  %v9491_v56 = vmul.f32 0.015625, %v944_v47  ;;  %v941_v35 = vpop.xlane.xlu0 %940 }
 0x3f3   :  { %v1125_v43 = vadd.f32 1e-05, %v1093_v18  ;;  %v1047_v32 = vmul.f32 0.015625, %v941_v35 }
 0x3f4   :  { %8333 = vrsqrt.f32 %v1126_v29  ;;  %v1080_v48 = vmul.f32 %v9491_v56, %v9491_v56 }
 0x3f5   :  { %8335 = vrsqrt.f32 %v1125_v43  ;;  %v1008_v7 = vpop.xlane.xlu1 %1007  ;;  %v1079_v11 = vmul.f32 %v1047_v32, %v1047_v32  ;;  %v9514_v43 = vld [vmem:[%s12665_s6 + $0x5] ss:$0 sm:$0xff] }
 0x3f6   :  { %v1064_v24 = vmul.f32 0.015625, %v1008_v7  ;;  %v1005_v37 = vpop.xlane.xlu0 %1004 }
 0x3f7   :  { %v1063_v19 = vmul.f32 0.015625, %v1005_v37 }
 0x3f8   :  { %v1096_v8 = vsub.f32 %v1064_v24, %v1080_v48 }
 0x3f9   :  { %v1095_v63 = vsub.f32 %v1063_v19, %v1079_v11  ;;  %v950_v39 = vpop.xlane.xlu1 %949 }
 0x3fa   :  { %v1128_v13 = vadd.f32 1e-05, %v1096_v8  ;;  %v9495_v58 = vmul.f32 0.015625, %v950_v39  ;;  %v947_v3 = vpop.xlane.xlu0 %946 }
 0x3fb   :  { %v1127_v49 = vadd.f32 1e-05, %v1095_v63  ;;  %v9497_v45 = vmul.f32 0.015625, %v947_v3  ;;  %v1112_v63 = vsub.f32 %v9344_v46, %v9491_v56 }
 0x3fc   :  { %8337 = vrsqrt.f32 %v1128_v13  ;;  %v1082_v34 = vmul.f32 %v9495_v58, %v9495_v58 }
 0x3fd   :  { %8339 = vrsqrt.f32 %v1127_v49  ;;  %v1014_v5 = vpop.xlane.xlu1 %1013  ;;  %v1081_v23 = vmul.f32 %v9497_v45, %v9497_v45  ;;  %v1111_v49 = vsub.f32 %v9347_v0, %v1047_v32 }
 0x3fe   :  { %v8334_v9 = vpop.eup %8333  ;;  %v1066_v50 = vmul.f32 0.015625, %v1014_v5  ;;  %v1011_v38 = vpop.xlane.xlu0 %1010 }
 0x3ff   :  { %v8336_v1 = vpop.eup %8335  ;;  %v1158_v18 = vmul.f32 %v8334_v9, %v1110_v54  ;;  %v1065_v15 = vmul.f32 0.015625, %v1011_v38 }
 0x400   :  { %v1098_v47 = vsub.f32 %v1066_v50, %v1082_v34  ;;  %v1157_v29 = vmul.f32 %v8336_v1, %v1109_v14 }
 0x401   :  { %v1178_v53 = vmul.f32 %v9504_v40, %v1158_v18  ;;  %v1097_v36 = vsub.f32 %v1065_v15, %v1081_v23  ;;  %v956_v35 = vpop.xlane.xlu1 %955 }
 0x402   :  { %v1130_v7 = vadd.f32 1e-05, %v1098_v47  ;;  %v9516_v48 = vmul.f32 0.015625, %v956_v35  ;;  %v953_v24 = vpop.xlane.xlu0 %952  ;;  %v1177_v37 = vmul.f32 %v9504_v40, %v1157_v29  ;;  %v1114_v35 = vsub.f32 %v9362_v33, %v9495_v58 }
 0x403   :  { %v1129_v11 = vadd.f32 1e-05, %v1097_v36  ;;  %v9519_v19 = vmul.f32 0.015625, %v953_v24  ;;  %v9527_v13 = vadd.f32 %v9514_v43, %v1178_v53 }
 0x404   :  { %8341 = vrsqrt.f32 %v1130_v7  ;;  %v9522_v8 = vadd.f32 %v9514_v43, %v1177_v37  ;;  %v1084_v54 = vmul.f32 %v9516_v48, %v9516_v48 }
 0x405   :  { %8343 = vrsqrt.f32 %v1129_v11  ;;  %v1020_v39 = vpop.xlane.xlu1 %1019  ;;  %v1083_v46 = vmul.f32 %v9519_v19, %v9519_v19  ;;  %v1113_v11 = vsub.f32 %v9365_v6, %v9497_v45 }
 0x406   :  { %v8338_v3 = vpop.eup %8337  ;;  %v1068_v5 = vmul.f32 0.015625, %v1020_v39  ;;  %7506 = vmatprep.mubr.msk.f32.mxu0 %vm246_vm0, %v9522_v8  ;;  %v1017_v9 = vpop.xlane.xlu0 %1016 }
 0x407   :  { %v8340_v14 = vpop.eup %8339  ;;  %v1067_v56 = vmul.f32 0.015625, %v1017_v9  ;;  %7507 = vmatmul.mubr.msk.f32.vlgmr.msra.gmra.mrb[24].mxu0 %vm246_vm0, %v9527_v13  ;;  %v1160_v34 = vmul.f32 %v8338_v3, %v1112_v63 }
 0x408   :  { %v1100_v50 = vsub.f32 %v1068_v5, %v1084_v54  ;;  %v1159_v38 = vmul.f32 %v8340_v14, %v1111_v49 }
 0x409   :  { %v1099_v0 = vsub.f32 %v1067_v56, %v1083_v46  ;;  %v962_v32 = vpop.xlane.xlu1 %961  ;;  %v1180_v1 = vmul.f32 %v9504_v40, %v1160_v34 }
 0x40a   :  { %v1132_v18 = vadd.f32 1e-05, %v1100_v50  ;;  %v9539_v23 = vmul.f32 0.015625, %v962_v32  ;;  %v959_v15 = vpop.xlane.xlu0 %958  ;;  %v1179_v47 = vmul.f32 %v9504_v40, %v1159_v38 }
 0x40b   :  { %v1131_v29 = vadd.f32 1e-05, %v1099_v0  ;;  %v9542_v53 = vmul.f32 0.015625, %v959_v15  ;;  %v9550_v24 = vadd.f32 %v9514_v43, %v1180_v1  ;;  %v1116_v1 = vsub.f32 %v9380_v59, %v9516_v48 }
 0x40c   :  { %8345 = vrsqrt.f32 %v1132_v18  ;;  %v9545_v36 = vadd.f32 %v9514_v43, %v1179_v47  ;;  %v1086_v63 = vmul.f32 %v9539_v23, %v9539_v23 }
 0x40d   :  { %8347 = vrsqrt.f32 %v1131_v29  ;;  %v1026_v7 = vpop.xlane.xlu1 %1025  ;;  %v1085_v33 = vmul.f32 %v9542_v53, %v9542_v53  ;;  %v1115_v29 = vsub.f32 %v9383_v20, %v9519_v19 }
 0x40e   :  { %v8342_v37 = vpop.eup %8341  ;;  %v1070_v39 = vmul.f32 0.015625, %v1026_v7  ;;  %7509 = vmatprep.mubr.msk.f32.mxu0 %vm246_vm0, %v9545_v36  ;;  %v1023_v3 = vpop.xlane.xlu0 %1022 }
 0x40f   :  { %v8344_v49 = vpop.eup %8343  ;;  %v1069_v58 = vmul.f32 0.015625, %v1023_v3  ;;  %7510 = vmatmul.mubr.msk.f32.gmra.mrb[26].mxu0 %vm246_vm0, %v9550_v24  ;;  %v1162_v54 = vmul.f32 %v8342_v37, %v1114_v35 }
 0x410   :  { %v1102_v5 = vsub.f32 %v1070_v39, %v1086_v63  ;;  %v1161_v9 = vmul.f32 %v8344_v49, %v1113_v11 }
 0x411   :  { %v1101_v6 = vsub.f32 %v1069_v58, %v1085_v33  ;;  %v968_v45 = vpop.xlane.xlu1 %967  ;;  %v1182_v14 = vmul.f32 %v9504_v40, %v1162_v54 }
 0x412   :  { %v1134_v46 = vadd.f32 1e-05, %v1102_v5  ;;  %v9563_v56 = vmul.f32 0.015625, %v968_v45  ;;  %v965_v34 = vpop.xlane.xlu0 %964  ;;  %v1181_v50 = vmul.f32 %v9504_v40, %v1161_v9 }
 0x413   :  { %v1133_v38 = vadd.f32 1e-05, %v1101_v6  ;;  %v9566_v0 = vmul.f32 0.015625, %v965_v34  ;;  %v9574_v15 = vadd.f32 %v9514_v43, %v1182_v14  ;;  %v1118_v14 = vsub.f32 %v9404_v21, %v9539_v23 }
 0x414   :  { %8349 = vrsqrt.f32 %v1134_v46  ;;  %v9569_v32 = vadd.f32 %v9514_v43, %v1181_v50  ;;  %v1088_v35 = vmul.f32 %v9563_v56, %v9563_v56 }
 0x415   :  { %8351 = vrsqrt.f32 %v1133_v38  ;;  %v1032_v18 = vpop.xlane.xlu1 %1031  ;;  %v1087_v59 = vmul.f32 %v9566_v0, %v9566_v0  ;;  %v1117_v38 = vsub.f32 %v9413_v27, %v9542_v53 }
 0x416   :  { %v8346_v47 = vpop.eup %8345  ;;  %v1072_v7 = vmul.f32 0.015625, %v1032_v18  ;;  %7512 = vmatprep.mubr.msk.f32.mxu0 %vm246_vm0, %v9569_v32  ;;  %v1029_v37 = vpop.xlane.xlu0 %1028 }
 0x417   :  { %v8348_v11 = vpop.eup %8347  ;;  %v1071_v48 = vmul.f32 0.015625, %v1029_v37  ;;  %7513 = vmatmul.mubr.msk.f32.gmra.mrb[28].mxu0 %vm246_vm0, %v9574_v15  ;;  %v1164_v63 = vmul.f32 %v8346_v47, %v1116_v1 }
 0x418   :  { %v1104_v39 = vsub.f32 %v1072_v7, %v1088_v35  ;;  %v1163_v3 = vmul.f32 %v8348_v11, %v1115_v29 }
 0x419   :  { %v1103_v20 = vsub.f32 %v1071_v48, %v1087_v59  ;;  %v974_v19 = vpop.xlane.xlu1 %973  ;;  %v1184_v49 = vmul.f32 %v9504_v40, %v1164_v63 }
 0x41a   :  { %v1136_v33 = vadd.f32 1e-05, %v1104_v39  ;;  %v9587_v58 = vmul.f32 0.015625, %v974_v19  ;;  %v971_v54 = vpop.xlane.xlu0 %970  ;;  %v1183_v5 = vmul.f32 %v9504_v40, %v1163_v3 }
 0x41b   :  { %v1135_v9 = vadd.f32 1e-05, %v1103_v20  ;;  %v9590_v6 = vmul.f32 0.015625, %v971_v54  ;;  %v9598_v34 = vadd.f32 %v9514_v43, %v1184_v49  ;;  %v1120_v49 = vsub.f32 %v9434_v22, %v9563_v56 }
 0x41c   :  { %8353 = vrsqrt.f32 %v1136_v33  ;;  %v9593_v45 = vadd.f32 %v9514_v43, %v1183_v5  ;;  %v1090_v1 = vmul.f32 %v9587_v58, %v9587_v58 }
 0x41d   :  { %8355 = vrsqrt.f32 %v1135_v9  ;;  %v1038_v46 = vpop.xlane.xlu1 %1037  ;;  %v1089_v21 = vmul.f32 %v9590_v6, %v9590_v6  ;;  %v1119_v9 = vsub.f32 %v9443_v55, %v9566_v0 }
 0x41e   :  { %v8350_v50 = vpop.eup %8349  ;;  %v1074_v18 = vmul.f32 0.015625, %v1038_v46  ;;  %7515 = vmatprep.mubr.msk.f32.mxu0 %vm246_vm0, %v9593_v45  ;;  %v1035_v47 = vpop.xlane.xlu0 %1034 }
 0x41f   :  { %v8352_v29 = vpop.eup %8351  ;;  %v1073_v23 = vmul.f32 0.015625, %v1035_v47  ;;  %7516 = vmatmul.mubr.msk.f32.gmra.mrb[30].mxu0 %vm246_vm0, %v9598_v34  ;;  %v1166_v35 = vmul.f32 %v8350_v50, %v1118_v14 }
 0x420   :  { %v1106_v7 = vsub.f32 %v1074_v18, %v1090_v1  ;;  %v1165_v37 = vmul.f32 %v8352_v29, %v1117_v38 }
 0x421   :  { %v1105_v27 = vsub.f32 %v1073_v23, %v1089_v21  ;;  %v980_v53 = vpop.xlane.xlu1 %979  ;;  %v1186_v11 = vmul.f32 %v9504_v40, %v1166_v35 }
 0x422   :  { %v1138_v59 = vadd.f32 1e-05, %v1106_v7  ;;  %v1060_v48 = vmul.f32 0.015625, %v980_v53  ;;  %v977_v63 = vpop.xlane.xlu0 %976  ;;  %v1185_v39 = vmul.f32 %v9504_v40, %v1165_v37  ;;  %v1122_v7 = vsub.f32 %v9458_v28, %v9587_v58 }
 0x423   :  { %v1137_v3 = vadd.f32 1e-05, %v1105_v27  ;;  %v1059_v20 = vmul.f32 0.015625, %v977_v63  ;;  %v9618_v54 = vadd.f32 %v9514_v43, %v1186_v11  ;;  %v1121_v53 = vsub.f32 %v9461_v60, %v9590_v6 }
 0x424   :  { %8357 = vrsqrt.f32 %v1138_v59  ;;  %v9613_v19 = vadd.f32 %v9514_v43, %v1185_v39  ;;  %v1092_v14 = vmul.f32 %v1060_v48, %v1060_v48 }
 0x425   :  { %8359 = vrsqrt.f32 %v1137_v3  ;;  %v1044_v33 = vpop.xlane.xlu1 %1043  ;;  %v1091_v1 = vmul.f32 %v1059_v20, %v1059_v20  ;;  %v1124_v3 = vsub.f32 %v9476_v42, %v1060_v48 }
 0x426   :  { %v8354_v5 = vpop.eup %8353  ;;  %v1076_v46 = vmul.f32 0.015625, %v1044_v33  ;;  %7518 = vmatprep.mubr.msk.f32.mxu0 %vm246_vm0, %v9613_v19  ;;  %v1041_v50 = vpop.xlane.xlu0 %1040 }
 0x427   :  { %v8356_v38 = vpop.eup %8355  ;;  %v1075_v18 = vmul.f32 0.015625, %v1041_v50  ;;  %7519 = vmatmul.mubr.msk.f32.gmra.mrb[32].mxu0 %vm246_vm0, %v9618_v54  ;;  %v1168_v22 = vmul.f32 %v8354_v5, %v1120_v49  ;;  %v1123_v49 = vsub.f32 %v9479_v4, %v1059_v20  ;;  %v9671_v4 = vld [vmem:[%s12665_s6 + $0x6] ss:$0 sm:$0xff] }
 0x428   :  { %v1108_v56 = vsub.f32 %v1076_v46, %v1092_v14  ;;  %v1167_v47 = vmul.f32 %v8356_v38, %v1119_v9 }
 0x429   :  { %v1107_v29 = vsub.f32 %v1075_v18, %v1091_v1  ;;  %v1188_v21 = vmul.f32 %v9504_v40, %v1168_v22 }
 0x42a   :  { %v1140_v23 = vadd.f32 1e-05, %v1108_v56  ;;  %v1187_v55 = vmul.f32 %v9504_v40, %v1167_v47 }
 0x42b   :  { %v1139_v0 = vadd.f32 1e-05, %v1107_v29  ;;  %v9634_v37 = vadd.f32 %v9514_v43, %v1188_v21 }
 0x42c   :  { %8361 = vrsqrt.f32 %v1140_v23  ;;  %v9629_v35 = vadd.f32 %v9514_v43, %v1187_v55 }
 0x42d   :  { %8363 = vrsqrt.f32 %v1139_v0 }
 0x42e   :  { %v8358_v27 = vpop.eup %8357  ;;  %7521 = vmatprep.mubr.msk.f32.mxu0 %vm246_vm0, %v9629_v35 }
 0x42f   :  { %v8360_v11 = vpop.eup %8359  ;;  %7522 = vmatmul.mubr.msk.f32.gmra.mrb[34].mxu0 %vm246_vm0, %v9634_v37  ;;  %v1170_v59 = vmul.f32 %v8358_v27, %v1122_v7 }
 0x430   :  { %v1169_v63 = vmul.f32 %v8360_v11, %v1121_v53 }
 0x431   :  { %v1190_v39 = vmul.f32 %v9504_v40, %v1170_v59 }
 0x432   :  { %v1189_v28 = vmul.f32 %v9504_v40, %v1169_v63 }
 0x433   :  { %v9649_v60 = vadd.f32 %v9514_v43, %v1190_v39 }
 0x434   :  { %v9645_v58 = vadd.f32 %v9514_v43, %v1189_v28 }
 0x436   :  { %v8362_v6 = vpop.eup %8361  ;;  %7524 = vmatprep.mubr.msk.f32.mxu0 %vm246_vm0, %v9645_v58 }
 0x437   :  { %v8364_v33 = vpop.eup %8363  ;;  %7525 = vmatmul.mubr.msk.f32.gmra.mrb[36].mxu0 %vm246_vm0, %v9649_v60  ;;  %v1172_v5 = vmul.f32 %v8362_v6, %v1124_v3 }
 0x438   :  { %v1171_v9 = vmul.f32 %v8364_v33, %v1123_v49 }
 0x439   :  { %v1192_v14 = vmul.f32 %v9504_v40, %v1172_v5 }
 0x43a   :  { %v1191_v46 = vmul.f32 %v9504_v40, %v1171_v9 }
 0x43b   :  { %v9662_v48 = vadd.f32 %v9514_v43, %v1192_v14 }
 0x43c   :  { %v9659_v42 = vadd.f32 %v9514_v43, %v1191_v46 }
 0x43e   :  { %7527 = vmatprep.mubr.msk.f32.mxu0 %vm246_vm0, %v9659_v42 }
 0x43f   :  { %7528 = vmatmul.mubr.msk.f32.gmra.mrb[38].mxu0 %vm246_vm0, %v9662_v48 }
 0x4da   :  { %v7508_v20 = vpop.f32.mrb[24].mxu0 }
 0x4db   :  { %v1346_v40 = vadd.f32 %v7508_v20, %v9671_v4  ;;  %v1340_v50 = vpop.f32.mrb[25].mxu0 }
 0x4dc   :  { %v1341_v38 = vadd.f32 %v9671_v4, %v1340_v50 }
 0x4dd   :  { %v9676_v43 = vadd.f32 %v1346_v40, %v9527_v13 }
 0x4de   :  { %v9679_v1 = vadd.f32 %v1341_v38, %v9522_v8 }
 0x4df   :  { %v1440_v18 = vsel %vm246_vm0, %v9676_v43, 0.0  ;;  %v1486_v22 = vmul.f32 %v9676_v43, %v9676_v43 }
 0x4e0   :  { %1441 = vadd.xlane.f32.xlu1 %v1440_v18  ;;  %v1437_v56 = vsel %vm246_vm0, %v9679_v1, 0.0  ;;  %v1485_v47 = vmul.f32 %v9679_v1, %v9679_v1 }
 0x4e1   :  { %1438 = vadd.xlane.f32.xlu0 %v1437_v56  ;;  %v1504_v8 = vsel %vm246_vm0, %v1486_v22, 0.0 }
 0x4e2   :  { %v7511_v29 = vpop.f32.mrb[26].mxu0  ;;  %v1501_v55 = vsel %vm246_vm0, %v1485_v47, 0.0 }
 0x4e3   :  { %v1356_v13 = vadd.f32 %v7511_v29, %v9671_v4  ;;  %v1350_v21 = vpop.f32.mrb[27].mxu0 }
 0x4e4   :  { %v1351_v23 = vadd.f32 %v9671_v4, %v1350_v21  ;;  %1505 = vadd.xlane.f32.xlu1 %v1504_v8 }
 0x4e5   :  { %v9694_v0 = vadd.f32 %v1356_v13, %v9550_v24  ;;  %1502 = vadd.xlane.f32.xlu0 %v1501_v55 }
 0x4e6   :  { %v9697_v7 = vadd.f32 %v1351_v23, %v9545_v36 }
 0x4e7   :  { %v1446_v27 = vsel %vm246_vm0, %v9694_v0, 0.0  ;;  %v1488_v53 = vmul.f32 %v9694_v0, %v9694_v0 }
 0x4e8   :  { %1447 = vadd.xlane.f32.xlu1 %v1446_v27  ;;  %v1443_v11 = vsel %vm246_vm0, %v9697_v7, 0.0  ;;  %v1487_v59 = vmul.f32 %v9697_v7, %v9697_v7 }
 0x4e9   :  { %1444 = vadd.xlane.f32.xlu0 %v1443_v11  ;;  %v1510_v36 = vsel %vm246_vm0, %v1488_v53, 0.0 }
 0x4ea   :  { %v7514_v24 = vpop.f32.mrb[28].mxu0  ;;  %v1507_v3 = vsel %vm246_vm0, %v1487_v59, 0.0  ;;  %v6793_v59 = vld [vmem:[%s12663_s4 + $0x50] sm:$0xff] }
 0x4eb   :  { %v1366_v63 = vadd.f32 %v7514_v24, %v9671_v4  ;;  %v1360_v39 = vpop.f32.mrb[29].mxu0  ;;  %v6794_v24 = vld [vmem:[%s12663_s4 + $0x58] sm:$0xff] }
 0x4ec   :  { %v1361_v28 = vadd.f32 %v9671_v4, %v1360_v39  ;;  %1511 = vadd.xlane.f32.xlu1 %v1510_v36  ;;  %v8033_v39 = vpack.c.bf16 %v6794_v24, %v6793_v59 }
 0x4ed   :  { %v9712_v6 = vadd.f32 %v1366_v63, %v9574_v15  ;;  %1508 = vadd.xlane.f32.xlu0 %v1507_v3 }
 0x4ee   :  { %v9715_v49 = vadd.f32 %v1361_v28, %v9569_v32 }
 0x4ef   :  { %v1452_v33 = vsel %vm246_vm0, %v9712_v6, 0.0  ;;  %v1490_v5 = vmul.f32 %v9712_v6, %v9712_v6 }
 0x4f0   :  { %1453 = vadd.xlane.f32.xlu1 %v1452_v33  ;;  %v1449_v9 = vsel %vm246_vm0, %v9715_v49, 0.0  ;;  %v1489_v14 = vmul.f32 %v9715_v49, %v9715_v49  ;;  %v6796_v33 = vld [vmem:[%s12663_s4 + $0x68] sm:$0xff] }
 0x4f1   :  { %1450 = vadd.xlane.f32.xlu0 %v1449_v9  ;;  %v1516_v32 = vsel %vm246_vm0, %v1490_v5, 0.0 }
 0x4f2   :  { %v7517_v15 = vpop.f32.mrb[30].mxu0  ;;  %v1513_v50 = vsel %vm246_vm0, %v1489_v14, 0.0 }
 0x4f3   :  { %v1376_v46 = vadd.f32 %v7517_v15, %v9671_v4  ;;  %v1370_v20 = vpop.f32.mrb[31].mxu0 }
 0x4f4   :  { %v1371_v40 = vadd.f32 %v9671_v4, %v1370_v20  ;;  %1517 = vadd.xlane.f32.xlu1 %v1516_v32 }
 0x4f5   :  { %v9730_v38 = vadd.f32 %v1376_v46, %v9598_v34  ;;  %1514 = vadd.xlane.f32.xlu0 %v1513_v50  ;;  %v6791_v34 = vld [vmem:[%s12663_s4 + $0x40] sm:$0xff]  ;;  %v6797_v50 = vld [vmem:[%s12663_s4 + $0x70] sm:$0xff] }
 0x4f6   :  { %v9733_v18 = vadd.f32 %v1371_v40, %v9593_v45  ;;  %v6792_v45 = vld [vmem:[%s12663_s4 + $0x48] sm:$0xff] }
 0x4f7   :  { %v1458_v22 = vsel %vm246_vm0, %v9730_v38, 0.0  ;;  %v1492_v56 = vmul.f32 %v9730_v38, %v9730_v38  ;;  %v8029_v21 = vpack.c.bf16 %v6792_v45, %v6791_v34 }
 0x4f8   :  { %1459 = vadd.xlane.f32.xlu1 %v1458_v22  ;;  %v1455_v47 = vsel %vm246_vm0, %v9733_v18, 0.0  ;;  %v1491_v29 = vmul.f32 %v9733_v18, %v9733_v18  ;;  %v6798_v22 = vld [vmem:[%s12663_s4 + $0x78] sm:$0xff] }
 0x4f9   :  { %1456 = vadd.xlane.f32.xlu0 %v1455_v47  ;;  %v1522_v55 = vsel %vm246_vm0, %v1492_v56, 0.0  ;;  %8030 = vmatprep.subr.bf16.mxu1 %v8029_v21  ;;  %v8041_v47 = vpack.c.bf16 %v6798_v22, %v6797_v50  ;;  %v6819_v22 = vld [vmem:[%s12664_s5 + $0x98] sm:$0xff] }
 0x4fa   :  { %v7520_v13 = vpop.f32.mrb[32].mxu0  ;;  %v1519_v53 = vsel %vm246_vm0, %v1491_v29, 0.0  ;;  %8032 = vmatpush3.bf16.msra.mxu1 %v8029_v21 }
 0x4fb   :  { %v1386_v8 = vadd.f32 %v7520_v13, %v9671_v4  ;;  %v1380_v23 = vpop.f32.mrb[33].mxu0  ;;  %8034 = vmatprep.subr.bf16.mxu1 %v8033_v39 }
 0x4fc   :  { %v1381_v27 = vadd.f32 %v9671_v4, %v1380_v23  ;;  %1523 = vadd.xlane.f32.xlu1 %v1522_v55 }
 0x4fd   :  { %v9754_v11 = vadd.f32 %v1386_v8, %v9618_v54  ;;  %1520 = vadd.xlane.f32.xlu0 %v1519_v53 }
 0x4fe   :  { %v9763_v63 = vadd.f32 %v1381_v27, %v9613_v19  ;;  %8036 = vmatpush3.bf16.msra.mxu1 %v8033_v39  ;;  %v6795_v19 = vld [vmem:[%s12663_s4 + $0x60] sm:$0xff] }
 0x4ff   :  { %v1464_v36 = vsel %vm246_vm0, %v9754_v11, 0.0  ;;  %v1494_v54 = vmul.f32 %v9754_v11, %v9754_v11  ;;  %v8037_v9 = vpack.c.bf16 %v6796_v33, %v6795_v19 }
 0x500   :  { %1465 = vadd.xlane.f32.xlu1 %v1464_v36  ;;  %v1461_v28 = vsel %vm246_vm0, %v9763_v63, 0.0  ;;  %v1493_v3 = vmul.f32 %v9763_v63, %v9763_v63 }
 0x501   :  { %1462 = vadd.xlane.f32.xlu0 %v1461_v28  ;;  %v1528_v46 = vsel %vm246_vm0, %v1494_v54, 0.0  ;;  %8038 = vmatprep.subr.bf16.mxu1 %v8037_v9 }
 0x502   :  { %v7523_v5 = vpop.f32.mrb[34].mxu0  ;;  %v1525_v32 = vsel %vm246_vm0, %v1493_v3, 0.0  ;;  %8040 = vmatpush3.bf16.msra.mxu1 %v8037_v9 }
 0x503   :  { %v1396_v14 = vadd.f32 %v7523_v5, %v9671_v4  ;;  %v1390_v15 = vpop.f32.mrb[35].mxu0  ;;  %8042 = vmatprep.subr.bf16.mxu1 %v8041_v47 }
 0x504   :  { %v1391_v20 = vadd.f32 %v9671_v4, %v1390_v15  ;;  %1529 = vadd.xlane.f32.xlu1 %v1528_v46  ;;  %v6816_v46 = vld [vmem:[%s12664_s5 + $0x80] sm:$0xff] }
 0x505   :  { %v9784_v40 = vadd.f32 %v1396_v14, %v9634_v37  ;;  %1526 = vadd.xlane.f32.xlu0 %v1525_v32  ;;  %v6818_v32 = vld [vmem:[%s12664_s5 + $0x90] sm:$0xff] }
 0x506   :  { %v9793_v56 = vadd.f32 %v1391_v20, %v9629_v35  ;;  %8044 = vmatpush3.bf16.msra.mxu1 %v8041_v47  ;;  %v6817_v20 = vld [vmem:[%s12664_s5 + $0x88] sm:$0xff]  ;;  %v8049_v47 = vpack.c.bf16 %v6819_v22, %v6818_v32 }
 0x507   :  { %v1470_v29 = vsel %vm246_vm0, %v9784_v40, 0.0  ;;  %v1496_v37 = vmul.f32 %v9784_v40, %v9784_v40  ;;  %v8045_v50 = vpack.c.bf16 %v6817_v20, %v6816_v46 }
 0x508   :  { %1471 = vadd.xlane.f32.xlu1 %v1470_v29  ;;  %v1467_v34 = vsel %vm246_vm0, %v9793_v56, 0.0  ;;  %v1495_v45 = vmul.f32 %v9793_v56, %v9793_v56  ;;  %v6820_v29 = vld [vmem:[%s12664_s5 + $0xa0] sm:$0xff] }
 0x509   :  { %1468 = vadd.xlane.f32.xlu0 %v1467_v34  ;;  %v1534_v8 = vsel %vm246_vm0, %v1496_v37, 0.0  ;;  %v6821_v37 = vld [vmem:[%s12664_s5 + $0xa8] sm:$0xff]  ;;  %8046 = vmatprep.subr.bf16.mxu0 %v8045_v50 }
 0x50a   :  { %v7526_v13 = vpop.f32.mrb[36].mxu0  ;;  %v1531_v55 = vsel %vm246_vm0, %v1495_v45, 0.0  ;;  %8048 = vmatpush3.bf16.msra.mxu0 %v8045_v50  ;;  %v8053_v34 = vpack.c.bf16 %v6821_v37, %v6820_v29  ;;  %v6822_v45 = vld [vmem:[%s12664_s5 + $0xb0] sm:$0xff] }
 0x50b   :  { %v1406_v35 = vadd.f32 %v7526_v13, %v9671_v4  ;;  %v1400_v21 = vpop.f32.mrb[37].mxu0  ;;  %8050 = vmatprep.subr.bf16.mxu0 %v8049_v47  ;;  %v6823_v13 = vld [vmem:[%s12664_s5 + $0xb8] sm:$0xff] }
 0x50c   :  { %v1401_v23 = vadd.f32 %v9671_v4, %v1400_v21  ;;  %1535 = vadd.xlane.f32.xlu1 %v1534_v8  ;;  %v6824_v21 = vld [vmem:[%s12664_s5 + $0xc0] sm:$0xff]  ;;  %v6825_v8 = vld [vmem:[%s12664_s5 + $0xc8] sm:$0xff] }
 0x50d   :  { %v9808_v27 = vadd.f32 %v1406_v35, %v9649_v60  ;;  %1532 = vadd.xlane.f32.xlu0 %v1531_v55  ;;  %v8057_v35 = vpack.c.bf16 %v6823_v13, %v6822_v45  ;;  %v6826_v55 = vld [vmem:[%s12664_s5 + $0xd0] sm:$0xff] }
 0x50e   :  { %v9811_v53 = vadd.f32 %v1401_v23, %v9645_v58  ;;  %8052 = vmatpush3.bf16.msra.mxu0 %v8049_v47  ;;  %v8061_v23 = vpack.c.bf16 %v6825_v8, %v6824_v21 }
 0x50f   :  { %v1476_v59 = vsel %vm246_vm0, %v9808_v27, 0.0  ;;  %v1498_v24 = vmul.f32 %v9808_v27, %v9808_v27  ;;  %8054 = vmatprep.subr.bf16.mxu0 %v8053_v34 }
 0x510   :  { %1477 = vadd.xlane.f32.xlu1 %v1476_v59  ;;  %v1473_v39 = vsel %vm246_vm0, %v9811_v53, 0.0  ;;  %v1497_v36 = vmul.f32 %v9811_v53, %v9811_v53  ;;  %v6827_v59 = vld [vmem:[%s12664_s5 + $0xd8] sm:$0xff] }
 0x511   :  { %1474 = vadd.xlane.f32.xlu0 %v1473_v39  ;;  %v1540_v58 = vsel %vm246_vm0, %v1498_v24, 0.0  ;;  %v8065_v24 = vpack.c.bf16 %v6827_v59, %v6826_v55  ;;  %v6828_v39 = vld [vmem:[%s12664_s5 + $0xe0] sm:$0xff] }
 0x512   :  { %v7529_v60 = vpop.f32.mrb[38].mxu0  ;;  %v1537_v19 = vsel %vm246_vm0, %v1497_v36, 0.0  ;;  %8056 = vmatpush3.bf16.msra.mxu0 %v8053_v34  ;;  %v6829_v36 = vld [vmem:[%s12664_s5 + $0xe8] sm:$0xff] }
 0x513   :  { %v1416_v54 = vadd.f32 %v7529_v60, %v9671_v4  ;;  %v1410_v28 = vpop.f32.mrb[39].mxu0  ;;  %8058 = vmatprep.subr.bf16.mxu0 %v8057_v35  ;;  %v8069_v60 = vpack.c.bf16 %v6829_v36, %v6828_v39 }
 0x514   :  { %v1411_v3 = vadd.f32 %v9671_v4, %v1410_v28  ;;  %1541 = vadd.xlane.f32.xlu1 %v1540_v58 }
 0x515   :  { %v9826_v33 = vadd.f32 %v1416_v54, %v9662_v48  ;;  %1538 = vadd.xlane.f32.xlu0 %v1537_v19 }
 0x516   :  { %v9829_v5 = vadd.f32 %v1411_v3, %v9659_v42  ;;  %8060 = vmatpush3.bf16.msra.mxu0 %v8057_v35 }
 0x517   :  { %v1482_v9 = vsel %vm246_vm0, %v9826_v33, 0.0  ;;  %v1500_v14 = vmul.f32 %v9826_v33, %v9826_v33  ;;  %8062 = vmatprep.subr.bf16.mxu0 %v8061_v23 }
 0x518   :  { %1483 = vadd.xlane.f32.xlu1 %v1482_v9  ;;  %v1479_v4 = vsel %vm246_vm0, %v9829_v5, 0.0  ;;  %v1499_v15 = vmul.f32 %v9829_v5, %v9829_v5 }
 0x519   :  { %1480 = vadd.xlane.f32.xlu0 %v1479_v4  ;;  %v1546_v48 = vsel %vm246_vm0, %v1500_v14, 0.0 }
 0x51a   :  { %v1543_v42 = vsel %vm246_vm0, %v1499_v15, 0.0  ;;  %8064 = vmatpush3.bf16.msra.mxu0 %v8061_v23 }
 0x51b   :  { %8066 = vmatprep.subr.bf16.mxu0 %v8065_v24 }
 0x51c   :  { %1547 = vadd.xlane.f32.xlu1 %v1546_v48 }
 0x51d   :  { %1544 = vadd.xlane.f32.xlu0 %v1543_v42 }
 0x51e   :  { %8068 = vmatpush3.bf16.msra.mxu0 %v8065_v24 }
 0x51f   :  { %8070 = vmatprep.subr.bf16.mxu0 %v8069_v60 }
 0x522   :  { %8072 = vmatpush3.bf16.msra.mxu0 %v8069_v60 }
 0x56d   :  { %v1442_v54 = vpop.xlane.xlu1 %1441 }
 0x56e   :  { %v1550_v28 = vmul.f32 0.015625, %v1442_v54  ;;  %v1439_v58 = vpop.xlane.xlu0 %1438 }
 0x56f   :  { %v1549_v3 = vmul.f32 0.015625, %v1439_v58 }
 0x570   :  { %v1582_v9 = vmul.f32 %v1550_v28, %v1550_v28  ;;  %v1614_v54 = vsub.f32 %v9676_v43, %v1550_v28 }
 0x571   :  { %v1506_v19 = vpop.xlane.xlu1 %1505  ;;  %v1581_v15 = vmul.f32 %v1549_v3, %v1549_v3 }
 0x572   :  { %v1566_v14 = vmul.f32 0.015625, %v1506_v19  ;;  %v1503_v4 = vpop.xlane.xlu0 %1502 }
 0x573   :  { %v1565_v48 = vmul.f32 0.015625, %v1503_v4 }
 0x574   :  { %v1598_v42 = vsub.f32 %v1566_v14, %v1582_v9  ;;  %v1613_v9 = vsub.f32 %v9679_v1, %v1549_v3  ;;  %v9896_v14 = vld [vmem:[%s12665_s6 + $0x7] ss:$0 sm:$0xff] }
 0x575   :  { %v1597_v46 = vsub.f32 %v1565_v48, %v1581_v15  ;;  %v1448_v20 = vpop.xlane.xlu1 %1447 }
 0x576   :  { %v1630_v32 = vadd.f32 1e-05, %v1598_v42  ;;  %v9883_v50 = vmul.f32 0.015625, %v1448_v20  ;;  %v1445_v22 = vpop.xlane.xlu0 %1444 }
 0x577   :  { %v1629_v47 = vadd.f32 1e-05, %v1597_v46  ;;  %v1551_v29 = vmul.f32 0.015625, %v1445_v22 }
 0x578   :  { %8365 = vrsqrt.f32 %v1630_v32  ;;  %v1584_v34 = vmul.f32 %v9883_v50, %v9883_v50 }
 0x579   :  { %8367 = vrsqrt.f32 %v1629_v47  ;;  %v1512_v37 = vpop.xlane.xlu1 %1511  ;;  %v1583_v35 = vmul.f32 %v1551_v29, %v1551_v29  ;;  %v9906_v47 = vld [vmem:[%s12665_s6 + $0x8] ss:$0 sm:$0xff] }
 0x57a   :  { %v1568_v45 = vmul.f32 0.015625, %v1512_v37  ;;  %v1509_v13 = vpop.xlane.xlu0 %1508 }
 0x57b   :  { %v1567_v21 = vmul.f32 0.015625, %v1509_v13 }
 0x57c   :  { %v1600_v8 = vsub.f32 %v1568_v45, %v1584_v34 }
 0x57d   :  { %v1599_v23 = vsub.f32 %v1567_v21, %v1583_v35  ;;  %v1454_v55 = vpop.xlane.xlu1 %1453 }
 0x57e   :  { %v1632_v59 = vadd.f32 1e-05, %v1600_v8  ;;  %v9887_v24 = vmul.f32 0.015625, %v1454_v55  ;;  %v1451_v39 = vpop.xlane.xlu0 %1450 }
 0x57f   :  { %v1631_v36 = vadd.f32 1e-05, %v1599_v23  ;;  %v9889_v60 = vmul.f32 0.015625, %v1451_v39  ;;  %v1616_v23 = vsub.f32 %v9694_v0, %v9883_v50 }
 0x580   :  { %8369 = vrsqrt.f32 %v1632_v59  ;;  %v1586_v4 = vmul.f32 %v9887_v24, %v9887_v24 }
 0x581   :  { %8371 = vrsqrt.f32 %v1631_v36  ;;  %v1518_v58 = vpop.xlane.xlu1 %1517  ;;  %v1585_v43 = vmul.f32 %v9889_v60, %v9889_v60  ;;  %v1615_v36 = vsub.f32 %v9697_v7, %v1551_v29 }
 0x582   :  { %v8366_v19 = vpop.eup %8365  ;;  %v1570_v15 = vmul.f32 0.015625, %v1518_v58  ;;  %v1515_v48 = vpop.xlane.xlu0 %1514 }
 0x583   :  { %v8368_v42 = vpop.eup %8367  ;;  %v1662_v46 = vmul.f32 %v8366_v19, %v1614_v54  ;;  %v1569_v28 = vmul.f32 0.015625, %v1515_v48 }
 0x584   :  { %v1602_v20 = vsub.f32 %v1570_v15, %v1586_v4  ;;  %v1661_v32 = vmul.f32 %v8368_v42, %v1613_v9 }
 0x585   :  { %v1682_v1 = vmul.f32 %v9896_v14, %v1662_v46  ;;  %v1601_v3 = vsub.f32 %v1569_v28, %v1585_v43  ;;  %v1460_v22 = vpop.xlane.xlu1 %1459 }
 0x586   :  { %v1634_v37 = vadd.f32 1e-05, %v1602_v20  ;;  %v9908_v34 = vmul.f32 0.015625, %v1460_v22  ;;  %v1457_v45 = vpop.xlane.xlu0 %1456  ;;  %v1681_v13 = vmul.f32 %v9896_v14, %v1661_v32  ;;  %v1618_v22 = vsub.f32 %v9712_v6, %v9887_v24 }
 0x587   :  { %v1633_v35 = vadd.f32 1e-05, %v1601_v3  ;;  %v9911_v21 = vmul.f32 0.015625, %v1457_v45  ;;  %v9919_v59 = vadd.f32 %v9906_v47, %v1682_v1 }
 0x588   :  { %8373 = vrsqrt.f32 %v1634_v37  ;;  %v9914_v8 = vadd.f32 %v9906_v47, %v1681_v13  ;;  %v1588_v54 = vmul.f32 %v9908_v34, %v9908_v34 }
 0x589   :  { %8375 = vrsqrt.f32 %v1633_v35  ;;  %v1524_v55 = vpop.xlane.xlu1 %1523  ;;  %v1587_v0 = vmul.f32 %v9911_v21, %v9911_v21  ;;  %v1617_v35 = vsub.f32 %v9715_v49, %v9889_v60 }
 0x58a   :  { %v8370_v39 = vpop.eup %8369  ;;  %v1572_v58 = vmul.f32 0.015625, %v1524_v55  ;;  %7546 = vmatprep.mubr.msk.f32.mxu1 %vm246_vm0, %v9914_v8  ;;  %v1521_v19 = vpop.xlane.xlu0 %1520 }
 0x58b   :  { %v8372_v9 = vpop.eup %8371  ;;  %v1571_v50 = vmul.f32 0.015625, %v1521_v19  ;;  %7547 = vmatmul.mubr.msk.f32.vlgmr.msra.gmra.mrb[24].mxu1 %vm246_vm0, %v9919_v59  ;;  %v1664_v4 = vmul.f32 %v8370_v39, %v1616_v23 }
 0x58c   :  { %v1604_v15 = vsub.f32 %v1572_v58, %v1588_v54  ;;  %v1663_v48 = vmul.f32 %v8372_v9, %v1615_v36 }
 0x58d   :  { %v1603_v7 = vsub.f32 %v1571_v50, %v1587_v0  ;;  %v1466_v29 = vpop.xlane.xlu1 %1465  ;;  %v1684_v42 = vmul.f32 %v9896_v14, %v1664_v4 }
 0x58e   :  { %v1636_v46 = vadd.f32 1e-05, %v1604_v15  ;;  %v9931_v43 = vmul.f32 0.015625, %v1466_v29  ;;  %v1463_v28 = vpop.xlane.xlu0 %1462  ;;  %v1683_v20 = vmul.f32 %v9896_v14, %v1663_v48 }
 0x58f   :  { %v1635_v32 = vadd.f32 1e-05, %v1603_v7  ;;  %v9934_v1 = vmul.f32 0.015625, %v1463_v28  ;;  %v9942_v45 = vadd.f32 %v9906_v47, %v1684_v42  ;;  %v1620_v42 = vsub.f32 %v9730_v38, %v9908_v34 }
 0x590   :  { %8377 = vrsqrt.f32 %v1636_v46  ;;  %v9937_v3 = vadd.f32 %v9906_v47, %v1683_v20  ;;  %v1590_v23 = vmul.f32 %v9931_v43, %v9931_v43 }
 0x591   :  { %8379 = vrsqrt.f32 %v1635_v32  ;;  %v1530_v37 = vpop.xlane.xlu1 %1529  ;;  %v1589_v6 = vmul.f32 %v9934_v1, %v9934_v1  ;;  %v1619_v32 = vsub.f32 %v9733_v18, %v9911_v21 }
 0x592   :  { %v8374_v13 = vpop.eup %8373  ;;  %v1574_v55 = vmul.f32 0.015625, %v1530_v37  ;;  %7549 = vmatprep.mubr.msk.f32.mxu1 %vm246_vm0, %v9937_v3  ;;  %v1527_v39 = vpop.xlane.xlu0 %1526 }
 0x593   :  { %v8376_v36 = vpop.eup %8375  ;;  %v1573_v24 = vmul.f32 0.015625, %v1527_v39  ;;  %7550 = vmatmul.mubr.msk.f32.gmra.mrb[26].mxu1 %vm246_vm0, %v9942_v45  ;;  %v1666_v54 = vmul.f32 %v8374_v13, %v1618_v22 }
 0x594   :  { %v1606_v58 = vsub.f32 %v1574_v55, %v1590_v23  ;;  %v1665_v19 = vmul.f32 %v8376_v36, %v1617_v35 }
 0x595   :  { %v1605_v49 = vsub.f32 %v1573_v24, %v1589_v6  ;;  %v1472_v60 = vpop.xlane.xlu1 %1471  ;;  %v1686_v9 = vmul.f32 %v9896_v14, %v1666_v54 }
 0x596   :  { %v1638_v0 = vadd.f32 1e-05, %v1606_v58  ;;  %v9955_v50 = vmul.f32 0.015625, %v1472_v60  ;;  %v1469_v4 = vpop.xlane.xlu0 %1468  ;;  %v1685_v15 = vmul.f32 %v9896_v14, %v1665_v19 }
 0x597   :  { %v1637_v48 = vadd.f32 1e-05, %v1605_v49  ;;  %v9958_v7 = vmul.f32 0.015625, %v1469_v4  ;;  %v9966_v28 = vadd.f32 %v9906_v47, %v1686_v9  ;;  %v1622_v9 = vsub.f32 %v9754_v11, %v9931_v43 }
 0x598   :  { %8381 = vrsqrt.f32 %v1638_v0  ;;  %v9961_v29 = vadd.f32 %v9906_v47, %v1685_v15  ;;  %v1592_v22 = vmul.f32 %v9955_v50, %v9955_v50 }
 0x599   :  { %8383 = vrsqrt.f32 %v1637_v48  ;;  %v1536_v46 = vpop.xlane.xlu1 %1535  ;;  %v1591_v38 = vmul.f32 %v9958_v7, %v9958_v7  ;;  %v1621_v48 = vsub.f32 %v9763_v63, %v9934_v1 }
 0x59a   :  { %v8378_v20 = vpop.eup %8377  ;;  %v1576_v37 = vmul.f32 0.015625, %v1536_v46  ;;  %7552 = vmatprep.mubr.msk.f32.mxu1 %vm246_vm0, %v9961_v29  ;;  %v1533_v13 = vpop.xlane.xlu0 %1532 }
 0x59b   :  { %v8380_v35 = vpop.eup %8379  ;;  %v1575_v34 = vmul.f32 0.015625, %v1533_v13  ;;  %7553 = vmatmul.mubr.msk.f32.gmra.mrb[28].mxu1 %vm246_vm0, %v9966_v28  ;;  %v1668_v23 = vmul.f32 %v8378_v20, %v1620_v42 }
 0x59c   :  { %v1608_v55 = vsub.f32 %v1576_v37, %v1592_v22  ;;  %v1667_v39 = vmul.f32 %v8380_v35, %v1619_v32 }
 0x59d   :  { %v1607_v18 = vsub.f32 %v1575_v34, %v1591_v38  ;;  %v1478_v21 = vpop.xlane.xlu1 %1477  ;;  %v1688_v36 = vmul.f32 %v9896_v14, %v1668_v23 }
 0x59e   :  { %v1640_v6 = vadd.f32 1e-05, %v1608_v55  ;;  %v9979_v24 = vmul.f32 0.015625, %v1478_v21  ;;  %v1475_v54 = vpop.xlane.xlu0 %1474  ;;  %v1687_v58 = vmul.f32 %v9896_v14, %v1667_v39 }
 0x59f   :  { %v1639_v19 = vadd.f32 1e-05, %v1607_v18  ;;  %v9982_v49 = vmul.f32 0.015625, %v1475_v54  ;;  %v9990_v4 = vadd.f32 %v9906_v47, %v1688_v36  ;;  %v1624_v36 = vsub.f32 %v9784_v40, %v9955_v50 }
 0x5a0   :  { %8385 = vrsqrt.f32 %v1640_v6  ;;  %v9985_v60 = vadd.f32 %v9906_v47, %v1687_v58  ;;  %v1594_v42 = vmul.f32 %v9979_v24, %v9979_v24 }
 0x5a1   :  { %8387 = vrsqrt.f32 %v1639_v19  ;;  %v1542_v0 = vpop.xlane.xlu1 %1541  ;;  %v1593_v11 = vmul.f32 %v9982_v49, %v9982_v49  ;;  %v1623_v19 = vsub.f32 %v9793_v56, %v9958_v7 }
 0x5a2   :  { %v8382_v15 = vpop.eup %8381  ;;  %v1578_v46 = vmul.f32 0.015625, %v1542_v0  ;;  %7555 = vmatprep.mubr.msk.f32.mxu1 %vm246_vm0, %v9985_v60  ;;  %v1539_v20 = vpop.xlane.xlu0 %1538 }
 0x5a3   :  { %v8384_v32 = vpop.eup %8383  ;;  %v1577_v43 = vmul.f32 0.015625, %v1539_v20  ;;  %7556 = vmatmul.mubr.msk.f32.gmra.mrb[30].mxu1 %vm246_vm0, %v9990_v4  ;;  %v1670_v22 = vmul.f32 %v8382_v15, %v1622_v9 }
 0x5a4   :  { %v1610_v37 = vsub.f32 %v1578_v46, %v1594_v42  ;;  %v1669_v13 = vmul.f32 %v8384_v32, %v1621_v48 }
 0x5a5   :  { %v1609_v63 = vsub.f32 %v1577_v43, %v1593_v11  ;;  %v1484_v1 = vpop.xlane.xlu1 %1483  ;;  %v1690_v35 = vmul.f32 %v9896_v14, %v1670_v22 }
 0x5a6   :  { %v1642_v38 = vadd.f32 1e-05, %v1610_v37  ;;  %v1564_v34 = vmul.f32 0.015625, %v1484_v1  ;;  %v1481_v23 = vpop.xlane.xlu0 %1480  ;;  %v1689_v55 = vmul.f32 %v9896_v14, %v1669_v13  ;;  %v1626_v37 = vsub.f32 %v9808_v27, %v9979_v24 }
 0x5a7   :  { %v1641_v39 = vadd.f32 1e-05, %v1609_v63  ;;  %v1563_v18 = vmul.f32 0.015625, %v1481_v23  ;;  %v10010_v54 = vadd.f32 %v9906_v47, %v1690_v35  ;;  %v1625_v1 = vsub.f32 %v9811_v53, %v9982_v49 }
 0x5a8   :  { %8389 = vrsqrt.f32 %v1642_v38  ;;  %v10005_v21 = vadd.f32 %v9906_v47, %v1689_v55  ;;  %v1596_v9 = vmul.f32 %v1564_v34, %v1564_v34 }
 0x5a9   :  { %8391 = vrsqrt.f32 %v1641_v39  ;;  %v1548_v6 = vpop.xlane.xlu1 %1547  ;;  %v1595_v42 = vmul.f32 %v1563_v18, %v1563_v18  ;;  %v1628_v39 = vsub.f32 %v9826_v33, %v1564_v34 }
 0x5aa   :  { %v8386_v58 = vpop.eup %8385  ;;  %v1580_v0 = vmul.f32 0.015625, %v1548_v6  ;;  %7558 = vmatprep.mubr.msk.f32.mxu1 %vm246_vm0, %v10005_v21  ;;  %v1545_v15 = vpop.xlane.xlu0 %1544 }
 0x5ab   :  { %v8388_v48 = vpop.eup %8387  ;;  %v1579_v46 = vmul.f32 0.015625, %v1545_v15  ;;  %7559 = vmatmul.mubr.msk.f32.gmra.mrb[32].mxu1 %vm246_vm0, %v10010_v54  ;;  %v1672_v40 = vmul.f32 %v8386_v58, %v1624_v36  ;;  %v1627_v36 = vsub.f32 %v9829_v5, %v1563_v18  ;;  %v6830_v5 = vld [vmem:[%s12664_s5 + $0xf0] sm:$0xff] }
 0x5ac   :  { %v1612_v50 = vsub.f32 %v1580_v0, %v1596_v9  ;;  %v1671_v20 = vmul.f32 %v8388_v48, %v1623_v19 }
 0x5ad   :  { %v1611_v32 = vsub.f32 %v1579_v46, %v1595_v42  ;;  %v1692_v11 = vmul.f32 %v9896_v14, %v1672_v40 }
 0x5ae   :  { %v1644_v43 = vadd.f32 1e-05, %v1612_v50  ;;  %v1691_v56 = vmul.f32 %v9896_v14, %v1671_v20 }
 0x5af   :  { %v1643_v7 = vadd.f32 1e-05, %v1611_v32  ;;  %v10026_v13 = vadd.f32 %v9906_v47, %v1692_v11 }
 0x5b0   :  { %8393 = vrsqrt.f32 %v1644_v43  ;;  %v10021_v22 = vadd.f32 %v9906_v47, %v1691_v56 }
 0x5b1   :  { %8395 = vrsqrt.f32 %v1643_v7 }
 0x5b2   :  { %v8390_v63 = vpop.eup %8389  ;;  %7561 = vmatprep.mubr.msk.f32.mxu1 %vm246_vm0, %v10021_v22 }
 0x5b3   :  { %v8392_v35 = vpop.eup %8391  ;;  %7562 = vmatmul.mubr.msk.f32.gmra.mrb[34].mxu1 %vm246_vm0, %v10026_v13  ;;  %v1674_v38 = vmul.f32 %v8390_v63, %v1626_v37 }
 0x5b4   :  { %v1673_v23 = vmul.f32 %v8392_v35, %v1625_v1 }
 0x5b5   :  { %v1694_v55 = vmul.f32 %v9896_v14, %v1674_v38 }
 0x5b6   :  { %v1693_v27 = vmul.f32 %v9896_v14, %v1673_v23 }
 0x5b7   :  { %v10041_v53 = vadd.f32 %v9906_v47, %v1694_v55 }
 0x5b8   :  { %v10037_v24 = vadd.f32 %v9906_v47, %v1693_v27 }
 0x5ba   :  { %v8394_v49 = vpop.eup %8393  ;;  %7564 = vmatprep.mubr.msk.f32.mxu1 %vm246_vm0, %v10037_v24 }
 0x5bb   :  { %v8396_v6 = vpop.eup %8395  ;;  %7565 = vmatmul.mubr.msk.f32.gmra.mrb[36].mxu1 %vm246_vm0, %v10041_v53  ;;  %v1676_v58 = vmul.f32 %v8394_v49, %v1628_v39 }
 0x5bc   :  { %v1675_v19 = vmul.f32 %v8396_v6, %v1627_v36 }
 0x5bd   :  { %v1696_v9 = vmul.f32 %v9896_v14, %v1676_v58 }
 0x5be   :  { %v1695_v0 = vmul.f32 %v9896_v14, %v1675_v19  ;;  %v6831_v14 = vld [vmem:[%s12664_s5 + $0xf8] sm:$0xff] }
 0x5bf   :  { %v10054_v34 = vadd.f32 %v9906_v47, %v1696_v9  ;;  %v8073_v18 = vpack.c.bf16 %v6831_v14, %v6830_v5 }
 0x5c0   :  { %v10051_v33 = vadd.f32 %v9906_v47, %v1695_v0  ;;  %v6799_v47 = vld [vmem:[%s12666_s7 + $0x1] ss:$0 sm:$0xff] }
 0x5c1   :  { %8074 = vmatprep.subr.bf16.mxu0 %v8073_v18 }
 0x5c2   :  { %7567 = vmatprep.mubr.msk.f32.mxu1 %vm246_vm0, %v10051_v33  ;;  %8076 = vmatpush3.bf16.msra.mxu0 %v8073_v18 }
 0x5c3   :  { %7568 = vmatmul.mubr.msk.f32.gmra.mrb[38].mxu1 %vm246_vm0, %v10054_v34 }
 0x65e   :  { %v7548_v15 = vpop.f32.mrb[24].mxu1 }
 0x65f   :  { %v1852_v48 = vadd.f32 %v7548_v15, %v6799_v47  ;;  %v1846_v42 = vpop.f32.mrb[25].mxu1 }
 0x660   :  { %v1847_v46 = vadd.f32 %v6799_v47, %v1846_v42 }
 0x661   :  { %v1926_v50 = vmax.f32 %v1852_v48, 0.0 }
 0x662   :  { %v1925_v40 = vmax.f32 %v1847_v46, 0.0 }
 0x664   :  { %7602 = vmatprep.mubr.f32.mxu0 %v1925_v40 }
 0x665   :  { %7603 = vmatmul.mubr.f32.vlgmr.msra.gmra.mrb[40].mxu0 %v1926_v50 }
 0x666   :  { %v7551_v20 = vpop.f32.mrb[26].mxu1 }
 0x667   :  { %v1862_v32 = vadd.f32 %v7551_v20, %v6799_v47  ;;  %v1856_v11 = vpop.f32.mrb[27].mxu1 }
 0x668   :  { %v1857_v43 = vadd.f32 %v6799_v47, %v1856_v11 }
 0x669   :  { %v1928_v7 = vmax.f32 %v1862_v32, 0.0 }
 0x66a   :  { %v1927_v56 = vmax.f32 %v1857_v43, 0.0 }
 0x66c   :  { %7605 = vmatprep.mubr.f32.mxu0 %v1927_v56 }
 0x66d   :  { %7606 = vmatmul.mubr.f32.gmra.mrb[42].mxu0 %v1928_v7 }
 0x66e   :  { %v7554_v37 = vpop.f32.mrb[28].mxu1 }
 0x66f   :  { %v1872_v63 = vadd.f32 %v7554_v37, %v6799_v47  ;;  %v1866_v1 = vpop.f32.mrb[29].mxu1 }
 0x670   :  { %v1867_v35 = vadd.f32 %v6799_v47, %v1866_v1 }
 0x671   :  { %v1930_v23 = vmax.f32 %v1872_v63, 0.0 }
 0x672   :  { %v1929_v38 = vmax.f32 %v1867_v35, 0.0 }
 0x674   :  { %7608 = vmatprep.mubr.f32.mxu0 %v1929_v38 }
 0x675   :  { %7609 = vmatmul.mubr.f32.gmra.mrb[44].mxu0 %v1930_v23  ;;  %v10072_v23 = vld [vmem:[%s12665_s6 + $0x9] ss:$0 sm:$0xff] }
 0x676   :  { %v7557_v55 = vpop.f32.mrb[30].mxu1 }
 0x677   :  { %v1882_v27 = vadd.f32 %v7557_v55, %v6799_v47  ;;  %v1876_v39 = vpop.f32.mrb[31].mxu1 }
 0x678   :  { %v1877_v49 = vadd.f32 %v6799_v47, %v1876_v39 }
 0x679   :  { %v1932_v6 = vmax.f32 %v1882_v27, 0.0 }
 0x67a   :  { %v1931_v36 = vmax.f32 %v1877_v49, 0.0 }
 0x67c   :  { %7611 = vmatprep.mubr.f32.mxu0 %v1931_v36 }
 0x67d   :  { %7612 = vmatmul.mubr.f32.gmra.mrb[46].mxu0 %v1932_v6 }
 0x67e   :  { %v7560_v58 = vpop.f32.mrb[32].mxu1 }
 0x67f   :  { %v1892_v19 = vadd.f32 %v7560_v58, %v6799_v47  ;;  %v1886_v9 = vpop.f32.mrb[33].mxu1 }
 0x680   :  { %v1887_v0 = vadd.f32 %v6799_v47, %v1886_v9 }
 0x681   :  { %v1934_v14 = vmax.f32 %v1892_v19, 0.0 }
 0x682   :  { %v1933_v5 = vmax.f32 %v1887_v0, 0.0 }
 0x684   :  { %7614 = vmatprep.mubr.f32.mxu0 %v1933_v5 }
 0x685   :  { %7615 = vmatmul.mubr.f32.gmra.mrb[48].mxu0 %v1934_v14 }
 0x686   :  { %v7563_v18 = vpop.f32.mrb[34].mxu1 }
 0x687   :  { %v1902_v15 = vadd.f32 %v7563_v18, %v6799_v47  ;;  %v1896_v48 = vpop.f32.mrb[35].mxu1 }
 0x688   :  { %v1897_v42 = vadd.f32 %v6799_v47, %v1896_v48 }
 0x689   :  { %v1936_v40 = vmax.f32 %v1902_v15, 0.0 }
 0x68a   :  { %v1935_v46 = vmax.f32 %v1897_v42, 0.0 }
 0x68c   :  { %7617 = vmatprep.mubr.f32.mxu0 %v1935_v46 }
 0x68d   :  { %7618 = vmatmul.mubr.f32.gmra.mrb[50].mxu0 %v1936_v40 }
 0x68e   :  { %v7566_v50 = vpop.f32.mrb[36].mxu1 }
 0x68f   :  { %v1912_v20 = vadd.f32 %v7566_v50, %v6799_v47  ;;  %v1906_v32 = vpop.f32.mrb[37].mxu1 }
 0x690   :  { %v1907_v11 = vadd.f32 %v6799_v47, %v1906_v32 }
 0x691   :  { %v1938_v56 = vmax.f32 %v1912_v20, 0.0 }
 0x692   :  { %v1937_v43 = vmax.f32 %v1907_v11, 0.0 }
 0x694   :  { %7620 = vmatprep.mubr.f32.mxu0 %v1937_v43 }
 0x695   :  { %7621 = vmatmul.mubr.f32.gmra.mrb[52].mxu0 %v1938_v56 }
 0x696   :  { %v7569_v7 = vpop.f32.mrb[38].mxu1 }
 0x697   :  { %v1922_v37 = vadd.f32 %v7569_v7, %v6799_v47  ;;  %v1916_v63 = vpop.f32.mrb[39].mxu1 }
 0x698   :  { %v1917_v1 = vadd.f32 %v6799_v47, %v1916_v63 }
 0x699   :  { %v1940_v38 = vmax.f32 %v1922_v37, 0.0 }
 0x69a   :  { %v1939_v35 = vmax.f32 %v1917_v1, 0.0 }
 0x69c   :  { %7623 = vmatprep.mubr.f32.mxu0 %v1939_v35 }
 0x69d   :  { %7624 = vmatmul.mubr.f32.gmra.mrb[54].mxu0 %v1940_v38 }
 0x738   :  { %v7604_v55 = vpop.f32.mrb[40].mxu0 }
 0x739   :  { %v2034_v27 = vadd.f32 %v7604_v55, %v10072_v23  ;;  %v2028_v39 = vpop.f32.mrb[41].mxu0 }
 0x73a   :  { %v2029_v49 = vadd.f32 %v10072_v23, %v2028_v39 }
 0x73b   :  { %v10077_v36 = vadd.f32 %v2034_v27, %v9919_v59 }
 0x73c   :  { %v10080_v47 = vadd.f32 %v2029_v49, %v9914_v8 }
 0x73d   :  { %v2128_v6 = vsel %vm246_vm0, %v10077_v36, 0.0  ;;  %v2174_v58 = vmul.f32 %v10077_v36, %v10077_v36 }
 0x73e   :  { %2129 = vadd.xlane.f32.xlu1 %v2128_v6  ;;  %v2125_v19 = vsel %vm246_vm0, %v10080_v47, 0.0  ;;  %v2173_v9 = vmul.f32 %v10080_v47, %v10080_v47 }
 0x73f   :  { %2126 = vadd.xlane.f32.xlu0 %v2125_v19  ;;  %v2192_v8 = vsel %vm246_vm0, %v2174_v58, 0.0 }
 0x740   :  { %v7607_v0 = vpop.f32.mrb[42].mxu0  ;;  %v2189_v18 = vsel %vm246_vm0, %v2173_v9, 0.0 }
 0x741   :  { %v2044_v59 = vadd.f32 %v7607_v0, %v10072_v23  ;;  %v2038_v5 = vpop.f32.mrb[43].mxu0 }
 0x742   :  { %v2039_v14 = vadd.f32 %v10072_v23, %v2038_v5  ;;  %2193 = vadd.xlane.f32.xlu1 %v2192_v8 }
 0x743   :  { %v10095_v15 = vadd.f32 %v2044_v59, %v9942_v45  ;;  %2190 = vadd.xlane.f32.xlu0 %v2189_v18 }
 0x744   :  { %v10098_v48 = vadd.f32 %v2039_v14, %v9937_v3 }
 0x745   :  { %v2134_v42 = vsel %vm246_vm0, %v10095_v15, 0.0  ;;  %v2176_v46 = vmul.f32 %v10095_v15, %v10095_v15 }
 0x746   :  { %2135 = vadd.xlane.f32.xlu1 %v2134_v42  ;;  %v2131_v40 = vsel %vm246_vm0, %v10098_v48, 0.0  ;;  %v2175_v50 = vmul.f32 %v10098_v48, %v10098_v48 }
 0x747   :  { %2132 = vadd.xlane.f32.xlu0 %v2131_v40  ;;  %v2198_v3 = vsel %vm246_vm0, %v2176_v46, 0.0 }
 0x748   :  { %v7610_v45 = vpop.f32.mrb[44].mxu0  ;;  %v2195_v43 = vsel %vm246_vm0, %v2175_v50, 0.0  ;;  %v2407_v50 = vld [vmem:[%s12662_s3 + $0x10] sm:$0xff] }
 0x749   :  { %v2054_v20 = vadd.f32 %v7610_v45, %v10072_v23  ;;  %v2048_v32 = vpop.f32.mrb[45].mxu0  ;;  %v2408_v45 = vld [vmem:[%s12662_s3 + $0x18] sm:$0xff] }
 0x74a   :  { %v2049_v11 = vadd.f32 %v10072_v23, %v2048_v32  ;;  %2199 = vadd.xlane.f32.xlu1 %v2198_v3  ;;  %v8081_v32 = vpack.c.bf16 %v2408_v45, %v2407_v50 }
 0x74b   :  { %v10113_v56 = vadd.f32 %v2054_v20, %v9966_v28  ;;  %2196 = vadd.xlane.f32.xlu0 %v2195_v43 }
 0x74c   :  { %v10116_v7 = vadd.f32 %v2049_v11, %v9961_v29 }
 0x74d   :  { %v2140_v37 = vsel %vm246_vm0, %v10113_v56, 0.0  ;;  %v2178_v63 = vmul.f32 %v10113_v56, %v10113_v56 }
 0x74e   :  { %2141 = vadd.xlane.f32.xlu1 %v2140_v37  ;;  %v2137_v1 = vsel %vm246_vm0, %v10116_v7, 0.0  ;;  %v2177_v35 = vmul.f32 %v10116_v7, %v10116_v7  ;;  %v2410_v37 = vld [vmem:[%s12662_s3 + $0x28] sm:$0xff] }
 0x74f   :  { %2138 = vadd.xlane.f32.xlu0 %v2137_v1  ;;  %v2204_v29 = vsel %vm246_vm0, %v2178_v63, 0.0 }
 0x750   :  { %v7613_v28 = vpop.f32.mrb[46].mxu0  ;;  %v2201_v39 = vsel %vm246_vm0, %v2177_v35, 0.0 }
 0x751   :  { %v2064_v38 = vadd.f32 %v7613_v28, %v10072_v23  ;;  %v2058_v55 = vpop.f32.mrb[47].mxu0 }
 0x752   :  { %v2059_v27 = vadd.f32 %v10072_v23, %v2058_v55  ;;  %2205 = vadd.xlane.f32.xlu1 %v2204_v29 }
 0x753   :  { %v10131_v49 = vadd.f32 %v2064_v38, %v9990_v4  ;;  %2202 = vadd.xlane.f32.xlu0 %v2201_v39  ;;  %v2405_v4 = vld [vmem:[%s12662_s3] sm:$0xff]  ;;  %v2411_v39 = vld [vmem:[%s12662_s3 + $0x30] sm:$0xff] }
 0x754   :  { %v10134_v6 = vadd.f32 %v2059_v27, %v9985_v60  ;;  %v2406_v60 = vld [vmem:[%s12662_s3 + $0x8] sm:$0xff] }
 0x755   :  { %v2146_v58 = vsel %vm246_vm0, %v10131_v49, 0.0  ;;  %v2180_v19 = vmul.f32 %v10131_v49, %v10131_v49  ;;  %v8077_v5 = vpack.c.bf16 %v2406_v60, %v2405_v4 }
 0x756   :  { %2147 = vadd.xlane.f32.xlu1 %v2146_v58  ;;  %v2143_v9 = vsel %vm246_vm0, %v10134_v6, 0.0  ;;  %v2179_v0 = vmul.f32 %v10134_v6, %v10134_v6  ;;  %v2412_v58 = vld [vmem:[%s12662_s3 + $0x38] sm:$0xff] }
 0x757   :  { %2144 = vadd.xlane.f32.xlu0 %v2143_v9  ;;  %v2210_v18 = vsel %vm246_vm0, %v2180_v19, 0.0  ;;  %8078 = vmatprep.subr.bf16.mxu1 %v8077_v5  ;;  %v8089_v9 = vpack.c.bf16 %v2412_v58, %v2411_v39 }
 0x758   :  { %v7616_v59 = vpop.f32.mrb[48].mxu0  ;;  %v2207_v46 = vsel %vm246_vm0, %v2179_v0, 0.0  ;;  %8080 = vmatpush3.bf16.msra.mxu1 %v8077_v5 }
 0x759   :  { %v2074_v8 = vadd.f32 %v7616_v59, %v10072_v23  ;;  %v2068_v14 = vpop.f32.mrb[49].mxu0  ;;  %8082 = vmatprep.subr.bf16.mxu1 %v8081_v32 }
 0x75a   :  { %v2069_v42 = vadd.f32 %v10072_v23, %v2068_v14  ;;  %2211 = vadd.xlane.f32.xlu1 %v2210_v18 }
 0x75b   :  { %v10155_v40 = vadd.f32 %v2074_v8, %v10010_v54  ;;  %2208 = vadd.xlane.f32.xlu0 %v2207_v46 }
 0x75c   :  { %v10164_v20 = vadd.f32 %v2069_v42, %v10005_v21  ;;  %8084 = vmatpush3.bf16.msra.mxu1 %v8081_v32  ;;  %v2409_v21 = vld [vmem:[%s12662_s3 + $0x20] sm:$0xff] }
 0x75d   :  { %v2152_v3 = vsel %vm246_vm0, %v10155_v40, 0.0  ;;  %v2182_v54 = vmul.f32 %v10155_v40, %v10155_v40  ;;  %v8085_v1 = vpack.c.bf16 %v2410_v37, %v2409_v21 }
 0x75e   :  { %2153 = vadd.xlane.f32.xlu1 %v2152_v3  ;;  %v2149_v11 = vsel %vm246_vm0, %v10164_v20, 0.0  ;;  %v2181_v43 = vmul.f32 %v10164_v20, %v10164_v20 }
 0x75f   :  { %2150 = vadd.xlane.f32.xlu0 %v2149_v11  ;;  %v2216_v38 = vsel %vm246_vm0, %v2182_v54, 0.0  ;;  %8086 = vmatprep.subr.bf16.mxu1 %v8085_v1 }
 0x760   :  { %v7619_v63 = vpop.f32.mrb[50].mxu0  ;;  %v2213_v29 = vsel %vm246_vm0, %v2181_v43, 0.0  ;;  %8088 = vmatpush3.bf16.msra.mxu1 %v8085_v1 }
 0x761   :  { %v2084_v35 = vadd.f32 %v7619_v63, %v10072_v23  ;;  %v2078_v28 = vpop.f32.mrb[51].mxu0  ;;  %8090 = vmatprep.subr.bf16.mxu1 %v8089_v9 }
 0x762   :  { %v2079_v55 = vadd.f32 %v10072_v23, %v2078_v28  ;;  %2217 = vadd.xlane.f32.xlu1 %v2216_v38  ;;  %v6852_v38 = vld [vmem:[%s12665_s6 + $0xc] ss:$0 sm:$0xff] }
 0x763   :  { %v10185_v27 = vadd.f32 %v2084_v35, %v10026_v13  ;;  %2214 = vadd.xlane.f32.xlu0 %v2213_v29 }
 0x764   :  { %v10194_v19 = vadd.f32 %v2079_v55, %v10021_v22  ;;  %8092 = vmatpush3.bf16.msra.mxu1 %v8089_v9 }
 0x765   :  { %v2158_v0 = vsel %vm246_vm0, %v10185_v27, 0.0  ;;  %v2184_v13 = vmul.f32 %v10185_v27, %v10185_v27 }
 0x766   :  { %2159 = vadd.xlane.f32.xlu1 %v2158_v0  ;;  %v2155_v4 = vsel %vm246_vm0, %v10194_v19, 0.0  ;;  %v2183_v60 = vmul.f32 %v10194_v19, %v10194_v19 }
 0x767   :  { %2156 = vadd.xlane.f32.xlu0 %v2155_v4  ;;  %v2222_v8 = vsel %vm246_vm0, %v2184_v13, 0.0 }
 0x768   :  { %v7622_v59 = vpop.f32.mrb[52].mxu0  ;;  %v2219_v18 = vsel %vm246_vm0, %v2183_v60, 0.0 }
 0x769   :  { %v2094_v22 = vadd.f32 %v7622_v59, %v10072_v23  ;;  %v2088_v5 = vpop.f32.mrb[53].mxu0 }
 0x76a   :  { %v2089_v14 = vadd.f32 %v10072_v23, %v2088_v5  ;;  %2223 = vadd.xlane.f32.xlu1 %v2222_v8 }
 0x76b   :  { %v10209_v42 = vadd.f32 %v2094_v22, %v10041_v53  ;;  %2220 = vadd.xlane.f32.xlu0 %v2219_v18 }
 0x76c   :  { %v10212_v46 = vadd.f32 %v2089_v14, %v10037_v24 }
 0x76d   :  { %v2164_v50 = vsel %vm246_vm0, %v10209_v42, 0.0  ;;  %v2186_v45 = vmul.f32 %v10209_v42, %v10209_v42 }
 0x76e   :  { %2165 = vadd.xlane.f32.xlu1 %v2164_v50  ;;  %v2161_v32 = vsel %vm246_vm0, %v10212_v46, 0.0  ;;  %v2185_v3 = vmul.f32 %v10212_v46, %v10212_v46 }
 0x76f   :  { %2162 = vadd.xlane.f32.xlu0 %v2161_v32  ;;  %v2228_v24 = vsel %vm246_vm0, %v2186_v45, 0.0 }
 0x770   :  { %v7625_v53 = vpop.f32.mrb[54].mxu0  ;;  %v2225_v21 = vsel %vm246_vm0, %v2185_v3, 0.0 }
 0x771   :  { %v2104_v54 = vadd.f32 %v7625_v53, %v10072_v23  ;;  %v2098_v11 = vpop.f32.mrb[55].mxu0 }
 0x772   :  { %v2099_v43 = vadd.f32 %v10072_v23, %v2098_v11  ;;  %2229 = vadd.xlane.f32.xlu1 %v2228_v24 }
 0x773   :  { %v10227_v37 = vadd.f32 %v2104_v54, %v10054_v34  ;;  %2226 = vadd.xlane.f32.xlu0 %v2225_v21 }
 0x774   :  { %v10230_v63 = vadd.f32 %v2099_v43, %v10051_v33 }
 0x775   :  { %v2170_v1 = vsel %vm246_vm0, %v10227_v37, 0.0  ;;  %v2188_v35 = vmul.f32 %v10227_v37, %v10227_v37 }
 0x776   :  { %2171 = vadd.xlane.f32.xlu1 %v2170_v1  ;;  %v2167_v23 = vsel %vm246_vm0, %v10230_v63, 0.0  ;;  %v2187_v28 = vmul.f32 %v10230_v63, %v10230_v63 }
 0x777   :  { %2168 = vadd.xlane.f32.xlu0 %v2167_v23  ;;  %v2234_v34 = vsel %vm246_vm0, %v2188_v35, 0.0 }
 0x778   :  { %v2231_v33 = vsel %vm246_vm0, %v2187_v28, 0.0 }
 0x77a   :  { %2235 = vadd.xlane.f32.xlu1 %v2234_v34 }
 0x77b   :  { %2232 = vadd.xlane.f32.xlu0 %v2231_v33 }
 0x791   :  { %2617 = vrot.lane.b32.xlu0 %v6852_v38, %s8649_s9 }
 0x7cb   :  { %v2130_v55 = vpop.xlane.xlu1 %2129 }
 0x7cc   :  { %v2238_v29 = vmul.f32 0.015625, %v2130_v55  ;;  %v2127_v39 = vpop.xlane.xlu0 %2126 }
 0x7cd   :  { %v2237_v58 = vmul.f32 0.015625, %v2127_v39 }
 0x7ce   :  { %v2270_v0 = vmul.f32 %v2238_v29, %v2238_v29  ;;  %v2302_v55 = vsub.f32 %v10077_v36, %v2238_v29 }
 0x7cf   :  { %v2194_v9 = vpop.xlane.xlu1 %2193  ;;  %v2269_v60 = vmul.f32 %v2237_v58, %v2237_v58 }
 0x7d0   :  { %v2254_v13 = vmul.f32 0.015625, %v2194_v9  ;;  %v2191_v4 = vpop.xlane.xlu0 %2190 }
 0x7d1   :  { %v2253_v59 = vmul.f32 0.015625, %v2191_v4 }
 0x7d2   :  { %v2286_v22 = vsub.f32 %v2254_v13, %v2270_v0  ;;  %v2301_v0 = vsub.f32 %v10080_v47, %v2237_v58  ;;  %v10259_v13 = vld [vmem:[%s12665_s6 + $0xa] ss:$0 sm:$0xff] }
 0x7d3   :  { %v2285_v5 = vsub.f32 %v2253_v59, %v2269_v60  ;;  %v2136_v8 = vpop.xlane.xlu1 %2135 }
 0x7d4   :  { %v2318_v14 = vadd.f32 1e-05, %v2286_v22  ;;  %v10246_v18 = vmul.f32 0.015625, %v2136_v8  ;;  %v2133_v50 = vpop.xlane.xlu0 %2132 }
 0x7d5   :  { %v2317_v45 = vadd.f32 1e-05, %v2285_v5  ;;  %v2239_v32 = vmul.f32 0.015625, %v2133_v50 }
 0x7d6   :  { %8397 = vrsqrt.f32 %v2318_v14  ;;  %v2272_v53 = vmul.f32 %v10246_v18, %v10246_v18 }
 0x7d7   :  { %8399 = vrsqrt.f32 %v2317_v45  ;;  %v2200_v3 = vpop.xlane.xlu1 %2199  ;;  %v2271_v24 = vmul.f32 %v2239_v32, %v2239_v32  ;;  %v10269_v45 = vld [vmem:[%s12665_s6 + $0xb] ss:$0 sm:$0xff] }
 0x7d8   :  { %v2256_v54 = vmul.f32 0.015625, %v2200_v3  ;;  %v2197_v11 = vpop.xlane.xlu0 %2196 }
 0x7d9   :  { %v2255_v43 = vmul.f32 0.015625, %v2197_v11 }
 0x7da   :  { %v2288_v21 = vsub.f32 %v2256_v54, %v2272_v53 }
 0x7db   :  { %v2287_v1 = vsub.f32 %v2255_v43, %v2271_v24  ;;  %v2142_v35 = vpop.xlane.xlu1 %2141 }
 0x7dc   :  { %v2320_v23 = vadd.f32 1e-05, %v2288_v21  ;;  %v10250_v28 = vmul.f32 0.015625, %v2142_v35  ;;  %v2139_v34 = vpop.xlane.xlu0 %2138 }
 0x7dd   :  { %v2319_v33 = vadd.f32 1e-05, %v2287_v1  ;;  %v10252_v38 = vmul.f32 0.015625, %v2139_v34  ;;  %v2304_v1 = vsub.f32 %v10095_v15, %v10246_v18 }
 0x7de   :  { %8401 = vrsqrt.f32 %v2320_v23  ;;  %v2274_v4 = vmul.f32 %v10250_v28, %v10250_v28 }
 0x7df   :  { %8403 = vrsqrt.f32 %v2319_v33  ;;  %v2206_v39 = vpop.xlane.xlu1 %2205  ;;  %v2273_v36 = vmul.f32 %v10252_v38, %v10252_v38  ;;  %v2303_v33 = vsub.f32 %v10098_v48, %v2239_v32 }
 0x7e0   :  { %v8398_v9 = vpop.eup %8397  ;;  %v2258_v60 = vmul.f32 0.015625, %v2206_v39  ;;  %v2203_v59 = vpop.xlane.xlu0 %2202 }
 0x7e1   :  { %v8400_v22 = vpop.eup %8399  ;;  %v2350_v5 = vmul.f32 %v8398_v9, %v2302_v55  ;;  %v2257_v29 = vmul.f32 0.015625, %v2203_v59 }
 0x7e2   :  { %v2290_v8 = vsub.f32 %v2258_v60, %v2274_v4  ;;  %v2349_v14 = vmul.f32 %v8400_v22, %v2301_v0 }
 0x7e3   :  { %v2370_v47 = vmul.f32 %v10259_v13, %v2350_v5  ;;  %v2289_v58 = vsub.f32 %v2257_v29, %v2273_v36  ;;  %v2148_v50 = vpop.xlane.xlu1 %2147 }
 0x7e4   :  { %v2322_v3 = vadd.f32 1e-05, %v2290_v8  ;;  %v10271_v53 = vmul.f32 0.015625, %v2148_v50  ;;  %v2145_v54 = vpop.xlane.xlu0 %2144  ;;  %v2369_v11 = vmul.f32 %v10259_v13, %v2349_v14  ;;  %v2306_v50 = vsub.f32 %v10113_v56, %v10250_v28 }
 0x7e5   :  { %v2321_v24 = vadd.f32 1e-05, %v2289_v58  ;;  %v10274_v43 = vmul.f32 0.015625, %v2145_v54  ;;  %v2390_v23 = vadd.f32 %v10269_v45, %v2370_v47 }
 0x7e6   :  { %8405 = vrsqrt.f32 %v2322_v3  ;;  %v2389_v21 = vadd.f32 %v10269_v45, %v2369_v11  ;;  %v2276_v55 = vmul.f32 %v10271_v53, %v10271_v53 }
 0x7e7   :  { %8407 = vrsqrt.f32 %v2321_v24  ;;  %v2212_v35 = vpop.xlane.xlu1 %2211  ;;  %v2275_v4 = vmul.f32 %v10274_v43, %v10274_v43  ;;  %v2305_v24 = vsub.f32 %v10116_v7, %v10252_v38 }
 0x7e8   :  { %v8402_v34 = vpop.eup %8401  ;;  %v2260_v39 = vmul.f32 0.015625, %v2212_v35  ;;  %7642 = vmatprep.mubr.msk.f32.mxu1 %vm246_vm0, %v2389_v21  ;;  %v2209_v9 = vpop.xlane.xlu0 %2208 }
 0x7e9   :  { %v8404_v0 = vpop.eup %8403  ;;  %v2259_v60 = vmul.f32 0.015625, %v2209_v9  ;;  %7643 = vmatmul.mubr.msk.f32.vlgmr.msra.gmra.mrb[40].mxu1 %vm246_vm0, %v2390_v23  ;;  %v2352_v15 = vmul.f32 %v8402_v34, %v2304_v1 }
 0x7ea   :  { %v2292_v18 = vsub.f32 %v2260_v39, %v2276_v55  ;;  %v2351_v59 = vmul.f32 %v8404_v0, %v2303_v33 }
 0x7eb   :  { %v2291_v22 = vsub.f32 %v2259_v60, %v2275_v4  ;;  %v2154_v5 = vpop.xlane.xlu1 %2153  ;;  %v2372_v48 = vmul.f32 %v10259_v13, %v2352_v15 }
 0x7ec   :  { %v2324_v32 = vadd.f32 1e-05, %v2292_v18  ;;  %v10288_v36 = vmul.f32 0.015625, %v2154_v5  ;;  %v2151_v29 = vpop.xlane.xlu0 %2150  ;;  %v2371_v8 = vmul.f32 %v10259_v13, %v2351_v59 }
 0x7ed   :  { %v2323_v14 = vadd.f32 1e-05, %v2291_v22  ;;  %v10291_v47 = vmul.f32 0.015625, %v2151_v29  ;;  %v2392_v54 = vadd.f32 %v10269_v45, %v2372_v48  ;;  %v2308_v22 = vsub.f32 %v10131_v49, %v10271_v53 }
 0x7ee   :  { %8409 = vrsqrt.f32 %v2324_v32  ;;  %v2391_v58 = vadd.f32 %v10269_v45, %v2371_v8  ;;  %v2278_v21 = vmul.f32 %v10288_v36, %v10288_v36  ;;  %v2307_v29 = vsub.f32 %v10134_v6, %v10274_v43 }
 0x7ef   :  { %8411 = vrsqrt.f32 %v2323_v14  ;;  %v2218_v3 = vpop.xlane.xlu1 %2217  ;;  %v2277_v34 = vmul.f32 %v10291_v47, %v10291_v47 }
 0x7f0   :  { %v8406_v11 = vpop.eup %8405  ;;  %v2262_v1 = vmul.f32 0.015625, %v2218_v3  ;;  %7645 = vmatprep.mubr.msk.f32.mxu1 %vm246_vm0, %v2391_v58  ;;  %v2215_v35 = vpop.xlane.xlu0 %2214 }
 0x7f1   :  { %v8408_v23 = vpop.eup %8407  ;;  %v2261_v56 = vmul.f32 0.015625, %v2215_v35  ;;  %7646 = vmatmul.mubr.msk.f32.gmra.mrb[42].mxu1 %vm246_vm0, %v2392_v54  ;;  %v2354_v28 = vmul.f32 %v8406_v11, %v2306_v50 }
 0x7f2   :  { %v2294_v33 = vsub.f32 %v2262_v1, %v2278_v21  ;;  %v2353_v55 = vmul.f32 %v8408_v23, %v2305_v24 }
 0x7f3   :  { %v2293_v39 = vsub.f32 %v2261_v56, %v2277_v34  ;;  %v2160_v9 = vpop.xlane.xlu1 %2159  ;;  %v2374_v7 = vmul.f32 %v10259_v13, %v2354_v28 }
 0x7f4   :  { %v2326_v38 = vadd.f32 1e-05, %v2294_v33  ;;  %v10306_v0 = vmul.f32 0.015625, %v2160_v9  ;;  %v2157_v4 = vpop.xlane.xlu0 %2156  ;;  %v2373_v60 = vmul.f32 %v10259_v13, %v2353_v55  ;;  %v2310_v33 = vsub.f32 %v10155_v40, %v10288_v36 }
 0x7f5   :  { %v2325_v15 = vadd.f32 1e-05, %v2293_v39  ;;  %v10309_v18 = vmul.f32 0.015625, %v2157_v4  ;;  %v2394_v48 = vadd.f32 %v10269_v45, %v2374_v7  ;;  %v2309_v7 = vsub.f32 %v10164_v20, %v10291_v47 }
 0x7f6   :  { %8413 = vrsqrt.f32 %v2326_v38  ;;  %v2393_v59 = vadd.f32 %v10269_v45, %v2373_v60  ;;  %v2280_v8 = vmul.f32 %v10306_v0, %v10306_v0 }
 0x7f7   :  { %8415 = vrsqrt.f32 %v2325_v15  ;;  %v2224_v5 = vpop.xlane.xlu1 %2223  ;;  %v2279_v3 = vmul.f32 %v10309_v18, %v10309_v18 }
 0x7f8   :  { %v8410_v32 = vpop.eup %8409  ;;  %v2264_v14 = vmul.f32 0.015625, %v2224_v5  ;;  %7648 = vmatprep.mubr.msk.f32.mxu1 %vm246_vm0, %v2393_v59  ;;  %v2221_v58 = vpop.xlane.xlu0 %2220 }
 0x7f9   :  { %v8412_v50 = vpop.eup %8411  ;;  %v2263_v49 = vmul.f32 0.015625, %v2221_v58  ;;  %7649 = vmatmul.mubr.msk.f32.gmra.mrb[44].mxu1 %vm246_vm0, %v2394_v48  ;;  %v2356_v53 = vmul.f32 %v8410_v32, %v2308_v22 }
 0x7fa   :  { %v2296_v54 = vsub.f32 %v2264_v14, %v2280_v8  ;;  %v2355_v11 = vmul.f32 %v8412_v50, %v2307_v29 }
 0x7fb   :  { %v2295_v24 = vsub.f32 %v2263_v49, %v2279_v3  ;;  %v2166_v21 = vpop.xlane.xlu1 %2165  ;;  %v2376_v6 = vmul.f32 %v10259_v13, %v2356_v53  ;;  %v2312_v49 = vsub.f32 %v10185_v27, %v10306_v0 }
 0x7fc   :  { %v2328_v43 = vadd.f32 1e-05, %v2296_v54  ;;  %v10324_v1 = vmul.f32 0.015625, %v2166_v21  ;;  %v2163_v35 = vpop.xlane.xlu0 %2162  ;;  %v2375_v23 = vmul.f32 %v10259_v13, %v2355_v11 }
 0x7fd   :  { %v2327_v34 = vadd.f32 1e-05, %v2295_v24  ;;  %v10327_v56 = vmul.f32 0.015625, %v2163_v35  ;;  %v2396_v39 = vadd.f32 %v10269_v45, %v2376_v6  ;;  %v2311_v24 = vsub.f32 %v10194_v19, %v10309_v18 }
 0x7fe   :  { %8417 = vrsqrt.f32 %v2328_v43  ;;  %v2395_v28 = vadd.f32 %v10269_v45, %v2375_v23  ;;  %v2282_v38 = vmul.f32 %v10324_v1, %v10324_v1 }
 0x7ff   :  { %8419 = vrsqrt.f32 %v2327_v34  ;;  %v2230_v55 = vpop.xlane.xlu1 %2229  ;;  %v2281_v59 = vmul.f32 %v10327_v56, %v10327_v56 }
 0x800   :  { %v8414_v9 = vpop.eup %8413  ;;  %v2266_v4 = vmul.f32 0.015625, %v2230_v55  ;;  %7651 = vmatprep.mubr.msk.f32.mxu1 %vm246_vm0, %v2395_v28  ;;  %v2227_v60 = vpop.xlane.xlu0 %2226 }
 0x801   :  { %v8416_v15 = vpop.eup %8415  ;;  %v2265_v40 = vmul.f32 0.015625, %v2227_v60  ;;  %7652 = vmatmul.mubr.msk.f32.gmra.mrb[46].mxu1 %vm246_vm0, %v2396_v39  ;;  %v2358_v36 = vmul.f32 %v8414_v9, %v2310_v33  ;;  %v2314_v60 = vsub.f32 %v10209_v42, %v10324_v1 }
 0x802   :  { %v2298_v22 = vsub.f32 %v2266_v4, %v2282_v38  ;;  %v2357_v5 = vmul.f32 %v8416_v15, %v2309_v7 }
 0x803   :  { %v2297_v48 = vsub.f32 %v2265_v40, %v2281_v59  ;;  %v2172_v32 = vpop.xlane.xlu1 %2171  ;;  %v2378_v20 = vmul.f32 %v10259_v13, %v2358_v36 }
 0x804   :  { %v2330_v47 = vadd.f32 1e-05, %v2298_v22  ;;  %v10342_v29 = vmul.f32 0.015625, %v2172_v32  ;;  %v2169_v8 = vpop.xlane.xlu0 %2168  ;;  %v2377_v14 = vmul.f32 %v10259_v13, %v2357_v5 }
 0x805   :  { %v2329_v58 = vadd.f32 1e-05, %v2297_v48  ;;  %v10345_v50 = vmul.f32 0.015625, %v2169_v8  ;;  %v2398_v54 = vadd.f32 %v10269_v45, %v2378_v20 }
 0x806   :  { %8421 = vrsqrt.f32 %v2330_v47  ;;  %v2397_v3 = vadd.f32 %v10269_v45, %v2377_v14  ;;  %v2284_v21 = vmul.f32 %v10342_v29, %v10342_v29  ;;  %v2316_v48 = vsub.f32 %v10227_v37, %v10342_v29 }
 0x807   :  { %8423 = vrsqrt.f32 %v2329_v58  ;;  %v2236_v53 = vpop.xlane.xlu1 %2235  ;;  %v2283_v23 = vmul.f32 %v10345_v50, %v10345_v50  ;;  %v2315_v47 = vsub.f32 %v10230_v63, %v10345_v50 }
 0x808   :  { %v8418_v11 = vpop.eup %8417  ;;  %v2268_v6 = vmul.f32 0.015625, %v2236_v53  ;;  %7654 = vmatprep.mubr.msk.f32.mxu1 %vm246_vm0, %v2397_v3  ;;  %v2233_v43 = vpop.xlane.xlu0 %2232 }
 0x809   :  { %v8420_v35 = vpop.eup %8419  ;;  %v2267_v27 = vmul.f32 0.015625, %v2233_v43  ;;  %7655 = vmatmul.mubr.msk.f32.gmra.mrb[48].mxu1 %vm246_vm0, %v2398_v54  ;;  %v2360_v0 = vmul.f32 %v8418_v11, %v2312_v49 }
 0x80a   :  { %v2300_v34 = vsub.f32 %v2268_v6, %v2284_v21  ;;  %v2359_v28 = vmul.f32 %v8420_v35, %v2311_v24 }
 0x80b   :  { %v2299_v33 = vsub.f32 %v2267_v27, %v2283_v23  ;;  %v2380_v19 = vmul.f32 %v10259_v13, %v2360_v0 }
 0x80c   :  { %v2332_v18 = vadd.f32 1e-05, %v2300_v34  ;;  %v10360_v55 = vpop.permute.xlu0 %2617  ;;  %v2379_v39 = vmul.f32 %v10259_v13, %v2359_v28 }
 0x80d   :  { %v2331_v9 = vadd.f32 1e-05, %v2299_v33  ;;  %v10365_v7 = vadd.f32 %v10360_v55, %v8837_v44  ;;  %v10369_v38 = vadd.f32 %v10360_v55, %v8829_v41  ;;  %v2400_v15 = vadd.f32 %v10269_v45, %v2380_v19 }
 0x80e   :  { %8425 = vrsqrt.f32 %v2332_v18  ;;  %v2399_v4 = vadd.f32 %v10269_v45, %v2379_v39  ;;  %v2313_v41 = vsub.f32 %v10212_v46, %v10327_v56  ;;  %v10388_v36 = vadd.f32 %v10360_v55, %v8853_v52 }
 0x80f   :  { %8427 = vrsqrt.f32 %v2331_v9  ;;  %2654 = vrot.lane.b32.xlu1 %v10365_v7, %s8649_s9  ;;  %v2751_v44 = vmul.f32 %v10369_v38, %v10369_v38  ;;  %v2750_v56 = vmul.f32 %v10365_v7, %v10365_v7  ;;  %v10410_v37 = vadd.f32 %v10360_v55, %v8851_v51 }
 0x810   :  { %v8422_v59 = vpop.eup %8421  ;;  %7657 = vmatprep.mubr.msk.f32.mxu1 %vm246_vm0, %v2399_v4  ;;  %v2753_v32 = vmul.f32 %v10388_v36, %v10388_v36  ;;  %v10416_v58 = vadd.f32 %v10360_v55, %v8875_v2  ;;  %v10440_v53 = vadd.f32 %v10360_v55, %v8899_v16  ;;  %v10458_v16 = vadd.f32 %v10360_v55, %v8925_v30 }
 0x811   :  { %v8424_v40 = vpop.eup %8423  ;;  %7658 = vmatmul.mubr.msk.f32.gmra.mrb[50].mxu1 %vm246_vm0, %v2400_v15  ;;  %2784 = vrot.lane.b32.xlu0 %v2751_v44, %s8649_s9  ;;  %v2362_v42 = vmul.f32 %v8422_v59, %v2314_v60  ;;  %v2752_v51 = vmul.f32 %v10410_v37, %v10410_v37  ;;  %v10476_v30 = vadd.f32 %v10360_v55, %v8961_v61 }
 0x812   :  { %v2361_v1 = vmul.f32 %v8424_v40, %v2313_v41  ;;  %v2755_v2 = vmul.f32 %v10416_v58, %v10416_v58  ;;  %v2757_v54 = vmul.f32 %v10440_v53, %v10440_v53  ;;  %v2759_v24 = vmul.f32 %v10458_v16, %v10458_v16 }
 0x813   :  { %2656 = vrot.lane.b32.xlu1 %v10369_v38, %s8649_s9  ;;  %v2382_v22 = vmul.f32 %v10259_v13, %v2362_v42  ;;  %v2761_v6 = vmul.f32 %v10476_v30, %v10476_v30  ;;  %v10494_v61 = vadd.f32 %v10360_v55, %v8997_v17  ;;  %v10512_v17 = vadd.f32 %v10360_v55, %v9022_v31 }
 0x814   :  { %v2381_v46 = vmul.f32 %v10259_v13, %v2361_v1  ;;  %v10521_v27 = vadd.f32 %v10360_v55, %v9016_v25 }
 0x815   :  { %2660 = vrot.lane.b32.xlu0 %v10388_v36, %s8649_s9  ;;  %v2402_v52 = vadd.f32 %v10269_v45, %v2382_v22  ;;  %v2763_v35 = vmul.f32 %v10494_v61, %v10494_v61  ;;  %v2765_v31 = vmul.f32 %v10512_v17, %v10512_v17 }
 0x816   :  { %v2401_v5 = vadd.f32 %v10269_v45, %v2381_v46 }
 0x817   :  { %2782 = vrot.lane.b32.xlu1 %v2750_v56, %s8649_s9 }
 0x818   :  { %v8426_v20 = vpop.eup %8425  ;;  %7660 = vmatprep.mubr.msk.f32.mxu1 %vm246_vm0, %v2401_v5 }
 0x819   :  { %v8428_v8 = vpop.eup %8427  ;;  %7661 = vmatmul.mubr.msk.f32.gmra.mrb[52].mxu1 %vm246_vm0, %v2402_v52  ;;  %2788 = vrot.lane.b32.xlu0 %v2753_v32, %s8649_s9  ;;  %v2364_v29 = vmul.f32 %v8426_v20, %v2316_v48 }
 0x81a   :  { %v2363_v14 = vmul.f32 %v8428_v8, %v2315_v47 }
 0x81b   :  { %2658 = vrot.lane.b32.xlu1 %v10410_v37, %s8649_s9  ;;  %v2384_v63 = vmul.f32 %v10259_v13, %v2364_v29 }
 0x81c   :  { %v2383_v50 = vmul.f32 %v10259_v13, %v2363_v14  ;;  %v10434_v13 = vadd.f32 %v10360_v55, %v8871_v62  ;;  %v10452_v62 = vadd.f32 %v10360_v55, %v8894_v12  ;;  %v10470_v12 = vadd.f32 %v10360_v55, %v8918_v26 }
 0x81d   :  { %2664 = vrot.lane.b32.xlu0 %v10416_v58, %s8649_s9  ;;  %v2404_v49 = vadd.f32 %v10269_v45, %v2384_v63  ;;  %v10488_v26 = vadd.f32 %v10360_v55, %v8956_v57  ;;  %v10506_v57 = vadd.f32 %v10360_v55, %v8986_v10  ;;  %v2764_v10 = vmul.f32 %v10521_v27, %v10521_v27 }
 0x81e   :  { %v2403_v3 = vadd.f32 %v10269_v45, %v2383_v50  ;;  %v2754_v45 = vmul.f32 %v10434_v13, %v10434_v13  ;;  %v2756_v11 = vmul.f32 %v10452_v62, %v10452_v62  ;;  %v2758_v21 = vmul.f32 %v10470_v12, %v10470_v12 }
 0x81f   :  { %2786 = vrot.lane.b32.xlu1 %v2752_v51, %s8649_s9  ;;  %v2760_v43 = vmul.f32 %v10488_v26, %v10488_v26  ;;  %v2762_v23 = vmul.f32 %v10506_v57, %v10506_v57 }
 0x820   :  { %7663 = vmatprep.mubr.msk.f32.mxu1 %vm246_vm0, %v2403_v3 }
 0x821   :  { %7664 = vmatmul.mubr.msk.f32.gmra.mrb[54].mxu1 %vm246_vm0, %v2404_v49  ;;  %2792 = vrot.lane.b32.xlu0 %v2755_v2, %s8649_s9 }
 0x823   :  { %2662 = vrot.lane.b32.xlu1 %v10434_v13, %s8649_s9 }
 0x825   :  { %2668 = vrot.lane.b32.xlu0 %v10440_v53, %s8649_s9 }
 0x827   :  { %2790 = vrot.lane.b32.xlu1 %v2754_v45, %s8649_s9 }
 0x829   :  { %2796 = vrot.lane.b32.xlu0 %v2757_v54, %s8649_s9 }
 0x82b   :  { %2666 = vrot.lane.b32.xlu1 %v10452_v62, %s8649_s9 }
 0x82d   :  { %2672 = vrot.lane.b32.xlu0 %v10458_v16, %s8649_s9 }
 0x82f   :  { %2794 = vrot.lane.b32.xlu1 %v2756_v11, %s8649_s9 }
 0x831   :  { %2800 = vrot.lane.b32.xlu0 %v2759_v24, %s8649_s9  ;;  %v6853_v24 = vld [vmem:[%s12665_s6 + $0xd] ss:$0 sm:$0xff] }
 0x833   :  { %2670 = vrot.lane.b32.xlu1 %v10470_v12, %s8649_s9 }
 0x835   :  { %2676 = vrot.lane.b32.xlu0 %v10476_v30, %s8649_s9 }
 0x837   :  { %2798 = vrot.lane.b32.xlu1 %v2758_v21, %s8649_s9 }
 0x839   :  { %2804 = vrot.lane.b32.xlu0 %v2761_v6, %s8649_s9 }
 0x83b   :  { %2674 = vrot.lane.b32.xlu1 %v10488_v26, %s8649_s9 }
 0x83d   :  { %2680 = vrot.lane.b32.xlu0 %v10494_v61, %s8649_s9 }
 0x83f   :  { %2802 = vrot.lane.b32.xlu1 %v2760_v43, %s8649_s9 }
 0x841   :  { %2808 = vrot.lane.b32.xlu0 %v2763_v35, %s8649_s9 }
 0x843   :  { %2678 = vrot.lane.b32.xlu1 %v10506_v57, %s8649_s9 }
 0x845   :  { %2684 = vrot.lane.b32.xlu0 %v10512_v17, %s8649_s9 }
 0x847   :  { %2806 = vrot.lane.b32.xlu1 %v2762_v23, %s8649_s9  ;;  %v6854_v23 = vld [vmem:[%s12665_s6 + $0xe] ss:$0 sm:$0xff] }
 0x84b   :  { %2682 = vrot.lane.b32.xlu1 %v10521_v27, %s8649_s9 }
 0x84f   :  { %2810 = vrot.lane.b32.xlu1 %v2764_v10, %s8649_s9 }
 0x853   :  { %2812 = vrot.lane.b32.xlu1 %v2765_v31, %s8649_s9 }
 0x881   :  { %v2655_v0 = vpop.permute.xlu1 %2654 }
 0x882   :  { %v2702_v34 = vsel %vm246_vm0, %v2655_v0, 0.0 }
 0x883   :  { %v2785_v28 = vpop.permute.xlu0 %2784  ;;  %2703 = vadd.xlane.f32.xlu0 %v2702_v34 }
 0x884   :  { %v2833_v4 = vsel %vm246_vm0, %v2785_v28, 0.0 }
 0x885   :  { %v2657_v25 = vpop.permute.xlu1 %2656 }
 0x886   :  { %v2705_v33 = vsel %vm246_vm0, %v2657_v25, 0.0 }
 0x887   :  { %v2661_v19 = vpop.permute.xlu0 %2660  ;;  %2706 = vadd.xlane.f32.xlu1 %v2705_v33 }
 0x888   :  { %v2711_v40 = vsel %vm246_vm0, %v2661_v19, 0.0 }
 0x889   :  { %v2783_v18 = vpop.permute.xlu1 %2782 }
 0x88a   :  { %v2830_v55 = vsel %vm246_vm0, %v2783_v18, 0.0 }
 0x88b   :  { %v2789_v39 = vpop.permute.xlu0 %2788  ;;  %2831 = vadd.xlane.f32.xlu0 %v2830_v55 }
 0x88c   :  { %v2839_v46 = vsel %vm246_vm0, %v2789_v39, 0.0 }
 0x88d   :  { %v2659_v9 = vpop.permute.xlu1 %2658 }
 0x88e   :  { %v2708_v44 = vsel %vm246_vm0, %v2659_v9, 0.0 }
 0x88f   :  { %2834 = vadd.xlane.f32.xlu0 %v2833_v4  ;;  %v2665_v60 = vpop.permute.xlu0 %2664 }
 0x890   :  { %v2717_v52 = vsel %vm246_vm0, %v2665_v60, 0.0 }
 0x891   :  { %v2787_v15 = vpop.permute.xlu1 %2786 }
 0x892   :  { %v2836_v59 = vsel %vm246_vm0, %v2787_v15, 0.0 }
 0x893   :  { %2709 = vadd.xlane.f32.xlu0 %v2708_v44  ;;  %2837 = vadd.xlane.f32.xlu1 %v2836_v59  ;;  %v2793_v1 = vpop.permute.xlu0 %2792 }
 0x894   :  { %v2845_v47 = vsel %vm246_vm0, %v2793_v1, 0.0 }
 0x895   :  { %v2663_v41 = vpop.permute.xlu1 %2662 }
 0x896   :  { %v2714_v42 = vsel %vm246_vm0, %v2663_v41, 0.0 }
 0x897   :  { %2712 = vadd.xlane.f32.xlu0 %v2711_v40  ;;  %2715 = vadd.xlane.f32.xlu1 %v2714_v42  ;;  %v2669_v5 = vpop.permute.xlu0 %2668 }
 0x898   :  { %v2723_v63 = vsel %vm246_vm0, %v2669_v5, 0.0 }
 0x899   :  { %v2791_v22 = vpop.permute.xlu1 %2790 }
 0x89a   :  { %v2842_v56 = vsel %vm246_vm0, %v2791_v22, 0.0 }
 0x89b   :  { %2840 = vadd.xlane.f32.xlu0 %v2839_v46  ;;  %2843 = vadd.xlane.f32.xlu1 %v2842_v56  ;;  %v2797_v29 = vpop.permute.xlu0 %2796 }
 0x89c   :  { %v2851_v49 = vsel %vm246_vm0, %v2797_v29, 0.0 }
 0x89d   :  { %v2667_v48 = vpop.permute.xlu1 %2666 }
 0x89e   :  { %v2720_v32 = vsel %vm246_vm0, %v2667_v48, 0.0 }
 0x89f   :  { %2718 = vadd.xlane.f32.xlu0 %v2717_v52  ;;  %2721 = vadd.xlane.f32.xlu1 %v2720_v32  ;;  %v2673_v51 = vpop.permute.xlu0 %2672 }
 0x8a0   :  { %v2729_v45 = vsel %vm246_vm0, %v2673_v51, 0.0 }
 0x8a1   :  { %v2795_v20 = vpop.permute.xlu1 %2794 }
 0x8a2   :  { %v2848_v8 = vsel %vm246_vm0, %v2795_v20, 0.0 }
 0x8a3   :  { %2846 = vadd.xlane.f32.xlu0 %v2845_v47  ;;  %2849 = vadd.xlane.f32.xlu1 %v2848_v8  ;;  %v2801_v54 = vpop.permute.xlu0 %2800 }
 0x8a4   :  { %v2857_v11 = vsel %vm246_vm0, %v2801_v54, 0.0 }
 0x8a5   :  { %v2671_v14 = vpop.permute.xlu1 %2670 }
 0x8a6   :  { %v2726_v50 = vsel %vm246_vm0, %v2671_v14, 0.0 }
 0x8a7   :  { %2724 = vadd.xlane.f32.xlu0 %v2723_v63  ;;  %2727 = vadd.xlane.f32.xlu1 %v2726_v50  ;;  %v2677_v28 = vpop.permute.xlu0 %2676 }
 0x8a8   :  { %v2735_v42 = vsel %vm246_vm0, %v2677_v28, 0.0 }
 0x8a9   :  { %v2799_v3 = vpop.permute.xlu1 %2798 }
 0x8aa   :  { %v2854_v2 = vsel %vm246_vm0, %v2799_v3, 0.0  ;;  %v6835_v3 = vld [vmem:[%s12666_s7 + $0x4] ss:$0 sm:$0xff] }
 0x8ab   :  { %2852 = vadd.xlane.f32.xlu0 %v2851_v49  ;;  %2855 = vadd.xlane.f32.xlu1 %v2854_v2  ;;  %v2805_v18 = vpop.permute.xlu0 %2804 }
 0x8ac   :  { %v2863_v46 = vsel %vm246_vm0, %v2805_v18, 0.0 }
 0x8ad   :  { %v2675_v10 = vpop.permute.xlu1 %2674 }
 0x8ae   :  { %v2732_v4 = vsel %vm246_vm0, %v2675_v10, 0.0 }
 0x8af   :  { %2730 = vadd.xlane.f32.xlu0 %v2729_v45  ;;  %v2681_v60 = vpop.permute.xlu0 %2680 }
 0x8b0   :  { %v2741_v1 = vsel %vm246_vm0, %v2681_v60, 0.0 }
 0x8b1   :  { %v2803_v34 = vpop.permute.xlu1 %2802 }
 0x8b2   :  { %v2860_v15 = vsel %vm246_vm0, %v2803_v34, 0.0 }
 0x8b3   :  { %2858 = vadd.xlane.f32.xlu0 %v2857_v11  ;;  %v2809_v40 = vpop.permute.xlu0 %2808 }
 0x8b4   :  { %v2869_v56 = vsel %vm246_vm0, %v2809_v40, 0.0 }
 0x8b5   :  { %v2679_v19 = vpop.permute.xlu1 %2678 }
 0x8b6   :  { %v2738_v20 = vsel %vm246_vm0, %v2679_v19, 0.0 }
 0x8b7   :  { %v2685_v5 = vpop.permute.xlu0 %2684 }
 0x8b8   :  { %v2747_v32 = vsel %vm246_vm0, %v2685_v5, 0.0 }
 0x8b9   :  { %v2807_v9 = vpop.permute.xlu1 %2806 }
 0x8ba   :  { %v2866_v8 = vsel %vm246_vm0, %v2807_v9, 0.0 }
 0x8bc   :  { %v10554_v21 = vpop.f32.mrb[40].mxu1  ;;  %3011 = vrot.lane.b32.xlu1 %v6853_v24, %s8649_s9 }
 0x8bd   :  { %v2532_v6 = vpop.f32.mrb[41].mxu1  ;;  %v2683_v44 = vpop.permute.xlu1 %2682  ;;  %v10597_v11 = vadd.f32 %v10554_v21, %v6835_v3 }
 0x8be   :  { %v2744_v50 = vsel %vm246_vm0, %v2683_v44, 0.0  ;;  %v10582_v49 = vadd.f32 %v6835_v3, %v2532_v6 }
 0x8c1   :  { %v2811_v22 = vpop.permute.xlu1 %2810 }
 0x8c2   :  { %v2872_v51 = vsel %vm246_vm0, %v2811_v22, 0.0 }
 0x8c4   :  { %v10557_v43 = vpop.f32.mrb[42].mxu1 }
 0x8c5   :  { %v2542_v35 = vpop.f32.mrb[43].mxu1  ;;  %v2813_v47 = vpop.permute.xlu1 %2812  ;;  %v10606_v6 = vadd.f32 %v10557_v43, %v6835_v3 }
 0x8c6   :  { %v2875_v29 = vsel %vm246_vm0, %v2813_v47, 0.0  ;;  %v10586_v2 = vadd.f32 %v6835_v3, %v2542_v35 }
 0x8c9   :  { %3035 = vrot.lane.b32.xlu0 %v6854_v23, %s8649_s9 }
 0x8cc   :  { %v10563_v31 = vpop.f32.mrb[44].mxu1 }
 0x8cd   :  { %v2552_v0 = vpop.f32.mrb[45].mxu1  ;;  %v10615_v21 = vadd.f32 %v10563_v31, %v6835_v3 }
 0x8ce   :  { %v10590_v45 = vadd.f32 %v6835_v3, %v2552_v0 }
 0x8d4   :  { %v10565_v25 = vpop.f32.mrb[46].mxu1 }
 0x8d5   :  { %v2562_v33 = vpop.f32.mrb[47].mxu1  ;;  %v10624_v43 = vadd.f32 %v10565_v25, %v6835_v3 }
 0x8d6   :  { %v10594_v54 = vadd.f32 %v6835_v3, %v2562_v33 }
 0x8dc   :  { %v7656_v55 = vpop.f32.mrb[48].mxu1 }
 0x8dd   :  { %v2572_v39 = vpop.f32.mrb[49].mxu1  ;;  %v10603_v24 = vadd.f32 %v7656_v55, %v6835_v3 }
 0x8de   :  { %v10612_v35 = vadd.f32 %v6835_v3, %v2572_v39 }
 0x8df   :  { %12676 = vst [vmem:[#allocation5_spill] sm:$0xff] %v10603_v24 }
 0x8e0   :  { %2733 = vadd.xlane.f32.xlu1 %v2732_v4  ;;  %12677 = vst [vmem:[#allocation6_spill] sm:$0xff] %v10612_v35 }
 0x8e4   :  { %v7659_v59 = vpop.f32.mrb[50].mxu1  ;;  %2861 = vadd.xlane.f32.xlu1 %v2860_v15 }
 0x8e5   :  { %v2582_v41 = vpop.f32.mrb[51].mxu1  ;;  %v10632_v31 = vadd.f32 %v7659_v59, %v6835_v3 }
 0x8e6   :  { %v10621_v23 = vadd.f32 %v6835_v3, %v2582_v41 }
 0x8e7   :  { %12680 = vst [vmem:[#allocation9_spill] sm:$0xff] %v10632_v31 }
 0x8e8   :  { %2736 = vadd.xlane.f32.xlu0 %v2735_v42  ;;  %2742 = vadd.xlane.f32.xlu1 %v2741_v1  ;;  %12678 = vst [vmem:[#allocation7_spill] sm:$0xff] %v10621_v23 }
 0x8ec   :  { %v7662_v48 = vpop.f32.mrb[52].mxu1  ;;  %2864 = vadd.xlane.f32.xlu0 %v2863_v46  ;;  %2870 = vadd.xlane.f32.xlu1 %v2869_v56 }
 0x8ed   :  { %v2592_v52 = vpop.f32.mrb[53].mxu1  ;;  %v10640_v34 = vadd.f32 %v7662_v48, %v6835_v3 }
 0x8ee   :  { %v10630_v10 = vadd.f32 %v6835_v3, %v2592_v52 }
 0x8ef   :  { %12682 = vst [vmem:[#allocation11_spill] sm:$0xff] %v10640_v34 }
 0x8f0   :  { %2748 = vadd.xlane.f32.xlu1 %v2747_v32  ;;  %2739 = vadd.xlane.f32.xlu0 %v2738_v20  ;;  %12679 = vst [vmem:[#allocation8_spill] sm:$0xff] %v10630_v10 }
 0x8f4   :  { %v7665_v14 = vpop.f32.mrb[54].mxu1  ;;  %2867 = vadd.xlane.f32.xlu0 %v2866_v8  ;;  %2876 = vadd.xlane.f32.xlu1 %v2875_v29 }
 0x8f5   :  { %v2602_v63 = vpop.f32.mrb[55].mxu1  ;;  %v10646_v28 = vadd.f32 %v7665_v14, %v6835_v3 }
 0x8f6   :  { %v10638_v0 = vadd.f32 %v6835_v3, %v2602_v63 }
 0x8f7   :  { %12683 = vst [vmem:[#allocation12_spill] sm:$0xff] %v10646_v28 }
 0x8f8   :  { %2745 = vadd.xlane.f32.xlu0 %v2744_v50  ;;  %12681 = vst [vmem:[#allocation10_spill] sm:$0xff] %v10638_v0 }
 0x8fc   :  { %2873 = vadd.xlane.f32.xlu0 %v2872_v51 }
 0x905   :  { %3070 = vrot.lane.b32.xlu1 %v10582_v49, %s8649_s9 }
 0x909   :  { %3074 = vrot.lane.b32.xlu1 %v10586_v2, %s8649_s9 }
 0x90d   :  { %3078 = vrot.lane.b32.xlu1 %v10590_v45, %s8649_s9 }
 0x910   :  { %v2704_v25 = vpop.xlane.xlu0 %2703 }
 0x911   :  { %3082 = vrot.lane.b32.xlu1 %v10594_v54, %s8649_s9  ;;  %v2878_v56 = vmul.f32 0.015625, %v2704_v25 }
 0x912   :  { %3072 = vrot.lane.b32.xlu0 %v10597_v11, %s8649_s9 }
 0x913   :  { %v2910_v52 = vmul.f32 %v2878_v56, %v2878_v56 }
 0x914   :  { %v2707_v18 = vpop.xlane.xlu1 %2706 }
 0x915   :  { %3088 = vrot.lane.b32.xlu1 %v10603_v24, %s8649_s9  ;;  %v10660_v29 = vmul.f32 0.015625, %v2707_v18 }
 0x916   :  { %3076 = vrot.lane.b32.xlu0 %v10606_v6, %s8649_s9 }
 0x917   :  { %v2911_v3 = vmul.f32 %v10660_v29, %v10660_v29 }
 0x918   :  { %v2832_v33 = vpop.xlane.xlu0 %2831 }
 0x919   :  { %3086 = vrot.lane.b32.xlu1 %v10612_v35, %s8649_s9  ;;  %v2894_v48 = vmul.f32 0.015625, %v2832_v33 }
 0x91a   :  { %3080 = vrot.lane.b32.xlu0 %v10615_v21, %s8649_s9 }
 0x91b   :  { %v2926_v20 = vsub.f32 %v2894_v48, %v2910_v52 }
 0x91c   :  { %v2835_v19 = vpop.xlane.xlu0 %2834 }
 0x91d   :  { %3090 = vrot.lane.b32.xlu1 %v10621_v23, %s8649_s9  ;;  %v2895_v63 = vmul.f32 0.015625, %v2835_v19  ;;  %v2958_v50 = vadd.f32 1e-05, %v2926_v20 }
 0x91e   :  { %3084 = vrot.lane.b32.xlu0 %v10624_v43, %s8649_s9 }
 0x91f   :  { %v2927_v52 = vsub.f32 %v2895_v63, %v2911_v3  ;;  %8429 = vrsqrt.f32 %v2958_v50 }
 0x920   :  { %v2710_v55 = vpop.xlane.xlu0 %2709  ;;  %v2838_v39 = vpop.xlane.xlu1 %2837 }
 0x921   :  { %3094 = vrot.lane.b32.xlu1 %v10630_v10, %s8649_s9  ;;  %v10656_v47 = vmul.f32 0.015625, %v2710_v55  ;;  %v2896_v25 = vmul.f32 0.015625, %v2838_v39  ;;  %v2959_v39 = vadd.f32 1e-05, %v2927_v52 }
 0x922   :  { %3092 = vrot.lane.b32.xlu0 %v10632_v31, %s8649_s9 }
 0x923   :  { %v2912_v51 = vmul.f32 %v10656_v47, %v10656_v47  ;;  %8431 = vrsqrt.f32 %v2959_v39 }
 0x924   :  { %v2713_v9 = vpop.xlane.xlu0 %2712  ;;  %v2716_v4 = vpop.xlane.xlu1 %2715 }
 0x925   :  { %3098 = vrot.lane.b32.xlu1 %v10638_v0, %s8649_s9  ;;  %v10668_v33 = vmul.f32 0.015625, %v2713_v9  ;;  %v10674_v18 = vmul.f32 0.015625, %v2716_v4  ;;  %v2928_v0 = vsub.f32 %v2896_v25, %v2912_v51 }
 0x926   :  { %3096 = vrot.lane.b32.xlu0 %v10640_v34, %s8649_s9 }
 0x927   :  { %v2914_v9 = vmul.f32 %v10674_v18, %v10674_v18  ;;  %v2960_v63 = vadd.f32 1e-05, %v2928_v0 }
 0x928   :  { %v2841_v60 = vpop.xlane.xlu0 %2840  ;;  %v2844_v15 = vpop.xlane.xlu1 %2843 }
 0x929   :  { %v2897_v19 = vmul.f32 0.015625, %v2841_v60  ;;  %v2898_v20 = vmul.f32 0.015625, %v2844_v15  ;;  %8433 = vrsqrt.f32 %v2960_v63 }
 0x92a   :  { %3100 = vrot.lane.b32.xlu0 %v10646_v28, %s8649_s9  ;;  %v2913_v28 = vmul.f32 %v10668_v33, %v10668_v33 }
 0x92b   :  { %v2930_v3 = vsub.f32 %v2898_v20, %v2914_v9 }
 0x92c   :  { %v2719_v44 = vpop.xlane.xlu0 %2718  ;;  %v2722_v59 = vpop.xlane.xlu1 %2721  ;;  %v2929_v4 = vsub.f32 %v2897_v19, %v2913_v28  ;;  %v2942_v19 = vsub.f32 %v10365_v7, %v2878_v56 }
 0x92d   :  { %v10684_v31 = vmul.f32 0.015625, %v2719_v44  ;;  %v10686_v50 = vmul.f32 0.015625, %v2722_v59  ;;  %v2962_v24 = vadd.f32 1e-05, %v2930_v3  ;;  %v8430_v44 = vpop.eup %8429 }
 0x92e   :  { %v2961_v23 = vadd.f32 1e-05, %v2929_v4  ;;  %v2990_v9 = vmul.f32 %v8430_v44, %v2942_v19  ;;  %v2944_v44 = vsub.f32 %v10410_v37, %v10656_v47 }
 0x92f   :  { %v2915_v25 = vmul.f32 %v10684_v31, %v10684_v31  ;;  %v2916_v0 = vmul.f32 %v10686_v50, %v10686_v50 }
 0x930   :  { %v2847_v41 = vpop.xlane.xlu0 %2846  ;;  %v2850_v40 = vpop.xlane.xlu1 %2849  ;;  %8435 = vrsqrt.f32 %v2961_v23 }
 0x931   :  { %v2899_v60 = vmul.f32 0.015625, %v2847_v41  ;;  %v2900_v52 = vmul.f32 0.015625, %v2850_v40  ;;  %8437 = vrsqrt.f32 %v2962_v24 }
 0x933   :  { %v2931_v28 = vsub.f32 %v2899_v60, %v2915_v25  ;;  %v2932_v20 = vsub.f32 %v2900_v52, %v2916_v0 }
 0x934   :  { %v2725_v42 = vpop.xlane.xlu0 %2724  ;;  %v2728_v1 = vpop.xlane.xlu1 %2727 }
 0x935   :  { %v10701_v39 = vmul.f32 0.015625, %v2725_v42  ;;  %v2963_v40 = vadd.f32 1e-05, %v2931_v28  ;;  %v10703_v63 = vmul.f32 0.015625, %v2728_v1  ;;  %v2964_v25 = vadd.f32 1e-05, %v2932_v20  ;;  %v8432_v42 = vpop.eup %8431 }
 0x936   :  { %v8434_v56 = vpop.eup %8433  ;;  %v2943_v28 = vsub.f32 %v10369_v38, %v10660_v29 }
 0x937   :  { %v2917_v7 = vmul.f32 %v10701_v39, %v10701_v39  ;;  %8439 = vrsqrt.f32 %v2963_v40  ;;  %v2918_v1 = vmul.f32 %v10703_v63, %v10703_v63  ;;  %v2992_v20 = vmul.f32 %v8434_v56, %v2944_v44 }
 0x938   :  { %v2853_v22 = vpop.xlane.xlu0 %2852  ;;  %v10650_v46 = vpop.xlane.xlu1 %2855  ;;  %8441 = vrsqrt.f32 %v2964_v25  ;;  %v2991_v40 = vmul.f32 %v8432_v42, %v2943_v28  ;;  %v2946_v42 = vsub.f32 %v10434_v13, %v10674_v18 }
 0x939   :  { %v2901_v4 = vmul.f32 0.015625, %v2853_v22  ;;  %v2902_v23 = vmul.f32 0.015625, %v10650_v46 }
 0x93b   :  { %v2933_v22 = vsub.f32 %v2901_v4, %v2917_v7  ;;  %v2934_v19 = vsub.f32 %v2902_v23, %v2918_v1  ;;  %v2945_v23 = vsub.f32 %v10388_v36, %v10668_v33 }
 0x93c   :  { %v10652_v5 = vpop.xlane.xlu0 %2730  ;;  %v10654_v32 = vpop.permute.xlu1 %3011 }
 0x93d   :  { %v3014_v35 = vmul.f32 %v10654_v32, %v2990_v9  ;;  %v8436_v9 = vpop.eup %8435  ;;  %v2965_v4 = vadd.f32 1e-05, %v2933_v22  ;;  %v3015_v25 = vmul.f32 %v10654_v32, %v2991_v40 }
 0x93e   :  { %v8438_v37 = vpop.eup %8437  ;;  %v2993_v28 = vmul.f32 %v8436_v9, %v2945_v23 }
 0x93f   :  { %v2994_v33 = vmul.f32 %v8438_v37, %v2946_v42  ;;  %8443 = vrsqrt.f32 %v2965_v4 }
 0x940   :  { %v10658_v8 = vpop.xlane.xlu0 %2858  ;;  %v3017_v4 = vmul.f32 %v10654_v32, %v2993_v28 }
 0x941   :  { %v2903_v47 = vmul.f32 0.015625, %v10658_v8  ;;  %v8440_v13 = vpop.eup %8439 }
 0x942   :  { %v8442_v40 = vpop.eup %8441 }
 0x944   :  { %v10670_v48 = vpop.permute.xlu0 %3035 }
 0x945   :  { %v3038_v24 = vadd.f32 %v10670_v48, %v3014_v35  ;;  %v10725_v35 = vmul.f32 0.015625, %v10652_v5  ;;  %v3016_v5 = vmul.f32 %v10654_v32, %v2992_v20  ;;  %v3039_v22 = vadd.f32 %v10670_v48, %v3015_v25 }
 0x947   :  { %v2919_v8 = vmul.f32 %v10725_v35, %v10725_v35  ;;  %v3040_v1 = vadd.f32 %v10670_v48, %v3016_v5 }
 0x949   :  { %v2935_v18 = vsub.f32 %v2903_v47, %v2919_v8  ;;  %v8444_v28 = vpop.eup %8443 }
 0x94b   :  { %v2967_v47 = vadd.f32 1e-05, %v2935_v18 }
 0x96d   :  { %v10662_v14 = vpop.xlane.xlu1 %2733 }
 0x96e   :  { %v10730_v7 = vmul.f32 0.015625, %v10662_v14  ;;  %v2966_v14 = vadd.f32 1e-05, %v2934_v19  ;;  %v2947_v19 = vsub.f32 %v10416_v58, %v10684_v31  ;;  %v3018_v58 = vmul.f32 %v10654_v32, %v2994_v33 }
 0x970   :  { %8445 = vrsqrt.f32 %v2966_v14  ;;  %v2995_v37 = vmul.f32 %v8440_v13, %v2947_v19  ;;  %v2949_v13 = vsub.f32 %v10440_v53, %v10701_v39 }
 0x971   :  { %v10672_v55 = vpop.xlane.xlu1 %2861  ;;  %8447 = vrsqrt.f32 %v2967_v47 }
 0x972   :  { %v3019_v8 = vmul.f32 %v10654_v32, %v2995_v37 }
 0x974   :  { %v3043_v53 = vadd.f32 %v10670_v48, %v3019_v8 }
 0x975   :  { %v10678_v34 = vpop.xlane.xlu0 %2736  ;;  %v10680_v10 = vpop.xlane.xlu1 %2742 }
 0x976   :  { %v10760_v5 = vmul.f32 0.015625, %v10678_v34 }
 0x978   :  { %v2921_v14 = vmul.f32 %v10760_v5, %v10760_v5 }
 0x979   :  { %v10688_v15 = vpop.xlane.xlu0 %2864  ;;  %v10690_v51 = vpop.xlane.xlu1 %2870 }
 0x97d   :  { %v10696_v59 = vpop.xlane.xlu0 %2739  ;;  %v10698_v41 = vpop.xlane.xlu1 %2748 }
 0x97e   :  { %v10767_v9 = vmul.f32 0.015625, %v10696_v59  ;;  %v10796_v18 = vmul.f32 0.015625, %v10698_v41 }
 0x980   :  { %v2925_v37 = vmul.f32 %v10796_v18, %v10796_v18 }
 0x981   :  { %v10705_v3 = vpop.xlane.xlu0 %2867  ;;  %v10707_v60 = vpop.xlane.xlu1 %2876 }
 0x982   :  { %v2906_v23 = vmul.f32 0.015625, %v10705_v3  ;;  %v2909_v39 = vmul.f32 0.015625, %v10707_v60 }
 0x985   :  { %v10716_v52 = vpop.xlane.xlu0 %2745  ;;  %v3071_v0 = vpop.permute.xlu1 %3070 }
 0x986   :  { %v10722_v46 = vadd.f32 %v3071_v0, %v3038_v24  ;;  %v2904_v24 = vmul.f32 0.015625, %v10672_v55  ;;  %v2920_v0 = vmul.f32 %v10730_v7, %v10730_v7 }
 0x988   :  { %3152 = vrot.lane.b32.xlu1 %v10722_v46, %s8649_s9  ;;  %v3248_v29 = vmul.f32 %v10722_v46, %v10722_v46  ;;  %v2936_v20 = vsub.f32 %v2904_v24, %v2920_v0  ;;  %v3042_v24 = vadd.f32 %v10670_v48, %v3018_v58  ;;  %v10791_v0 = vmul.f32 0.015625, %v10680_v10 }
 0x989   :  { %v10732_v38 = vpop.xlane.xlu0 %2873  ;;  %v3075_v56 = vpop.permute.xlu1 %3074  ;;  %v2950_v10 = vsub.f32 %v10470_v12, %v10703_v63 }
 0x98a   :  { %v10751_v55 = vadd.f32 %v3075_v56, %v3040_v1  ;;  %v2968_v25 = vadd.f32 1e-05, %v2936_v20  ;;  %v3041_v56 = vadd.f32 %v10670_v48, %v3017_v4  ;;  %v8446_v20 = vpop.eup %8445  ;;  %v2923_v4 = vmul.f32 %v10791_v0, %v10791_v0 }
 0x98b   :  { %v2998_v60 = vmul.f32 %v8446_v20, %v2950_v10 }
 0x98c   :  { %3280 = vrot.lane.b32.xlu1 %v3248_v29, %s8649_s9  ;;  %v2948_v29 = vsub.f32 %v10452_v62, %v10686_v50  ;;  %v2905_v62 = vmul.f32 0.015625, %v10688_v15  ;;  %v3250_v34 = vmul.f32 %v10751_v55, %v10751_v55  ;;  %v2922_v15 = vmul.f32 %v10767_v9, %v10767_v9 }
 0x98d   :  { %v3073_v36 = vpop.permute.xlu0 %3072  ;;  %v3079_v31 = vpop.permute.xlu1 %3078  ;;  %8449 = vrsqrt.f32 %v2968_v25  ;;  %v2941_v25 = vsub.f32 %v2909_v39, %v2925_v37 }
 0x98e   :  { %v10753_v44 = vadd.f32 %v3073_v36, %v3039_v22  ;;  %v2996_v42 = vmul.f32 %v8442_v40, %v2948_v29  ;;  %v2937_v3 = vsub.f32 %v2905_v62, %v2921_v14  ;;  %v10786_v1 = vadd.f32 %v3079_v31, %v3042_v24  ;;  %v8448_v14 = vpop.eup %8447 }
 0x98f   :  { %v2938_v36 = vsub.f32 %v2906_v23, %v2922_v15  ;;  %v2907_v40 = vmul.f32 0.015625, %v10690_v51  ;;  %v10807_v29 = vmul.f32 0.015625, %v10716_v52  ;;  %v2908_v51 = vmul.f32 0.015625, %v10732_v38 }
 0x990   :  { %3154 = vrot.lane.b32.xlu0 %v10753_v44, %s8649_s9  ;;  %3156 = vrot.lane.b32.xlu1 %v10751_v55, %s8649_s9  ;;  %v3249_v50 = vmul.f32 %v10753_v44, %v10753_v44  ;;  %v3020_v19 = vmul.f32 %v10654_v32, %v2996_v42  ;;  %v2969_v41 = vadd.f32 1e-05, %v2937_v3  ;;  %v3252_v58 = vmul.f32 %v10786_v1, %v10786_v1 }
 0x991   :  { %v3077_v59 = vpop.permute.xlu0 %3076  ;;  %v3083_v33 = vpop.permute.xlu1 %3082  ;;  %v2970_v12 = vadd.f32 1e-05, %v2938_v36  ;;  %v2997_v52 = vmul.f32 %v8444_v28, %v2949_v13  ;;  %v2939_v62 = vsub.f32 %v2907_v40, %v2923_v4  ;;  %v3022_v24 = vmul.f32 %v10654_v32, %v2998_v60 }
 0x992   :  { %v10788_v22 = vadd.f32 %v3077_v59, %v3041_v56  ;;  %v3044_v47 = vadd.f32 %v10670_v48, %v3020_v19  ;;  %8451 = vrsqrt.f32 %v2969_v41  ;;  %v2951_v15 = vsub.f32 %v10458_v16, %v10725_v35 }
 0x993   :  { %8453 = vrsqrt.f32 %v2970_v12  ;;  %v3021_v42 = vmul.f32 %v10654_v32, %v2997_v52  ;;  %v2971_v8 = vadd.f32 1e-05, %v2939_v62  ;;  %v2952_v3 = vsub.f32 %v10488_v26, %v10730_v7 }
 0x994   :  { %3282 = vrot.lane.b32.xlu0 %v3249_v50, %s8649_s9  ;;  %3284 = vrot.lane.b32.xlu1 %v3250_v34, %s8649_s9  ;;  %v3251_v31 = vmul.f32 %v10788_v22, %v10788_v22  ;;  %v2924_v34 = vmul.f32 %v10807_v29, %v10807_v29  ;;  %v10825_v38 = vadd.f32 %v3083_v33, %v3044_v47  ;;  %v2973_v36 = vadd.f32 1e-05, %v2941_v25 }
 0x995   :  { %v3081_v63 = vpop.permute.xlu0 %3080  ;;  %v3089_v50 = vpop.permute.xlu1 %3088  ;;  %v3045_v20 = vadd.f32 %v10670_v48, %v3021_v42  ;;  %v2999_v40 = vmul.f32 %v8448_v14, %v2951_v15  ;;  %8455 = vrsqrt.f32 %v2971_v8  ;;  %v2954_v4 = vsub.f32 %v10506_v57, %v10767_v9 }
 0x996   :  { %v10827_v23 = vadd.f32 %v3081_v63, %v3043_v53  ;;  %v2940_v59 = vsub.f32 %v2908_v51, %v2924_v34  ;;  %v3254_v33 = vmul.f32 %v10825_v38, %v10825_v38  ;;  %v3046_v53 = vadd.f32 %v10670_v48, %v3022_v24 }
 0x997   :  { %v8450_v56 = vpop.eup %8449  ;;  %8457 = vrsqrt.f32 %v2973_v36  ;;  %v3023_v41 = vmul.f32 %v10654_v32, %v2999_v40  ;;  %v2957_v42 = vsub.f32 %v10512_v17, %v10796_v18  ;;  %v2956_v14 = vsub.f32 %v10521_v27, %v10807_v29 }
 0x998   :  { %3158 = vrot.lane.b32.xlu0 %v10788_v22, %s8649_s9  ;;  %3160 = vrot.lane.b32.xlu1 %v10786_v1, %s8649_s9  ;;  %v3253_v28 = vmul.f32 %v10827_v23, %v10827_v23  ;;  %v2972_v13 = vadd.f32 1e-05, %v2940_v59  ;;  %v3000_v16 = vmul.f32 %v8450_v56, %v2952_v3 }
 0x999   :  { %v3085_v19 = vpop.permute.xlu0 %3084  ;;  %v3087_v10 = vpop.permute.xlu1 %3086  ;;  %v3047_v37 = vadd.f32 %v10670_v48, %v3023_v41 }
 0x99a   :  { %v10847_v26 = vadd.f32 %v3085_v19, %v3045_v20  ;;  %v10849_v35 = vadd.f32 %v3087_v10, %v3046_v53  ;;  %8459 = vrsqrt.f32 %v2972_v13  ;;  %v3024_v39 = vmul.f32 %v10654_v32, %v3000_v16 }
 0x99c   :  { %3286 = vrot.lane.b32.xlu0 %v3251_v31, %s8649_s9  ;;  %3288 = vrot.lane.b32.xlu1 %v3252_v58, %s8649_s9  ;;  %v8452_v7 = vpop.eup %8451  ;;  %v2953_v31 = vsub.f32 %v10476_v30, %v10760_v5  ;;  %v3255_v12 = vmul.f32 %v10847_v26, %v10847_v26  ;;  %v3256_v51 = vmul.f32 %v10849_v35, %v10849_v35 }
 0x99d   :  { %v8454_v58 = vpop.eup %8453  ;;  %v3091_v52 = vpop.permute.xlu1 %3090  ;;  %v3048_v47 = vadd.f32 %v10670_v48, %v3024_v39  ;;  %v10869_v30 = vadd.f32 %v3089_v50, %v3047_v37  ;;  %v2955_v50 = vsub.f32 %v10494_v61, %v10791_v0 }
 0x99e   :  { %v3001_v63 = vmul.f32 %v8452_v7, %v2953_v31  ;;  %v3002_v60 = vmul.f32 %v8454_v58, %v2954_v4  ;;  %v3093_v9 = vpop.permute.xlu0 %3092  ;;  %v6856_v31 = vld [vmem:[%s12665_s6 + $0x10] ss:$0 sm:$0xff] }
 0x99f   :  { %v10871_v57 = vadd.f32 %v3091_v52, %v3048_v47  ;;  %v8456_v5 = vpop.eup %8455  ;;  %v3257_v24 = vmul.f32 %v10869_v30, %v10869_v30 }
 0x9a0   :  { %3162 = vrot.lane.b32.xlu0 %v10827_v23, %s8649_s9  ;;  %3164 = vrot.lane.b32.xlu1 %v10825_v38, %s8649_s9  ;;  %v3025_v62 = vmul.f32 %v10654_v32, %v3001_v63  ;;  %v3026_v25 = vmul.f32 %v10654_v32, %v3002_v60  ;;  %v3003_v8 = vmul.f32 %v8456_v5, %v2955_v50 }
 0x9a1   :  { %v8458_v34 = vpop.eup %8457  ;;  %v3258_v56 = vmul.f32 %v10871_v57, %v10871_v57  ;;  %v3095_v3 = vpop.permute.xlu1 %3094 }
 0x9a2   :  { %v3049_v15 = vadd.f32 %v10670_v48, %v3025_v62  ;;  %v3050_v36 = vadd.f32 %v10670_v48, %v3026_v25  ;;  %v3097_v17 = vpop.permute.xlu0 %3096  ;;  %v3027_v18 = vmul.f32 %v10654_v32, %v3003_v8 }
 0x9a4   :  { %3290 = vrot.lane.b32.xlu0 %v3253_v28, %s8649_s9  ;;  %3292 = vrot.lane.b32.xlu1 %v3254_v33, %s8649_s9  ;;  %v8460_v59 = vpop.eup %8459  ;;  %v3005_v33 = vmul.f32 %v8458_v34, %v2957_v42  ;;  %v10893_v27 = vadd.f32 %v3093_v9, %v3049_v15  ;;  %v10895_v0 = vadd.f32 %v3095_v3, %v3050_v36 }
 0x9a5   :  { %v3004_v61 = vmul.f32 %v8460_v59, %v2956_v14  ;;  %v3099_v10 = vpop.permute.xlu1 %3098  ;;  %v3051_v40 = vadd.f32 %v10670_v48, %v3027_v18 }
 0x9a6   :  { %v3029_v29 = vmul.f32 %v10654_v32, %v3005_v33  ;;  %v3259_v13 = vmul.f32 %v10893_v27, %v10893_v27  ;;  %v3260_v19 = vmul.f32 %v10895_v0, %v10895_v0  ;;  %v3101_v20 = vpop.permute.xlu0 %3100 }
 0x9a7   :  { %v3028_v28 = vmul.f32 %v10654_v32, %v3004_v61  ;;  %v10913_v16 = vadd.f32 %v3097_v17, %v3051_v40 }
 0x9a8   :  { %3166 = vrot.lane.b32.xlu0 %v10847_v26, %s8649_s9  ;;  %3168 = vrot.lane.b32.xlu1 %v10849_v35, %s8649_s9  ;;  %v3053_v53 = vadd.f32 %v10670_v48, %v3029_v29 }
 0x9a9   :  { %v3052_v32 = vadd.f32 %v10670_v48, %v3028_v28  ;;  %v3261_v39 = vmul.f32 %v10913_v16, %v10913_v16 }
 0x9aa   :  { %v10915_v7 = vadd.f32 %v3101_v20, %v3053_v53 }
 0x9ab   :  { %v10917_v41 = vadd.f32 %v3099_v10, %v3052_v32 }
 0x9ac   :  { %3294 = vrot.lane.b32.xlu0 %v3255_v12, %s8649_s9  ;;  %3296 = vrot.lane.b32.xlu1 %v3256_v51, %s8649_s9  ;;  %v3263_v48 = vmul.f32 %v10915_v7, %v10915_v7 }
 0x9ad   :  { %v3262_v58 = vmul.f32 %v10917_v41, %v10917_v41 }
 0x9b0   :  { %3170 = vrot.lane.b32.xlu0 %v10869_v30, %s8649_s9  ;;  %3172 = vrot.lane.b32.xlu1 %v10871_v57, %s8649_s9 }
 0x9b4   :  { %3298 = vrot.lane.b32.xlu0 %v3257_v24, %s8649_s9  ;;  %3300 = vrot.lane.b32.xlu1 %v3258_v56, %s8649_s9  ;;  %v6855_v24 = vld [vmem:[%s12665_s6 + $0xf] ss:$0 sm:$0xff] }
 0x9b8   :  { %3174 = vrot.lane.b32.xlu0 %v10893_v27, %s8649_s9  ;;  %3176 = vrot.lane.b32.xlu1 %v10895_v0, %s8649_s9 }
 0x9bc   :  { %3302 = vrot.lane.b32.xlu0 %v3259_v13, %s8649_s9  ;;  %3304 = vrot.lane.b32.xlu1 %v3260_v19, %s8649_s9 }
 0x9c0   :  { %3178 = vrot.lane.b32.xlu0 %v10913_v16, %s8649_s9  ;;  %3180 = vrot.lane.b32.xlu1 %v10917_v41, %s8649_s9 }
 0x9c4   :  { %3306 = vrot.lane.b32.xlu0 %v3261_v39, %s8649_s9  ;;  %3310 = vrot.lane.b32.xlu1 %v3263_v48, %s8649_s9 }
 0x9c8   :  { %3182 = vrot.lane.b32.xlu0 %v10915_v7, %s8649_s9  ;;  %3308 = vrot.lane.b32.xlu1 %v3262_v58, %s8649_s9 }
 0x9cc   :  { %3533 = vrot.lane.b32.xlu0 %v6856_v31, %s8649_s9 }
 0x9fa   :  { %v3153_v4 = vpop.permute.xlu1 %3152 }
 0x9fb   :  { %v3200_v12 = vsel %vm246_vm0, %v3153_v4, 0.0 }
 0x9fc   :  { %3201 = vadd.xlane.f32.xlu0 %v3200_v12 }
 0x9fe   :  { %v3281_v51 = vpop.permute.xlu1 %3280 }
 0x9ff   :  { %v3328_v34 = vsel %vm246_vm0, %v3281_v51, 0.0 }
 0xa02   :  { %v3155_v63 = vpop.permute.xlu0 %3154  ;;  %v3157_v52 = vpop.permute.xlu1 %3156 }
 0xa03   :  { %v3203_v37 = vsel %vm246_vm0, %v3155_v63, 0.0  ;;  %v3206_v56 = vsel %vm246_vm0, %v3157_v52, 0.0 }
 0xa04   :  { %3204 = vadd.xlane.f32.xlu1 %v3203_v37 }
 0xa06   :  { %v3283_v47 = vpop.permute.xlu0 %3282  ;;  %v3285_v60 = vpop.permute.xlu1 %3284 }
 0xa07   :  { %v3331_v5 = vsel %vm246_vm0, %v3283_v47, 0.0  ;;  %v3334_v63 = vsel %vm246_vm0, %v3285_v60, 0.0 }
 0xa08   :  { %3332 = vadd.xlane.f32.xlu0 %v3331_v5 }
 0xa0a   :  { %v3159_v9 = vpop.permute.xlu0 %3158  ;;  %v3161_v62 = vpop.permute.xlu1 %3160 }
 0xa0b   :  { %v3209_v50 = vsel %vm246_vm0, %v3159_v9, 0.0  ;;  %v3212_v47 = vsel %vm246_vm0, %v3161_v62, 0.0 }
 0xa0c   :  { %3329 = vadd.xlane.f32.xlu0 %v3328_v34 }
 0xa0e   :  { %v3287_v25 = vpop.permute.xlu0 %3286  ;;  %v3289_v59 = vpop.permute.xlu1 %3288 }
 0xa0f   :  { %v3337_v3 = vsel %vm246_vm0, %v3287_v25, 0.0  ;;  %v3340_v25 = vsel %vm246_vm0, %v3289_v59, 0.0 }
 0xa10   :  { %3210 = vadd.xlane.f32.xlu0 %v3209_v50 }
 0xa12   :  { %v3163_v42 = vpop.permute.xlu0 %3162  ;;  %v3165_v14 = vpop.permute.xlu1 %3164 }
 0xa13   :  { %v3215_v61 = vsel %vm246_vm0, %v3163_v42, 0.0  ;;  %v3218_v60 = vsel %vm246_vm0, %v3165_v14, 0.0 }
 0xa14   :  { %3207 = vadd.xlane.f32.xlu0 %v3206_v56 }
 0xa15   :  { %3509 = vrot.lane.b32.xlu1 %v6855_v24, %s8649_s9 }
 0xa16   :  { %v3291_v15 = vpop.permute.xlu0 %3290  ;;  %v3293_v8 = vpop.permute.xlu1 %3292 }
 0xa17   :  { %v3343_v18 = vsel %vm246_vm0, %v3291_v15, 0.0  ;;  %v3346_v62 = vsel %vm246_vm0, %v3293_v8, 0.0 }
 0xa18   :  { %3338 = vadd.xlane.f32.xlu0 %v3337_v3 }
 0xa1a   :  { %v3167_v36 = vpop.permute.xlu0 %3166  ;;  %v3169_v33 = vpop.permute.xlu1 %3168 }
 0xa1b   :  { %v3221_v13 = vsel %vm246_vm0, %v3167_v36, 0.0  ;;  %v3224_v56 = vsel %vm246_vm0, %v3169_v33, 0.0 }
 0xa1c   :  { %3216 = vadd.xlane.f32.xlu0 %v3215_v61 }
 0xa1e   :  { %v3295_v17 = vpop.permute.xlu0 %3294  ;;  %v3297_v29 = vpop.permute.xlu1 %3296 }
 0xa1f   :  { %v3349_v10 = vsel %vm246_vm0, %v3295_v17, 0.0  ;;  %v3352_v15 = vsel %vm246_vm0, %v3297_v29, 0.0  ;;  %v6858_v29 = vld [vmem:[%s12663_s4 + $0x88] sm:$0xff] }
 0xa20   :  { %3344 = vadd.xlane.f32.xlu0 %v3343_v18  ;;  %v6857_v18 = vld [vmem:[%s12663_s4 + $0x80] sm:$0xff] }
 0xa22   :  { %v3171_v28 = vpop.permute.xlu0 %3170  ;;  %v3173_v19 = vpop.permute.xlu1 %3172 }
 0xa23   :  { %v3227_v53 = vsel %vm246_vm0, %v3171_v28, 0.0  ;;  %v3230_v59 = vsel %vm246_vm0, %v3173_v19, 0.0  ;;  %v6859_v28 = vld [vmem:[%s12663_s4 + $0x90] sm:$0xff]  ;;  %v6860_v19 = vld [vmem:[%s12663_s4 + $0x98] sm:$0xff] }
 0xa24   :  { %3222 = vadd.xlane.f32.xlu0 %v3221_v13  ;;  %v8093_v13 = vpack.c.bf16 %v6858_v29, %v6857_v18 }
 0xa26   :  { %v3299_v20 = vpop.permute.xlu0 %3298  ;;  %v3301_v32 = vpop.permute.xlu1 %3300  ;;  %8094 = vmatprep.subr.bf16.mxu0 %v8093_v13 }
 0xa27   :  { %v3355_v48 = vsel %vm246_vm0, %v3299_v20, 0.0  ;;  %v3358_v3 = vsel %vm246_vm0, %v3301_v32, 0.0  ;;  %v8097_v20 = vpack.c.bf16 %v6860_v19, %v6859_v28  ;;  %8096 = vmatpush3.bf16.msra.mxu0 %v8093_v13 }
 0xa28   :  { %3350 = vadd.xlane.f32.xlu0 %v3349_v10  ;;  %v6861_v10 = vld [vmem:[%s12663_s4 + $0xa0] sm:$0xff] }
 0xa29   :  { %8098 = vmatprep.subr.bf16.mxu0 %v8097_v20 }
 0xa2a   :  { %v3175_v40 = vpop.permute.xlu0 %3174  ;;  %v3177_v58 = vpop.permute.xlu1 %3176 }
 0xa2b   :  { %v3233_v31 = vsel %vm246_vm0, %v3175_v40, 0.0  ;;  %v3236_v14 = vsel %vm246_vm0, %v3177_v58, 0.0  ;;  %v6862_v40 = vld [vmem:[%s12663_s4 + $0xa8] sm:$0xff]  ;;  %8100 = vmatpush3.bf16.msra.mxu0 %v8097_v20 }
 0xa2c   :  { %3228 = vadd.xlane.f32.xlu0 %v3227_v53 }
 0xa2e   :  { %v3303_v39 = vpop.permute.xlu0 %3302  ;;  %v3305_v51 = vpop.permute.xlu1 %3304 }
 0xa2f   :  { %v3361_v12 = vsel %vm246_vm0, %v3303_v39, 0.0  ;;  %v3364_v36 = vsel %vm246_vm0, %v3305_v51, 0.0 }
 0xa30   :  { %3356 = vadd.xlane.f32.xlu0 %v3355_v48  ;;  %v8101_v48 = vpack.c.bf16 %v6862_v40, %v6861_v10 }
 0xa32   :  { %v3179_v4 = vpop.permute.xlu0 %3178  ;;  %v3181_v5 = vpop.permute.xlu1 %3180  ;;  %8102 = vmatprep.subr.bf16.mxu0 %v8101_v48 }
 0xa33   :  { %v3239_v37 = vsel %vm246_vm0, %v3179_v4, 0.0  ;;  %v3242_v8 = vsel %vm246_vm0, %v3181_v5, 0.0  ;;  %8104 = vmatpush3.bf16.msra.mxu0 %v8101_v48 }
 0xa34   :  { %3234 = vadd.xlane.f32.xlu0 %v3233_v31 }
 0xa36   :  { %v3307_v52 = vpop.permute.xlu0 %3306  ;;  %v3311_v42 = vpop.permute.xlu1 %3310 }
 0xa37   :  { %v3367_v9 = vsel %vm246_vm0, %v3307_v52, 0.0  ;;  %v3373_v24 = vsel %vm246_vm0, %v3311_v42, 0.0 }
 0xa38   :  { %3362 = vadd.xlane.f32.xlu0 %v3361_v12 }
 0xa39   :  { %3335 = vadd.xlane.f32.xlu1 %v3334_v63 }
 0xa3a   :  { %v3183_v34 = vpop.permute.xlu0 %3182  ;;  %v3309_v61 = vpop.permute.xlu1 %3308 }
 0xa3b   :  { %v3245_v50 = vsel %vm246_vm0, %v3183_v34, 0.0  ;;  %v3370_v33 = vsel %vm246_vm0, %v3309_v61, 0.0 }
 0xa3c   :  { %3240 = vadd.xlane.f32.xlu0 %v3239_v37 }
 0xa3d   :  { %3213 = vadd.xlane.f32.xlu1 %v3212_v47 }
 0xa3e   :  { %v10974_v17 = vpop.permute.xlu0 %3533 }
 0xa40   :  { %3368 = vadd.xlane.f32.xlu0 %v3367_v9 }
 0xa41   :  { %3341 = vadd.xlane.f32.xlu1 %v3340_v25  ;;  %v6863_v25 = vld [vmem:[%s12663_s4 + $0xb0] sm:$0xff] }
 0xa44   :  { %3246 = vadd.xlane.f32.xlu0 %v3245_v50  ;;  %v6864_v50 = vld [vmem:[%s12663_s4 + $0xb8] sm:$0xff] }
 0xa45   :  { %3219 = vadd.xlane.f32.xlu1 %v3218_v60  ;;  %v8105_v42 = vpack.c.bf16 %v6864_v50, %v6863_v25 }
 0xa47   :  { %8106 = vmatprep.subr.bf16.mxu0 %v8105_v42 }
 0xa48   :  { %3374 = vadd.xlane.f32.xlu0 %v3373_v24  ;;  %8108 = vmatpush3.bf16.msra.mxu0 %v8105_v42 }
 0xa49   :  { %3347 = vadd.xlane.f32.xlu1 %v3346_v62 }
 0xa4d   :  { %3225 = vadd.xlane.f32.xlu1 %v3224_v56 }
 0xa51   :  { %3353 = vadd.xlane.f32.xlu1 %v3352_v15 }
 0xa55   :  { %3231 = vadd.xlane.f32.xlu1 %v3230_v59 }
 0xa59   :  { %3359 = vadd.xlane.f32.xlu1 %v3358_v3 }
 0xa5d   :  { %3237 = vadd.xlane.f32.xlu1 %v3236_v14 }
 0xa61   :  { %3365 = vadd.xlane.f32.xlu1 %v3364_v36 }
 0xa65   :  { %3243 = vadd.xlane.f32.xlu1 %v3242_v8 }
 0xa69   :  { %3371 = vadd.xlane.f32.xlu1 %v3370_v33 }
 0xa89   :  { %v3202_v53 = vpop.xlane.xlu0 %3201 }
 0xa8a   :  { %v3376_v31 = vmul.f32 0.015625, %v3202_v53 }
 0xa8c   :  { %v3408_v52 = vmul.f32 %v3376_v31, %v3376_v31  ;;  %v3440_v3 = vsub.f32 %v10722_v46, %v3376_v31 }
 0xa91   :  { %v3205_v32 = vpop.xlane.xlu1 %3204 }
 0xa92   :  { %v3377_v39 = vmul.f32 0.015625, %v3205_v32 }
 0xa94   :  { %v3409_v4 = vmul.f32 %v3377_v39, %v3377_v39  ;;  %v3441_v24 = vsub.f32 %v10753_v44, %v3377_v39 }
 0xa95   :  { %v3333_v58 = vpop.xlane.xlu0 %3332  ;;  %v11001_v59 = vpop.permute.xlu1 %3509 }
 0xa96   :  { %v3393_v12 = vmul.f32 0.015625, %v3333_v58 }
 0xa98   :  { %v3425_v51 = vsub.f32 %v3393_v12, %v3409_v4 }
 0xa99   :  { %v3330_v63 = vpop.xlane.xlu0 %3329 }
 0xa9a   :  { %v3457_v37 = vadd.f32 1e-05, %v3425_v51  ;;  %v3392_v47 = vmul.f32 0.015625, %v3330_v63 }
 0xa9c   :  { %8461 = vrsqrt.f32 %v3457_v37  ;;  %v3424_v5 = vsub.f32 %v3392_v47, %v3408_v52 }
 0xa9d   :  { %v3211_v9 = vpop.xlane.xlu0 %3210 }
 0xa9e   :  { %v3456_v34 = vadd.f32 1e-05, %v3424_v5  ;;  %v11016_v12 = vmul.f32 0.015625, %v3211_v9 }
 0xaa0   :  { %8463 = vrsqrt.f32 %v3456_v34  ;;  %v3411_v50 = vmul.f32 %v11016_v12, %v11016_v12 }
 0xaa1   :  { %v3208_v60 = vpop.xlane.xlu0 %3207 }
 0xaa2   :  { %v11024_v9 = vmul.f32 0.015625, %v3208_v60 }
 0xaa4   :  { %v3410_v60 = vmul.f32 %v11024_v9, %v11024_v9 }
 0xaa5   :  { %v3339_v62 = vpop.xlane.xlu0 %3338 }
 0xaa6   :  { %v8462_v56 = vpop.eup %8461  ;;  %v3395_v5 = vmul.f32 0.015625, %v3339_v62 }
 0xaa7   :  { %v3489_v15 = vmul.f32 %v8462_v56, %v3441_v24 }
 0xaa9   :  { %v3217_v14 = vpop.xlane.xlu0 %3216  ;;  %v3513_v36 = vmul.f32 %v11001_v59, %v3489_v15 }
 0xaaa   :  { %v8464_v8 = vpop.eup %8463  ;;  %v3381_v61 = vmul.f32 0.015625, %v3217_v14 }
 0xaab   :  { %v11006_v33 = vadd.f32 %v10974_v17, %v3513_v36  ;;  %v3488_v18 = vmul.f32 %v8464_v8, %v3440_v3  ;;  %v3427_v3 = vsub.f32 %v3395_v5, %v3411_v50 }
 0xaac   :  { %v3413_v28 = vmul.f32 %v3381_v61, %v3381_v61  ;;  %v3445_v51 = vsub.f32 %v10827_v23, %v3381_v61 }
 0xaad   :  { %v3345_v29 = vpop.xlane.xlu0 %3344  ;;  %3585 = vrot.lane.b32.xlu0 %v11006_v33, %s8649_s9  ;;  %v3512_v44 = vmul.f32 %v11001_v59, %v3488_v18 }
 0xaae   :  { %v3397_v13 = vmul.f32 0.015625, %v3345_v29  ;;  %v3459_v29 = vadd.f32 1e-05, %v3427_v3 }
 0xaaf   :  { %v11012_v19 = vadd.f32 %v10974_v17, %v3512_v44 }
 0xab0   :  { %v3429_v46 = vsub.f32 %v3397_v13, %v3413_v28 }
 0xab1   :  { %v3223_v20 = vpop.xlane.xlu0 %3222  ;;  %3583 = vrot.lane.b32.xlu1 %v11012_v19, %s8649_s9 }
 0xab2   :  { %v3461_v10 = vadd.f32 1e-05, %v3429_v46  ;;  %v3383_v40 = vmul.f32 0.015625, %v3223_v20 }
 0xab4   :  { %8465 = vrsqrt.f32 %v3461_v10  ;;  %v3415_v32 = vmul.f32 %v3383_v40, %v3383_v40  ;;  %v3447_v62 = vsub.f32 %v10847_v26, %v3383_v40 }
 0xab5   :  { %v3351_v53 = vpop.xlane.xlu0 %3350 }
 0xab6   :  { %v3399_v39 = vmul.f32 0.015625, %v3351_v53 }
 0xab8   :  { %v3431_v48 = vsub.f32 %v3399_v39, %v3415_v32 }
 0xab9   :  { %v3229_v58 = vpop.xlane.xlu0 %3228 }
 0xaba   :  { %v3463_v31 = vadd.f32 1e-05, %v3431_v48  ;;  %v3385_v4 = vmul.f32 0.015625, %v3229_v58 }
 0xabc   :  { %8467 = vrsqrt.f32 %v3463_v31  ;;  %v3417_v37 = vmul.f32 %v3385_v4, %v3385_v4  ;;  %v3449_v58 = vsub.f32 %v10869_v30, %v3385_v4 }
 0xabd   :  { %v3357_v63 = vpop.xlane.xlu0 %3356 }
 0xabe   :  { %v8466_v52 = vpop.eup %8465  ;;  %v3401_v47 = vmul.f32 0.015625, %v3357_v63 }
 0xabf   :  { %v3493_v34 = vmul.f32 %v8466_v52, %v3445_v51 }
 0xac0   :  { %v3433_v25 = vsub.f32 %v3401_v47, %v3417_v37 }
 0xac1   :  { %v3235_v42 = vpop.xlane.xlu0 %3234  ;;  %v3517_v24 = vmul.f32 %v11001_v59, %v3493_v34 }
 0xac2   :  { %v3465_v56 = vadd.f32 1e-05, %v3433_v25  ;;  %v11022_v15 = vmul.f32 0.015625, %v3235_v42 }
 0xac3   :  { %v11027_v23 = vadd.f32 %v10974_v17, %v3517_v24 }
 0xac4   :  { %8469 = vrsqrt.f32 %v3465_v56  ;;  %v3419_v8 = vmul.f32 %v11022_v15, %v11022_v15 }
 0xac5   :  { %v3363_v14 = vpop.xlane.xlu0 %3362  ;;  %3593 = vrot.lane.b32.xlu0 %v11027_v23, %s8649_s9  ;;  %8471 = vrsqrt.f32 %v3459_v29  ;;  %v3442_v29 = vsub.f32 %v10751_v55, %v11024_v9 }
 0xac6   :  { %v8468_v36 = vpop.eup %8467  ;;  %v3403_v61 = vmul.f32 0.015625, %v3363_v14  ;;  %v3336_v18 = vpop.xlane.xlu1 %3335 }
 0xac7   :  { %v3394_v44 = vmul.f32 0.015625, %v3336_v18  ;;  %v3495_v28 = vmul.f32 %v8468_v36, %v3447_v62 }
 0xac8   :  { %v3435_v13 = vsub.f32 %v3403_v61, %v3419_v8  ;;  %v3451_v8 = vsub.f32 %v10893_v27, %v11022_v15 }
 0xac9   :  { %v3426_v46 = vsub.f32 %v3394_v44, %v3410_v60  ;;  %v3241_v20 = vpop.xlane.xlu0 %3240  ;;  %v3519_v26 = vmul.f32 %v11001_v59, %v3495_v28  ;;  %v3443_v60 = vsub.f32 %v10788_v22, %v11016_v12 }
 0xaca   :  { %v3467_v10 = vadd.f32 1e-05, %v3435_v13  ;;  %v11037_v40 = vmul.f32 0.015625, %v3241_v20  ;;  %v3214_v53 = vpop.xlane.xlu1 %3213 }
 0xacb   :  { %v3458_v32 = vadd.f32 1e-05, %v3426_v46  ;;  %v11039_v39 = vmul.f32 0.015625, %v3214_v53  ;;  %v11042_v48 = vadd.f32 %v10974_v17, %v3519_v26 }
 0xacc   :  { %8473 = vrsqrt.f32 %v3467_v10  ;;  %v3421_v63 = vmul.f32 %v11037_v40, %v11037_v40 }
 0xacd   :  { %8475 = vrsqrt.f32 %v3458_v32  ;;  %v3369_v31 = vpop.xlane.xlu0 %3368  ;;  %3597 = vrot.lane.b32.xlu0 %v11042_v48, %s8649_s9  ;;  %v3412_v47 = vmul.f32 %v11039_v39, %v11039_v39 }
 0xace   :  { %v8470_v51 = vpop.eup %8469  ;;  %v3405_v52 = vmul.f32 0.015625, %v3369_v31  ;;  %v3342_v37 = vpop.xlane.xlu1 %3341 }
 0xacf   :  { %v3396_v5 = vmul.f32 0.015625, %v3342_v37  ;;  %v3497_v34 = vmul.f32 %v8470_v51, %v3449_v58  ;;  %v8472_v36 = vpop.eup %8471  ;;  %v3453_v37 = vsub.f32 %v10913_v16, %v11037_v40 }
 0xad0   :  { %v3437_v25 = vsub.f32 %v3405_v52, %v3421_v63  ;;  %v3491_v53 = vmul.f32 %v8472_v36, %v3443_v60 }
 0xad1   :  { %v3428_v50 = vsub.f32 %v3396_v5, %v3412_v47  ;;  %v3247_v42 = vpop.xlane.xlu0 %3246  ;;  %v3521_v30 = vmul.f32 %v11001_v59, %v3497_v34  ;;  %v3444_v5 = vsub.f32 %v10786_v1, %v11039_v39 }
 0xad2   :  { %v3469_v4 = vadd.f32 1e-05, %v3437_v25  ;;  %v11052_v24 = vmul.f32 0.015625, %v3247_v42  ;;  %v3220_v56 = vpop.xlane.xlu1 %3219  ;;  %v3515_v52 = vmul.f32 %v11001_v59, %v3491_v53 }
 0xad3   :  { %v3460_v3 = vadd.f32 1e-05, %v3428_v50  ;;  %v11054_v62 = vmul.f32 0.015625, %v3220_v56  ;;  %v11057_v14 = vadd.f32 %v10974_v17, %v3521_v30 }
 0xad4   :  { %8477 = vrsqrt.f32 %v3469_v4  ;;  %v3423_v44 = vmul.f32 %v11052_v24, %v11052_v24  ;;  %v11089_v4 = vadd.f32 %v10974_v17, %v3515_v52 }
 0xad5   :  { %8479 = vrsqrt.f32 %v3460_v3  ;;  %v3375_v61 = vpop.xlane.xlu0 %3374  ;;  %3601 = vrot.lane.b32.xlu0 %v11057_v14, %s8649_s9  ;;  %v3414_v27 = vmul.f32 %v11054_v62, %v11054_v62 }
 0xad6   :  { %v8474_v18 = vpop.eup %8473  ;;  %v3407_v28 = vmul.f32 0.015625, %v3375_v61  ;;  %v3348_v13 = vpop.xlane.xlu1 %3347 }
 0xad7   :  { %v8476_v46 = vpop.eup %8475  ;;  %v3398_v15 = vmul.f32 0.015625, %v3348_v13  ;;  %v3499_v20 = vmul.f32 %v8474_v18, %v3451_v8  ;;  %v3455_v18 = vsub.f32 %v10915_v7, %v11052_v24 }
 0xad8   :  { %v3439_v26 = vsub.f32 %v3407_v28, %v3423_v44  ;;  %v3490_v10 = vmul.f32 %v8476_v46, %v3442_v29  ;;  %v3446_v29 = vsub.f32 %v10825_v38, %v11054_v62 }
 0xad9   :  { %v3430_v32 = vsub.f32 %v3398_v15, %v3414_v27  ;;  %v3523_v22 = vmul.f32 %v11001_v59, %v3499_v20 }
 0xada   :  { %v3471_v12 = vadd.f32 1e-05, %v3439_v26  ;;  %v3226_v58 = vpop.xlane.xlu1 %3225  ;;  %v3514_v55 = vmul.f32 %v11001_v59, %v3490_v10 }
 0xadb   :  { %v3462_v9 = vadd.f32 1e-05, %v3430_v32  ;;  %v3384_v31 = vmul.f32 0.015625, %v3226_v58  ;;  %v11074_v51 = vadd.f32 %v10974_v17, %v3523_v22 }
 0xadc   :  { %8481 = vrsqrt.f32 %v3471_v12  ;;  %v11077_v63 = vadd.f32 %v10974_v17, %v3514_v55 }
 0xadd   :  { %8483 = vrsqrt.f32 %v3462_v9  ;;  %3605 = vrot.lane.b32.xlu0 %v11074_v51, %s8649_s9  ;;  %v3416_v50 = vmul.f32 %v3384_v31, %v3384_v31  ;;  %v3448_v62 = vsub.f32 %v10849_v35, %v3384_v31 }
 0xade   :  { %v8478_v47 = vpop.eup %8477  ;;  %3587 = vrot.lane.b32.xlu1 %v11077_v63, %s8649_s9  ;;  %v3354_v34 = vpop.xlane.xlu1 %3353 }
 0xadf   :  { %v8480_v25 = vpop.eup %8479  ;;  %v3400_v42 = vmul.f32 0.015625, %v3354_v34  ;;  %v3501_v30 = vmul.f32 %v8478_v47, %v3453_v37 }
 0xae0   :  { %v3492_v16 = vmul.f32 %v8480_v25, %v3444_v5 }
 0xae1   :  { %v3432_v40 = vsub.f32 %v3400_v42, %v3416_v50  ;;  %v3525_v56 = vmul.f32 %v11001_v59, %v3501_v30 }
 0xae2   :  { %3589 = vrot.lane.b32.xlu1 %v11089_v4, %s8649_s9  ;;  %v3232_v3 = vpop.xlane.xlu1 %3231  ;;  %v3516_v1 = vmul.f32 %v11001_v59, %v3492_v16 }
 0xae3   :  { %v3464_v39 = vadd.f32 1e-05, %v3432_v40  ;;  %v3386_v36 = vmul.f32 0.015625, %v3232_v3  ;;  %v11096_v8 = vadd.f32 %v10974_v17, %v3525_v56 }
 0xae4   :  { %v11099_v61 = vadd.f32 %v10974_v17, %v3516_v1 }
 0xae5   :  { %8485 = vrsqrt.f32 %v3464_v39  ;;  %3609 = vrot.lane.b32.xlu0 %v11096_v8, %s8649_s9  ;;  %v3418_v13 = vmul.f32 %v3386_v36, %v3386_v36  ;;  %v3450_v35 = vsub.f32 %v10871_v57, %v3386_v36 }
 0xae6   :  { %v8482_v60 = vpop.eup %8481  ;;  %3591 = vrot.lane.b32.xlu1 %v11099_v61, %s8649_s9  ;;  %v3360_v44 = vpop.xlane.xlu1 %3359 }
 0xae7   :  { %v8484_v28 = vpop.eup %8483  ;;  %v3402_v46 = vmul.f32 0.015625, %v3360_v44  ;;  %v3503_v27 = vmul.f32 %v8482_v60, %v3455_v18  ;;  %v6882_v60 = vld [vmem:[%s12664_s5 + $0x100] sm:$0xff]  ;;  %v6884_v44 = vld [vmem:[%s12664_s5 + $0x110] sm:$0xff] }
 0xae8   :  { %v3494_v15 = vmul.f32 %v8484_v28, %v3446_v29  ;;  %v6883_v29 = vld [vmem:[%s12664_s5 + $0x108] sm:$0xff]  ;;  %v6885_v28 = vld [vmem:[%s12664_s5 + $0x118] sm:$0xff] }
 0xae9   :  { %v3434_v20 = vsub.f32 %v3402_v46, %v3418_v13  ;;  %v3527_v7 = vmul.f32 %v11001_v59, %v3503_v27  ;;  %v8113_v46 = vpack.c.bf16 %v6885_v28, %v6884_v44  ;;  %v6886_v27 = vld [vmem:[%s12664_s5 + $0x120] sm:$0xff] }
 0xaea   :  { %v3238_v24 = vpop.xlane.xlu1 %3237  ;;  %v3518_v26 = vmul.f32 %v11001_v59, %v3494_v15  ;;  %v6887_v15 = vld [vmem:[%s12664_s5 + $0x128] sm:$0xff]  ;;  %v6865_v28 = vld [vmem:[%s12666_s7 + $0x2] ss:$0 sm:$0xff] }
 0xaeb   :  { %v3466_v10 = vadd.f32 1e-05, %v3434_v20  ;;  %v3388_v53 = vmul.f32 0.015625, %v3238_v24  ;;  %v11112_v32 = vadd.f32 %v10974_v17, %v3527_v7  ;;  %v8117_v24 = vpack.c.bf16 %v6887_v15, %v6886_v27 }
 0xaec   :  { %v11115_v38 = vadd.f32 %v10974_v17, %v3518_v26 }
 0xaed   :  { %8487 = vrsqrt.f32 %v3466_v10  ;;  %3613 = vrot.lane.b32.xlu0 %v11112_v32, %s8649_s9  ;;  %v3420_v58 = vmul.f32 %v3388_v53, %v3388_v53  ;;  %v3452_v39 = vsub.f32 %v10895_v0, %v3388_v53  ;;  %v8109_v0 = vpack.c.bf16 %v6883_v29, %v6882_v60  ;;  %v6888_v10 = vld [vmem:[%s12664_s5 + $0x130] sm:$0xff]  ;;  %v6889_v53 = vld [vmem:[%s12664_s5 + $0x138] sm:$0xff] }
 0xaee   :  { %3595 = vrot.lane.b32.xlu1 %v11115_v38, %s8649_s9  ;;  %v3366_v22 = vpop.xlane.xlu1 %3365  ;;  %v6897_v60 = vld [vmem:[%s12664_s5 + $0x178] sm:$0xff] }
 0xaef   :  { %v8486_v12 = vpop.eup %8485  ;;  %v3404_v55 = vmul.f32 0.015625, %v3366_v22  ;;  %8110 = vmatprep.subr.bf16.mxu1 %v8109_v0 }
 0xaf0   :  { %v3496_v9 = vmul.f32 %v8486_v12, %v3448_v62  ;;  %8112 = vmatpush3.bf16.msra.mxu1 %v8109_v0  ;;  %v6890_v12 = vld [vmem:[%s12664_s5 + $0x140] sm:$0xff] }
 0xaf1   :  { %v3436_v52 = vsub.f32 %v3404_v55, %v3420_v58  ;;  %8114 = vmatprep.subr.bf16.mxu1 %v8113_v46  ;;  %v6891_v58 = vld [vmem:[%s12664_s5 + $0x148] sm:$0xff]  ;;  %v6892_v55 = vld [vmem:[%s12664_s5 + $0x150] sm:$0xff] }
 0xaf2   :  { %v3244_v37 = vpop.xlane.xlu1 %3243  ;;  %v3520_v47 = vmul.f32 %v11001_v59, %v3496_v9 }
 0xaf3   :  { %v3468_v5 = vadd.f32 1e-05, %v3436_v52  ;;  %v3390_v34 = vmul.f32 0.015625, %v3244_v37  ;;  %v6894_v52 = vld [vmem:[%s12664_s5 + $0x160] sm:$0xff]  ;;  %v6895_v37 = vld [vmem:[%s12664_s5 + $0x168] sm:$0xff] }
 0xaf4   :  { %v11124_v25 = vadd.f32 %v10974_v17, %v3520_v47  ;;  %8116 = vmatpush3.bf16.msra.mxu1 %v8113_v46  ;;  %v8133_v47 = vpack.c.bf16 %v6895_v37, %v6894_v52 }
 0xaf5   :  { %8489 = vrsqrt.f32 %v3468_v5  ;;  %v3422_v42 = vmul.f32 %v3390_v34, %v3390_v34  ;;  %v3454_v20 = vsub.f32 %v10917_v41, %v3390_v34  ;;  %8118 = vmatprep.subr.bf16.mxu1 %v8117_v24  ;;  %v8121_v41 = vpack.c.bf16 %v6889_v53, %v6888_v10 }
 0xaf6   :  { %3599 = vrot.lane.b32.xlu1 %v11124_v25, %s8649_s9  ;;  %v3372_v31 = vpop.xlane.xlu1 %3371 }
 0xaf7   :  { %v8488_v50 = vpop.eup %8487  ;;  %v3406_v30 = vmul.f32 0.015625, %v3372_v31 }
 0xaf8   :  { %v3498_v16 = vmul.f32 %v8488_v50, %v3450_v35  ;;  %8120 = vmatpush3.bf16.msra.mxu1 %v8117_v24 }
 0xaf9   :  { %v3438_v40 = vsub.f32 %v3406_v30, %v3422_v42  ;;  %8122 = vmatprep.subr.bf16.mxu1 %v8121_v41 }
 0xafa   :  { %v3522_v56 = vmul.f32 %v11001_v59, %v3498_v16 }
 0xafb   :  { %v3470_v3 = vadd.f32 1e-05, %v3438_v40 }
 0xafc   :  { %v11131_v1 = vadd.f32 %v10974_v17, %v3522_v56  ;;  %8124 = vmatpush3.bf16.msra.mxu1 %v8121_v41 }
 0xafd   :  { %8491 = vrsqrt.f32 %v3470_v3 }
 0xafe   :  { %3603 = vrot.lane.b32.xlu1 %v11131_v1, %s8649_s9 }
 0xaff   :  { %v8490_v57 = vpop.eup %8489 }
 0xb00   :  { %v3500_v36 = vmul.f32 %v8490_v57, %v3452_v39 }
 0xb02   :  { %v3524_v18 = vmul.f32 %v11001_v59, %v3500_v36 }
 0xb04   :  { %v11150_v13 = vadd.f32 %v10974_v17, %v3524_v18  ;;  %v6896_v18 = vld [vmem:[%s12664_s5 + $0x170] sm:$0xff] }
 0xb05   :  { %v8137_v29 = vpack.c.bf16 %v6897_v60, %v6896_v18 }
 0xb06   :  { %3607 = vrot.lane.b32.xlu1 %v11150_v13, %s8649_s9 }
 0xb07   :  { %v8492_v7 = vpop.eup %8491 }
 0xb08   :  { %v3502_v26 = vmul.f32 %v8492_v7, %v3454_v20 }
 0xb0a   :  { %v3526_v62 = vmul.f32 %v11001_v59, %v3502_v26  ;;  %v8125_v59 = vpack.c.bf16 %v6891_v58, %v6890_v12 }
 0xb0c   :  { %v11169_v22 = vadd.f32 %v10974_v17, %v3526_v62  ;;  %v6893_v17 = vld [vmem:[%s12664_s5 + $0x158] sm:$0xff]  ;;  %8126 = vmatprep.subr.bf16.mxu1 %v8125_v59 }
 0xb0d   :  { %v8129_v9 = vpack.c.bf16 %v6893_v17, %v6892_v55  ;;  %8128 = vmatpush3.bf16.msra.mxu1 %v8125_v59 }
 0xb0e   :  { %3611 = vrot.lane.b32.xlu1 %v11169_v22, %s8649_s9 }
 0xb0f   :  { %8130 = vmatprep.subr.bf16.mxu1 %v8129_v9 }
 0xb11   :  { %8132 = vmatpush3.bf16.msra.mxu1 %v8129_v9 }
 0xb12   :  { %8134 = vmatprep.subr.bf16.mxu1 %v8133_v47 }
 0xb15   :  { %8136 = vmatpush3.bf16.msra.mxu1 %v8133_v47 }
 0xb16   :  { %8138 = vmatprep.subr.bf16.mxu1 %v8137_v29 }
 0xb19   :  { %8140 = vmatpush3.bf16.msra.mxu1 %v8137_v29 }
 0xb1f   :  { %v3586_v34 = vpop.permute.xlu0 %3585 }
 0xb23   :  { %v3584_v5 = vpop.permute.xlu1 %3583 }
 0xb24   :  { %7682 = vmatprep.mubr.msk.f32.mxu0 %vm246_vm0, %v3584_v5 }
 0xb25   :  { %7683 = vmatmul.mubr.msk.f32.vlgmr.msra.gmra.mrb[56].mxu0 %vm246_vm0, %v3586_v34 }
 0xb37   :  { %v3594_v42 = vpop.permute.xlu0 %3593 }
 0xb3f   :  { %v3598_v16 = vpop.permute.xlu0 %3597 }
 0xb47   :  { %v3602_v56 = vpop.permute.xlu0 %3601 }
 0xb4f   :  { %v3606_v39 = vpop.permute.xlu0 %3605 }
 0xb50   :  { %v3588_v35 = vpop.permute.xlu1 %3587 }
 0xb51   :  { %7685 = vmatprep.mubr.msk.f32.mxu0 %vm246_vm0, %v3588_v35 }
 0xb54   :  { %v3590_v31 = vpop.permute.xlu1 %3589 }
 0xb55   :  { %7686 = vmatmul.mubr.msk.f32.gmra.mrb[58].mxu0 %vm246_vm0, %v3590_v31 }
 0xb57   :  { %v3610_v36 = vpop.permute.xlu0 %3609 }
 0xb58   :  { %v3592_v50 = vpop.permute.xlu1 %3591 }
 0xb59   :  { %7688 = vmatprep.mubr.msk.f32.mxu0 %vm246_vm0, %v3592_v50 }
 0xb5a   :  { %7689 = vmatmul.mubr.msk.f32.gmra.mrb[60].mxu0 %vm246_vm0, %v3594_v42 }
 0xb5f   :  { %v3614_v0 = vpop.permute.xlu0 %3613 }
 0xb60   :  { %v3596_v30 = vpop.permute.xlu1 %3595 }
 0xb61   :  { %7691 = vmatprep.mubr.msk.f32.mxu0 %vm246_vm0, %v3596_v30 }
 0xb62   :  { %7692 = vmatmul.mubr.msk.f32.gmra.mrb[62].mxu0 %vm246_vm0, %v3598_v16 }
 0xb68   :  { %v3600_v40 = vpop.permute.xlu1 %3599 }
 0xb69   :  { %7694 = vmatprep.mubr.msk.f32.mxu0 %vm246_vm0, %v3600_v40 }
 0xb6a   :  { %7695 = vmatmul.mubr.msk.f32.gmra.mrb[64].mxu0 %vm246_vm0, %v3602_v56 }
 0xb70   :  { %v3604_v3 = vpop.permute.xlu1 %3603 }
 0xb71   :  { %7697 = vmatprep.mubr.msk.f32.mxu0 %vm246_vm0, %v3604_v3 }
 0xb72   :  { %7698 = vmatmul.mubr.msk.f32.gmra.mrb[66].mxu0 %vm246_vm0, %v3606_v39 }
 0xb78   :  { %v3608_v57 = vpop.permute.xlu1 %3607 }
 0xb79   :  { %7700 = vmatprep.mubr.msk.f32.mxu0 %vm246_vm0, %v3608_v57 }
 0xb7a   :  { %7701 = vmatmul.mubr.msk.f32.gmra.mrb[68].mxu0 %vm246_vm0, %v3610_v36 }
 0xb80   :  { %v3612_v44 = vpop.permute.xlu1 %3611 }
 0xb81   :  { %7703 = vmatprep.mubr.msk.f32.mxu0 %vm246_vm0, %v3612_v44 }
 0xb82   :  { %7704 = vmatmul.mubr.msk.f32.gmra.mrb[70].mxu0 %vm246_vm0, %v3614_v0 }
 0xbf8   :  { %v7684_v46 = vpop.f32.mrb[56].mxu0 }
 0xbf9   :  { %v3719_v27 = vadd.f32 %v7684_v46, %v6865_v28  ;;  %v3713_v15 = vpop.f32.mrb[57].mxu0 }
 0xbfa   :  { %v3714_v20 = vadd.f32 %v6865_v28, %v3713_v15 }
 0xbfb   :  { %v3793_v24 = vmax.f32 %v3719_v27, 0.0 }
 0xbfc   :  { %v3792_v7 = vmax.f32 %v3714_v20, 0.0 }
 0xbfe   :  { %7738 = vmatprep.mubr.f32.mxu1 %v3792_v7 }
 0xbff   :  { %7739 = vmatmul.mubr.f32.vlgmr.msra.gmra.mrb[56].mxu1 %v3793_v24 }
 0xc28   :  { %v7687_v26 = vpop.f32.mrb[58].mxu0 }
 0xc29   :  { %v3729_v10 = vadd.f32 %v7687_v26, %v6865_v28  ;;  %v3723_v53 = vpop.f32.mrb[59].mxu0 }
 0xc2a   :  { %v3724_v62 = vadd.f32 %v6865_v28, %v3723_v53 }
 0xc2b   :  { %v3795_v12 = vmax.f32 %v3729_v10, 0.0 }
 0xc2c   :  { %v3794_v41 = vmax.f32 %v3724_v62, 0.0  ;;  %v6898_v62 = vld [vmem:[%s12665_s6 + $0x11] ss:$0 sm:$0xff] }
 0xc2d   :  { %v7690_v58 = vpop.f32.mrb[60].mxu0 }
 0xc2e   :  { %v3739_v59 = vadd.f32 %v7690_v58, %v6865_v28  ;;  %v3733_v55 = vpop.f32.mrb[61].mxu0  ;;  %7741 = vmatprep.mubr.f32.mxu1 %v3794_v41 }
 0xc2f   :  { %v3734_v17 = vadd.f32 %v6865_v28, %v3733_v55  ;;  %7742 = vmatmul.mubr.f32.gmra.mrb[58].mxu1 %v3795_v12 }
 0xc30   :  { %v3797_v52 = vmax.f32 %v3739_v59, 0.0 }
 0xc31   :  { %v3796_v9 = vmax.f32 %v3734_v17, 0.0 }
 0xc33   :  { %7744 = vmatprep.mubr.f32.mxu1 %v3796_v9 }
 0xc34   :  { %7745 = vmatmul.mubr.f32.gmra.mrb[60].mxu1 %v3797_v52 }
 0xc35   :  { %v7693_v37 = vpop.f32.mrb[62].mxu0 }
 0xc36   :  { %v3749_v47 = vadd.f32 %v7693_v37, %v6865_v28  ;;  %v3743_v5 = vpop.f32.mrb[63].mxu0 }
 0xc37   :  { %v3744_v34 = vadd.f32 %v6865_v28, %v3743_v5 }
 0xc38   :  { %v3799_v31 = vmax.f32 %v3749_v47, 0.0 }
 0xc39   :  { %v3798_v35 = vmax.f32 %v3744_v34, 0.0 }
 0xc3b   :  { %7747 = vmatprep.mubr.f32.mxu1 %v3798_v35 }
 0xc3c   :  { %7748 = vmatmul.mubr.f32.gmra.mrb[62].mxu1 %v3799_v31 }
 0xc3d   :  { %v7696_v50 = vpop.f32.mrb[64].mxu0 }
 0xc3e   :  { %v3759_v42 = vadd.f32 %v7696_v50, %v6865_v28  ;;  %v3753_v30 = vpop.f32.mrb[65].mxu0 }
 0xc3f   :  { %v3754_v16 = vadd.f32 %v6865_v28, %v3753_v30 }
 0xc40   :  { %v3801_v56 = vmax.f32 %v3759_v42, 0.0 }
 0xc41   :  { %v3800_v40 = vmax.f32 %v3754_v16, 0.0 }
 0xc43   :  { %7750 = vmatprep.mubr.f32.mxu1 %v3800_v40 }
 0xc44   :  { %7751 = vmatmul.mubr.f32.gmra.mrb[64].mxu1 %v3801_v56 }
 0xc45   :  { %v7699_v3 = vpop.f32.mrb[66].mxu0 }
 0xc46   :  { %v3769_v39 = vadd.f32 %v7699_v3, %v6865_v28  ;;  %v3763_v57 = vpop.f32.mrb[67].mxu0 }
 0xc47   :  { %v3764_v36 = vadd.f32 %v6865_v28, %v3763_v57 }
 0xc48   :  { %v3803_v60 = vmax.f32 %v3769_v39, 0.0 }
 0xc49   :  { %v3802_v18 = vmax.f32 %v3764_v36, 0.0 }
 0xc4b   :  { %7753 = vmatprep.mubr.f32.mxu1 %v3802_v18 }
 0xc4c   :  { %7754 = vmatmul.mubr.f32.gmra.mrb[66].mxu1 %v3803_v60 }
 0xc4d   :  { %v7702_v29 = vpop.f32.mrb[68].mxu0 }
 0xc4e   :  { %v3779_v44 = vadd.f32 %v7702_v29, %v6865_v28  ;;  %v3773_v0 = vpop.f32.mrb[69].mxu0 }
 0xc4f   :  { %v3774_v46 = vadd.f32 %v6865_v28, %v3773_v0 }
 0xc50   :  { %v3805_v15 = vmax.f32 %v3779_v44, 0.0 }
 0xc51   :  { %v3804_v27 = vmax.f32 %v3774_v46, 0.0 }
 0xc53   :  { %7756 = vmatprep.mubr.f32.mxu1 %v3804_v27 }
 0xc54   :  { %7757 = vmatmul.mubr.f32.gmra.mrb[68].mxu1 %v3805_v15 }
 0xc55   :  { %v7705_v20 = vpop.f32.mrb[70].mxu0 }
 0xc56   :  { %v3789_v7 = vadd.f32 %v7705_v20, %v6865_v28  ;;  %v3783_v24 = vpop.f32.mrb[71].mxu0 }
 0xc57   :  { %v3784_v26 = vadd.f32 %v6865_v28, %v3783_v24 }
 0xc58   :  { %v3807_v53 = vmax.f32 %v3789_v7, 0.0 }
 0xc59   :  { %v3806_v10 = vmax.f32 %v3784_v26, 0.0 }
 0xc5b   :  { %7759 = vmatprep.mubr.f32.mxu1 %v3806_v10 }
 0xc5c   :  { %7760 = vmatmul.mubr.f32.gmra.mrb[70].mxu1 %v3807_v53 }
 0xcd2   :  { %v7740_v41 = vpop.f32.mrb[56].mxu1 }
 0xcd3   :  { %v3901_v12 = vadd.f32 %v7740_v41, %v6898_v62  ;;  %v3895_v58 = vpop.f32.mrb[57].mxu1 }
 0xcd4   :  { %v3896_v59 = vadd.f32 %v6898_v62, %v3895_v58 }
 0xcd5   :  { %3992 = vrot.lane.b32.xlu0 %v3901_v12, %s8649_s9 }
 0xcd6   :  { %3990 = vrot.lane.b32.xlu1 %v3896_v59, %s8649_s9 }
 0xd02   :  { %v7743_v55 = vpop.f32.mrb[58].mxu1 }
 0xd03   :  { %v3911_v17 = vadd.f32 %v7743_v55, %v6898_v62  ;;  %v3905_v9 = vpop.f32.mrb[59].mxu1 }
 0xd04   :  { %v3906_v28 = vadd.f32 %v6898_v62, %v3905_v9 }
 0xd05   :  { %3996 = vrot.lane.b32.xlu0 %v3911_v17, %s8649_s9 }
 0xd06   :  { %3994 = vrot.lane.b32.xlu1 %v3906_v28, %s8649_s9 }
 0xd07   :  { %v7746_v52 = vpop.f32.mrb[60].mxu1 }
 0xd08   :  { %v3921_v37 = vadd.f32 %v7746_v52, %v6898_v62  ;;  %v3915_v47 = vpop.f32.mrb[61].mxu1 }
 0xd09   :  { %v3916_v5 = vadd.f32 %v6898_v62, %v3915_v47 }
 0xd0a   :  { %4000 = vrot.lane.b32.xlu0 %v3921_v37, %s8649_s9 }
 0xd0b   :  { %3998 = vrot.lane.b32.xlu1 %v3916_v5, %s8649_s9 }
 0xd0f   :  { %v7749_v34 = vpop.f32.mrb[62].mxu1 }
 0xd10   :  { %v3931_v35 = vadd.f32 %v7749_v34, %v6898_v62  ;;  %v3925_v31 = vpop.f32.mrb[63].mxu1 }
 0xd11   :  { %v3926_v50 = vadd.f32 %v6898_v62, %v3925_v31 }
 0xd12   :  { %4004 = vrot.lane.b32.xlu0 %v3931_v35, %s8649_s9 }
 0xd13   :  { %4002 = vrot.lane.b32.xlu1 %v3926_v50, %s8649_s9 }
 0xd17   :  { %v7752_v42 = vpop.f32.mrb[64].mxu1 }
 0xd18   :  { %v3941_v30 = vadd.f32 %v7752_v42, %v6898_v62  ;;  %v3935_v16 = vpop.f32.mrb[65].mxu1 }
 0xd19   :  { %v3936_v40 = vadd.f32 %v6898_v62, %v3935_v16 }
 0xd1a   :  { %4008 = vrot.lane.b32.xlu0 %v3941_v30, %s8649_s9 }
 0xd1b   :  { %4006 = vrot.lane.b32.xlu1 %v3936_v40, %s8649_s9 }
 0xd1f   :  { %v7755_v56 = vpop.f32.mrb[66].mxu1 }
 0xd20   :  { %v3951_v3 = vadd.f32 %v7755_v56, %v6898_v62  ;;  %v3945_v39 = vpop.f32.mrb[67].mxu1 }
 0xd21   :  { %v3946_v57 = vadd.f32 %v6898_v62, %v3945_v39 }
 0xd22   :  { %4012 = vrot.lane.b32.xlu0 %v3951_v3, %s8649_s9 }
 0xd23   :  { %4010 = vrot.lane.b32.xlu1 %v3946_v57, %s8649_s9 }
 0xd27   :  { %v7758_v36 = vpop.f32.mrb[68].mxu1 }
 0xd28   :  { %v3961_v18 = vadd.f32 %v7758_v36, %v6898_v62  ;;  %v3955_v60 = vpop.f32.mrb[69].mxu1  ;;  %v6900_v36 = vld [vmem:[%s12665_s6 + $0x13] ss:$0 sm:$0xff] }
 0xd29   :  { %v3956_v29 = vadd.f32 %v6898_v62, %v3955_v60 }
 0xd2a   :  { %4016 = vrot.lane.b32.xlu0 %v3961_v18, %s8649_s9 }
 0xd2b   :  { %4014 = vrot.lane.b32.xlu1 %v3956_v29, %s8649_s9 }
 0xd2f   :  { %v7761_v44 = vpop.f32.mrb[70].mxu1 }
 0xd30   :  { %v3971_v0 = vadd.f32 %v7761_v44, %v6898_v62  ;;  %v3965_v46 = vpop.f32.mrb[71].mxu1 }
 0xd31   :  { %v3966_v27 = vadd.f32 %v6898_v62, %v3965_v46 }
 0xd32   :  { %4020 = vrot.lane.b32.xlu0 %v3971_v0, %s8649_s9 }
 0xd33   :  { %4018 = vrot.lane.b32.xlu1 %v3966_v27, %s8649_s9 }
 0xd47   :  { %v3993_v15 = vpop.permute.xlu0 %3992 }
 0xd48   :  { %v11236_v20 = vadd.f32 %v3993_v15, %v11006_v33  ;;  %v3991_v7 = vpop.permute.xlu1 %3990 }
 0xd49   :  { %v11239_v24 = vadd.f32 %v3991_v7, %v11012_v19  ;;  %v6899_v7 = vld [vmem:[%s12665_s6 + $0x12] ss:$0 sm:$0xff] }
 0xd4a   :  { %4074 = vrot.lane.b32.xlu0 %v11236_v20, %s8649_s9  ;;  %v4169_v26 = vmul.f32 %v11236_v20, %v11236_v20 }
 0xd4b   :  { %4072 = vrot.lane.b32.xlu1 %v11239_v24, %s8649_s9  ;;  %v4168_v10 = vmul.f32 %v11239_v24, %v11239_v24 }
 0xd4e   :  { %4202 = vrot.lane.b32.xlu0 %v4169_v26, %s8649_s9 }
 0xd4f   :  { %4200 = vrot.lane.b32.xlu1 %v4168_v10, %s8649_s9 }
 0xd77   :  { %v3997_v33 = vpop.permute.xlu0 %3996 }
 0xd78   :  { %v11252_v19 = vadd.f32 %v3997_v33, %v11089_v4  ;;  %v3995_v53 = vpop.permute.xlu1 %3994 }
 0xd79   :  { %v11255_v62 = vadd.f32 %v3995_v53, %v11077_v63 }
 0xd7a   :  { %4078 = vrot.lane.b32.xlu0 %v11252_v19, %s8649_s9  ;;  %v4171_v41 = vmul.f32 %v11252_v19, %v11252_v19 }
 0xd7b   :  { %4076 = vrot.lane.b32.xlu1 %v11255_v62, %s8649_s9  ;;  %v4170_v12 = vmul.f32 %v11255_v62, %v11255_v62 }
 0xd7c   :  { %v4001_v58 = vpop.permute.xlu0 %4000 }
 0xd7d   :  { %v3999_v59 = vpop.permute.xlu1 %3998  ;;  %v11268_v63 = vadd.f32 %v4001_v58, %v11027_v23 }
 0xd7e   :  { %4206 = vrot.lane.b32.xlu0 %v4171_v41, %s8649_s9  ;;  %v11271_v4 = vadd.f32 %v3999_v59, %v11099_v61 }
 0xd7f   :  { %4204 = vrot.lane.b32.xlu1 %v4170_v12, %s8649_s9  ;;  %v4173_v55 = vmul.f32 %v11268_v63, %v11268_v63 }
 0xd80   :  { %v4172_v17 = vmul.f32 %v11271_v4, %v11271_v4 }
 0xd82   :  { %4082 = vrot.lane.b32.xlu0 %v11268_v63, %s8649_s9 }
 0xd83   :  { %4080 = vrot.lane.b32.xlu1 %v11271_v4, %s8649_s9 }
 0xd84   :  { %v4005_v9 = vpop.permute.xlu0 %4004 }
 0xd85   :  { %v4003_v28 = vpop.permute.xlu1 %4002  ;;  %v11284_v23 = vadd.f32 %v4005_v9, %v11042_v48 }
 0xd86   :  { %4210 = vrot.lane.b32.xlu0 %v4173_v55, %s8649_s9  ;;  %v11287_v61 = vadd.f32 %v4003_v28, %v11115_v38 }
 0xd87   :  { %4208 = vrot.lane.b32.xlu1 %v4172_v17, %s8649_s9  ;;  %v4175_v52 = vmul.f32 %v11284_v23, %v11284_v23 }
 0xd88   :  { %v4174_v37 = vmul.f32 %v11287_v61, %v11287_v61 }
 0xd8a   :  { %4086 = vrot.lane.b32.xlu0 %v11284_v23, %s8649_s9 }
 0xd8b   :  { %4084 = vrot.lane.b32.xlu1 %v11287_v61, %s8649_s9 }
 0xd8c   :  { %v4009_v47 = vpop.permute.xlu0 %4008 }
 0xd8d   :  { %v4007_v5 = vpop.permute.xlu1 %4006  ;;  %v11300_v48 = vadd.f32 %v4009_v47, %v11057_v14 }
 0xd8e   :  { %4214 = vrot.lane.b32.xlu0 %v4175_v52, %s8649_s9  ;;  %v11303_v38 = vadd.f32 %v4007_v5, %v11124_v25 }
 0xd8f   :  { %4212 = vrot.lane.b32.xlu1 %v4174_v37, %s8649_s9  ;;  %v4177_v34 = vmul.f32 %v11300_v48, %v11300_v48 }
 0xd90   :  { %v4176_v35 = vmul.f32 %v11303_v38, %v11303_v38 }
 0xd92   :  { %4090 = vrot.lane.b32.xlu0 %v11300_v48, %s8649_s9 }
 0xd93   :  { %4088 = vrot.lane.b32.xlu1 %v11303_v38, %s8649_s9 }
 0xd94   :  { %v4013_v31 = vpop.permute.xlu0 %4012 }
 0xd95   :  { %v4011_v50 = vpop.permute.xlu1 %4010  ;;  %v11316_v14 = vadd.f32 %v4013_v31, %v11074_v51 }
 0xd96   :  { %4218 = vrot.lane.b32.xlu0 %v4177_v34, %s8649_s9  ;;  %v11319_v25 = vadd.f32 %v4011_v50, %v11131_v1 }
 0xd97   :  { %4216 = vrot.lane.b32.xlu1 %v4176_v35, %s8649_s9  ;;  %v4179_v42 = vmul.f32 %v11316_v14, %v11316_v14 }
 0xd98   :  { %v4178_v30 = vmul.f32 %v11319_v25, %v11319_v25 }
 0xd9a   :  { %4094 = vrot.lane.b32.xlu0 %v11316_v14, %s8649_s9 }
 0xd9b   :  { %4092 = vrot.lane.b32.xlu1 %v11319_v25, %s8649_s9 }
 0xd9c   :  { %v4017_v16 = vpop.permute.xlu0 %4016 }
 0xd9d   :  { %v4015_v40 = vpop.permute.xlu1 %4014  ;;  %v11332_v51 = vadd.f32 %v4017_v16, %v11096_v8 }
 0xd9e   :  { %4222 = vrot.lane.b32.xlu0 %v4179_v42, %s8649_s9  ;;  %v11335_v1 = vadd.f32 %v4015_v40, %v11150_v13 }
 0xd9f   :  { %4220 = vrot.lane.b32.xlu1 %v4178_v30, %s8649_s9  ;;  %v4181_v56 = vmul.f32 %v11332_v51, %v11332_v51 }
 0xda0   :  { %v4180_v3 = vmul.f32 %v11335_v1, %v11335_v1 }
 0xda2   :  { %4098 = vrot.lane.b32.xlu0 %v11332_v51, %s8649_s9 }
 0xda3   :  { %4096 = vrot.lane.b32.xlu1 %v11335_v1, %s8649_s9 }
 0xda4   :  { %v4021_v39 = vpop.permute.xlu0 %4020 }
 0xda5   :  { %v4019_v57 = vpop.permute.xlu1 %4018  ;;  %v11348_v8 = vadd.f32 %v4021_v39, %v11112_v32 }
 0xda6   :  { %4226 = vrot.lane.b32.xlu0 %v4181_v56, %s8649_s9  ;;  %v11351_v13 = vadd.f32 %v4019_v57, %v11169_v22 }
 0xda7   :  { %4224 = vrot.lane.b32.xlu1 %v4180_v3, %s8649_s9  ;;  %v4183_v18 = vmul.f32 %v11348_v8, %v11348_v8 }
 0xda8   :  { %v4182_v32 = vmul.f32 %v11351_v13, %v11351_v13 }
 0xdaa   :  { %4102 = vrot.lane.b32.xlu0 %v11348_v8, %s8649_s9 }
 0xdab   :  { %4100 = vrot.lane.b32.xlu1 %v11351_v13, %s8649_s9 }
 0xdae   :  { %4453 = vrot.lane.b32.xlu0 %v6900_v36, %s8649_s9 }
 0xdaf   :  { %4230 = vrot.lane.b32.xlu1 %v4183_v18, %s8649_s9 }
 0xdb3   :  { %4228 = vrot.lane.b32.xlu1 %v4182_v32, %s8649_s9 }
 0xdbc   :  { %v4075_v22 = vpop.permute.xlu0 %4074 }
 0xdbd   :  { %v4073_v60 = vpop.permute.xlu1 %4072  ;;  %v4123_v15 = vsel %vm246_vm0, %v4075_v22, 0.0 }
 0xdbe   :  { %v4120_v29 = vsel %vm246_vm0, %v4073_v60, 0.0 }
 0xdc0   :  { %v4203_v44 = vpop.permute.xlu0 %4202 }
 0xdc1   :  { %v4251_v0 = vsel %vm246_vm0, %v4203_v44, 0.0  ;;  %v4201_v46 = vpop.permute.xlu1 %4200 }
 0xdc2   :  { %v4248_v27 = vsel %vm246_vm0, %v4201_v46, 0.0 }
 0xdcd   :  { %4121 = vadd.xlane.f32.xlu0 %v4120_v29 }
 0xdd1   :  { %4252 = vadd.xlane.f32.xlu0 %v4251_v0 }
 0xdd5   :  { %4249 = vadd.xlane.f32.xlu0 %v4248_v27 }
 0xdd7   :  { %4124 = vadd.xlane.f32.xlu1 %v4123_v15 }
 0xde8   :  { %4429 = vrot.lane.b32.xlu1 %v6899_v7, %s8649_s9 }
 0xdec   :  { %v4079_v26 = vpop.permute.xlu0 %4078 }
 0xded   :  { %v4077_v10 = vpop.permute.xlu1 %4076  ;;  %v4129_v33 = vsel %vm246_vm0, %v4079_v26, 0.0 }
 0xdee   :  { %4130 = vadd.xlane.f32.xlu0 %v4129_v33  ;;  %v4126_v12 = vsel %vm246_vm0, %v4077_v10, 0.0 }
 0xdf0   :  { %v4207_v53 = vpop.permute.xlu0 %4206 }
 0xdf1   :  { %v4205_v41 = vpop.permute.xlu1 %4204  ;;  %v4257_v55 = vsel %vm246_vm0, %v4207_v53, 0.0 }
 0xdf2   :  { %4127 = vadd.xlane.f32.xlu0 %v4126_v12  ;;  %v4254_v56 = vsel %vm246_vm0, %v4205_v41, 0.0 }
 0xdf4   :  { %v4083_v58 = vpop.permute.xlu0 %4082 }
 0xdf5   :  { %v4081_v59 = vpop.permute.xlu1 %4080  ;;  %v4135_v28 = vsel %vm246_vm0, %v4083_v58, 0.0 }
 0xdf6   :  { %4258 = vadd.xlane.f32.xlu0 %v4257_v55  ;;  %v4132_v36 = vsel %vm246_vm0, %v4081_v59, 0.0 }
 0xdf8   :  { %v4211_v17 = vpop.permute.xlu0 %4210 }
 0xdf9   :  { %v4209_v9 = vpop.permute.xlu1 %4208  ;;  %v4263_v47 = vsel %vm246_vm0, %v4211_v17, 0.0 }
 0xdfa   :  { %4136 = vadd.xlane.f32.xlu0 %v4135_v28  ;;  %v4260_v60 = vsel %vm246_vm0, %v4209_v9, 0.0 }
 0xdfc   :  { %v4087_v52 = vpop.permute.xlu0 %4086 }
 0xdfd   :  { %v4085_v37 = vpop.permute.xlu1 %4084  ;;  %v4141_v35 = vsel %vm246_vm0, %v4087_v52, 0.0 }
 0xdfe   :  { %4264 = vadd.xlane.f32.xlu0 %v4263_v47  ;;  %v4138_v46 = vsel %vm246_vm0, %v4085_v37, 0.0 }
 0xe00   :  { %v4215_v5 = vpop.permute.xlu0 %4214 }
 0xe01   :  { %v4213_v34 = vpop.permute.xlu1 %4212  ;;  %v4269_v42 = vsel %vm246_vm0, %v4215_v5, 0.0 }
 0xe02   :  { %4142 = vadd.xlane.f32.xlu0 %v4141_v35  ;;  %v4266_v26 = vsel %vm246_vm0, %v4213_v34, 0.0  ;;  %v6901_v35 = vld [vmem:[%s12661_s2 + $0x40] sm:$0xff] }
 0xe04   :  { %v4091_v31 = vpop.permute.xlu0 %4090 }
 0xe05   :  { %v4089_v50 = vpop.permute.xlu1 %4088  ;;  %v4147_v40 = vsel %vm246_vm0, %v4091_v31, 0.0  ;;  %v6902_v31 = vld [vmem:[%s12661_s2 + $0x48] sm:$0xff] }
 0xe06   :  { %4270 = vadd.xlane.f32.xlu0 %v4269_v42  ;;  %v4144_v41 = vsel %vm246_vm0, %v4089_v50, 0.0  ;;  %v8141_v42 = vpack.c.bf16 %v6902_v31, %v6901_v35 }
 0xe08   :  { %v4219_v30 = vpop.permute.xlu0 %4218  ;;  %8142 = vmatprep.subr.bf16.mxu0 %v8141_v42 }
 0xe09   :  { %v4217_v16 = vpop.permute.xlu1 %4216  ;;  %v4275_v57 = vsel %vm246_vm0, %v4219_v30, 0.0  ;;  %8144 = vmatpush3.bf16.msra.mxu0 %v8141_v42 }
 0xe0a   :  { %4148 = vadd.xlane.f32.xlu0 %v4147_v40  ;;  %v4272_v59 = vsel %vm246_vm0, %v4217_v16, 0.0  ;;  %v6903_v40 = vld [vmem:[%s12661_s2 + $0x50] sm:$0xff] }
 0xe0c   :  { %v4095_v3 = vpop.permute.xlu0 %4094  ;;  %4255 = vadd.xlane.f32.xlu1 %v4254_v56  ;;  %v6904_v56 = vld [vmem:[%s12661_s2 + $0x58] sm:$0xff] }
 0xe0d   :  { %v4093_v39 = vpop.permute.xlu1 %4092  ;;  %v4153_v22 = vsel %vm246_vm0, %v4095_v3, 0.0  ;;  %v6905_v3 = vld [vmem:[%s12661_s2 + $0x60] sm:$0xff] }
 0xe0e   :  { %4276 = vadd.xlane.f32.xlu0 %v4275_v57  ;;  %v4150_v17 = vsel %vm246_vm0, %v4093_v39, 0.0  ;;  %v8145_v57 = vpack.c.bf16 %v6904_v56, %v6903_v40 }
 0xe10   :  { %v4223_v18 = vpop.permute.xlu0 %4222  ;;  %4133 = vadd.xlane.f32.xlu1 %v4132_v36  ;;  %v6906_v36 = vld [vmem:[%s12661_s2 + $0x68] sm:$0xff]  ;;  %8146 = vmatprep.subr.bf16.mxu0 %v8145_v57 }
 0xe11   :  { %v4221_v32 = vpop.permute.xlu1 %4220  ;;  %v4281_v0 = vsel %vm246_vm0, %v4223_v18, 0.0  ;;  %8148 = vmatpush3.bf16.msra.mxu0 %v8145_v57 }
 0xe12   :  { %4154 = vadd.xlane.f32.xlu0 %v4153_v22  ;;  %v4278_v9 = vsel %vm246_vm0, %v4221_v32, 0.0  ;;  %v8149_v22 = vpack.c.bf16 %v6906_v36, %v6905_v3 }
 0xe14   :  { %v4099_v29 = vpop.permute.xlu0 %4098  ;;  %4261 = vadd.xlane.f32.xlu1 %v4260_v60  ;;  %8150 = vmatprep.subr.bf16.mxu0 %v8149_v22 }
 0xe15   :  { %v4097_v44 = vpop.permute.xlu1 %4096  ;;  %v4159_v7 = vsel %vm246_vm0, %v4099_v29, 0.0  ;;  %8152 = vmatpush3.bf16.msra.mxu0 %v8149_v22 }
 0xe16   :  { %4282 = vadd.xlane.f32.xlu0 %v4281_v0  ;;  %v4156_v28 = vsel %vm246_vm0, %v4097_v44, 0.0 }
 0xe18   :  { %v4227_v27 = vpop.permute.xlu0 %4226  ;;  %4139 = vadd.xlane.f32.xlu1 %v4138_v46 }
 0xe19   :  { %v4225_v15 = vpop.permute.xlu1 %4224  ;;  %v4287_v33 = vsel %vm246_vm0, %v4227_v27, 0.0 }
 0xe1a   :  { %4160 = vadd.xlane.f32.xlu0 %v4159_v7  ;;  %v4284_v52 = vsel %vm246_vm0, %v4225_v15, 0.0 }
 0xe1c   :  { %4267 = vadd.xlane.f32.xlu1 %v4266_v26  ;;  %v4103_v53 = vpop.permute.xlu0 %4102  ;;  %v6907_v26 = vld [vmem:[%s12661_s2 + $0x70] sm:$0xff] }
 0xe1d   :  { %v4101_v10 = vpop.permute.xlu1 %4100  ;;  %v4165_v12 = vsel %vm246_vm0, %v4103_v53, 0.0 }
 0xe1e   :  { %4288 = vadd.xlane.f32.xlu0 %v4287_v33  ;;  %v4162_v37 = vsel %vm246_vm0, %v4101_v10, 0.0  ;;  %v6908_v10 = vld [vmem:[%s12661_s2 + $0x78] sm:$0xff] }
 0xe1f   :  { %v8153_v33 = vpack.c.bf16 %v6908_v10, %v6907_v26 }
 0xe20   :  { %4145 = vadd.xlane.f32.xlu1 %v4144_v41  ;;  %v11403_v34 = vpop.permute.xlu0 %4453 }
 0xe21   :  { %v4231_v58 = vpop.permute.xlu1 %4230  ;;  %8154 = vmatprep.subr.bf16.mxu0 %v8153_v33 }
 0xe22   :  { %4166 = vadd.xlane.f32.xlu0 %v4165_v12  ;;  %v4293_v55 = vsel %vm246_vm0, %v4231_v58, 0.0  ;;  %8156 = vmatpush3.bf16.msra.mxu0 %v8153_v33 }
 0xe24   :  { %4273 = vadd.xlane.f32.xlu1 %v4272_v59 }
 0xe25   :  { %v4229_v47 = vpop.permute.xlu1 %4228 }
 0xe26   :  { %4294 = vadd.xlane.f32.xlu0 %v4293_v55  ;;  %v4290_v5 = vsel %vm246_vm0, %v4229_v47, 0.0 }
 0xe28   :  { %4151 = vadd.xlane.f32.xlu1 %v4150_v17 }
 0xe2c   :  { %4279 = vadd.xlane.f32.xlu1 %v4278_v9 }
 0xe30   :  { %4157 = vadd.xlane.f32.xlu1 %v4156_v28 }
 0xe34   :  { %4285 = vadd.xlane.f32.xlu1 %v4284_v52 }
 0xe38   :  { %4163 = vadd.xlane.f32.xlu1 %v4162_v37 }
 0xe3c   :  { %4291 = vadd.xlane.f32.xlu1 %v4290_v5 }
 0xe5a   :  { %v4122_v50 = vpop.xlane.xlu0 %4121 }
 0xe5b   :  { %v4296_v16 = vmul.f32 0.015625, %v4122_v50 }
 0xe5d   :  { %v4328_v18 = vmul.f32 %v4296_v16, %v4296_v16  ;;  %v4360_v53 = vsub.f32 %v11239_v24, %v4296_v16 }
 0xe5e   :  { %v4253_v30 = vpop.xlane.xlu0 %4252 }
 0xe5f   :  { %v4313_v0 = vmul.f32 0.015625, %v4253_v30 }
 0xe62   :  { %v4250_v39 = vpop.xlane.xlu0 %4249 }
 0xe63   :  { %v4312_v32 = vmul.f32 0.015625, %v4250_v39 }
 0xe64   :  { %v4125_v60 = vpop.xlane.xlu1 %4124 }
 0xe65   :  { %v4344_v29 = vsub.f32 %v4312_v32, %v4328_v18  ;;  %v4297_v44 = vmul.f32 0.015625, %v4125_v60 }
 0xe67   :  { %v4376_v46 = vadd.f32 1e-05, %v4344_v29  ;;  %v4329_v27 = vmul.f32 %v4297_v44, %v4297_v44  ;;  %v4361_v59 = vsub.f32 %v11236_v20, %v4297_v44 }
 0xe68   :  { %v11430_v58 = vpop.permute.xlu1 %4429 }
 0xe69   :  { %8493 = vrsqrt.f32 %v4376_v46  ;;  %v4345_v15 = vsub.f32 %v4313_v0, %v4329_v27 }
 0xe6b   :  { %v4377_v7 = vadd.f32 1e-05, %v4345_v15 }
 0xe6d   :  { %8495 = vrsqrt.f32 %v4377_v7 }
 0xe73   :  { %v8494_v41 = vpop.eup %8493 }
 0xe74   :  { %v4408_v12 = vmul.f32 %v8494_v41, %v4360_v53 }
 0xe76   :  { %v4432_v55 = vmul.f32 %v11430_v58, %v4408_v12 }
 0xe77   :  { %v8496_v17 = vpop.eup %8495 }
 0xe78   :  { %v4409_v9 = vmul.f32 %v8496_v17, %v4361_v59  ;;  %v11435_v28 = vadd.f32 %v11403_v34, %v4432_v55 }
 0xe7a   :  { %4502 = vrot.lane.b32.xlu1 %v11435_v28, %s8649_s9  ;;  %v4433_v52 = vmul.f32 %v11430_v58, %v4409_v9 }
 0xe7b   :  { %v4131_v37 = vpop.xlane.xlu0 %4130 }
 0xe7c   :  { %v11441_v24 = vadd.f32 %v11403_v34, %v4433_v52  ;;  %v11445_v40 = vmul.f32 0.015625, %v4131_v37 }
 0xe7e   :  { %4504 = vrot.lane.b32.xlu0 %v11441_v24, %s8649_s9  ;;  %v4331_v36 = vmul.f32 %v11445_v40, %v11445_v40 }
 0xe7f   :  { %v4128_v20 = vpop.xlane.xlu0 %4127 }
 0xe80   :  { %v11449_v22 = vmul.f32 0.015625, %v4128_v20 }
 0xe82   :  { %v4330_v15 = vmul.f32 %v11449_v22, %v11449_v22 }
 0xe83   :  { %v4259_v47 = vpop.xlane.xlu0 %4258 }
 0xe84   :  { %v4315_v39 = vmul.f32 0.015625, %v4259_v47 }
 0xe86   :  { %v4347_v60 = vsub.f32 %v4315_v39, %v4331_v36 }
 0xe87   :  { %v4137_v5 = vpop.xlane.xlu0 %4136 }
 0xe88   :  { %v4301_v35 = vmul.f32 0.015625, %v4137_v5  ;;  %v4379_v7 = vadd.f32 1e-05, %v4347_v60 }
 0xe8a   :  { %v4333_v50 = vmul.f32 %v4301_v35, %v4301_v35  ;;  %v4365_v10 = vsub.f32 %v11268_v63, %v4301_v35 }
 0xe8b   :  { %v4265_v31 = vpop.xlane.xlu0 %4264 }
 0xe8c   :  { %v4317_v42 = vmul.f32 0.015625, %v4265_v31 }
 0xe8e   :  { %v4349_v30 = vsub.f32 %v4317_v42, %v4333_v50 }
 0xe8f   :  { %v4143_v16 = vpop.xlane.xlu0 %4142 }
 0xe90   :  { %v4381_v56 = vadd.f32 1e-05, %v4349_v30  ;;  %v4303_v3 = vmul.f32 0.015625, %v4143_v16 }
 0xe92   :  { %8497 = vrsqrt.f32 %v4381_v56  ;;  %v4335_v18 = vmul.f32 %v4303_v3, %v4303_v3  ;;  %v4367_v30 = vsub.f32 %v11284_v23, %v4303_v3 }
 0xe93   :  { %v4271_v57 = vpop.xlane.xlu0 %4270 }
 0xe94   :  { %v4319_v32 = vmul.f32 0.015625, %v4271_v57 }
 0xe96   :  { %v4351_v29 = vsub.f32 %v4319_v32, %v4335_v18 }
 0xe97   :  { %v4149_v44 = vpop.xlane.xlu0 %4148 }
 0xe98   :  { %v4383_v0 = vadd.f32 1e-05, %v4351_v29  ;;  %v11451_v46 = vmul.f32 0.015625, %v4149_v44 }
 0xe99   :  { %v4256_v27 = vpop.xlane.xlu1 %4255 }
 0xe9a   :  { %8499 = vrsqrt.f32 %v4383_v0  ;;  %v4314_v26 = vmul.f32 0.015625, %v4256_v27  ;;  %v4337_v41 = vmul.f32 %v11451_v46, %v11451_v46 }
 0xe9b   :  { %v4277_v33 = vpop.xlane.xlu0 %4276  ;;  %8501 = vrsqrt.f32 %v4379_v7  ;;  %v4362_v7 = vsub.f32 %v11255_v62, %v11449_v22 }
 0xe9c   :  { %v8498_v53 = vpop.eup %8497  ;;  %v4346_v12 = vsub.f32 %v4314_v26, %v4330_v15  ;;  %v4321_v59 = vmul.f32 0.015625, %v4277_v33  ;;  %v4363_v15 = vsub.f32 %v11252_v19, %v11445_v40 }
 0xe9d   :  { %v4134_v55 = vpop.xlane.xlu1 %4133  ;;  %v4413_v17 = vmul.f32 %v8498_v53, %v4365_v10 }
 0xe9e   :  { %v4378_v9 = vadd.f32 1e-05, %v4346_v12  ;;  %v4353_v52 = vsub.f32 %v4321_v59, %v4337_v41  ;;  %v11458_v37 = vmul.f32 0.015625, %v4134_v55  ;;  %v4369_v59 = vsub.f32 %v11300_v48, %v11451_v46 }
 0xe9f   :  { %v4155_v20 = vpop.xlane.xlu0 %4154  ;;  %v4437_v47 = vmul.f32 %v11430_v58, %v4413_v17 }
 0xea0   :  { %8503 = vrsqrt.f32 %v4378_v9  ;;  %v4385_v5 = vadd.f32 1e-05, %v4353_v52  ;;  %v11461_v63 = vmul.f32 0.015625, %v4155_v20  ;;  %v4332_v50 = vmul.f32 %v11458_v37, %v11458_v37 }
 0xea1   :  { %v4262_v35 = vpop.xlane.xlu1 %4261  ;;  %v11464_v31 = vadd.f32 %v11403_v34, %v4437_v47 }
 0xea2   :  { %8505 = vrsqrt.f32 %v4385_v5  ;;  %v4316_v42 = vmul.f32 0.015625, %v4262_v35  ;;  %v4339_v39 = vmul.f32 %v11461_v63, %v11461_v63 }
 0xea3   :  { %v4283_v16 = vpop.xlane.xlu0 %4282  ;;  %4512 = vrot.lane.b32.xlu0 %v11464_v31, %s8649_s9 }
 0xea4   :  { %v8500_v56 = vpop.eup %8499  ;;  %v4348_v57 = vsub.f32 %v4316_v42, %v4332_v50  ;;  %v4323_v36 = vmul.f32 0.015625, %v4283_v16 }
 0xea5   :  { %v4140_v18 = vpop.xlane.xlu1 %4139  ;;  %v4415_v32 = vmul.f32 %v8500_v56, %v4367_v30  ;;  %v8502_v23 = vpop.eup %8501  ;;  %v4364_v56 = vsub.f32 %v11271_v4, %v11458_v37 }
 0xea6   :  { %v4380_v60 = vadd.f32 1e-05, %v4348_v57  ;;  %v4355_v29 = vsub.f32 %v4323_v36, %v4339_v39  ;;  %v11473_v44 = vmul.f32 0.015625, %v4140_v18  ;;  %v4411_v62 = vmul.f32 %v8502_v23, %v4363_v15 }
 0xea7   :  { %v4161_v0 = vpop.xlane.xlu0 %4160  ;;  %v4439_v27 = vmul.f32 %v11430_v58, %v4415_v32 }
 0xea8   :  { %8507 = vrsqrt.f32 %v4380_v60  ;;  %v4387_v3 = vadd.f32 1e-05, %v4355_v29  ;;  %v11480_v26 = vmul.f32 0.015625, %v4161_v0  ;;  %v4334_v41 = vmul.f32 %v11473_v44, %v11473_v44 }
 0xea9   :  { %v4268_v10 = vpop.xlane.xlu1 %4267  ;;  %v11483_v33 = vadd.f32 %v11403_v34, %v4439_v27  ;;  %v4435_v30 = vmul.f32 %v11430_v58, %v4411_v62  ;;  %v4371_v29 = vsub.f32 %v11316_v14, %v11461_v63 }
 0xeaa   :  { %v8504_v53 = vpop.eup %8503  ;;  %8509 = vrsqrt.f32 %v4387_v3  ;;  %v4318_v12 = vmul.f32 0.015625, %v4268_v10  ;;  %v4341_v22 = vmul.f32 %v11480_v26, %v11480_v26 }
 0xeab   :  { %v4289_v55 = vpop.xlane.xlu0 %4288  ;;  %4516 = vrot.lane.b32.xlu0 %v11483_v33, %s8649_s9  ;;  %v4410_v19 = vmul.f32 %v8504_v53, %v4362_v7  ;;  %v11517_v4 = vadd.f32 %v11403_v34, %v4435_v30 }
 0xeac   :  { %v8506_v40 = vpop.eup %8505  ;;  %v4350_v17 = vsub.f32 %v4318_v12, %v4334_v41  ;;  %v4325_v9 = vmul.f32 0.015625, %v4289_v55 }
 0xead   :  { %v4146_v52 = vpop.xlane.xlu1 %4145  ;;  %v4434_v20 = vmul.f32 %v11430_v58, %v4410_v19  ;;  %v4417_v47 = vmul.f32 %v8506_v40, %v4369_v59  ;;  %v4366_v19 = vsub.f32 %v11287_v61, %v11473_v44 }
 0xeae   :  { %v4382_v5 = vadd.f32 1e-05, %v4350_v17  ;;  %v4357_v35 = vsub.f32 %v4325_v9, %v4341_v22  ;;  %v11494_v50 = vmul.f32 0.015625, %v4146_v52  ;;  %v4373_v52 = vsub.f32 %v11332_v51, %v11480_v26 }
 0xeaf   :  { %v4167_v48 = vpop.xlane.xlu0 %4166  ;;  %v11497_v46 = vadd.f32 %v11403_v34, %v4434_v20  ;;  %v4441_v42 = vmul.f32 %v11430_v58, %v4417_v47 }
 0xeb0   :  { %8511 = vrsqrt.f32 %v4382_v5  ;;  %v4389_v16 = vadd.f32 1e-05, %v4357_v35  ;;  %v11503_v39 = vmul.f32 0.015625, %v4167_v48  ;;  %v4336_v32 = vmul.f32 %v11494_v50, %v11494_v50 }
 0xeb1   :  { %4506 = vrot.lane.b32.xlu1 %v11497_v46, %s8649_s9  ;;  %v4274_v57 = vpop.xlane.xlu1 %4273  ;;  %v11508_v36 = vadd.f32 %v11403_v34, %v4441_v42  ;;  %v4368_v51 = vsub.f32 %v11303_v38, %v11494_v50 }
 0xeb2   :  { %v8508_v18 = vpop.eup %8507  ;;  %8513 = vrsqrt.f32 %v4389_v16  ;;  %v4320_v60 = vmul.f32 0.015625, %v4274_v57  ;;  %v4343_v23 = vmul.f32 %v11503_v39, %v11503_v39 }
 0xeb3   :  { %v4295_v0 = vpop.xlane.xlu0 %4294  ;;  %4520 = vrot.lane.b32.xlu0 %v11508_v36, %s8649_s9  ;;  %v4412_v37 = vmul.f32 %v8508_v18, %v4364_v56 }
 0xeb4   :  { %v8510_v27 = vpop.eup %8509  ;;  %v4352_v3 = vsub.f32 %v4320_v60, %v4336_v32  ;;  %v4327_v15 = vmul.f32 0.015625, %v4295_v0  ;;  %v4375_v60 = vsub.f32 %v11348_v8, %v11503_v39 }
 0xeb5   :  { %4508 = vrot.lane.b32.xlu1 %v11517_v4, %s8649_s9  ;;  %v4152_v7 = vpop.xlane.xlu1 %4151  ;;  %v4436_v14 = vmul.f32 %v11430_v58, %v4412_v37  ;;  %v4419_v63 = vmul.f32 %v8510_v27, %v4371_v29 }
 0xeb6   :  { %v4384_v10 = vadd.f32 1e-05, %v4352_v3  ;;  %v4359_v53 = vsub.f32 %v4327_v15, %v4343_v23  ;;  %v4306_v41 = vmul.f32 0.015625, %v4152_v7 }
 0xeb7   :  { %v11525_v12 = vadd.f32 %v11403_v34, %v4436_v14  ;;  %v4443_v59 = vmul.f32 %v11430_v58, %v4419_v63 }
 0xeb8   :  { %8515 = vrsqrt.f32 %v4384_v10  ;;  %v4391_v55 = vadd.f32 1e-05, %v4359_v53  ;;  %v4338_v17 = vmul.f32 %v4306_v41, %v4306_v41  ;;  %v4370_v8 = vsub.f32 %v11319_v25, %v4306_v41 }
 0xeb9   :  { %4510 = vrot.lane.b32.xlu1 %v11525_v12, %s8649_s9  ;;  %v4280_v62 = vpop.xlane.xlu1 %4279  ;;  %v11533_v40 = vadd.f32 %v11403_v34, %v4443_v59 }
 0xeba   :  { %v8512_v22 = vpop.eup %8511  ;;  %8517 = vrsqrt.f32 %v4391_v55  ;;  %v4322_v9 = vmul.f32 0.015625, %v4280_v62 }
 0xebb   :  { %4524 = vrot.lane.b32.xlu0 %v11533_v40, %s8649_s9  ;;  %v4414_v20 = vmul.f32 %v8512_v22, %v4366_v19 }
 0xebc   :  { %v8514_v47 = vpop.eup %8513  ;;  %v4354_v61 = vsub.f32 %v4322_v9, %v4338_v17 }
 0xebd   :  { %v4158_v44 = vpop.xlane.xlu1 %4157  ;;  %v4438_v5 = vmul.f32 %v11430_v58, %v4414_v20  ;;  %v4421_v35 = vmul.f32 %v8514_v47, %v4373_v52  ;;  %v6927_v52 = vld [vmem:[%s12665_s6 + $0x16] ss:$0 sm:$0xff] }
 0xebe   :  { %v4386_v48 = vadd.f32 1e-05, %v4354_v61  ;;  %v4308_v42 = vmul.f32 0.015625, %v4158_v44 }
 0xebf   :  { %v11541_v30 = vadd.f32 %v11403_v34, %v4438_v5  ;;  %v4445_v16 = vmul.f32 %v11430_v58, %v4421_v35  ;;  %v6926_v35 = vld [vmem:[%s12665_s6 + $0x15] ss:$0 sm:$0xff] }
 0xec0   :  { %8519 = vrsqrt.f32 %v4386_v48  ;;  %v4340_v18 = vmul.f32 %v4308_v42, %v4308_v42  ;;  %v4372_v41 = vsub.f32 %v11335_v1, %v4308_v42 }
 0xec1   :  { %4514 = vrot.lane.b32.xlu1 %v11541_v30, %s8649_s9  ;;  %v4286_v26 = vpop.xlane.xlu1 %4285  ;;  %v11549_v56 = vadd.f32 %v11403_v34, %v4445_v16 }
 0xec2   :  { %v8516_v57 = vpop.eup %8515  ;;  %v4324_v32 = vmul.f32 0.015625, %v4286_v26 }
 0xec3   :  { %4528 = vrot.lane.b32.xlu0 %v11549_v56, %s8649_s9  ;;  %v4416_v29 = vmul.f32 %v8516_v57, %v4368_v51 }
 0xec4   :  { %v8518_v0 = vpop.eup %8517  ;;  %v4356_v37 = vsub.f32 %v4324_v32, %v4340_v18 }
 0xec5   :  { %v4164_v38 = vpop.xlane.xlu1 %4163  ;;  %v4440_v50 = vmul.f32 %v11430_v58, %v4416_v29  ;;  %v4423_v27 = vmul.f32 %v8518_v0, %v4375_v60 }
 0xec6   :  { %v4388_v23 = vadd.f32 1e-05, %v4356_v37  ;;  %v4310_v3 = vmul.f32 0.015625, %v4164_v38 }
 0xec7   :  { %v11557_v15 = vadd.f32 %v11403_v34, %v4440_v50  ;;  %v4447_v7 = vmul.f32 %v11430_v58, %v4423_v27  ;;  %v6909_v50 = vld [vmem:[%s12665_s6 + $0x14] ss:$0 sm:$0xff] }
 0xec8   :  { %8521 = vrsqrt.f32 %v4388_v23  ;;  %v4342_v10 = vmul.f32 %v4310_v3, %v4310_v3  ;;  %v4374_v47 = vsub.f32 %v11351_v13, %v4310_v3 }
 0xec9   :  { %4518 = vrot.lane.b32.xlu1 %v11557_v15, %s8649_s9  ;;  %v4292_v39 = vpop.xlane.xlu1 %4291  ;;  %v11564_v14 = vadd.f32 %v11403_v34, %v4447_v7 }
 0xeca   :  { %v8520_v63 = vpop.eup %8519  ;;  %v4326_v53 = vmul.f32 0.015625, %v4292_v39 }
 0xecb   :  { %4532 = vrot.lane.b32.xlu0 %v11564_v14, %s8649_s9  ;;  %v4418_v59 = vmul.f32 %v8520_v63, %v4370_v8 }
 0xecc   :  { %v4358_v55 = vsub.f32 %v4326_v53, %v4342_v10 }
 0xecd   :  { %v4442_v19 = vmul.f32 %v11430_v58, %v4418_v59 }
 0xece   :  { %v4390_v62 = vadd.f32 1e-05, %v4358_v55 }
 0xecf   :  { %v11570_v25 = vadd.f32 %v11403_v34, %v4442_v19  ;;  %5190 = vrot.lane.b32.xlu0 %v6927_v52, %s8649_s9 }
 0xed0   :  { %8523 = vrsqrt.f32 %v4390_v62 }
 0xed1   :  { %4522 = vrot.lane.b32.xlu1 %v11570_v25, %s8649_s9 }
 0xed2   :  { %v8522_v22 = vpop.eup %8521 }
 0xed3   :  { %v4420_v17 = vmul.f32 %v8522_v22, %v4372_v41 }
 0xed5   :  { %v4444_v9 = vmul.f32 %v11430_v58, %v4420_v17 }
 0xed7   :  { %v11581_v20 = vadd.f32 %v11403_v34, %v4444_v9 }
 0xed9   :  { %4526 = vrot.lane.b32.xlu1 %v11581_v20, %s8649_s9 }
 0xeda   :  { %v8524_v1 = vpop.eup %8523 }
 0xedb   :  { %v4422_v61 = vmul.f32 %v8524_v1, %v4374_v47 }
 0xedd   :  { %v4446_v44 = vmul.f32 %v11430_v58, %v4422_v61 }
 0xedf   :  { %v11588_v5 = vadd.f32 %v11403_v34, %v4446_v44 }
 0xee1   :  { %4530 = vrot.lane.b32.xlu1 %v11588_v5, %s8649_s9 }
 0xee5   :  { %5166 = vrot.lane.b32.xlu1 %v6926_v35, %s8649_s9 }
 0xeec   :  { %v4503_v13 = vpop.permute.xlu1 %4502 }
 0xeed   :  { %7778 = vmatprep.mubr.msk.f32.mxu0 %vm246_vm0, %v4503_v13 }
 0xef0   :  { %v4505_v48 = vpop.permute.xlu0 %4504 }
 0xef1   :  { %7779 = vmatmul.mubr.msk.f32.vlgmr.msra.gmra.mrb[72].mxu0 %vm246_vm0, %v4505_v48 }
 0xf15   :  { %v4513_v16 = vpop.permute.xlu0 %4512 }
 0xf1d   :  { %v4517_v26 = vpop.permute.xlu0 %4516 }
 0xf23   :  { %v4507_v42 = vpop.permute.xlu1 %4506 }
 0xf24   :  { %7781 = vmatprep.mubr.msk.f32.mxu0 %vm246_vm0, %v4507_v42 }
 0xf25   :  { %v4521_v18 = vpop.permute.xlu0 %4520 }
 0xf27   :  { %v4509_v34 = vpop.permute.xlu1 %4508 }
 0xf28   :  { %7782 = vmatmul.mubr.msk.f32.gmra.mrb[74].mxu0 %vm246_vm0, %v4509_v34 }
 0xf2b   :  { %v4511_v58 = vpop.permute.xlu1 %4510 }
 0xf2c   :  { %7784 = vmatprep.mubr.msk.f32.mxu0 %vm246_vm0, %v4511_v58 }
 0xf2d   :  { %7785 = vmatmul.mubr.msk.f32.gmra.mrb[76].mxu0 %vm246_vm0, %v4513_v16  ;;  %v4525_v60 = vpop.permute.xlu0 %4524 }
 0xf33   :  { %v4515_v51 = vpop.permute.xlu1 %4514 }
 0xf34   :  { %7787 = vmatprep.mubr.msk.f32.mxu0 %vm246_vm0, %v4515_v51 }
 0xf35   :  { %7788 = vmatmul.mubr.msk.f32.gmra.mrb[78].mxu0 %vm246_vm0, %v4517_v26  ;;  %v4529_v0 = vpop.permute.xlu0 %4528 }
 0xf3b   :  { %v4519_v57 = vpop.permute.xlu1 %4518 }
 0xf3c   :  { %7790 = vmatprep.mubr.msk.f32.mxu0 %vm246_vm0, %v4519_v57 }
 0xf3d   :  { %7791 = vmatmul.mubr.msk.f32.gmra.mrb[80].mxu0 %vm246_vm0, %v4521_v18  ;;  %v4533_v38 = vpop.permute.xlu0 %4532 }
 0xf41   :  { %v11631_v18 = vpop.permute.xlu0 %5190 }
 0xf43   :  { %v4523_v32 = vpop.permute.xlu1 %4522 }
 0xf44   :  { %7793 = vmatprep.mubr.msk.f32.mxu0 %vm246_vm0, %v4523_v32 }
 0xf45   :  { %7794 = vmatmul.mubr.msk.f32.gmra.mrb[82].mxu0 %vm246_vm0, %v4525_v60 }
 0xf4b   :  { %v4527_v29 = vpop.permute.xlu1 %4526 }
 0xf4c   :  { %7796 = vmatprep.mubr.msk.f32.mxu0 %vm246_vm0, %v4527_v29 }
 0xf4d   :  { %7797 = vmatmul.mubr.msk.f32.gmra.mrb[84].mxu0 %vm246_vm0, %v4529_v0 }
 0xf53   :  { %v4531_v37 = vpop.permute.xlu1 %4530 }
 0xf54   :  { %7799 = vmatprep.mubr.msk.f32.mxu0 %vm246_vm0, %v4531_v37 }
 0xf55   :  { %7800 = vmatmul.mubr.msk.f32.gmra.mrb[86].mxu0 %vm246_vm0, %v4533_v38 }
 0xf57   :  { %v11633_v32 = vpop.permute.xlu1 %5166 }
 0xfc4   :  { %v7780_v27 = vpop.f32.mrb[72].mxu0 }
 0xfc5   :  { %v4638_v23 = vadd.f32 %v7780_v27, %v6909_v50  ;;  %v4632_v3 = vpop.f32.mrb[73].mxu0 }
 0xfc6   :  { %v4633_v7 = vadd.f32 %v6909_v50, %v4632_v3 }
 0xfc7   :  { %4729 = vrot.lane.b32.xlu0 %v4638_v23, %s8649_s9 }
 0xfc8   :  { %4727 = vrot.lane.b32.xlu1 %v4633_v7, %s8649_s9 }
 0xffb   :  { %v7783_v8 = vpop.f32.mrb[74].mxu0 }
 0xffc   :  { %v4648_v39 = vadd.f32 %v7783_v8, %v6909_v50  ;;  %v4642_v63 = vpop.f32.mrb[75].mxu0 }
 0xffd   :  { %v4643_v10 = vadd.f32 %v6909_v50, %v4642_v63 }
 0xffe   :  { %4733 = vrot.lane.b32.xlu0 %v4648_v39, %s8649_s9 }
 0xfff   :  { %4731 = vrot.lane.b32.xlu1 %v4643_v10, %s8649_s9 }
0x1000   :  { %v7786_v53 = vpop.f32.mrb[76].mxu0 }
0x1001   :  { %v4658_v59 = vadd.f32 %v7786_v53, %v6909_v50  ;;  %v4652_v55 = vpop.f32.mrb[77].mxu0 }
0x1002   :  { %v4653_v19 = vadd.f32 %v6909_v50, %v4652_v55 }
0x1003   :  { %4737 = vrot.lane.b32.xlu0 %v4658_v59, %s8649_s9 }
0x1004   :  { %4735 = vrot.lane.b32.xlu1 %v4653_v19, %s8649_s9 }
0x1008   :  { %v7789_v62 = vpop.f32.mrb[78].mxu0 }
0x1009   :  { %v4668_v41 = vadd.f32 %v7789_v62, %v6909_v50  ;;  %v4662_v22 = vpop.f32.mrb[79].mxu0 }
0x100a   :  { %v4663_v17 = vadd.f32 %v6909_v50, %v4662_v22 }
0x100b   :  { %4741 = vrot.lane.b32.xlu0 %v4668_v41, %s8649_s9 }
0x100c   :  { %4739 = vrot.lane.b32.xlu1 %v4663_v17, %s8649_s9 }
0x1010   :  { %v7792_v9 = vpop.f32.mrb[80].mxu0 }
0x1011   :  { %v4678_v52 = vadd.f32 %v7792_v9, %v6909_v50  ;;  %v4672_v47 = vpop.f32.mrb[81].mxu0 }
0x1012   :  { %v4673_v1 = vadd.f32 %v6909_v50, %v4672_v47 }
0x1013   :  { %4745 = vrot.lane.b32.xlu0 %v4678_v52, %s8649_s9 }
0x1014   :  { %4743 = vrot.lane.b32.xlu1 %v4673_v1, %s8649_s9 }
0x1018   :  { %v7795_v61 = vpop.f32.mrb[82].mxu0 }
0x1019   :  { %v4688_v44 = vadd.f32 %v7795_v61, %v6909_v50  ;;  %v4682_v35 = vpop.f32.mrb[83].mxu0 }
0x101a   :  { %v4683_v13 = vadd.f32 %v6909_v50, %v4682_v35 }
0x101b   :  { %4749 = vrot.lane.b32.xlu0 %v4688_v44, %s8649_s9 }
0x101c   :  { %4747 = vrot.lane.b32.xlu1 %v4683_v13, %s8649_s9 }
0x1020   :  { %v7798_v48 = vpop.f32.mrb[84].mxu0 }
0x1021   :  { %v4698_v42 = vadd.f32 %v7798_v48, %v6909_v50  ;;  %v4692_v34 = vpop.f32.mrb[85].mxu0 }
0x1022   :  { %v4693_v58 = vadd.f32 %v6909_v50, %v4692_v34 }
0x1023   :  { %4753 = vrot.lane.b32.xlu0 %v4698_v42, %s8649_s9 }
0x1024   :  { %4751 = vrot.lane.b32.xlu1 %v4693_v58, %s8649_s9 }
0x1028   :  { %v7801_v16 = vpop.f32.mrb[86].mxu0 }
0x1029   :  { %v4708_v51 = vadd.f32 %v7801_v16, %v6909_v50  ;;  %v4702_v26 = vpop.f32.mrb[87].mxu0 }
0x102a   :  { %v4703_v57 = vadd.f32 %v6909_v50, %v4702_v26 }
0x102b   :  { %4757 = vrot.lane.b32.xlu0 %v4708_v51, %s8649_s9 }
0x102c   :  { %4755 = vrot.lane.b32.xlu1 %v4703_v57, %s8649_s9 }
0x1039   :  { %v4730_v60 = vpop.permute.xlu0 %4729 }
0x103a   :  { %v11636_v29 = vadd.f32 %v4730_v60, %v11441_v24  ;;  %v4728_v0 = vpop.permute.xlu1 %4727 }
0x103b   :  { %v11639_v37 = vadd.f32 %v4728_v0, %v11435_v28 }
0x103c   :  { %4811 = vrot.lane.b32.xlu0 %v11636_v29, %s8649_s9  ;;  %v4906_v38 = vmul.f32 %v11636_v29, %v11636_v29 }
0x103d   :  { %4809 = vrot.lane.b32.xlu1 %v11639_v37, %s8649_s9  ;;  %v4905_v50 = vmul.f32 %v11639_v37, %v11639_v37 }
0x1040   :  { %4939 = vrot.lane.b32.xlu0 %v4906_v38, %s8649_s9 }
0x1041   :  { %4937 = vrot.lane.b32.xlu1 %v4905_v50, %s8649_s9 }
0x1070   :  { %v4734_v24 = vpop.permute.xlu0 %4733 }
0x1071   :  { %v11652_v28 = vadd.f32 %v4734_v24, %v11517_v4  ;;  %v4732_v27 = vpop.permute.xlu1 %4731 }
0x1072   :  { %v11655_v23 = vadd.f32 %v4732_v27, %v11497_v46 }
0x1073   :  { %4815 = vrot.lane.b32.xlu0 %v11652_v28, %s8649_s9  ;;  %v4908_v3 = vmul.f32 %v11652_v28, %v11652_v28 }
0x1074   :  { %4813 = vrot.lane.b32.xlu1 %v11655_v23, %s8649_s9  ;;  %v4907_v7 = vmul.f32 %v11655_v23, %v11655_v23 }
0x1075   :  { %v4738_v8 = vpop.permute.xlu0 %4737 }
0x1076   :  { %v4736_v39 = vpop.permute.xlu1 %4735  ;;  %v11668_v46 = vadd.f32 %v4738_v8, %v11464_v31 }
0x1077   :  { %4943 = vrot.lane.b32.xlu0 %v4908_v3, %s8649_s9  ;;  %v11671_v4 = vadd.f32 %v4736_v39, %v11525_v12 }
0x1078   :  { %4941 = vrot.lane.b32.xlu1 %v4907_v7, %s8649_s9  ;;  %v4910_v63 = vmul.f32 %v11668_v46, %v11668_v46 }
0x1079   :  { %v4909_v10 = vmul.f32 %v11671_v4, %v11671_v4 }
0x107b   :  { %4819 = vrot.lane.b32.xlu0 %v11668_v46, %s8649_s9 }
0x107c   :  { %4817 = vrot.lane.b32.xlu1 %v11671_v4, %s8649_s9 }
0x107d   :  { %v4742_v53 = vpop.permute.xlu0 %4741 }
0x107e   :  { %v4740_v59 = vpop.permute.xlu1 %4739  ;;  %v11684_v31 = vadd.f32 %v4742_v53, %v11483_v33 }
0x107f   :  { %4947 = vrot.lane.b32.xlu0 %v4910_v63, %s8649_s9  ;;  %v11687_v12 = vadd.f32 %v4740_v59, %v11541_v30 }
0x1080   :  { %4945 = vrot.lane.b32.xlu1 %v4909_v10, %s8649_s9  ;;  %v4912_v55 = vmul.f32 %v11684_v31, %v11684_v31 }
0x1081   :  { %v4911_v19 = vmul.f32 %v11687_v12, %v11687_v12 }
0x1083   :  { %4823 = vrot.lane.b32.xlu0 %v11684_v31, %s8649_s9 }
0x1084   :  { %4821 = vrot.lane.b32.xlu1 %v11687_v12, %s8649_s9 }
0x1085   :  { %v4746_v62 = vpop.permute.xlu0 %4745 }
0x1086   :  { %v4744_v41 = vpop.permute.xlu1 %4743  ;;  %v11700_v33 = vadd.f32 %v4746_v62, %v11508_v36 }
0x1087   :  { %4951 = vrot.lane.b32.xlu0 %v4912_v55, %s8649_s9  ;;  %v11703_v30 = vadd.f32 %v4744_v41, %v11557_v15 }
0x1088   :  { %4949 = vrot.lane.b32.xlu1 %v4911_v19, %s8649_s9  ;;  %v4914_v22 = vmul.f32 %v11700_v33, %v11700_v33 }
0x1089   :  { %v4913_v17 = vmul.f32 %v11703_v30, %v11703_v30 }
0x108b   :  { %4827 = vrot.lane.b32.xlu0 %v11700_v33, %s8649_s9 }
0x108c   :  { %4825 = vrot.lane.b32.xlu1 %v11703_v30, %s8649_s9 }
0x108d   :  { %v4750_v9 = vpop.permute.xlu0 %4749 }
0x108e   :  { %v4748_v52 = vpop.permute.xlu1 %4747  ;;  %v11716_v36 = vadd.f32 %v4750_v9, %v11533_v40 }
0x108f   :  { %4955 = vrot.lane.b32.xlu0 %v4914_v22, %s8649_s9  ;;  %v11719_v15 = vadd.f32 %v4748_v52, %v11570_v25 }
0x1090   :  { %4953 = vrot.lane.b32.xlu1 %v4913_v17, %s8649_s9  ;;  %v4916_v47 = vmul.f32 %v11716_v36, %v11716_v36 }
0x1091   :  { %v4915_v1 = vmul.f32 %v11719_v15, %v11719_v15 }
0x1093   :  { %4831 = vrot.lane.b32.xlu0 %v11716_v36, %s8649_s9 }
0x1094   :  { %4829 = vrot.lane.b32.xlu1 %v11719_v15, %s8649_s9 }
0x1095   :  { %v4754_v61 = vpop.permute.xlu0 %4753 }
0x1096   :  { %v4752_v44 = vpop.permute.xlu1 %4751  ;;  %v11732_v40 = vadd.f32 %v4754_v61, %v11549_v56 }
0x1097   :  { %4959 = vrot.lane.b32.xlu0 %v4916_v47, %s8649_s9  ;;  %v11735_v25 = vadd.f32 %v4752_v44, %v11581_v20 }
0x1098   :  { %4957 = vrot.lane.b32.xlu1 %v4915_v1, %s8649_s9  ;;  %v4918_v35 = vmul.f32 %v11732_v40, %v11732_v40 }
0x1099   :  { %v4917_v13 = vmul.f32 %v11735_v25, %v11735_v25 }
0x109b   :  { %4835 = vrot.lane.b32.xlu0 %v11732_v40, %s8649_s9 }
0x109c   :  { %4833 = vrot.lane.b32.xlu1 %v11735_v25, %s8649_s9 }
0x109d   :  { %v4758_v48 = vpop.permute.xlu0 %4757 }
0x109e   :  { %v4756_v42 = vpop.permute.xlu1 %4755  ;;  %v11748_v56 = vadd.f32 %v4758_v48, %v11564_v14 }
0x109f   :  { %4963 = vrot.lane.b32.xlu0 %v4918_v35, %s8649_s9  ;;  %v11751_v20 = vadd.f32 %v4756_v42, %v11588_v5 }
0x10a0   :  { %4961 = vrot.lane.b32.xlu1 %v4917_v13, %s8649_s9  ;;  %v4920_v34 = vmul.f32 %v11748_v56, %v11748_v56 }
0x10a1   :  { %v4919_v58 = vmul.f32 %v11751_v20, %v11751_v20 }
0x10a3   :  { %4839 = vrot.lane.b32.xlu0 %v11748_v56, %s8649_s9 }
0x10a4   :  { %4837 = vrot.lane.b32.xlu1 %v11751_v20, %s8649_s9 }
0x10a8   :  { %4967 = vrot.lane.b32.xlu1 %v4920_v34, %s8649_s9 }
0x10ac   :  { %4965 = vrot.lane.b32.xlu1 %v4919_v58, %s8649_s9 }
0x10ae   :  { %v4812_v14 = vpop.permute.xlu0 %4811 }
0x10af   :  { %v4810_v16 = vpop.permute.xlu1 %4809  ;;  %v4860_v0 = vsel %vm246_vm0, %v4812_v14, 0.0 }
0x10b0   :  { %v4857_v5 = vsel %vm246_vm0, %v4810_v16, 0.0 }
0x10b2   :  { %v4940_v51 = vpop.permute.xlu0 %4939 }
0x10b3   :  { %v4988_v26 = vsel %vm246_vm0, %v4940_v51, 0.0  ;;  %v4938_v57 = vpop.permute.xlu1 %4937 }
0x10b4   :  { %v4985_v60 = vsel %vm246_vm0, %v4938_v57, 0.0 }
0x10c2   :  { %4858 = vadd.xlane.f32.xlu0 %v4857_v5 }
0x10c6   :  { %4989 = vadd.xlane.f32.xlu0 %v4988_v26 }
0x10ca   :  { %4986 = vadd.xlane.f32.xlu0 %v4985_v60 }
0x10d0   :  { %4861 = vadd.xlane.f32.xlu1 %v4860_v0 }
0x10e5   :  { %v4816_v38 = vpop.permute.xlu0 %4815 }
0x10e6   :  { %v4814_v50 = vpop.permute.xlu1 %4813  ;;  %v4866_v24 = vsel %vm246_vm0, %v4816_v38, 0.0 }
0x10e7   :  { %4867 = vadd.xlane.f32.xlu0 %v4866_v24  ;;  %v4863_v7 = vsel %vm246_vm0, %v4814_v50, 0.0 }
0x10e9   :  { %v4944_v27 = vpop.permute.xlu0 %4943 }
0x10ea   :  { %v4942_v3 = vpop.permute.xlu1 %4941  ;;  %v4994_v10 = vsel %vm246_vm0, %v4944_v27, 0.0 }
0x10eb   :  { %4864 = vadd.xlane.f32.xlu0 %v4863_v7  ;;  %v4991_v8 = vsel %vm246_vm0, %v4942_v3, 0.0 }
0x10ec   :  { %4992 = vadd.xlane.f32.xlu1 %v4991_v8 }
0x10ed   :  { %v4820_v39 = vpop.permute.xlu0 %4819 }
0x10ee   :  { %v4818_v63 = vpop.permute.xlu1 %4817  ;;  %v4872_v19 = vsel %vm246_vm0, %v4820_v39, 0.0 }
0x10ef   :  { %4995 = vadd.xlane.f32.xlu0 %v4994_v10  ;;  %v4869_v53 = vsel %vm246_vm0, %v4818_v63, 0.0 }
0x10f0   :  { %4870 = vadd.xlane.f32.xlu1 %v4869_v53 }
0x10f1   :  { %v4948_v59 = vpop.permute.xlu0 %4947 }
0x10f2   :  { %v4946_v55 = vpop.permute.xlu1 %4945  ;;  %v5000_v17 = vsel %vm246_vm0, %v4948_v59, 0.0 }
0x10f3   :  { %4873 = vadd.xlane.f32.xlu0 %v4872_v19  ;;  %v4997_v62 = vsel %vm246_vm0, %v4946_v55, 0.0 }
0x10f4   :  { %4998 = vadd.xlane.f32.xlu1 %v4997_v62 }
0x10f5   :  { %v4824_v41 = vpop.permute.xlu0 %4823 }
0x10f6   :  { %v4822_v22 = vpop.permute.xlu1 %4821  ;;  %v4878_v1 = vsel %vm246_vm0, %v4824_v41, 0.0 }
0x10f7   :  { %5001 = vadd.xlane.f32.xlu0 %v5000_v17  ;;  %v4875_v9 = vsel %vm246_vm0, %v4822_v22, 0.0 }
0x10f8   :  { %4876 = vadd.xlane.f32.xlu1 %v4875_v9 }
0x10f9   :  { %v4952_v52 = vpop.permute.xlu0 %4951 }
0x10fa   :  { %v4950_v47 = vpop.permute.xlu1 %4949  ;;  %v5006_v13 = vsel %vm246_vm0, %v4952_v52, 0.0 }
0x10fb   :  { %4879 = vadd.xlane.f32.xlu0 %v4878_v1  ;;  %v5003_v61 = vsel %vm246_vm0, %v4950_v47, 0.0 }
0x10fc   :  { %5004 = vadd.xlane.f32.xlu1 %v5003_v61 }
0x10fd   :  { %v4828_v44 = vpop.permute.xlu0 %4827 }
0x10fe   :  { %v4826_v35 = vpop.permute.xlu1 %4825  ;;  %v4884_v58 = vsel %vm246_vm0, %v4828_v44, 0.0 }
0x10ff   :  { %5007 = vadd.xlane.f32.xlu0 %v5006_v13  ;;  %v4881_v48 = vsel %vm246_vm0, %v4826_v35, 0.0 }
0x1100   :  { %4882 = vadd.xlane.f32.xlu1 %v4881_v48 }
0x1101   :  { %v4956_v42 = vpop.permute.xlu0 %4955 }
0x1102   :  { %v4954_v34 = vpop.permute.xlu1 %4953  ;;  %v5012_v51 = vsel %vm246_vm0, %v4956_v42, 0.0 }
0x1103   :  { %4885 = vadd.xlane.f32.xlu0 %v4884_v58  ;;  %v5009_v14 = vsel %vm246_vm0, %v4954_v34, 0.0 }
0x1104   :  { %5010 = vadd.xlane.f32.xlu1 %v5009_v14 }
0x1105   :  { %v4832_v16 = vpop.permute.xlu0 %4831 }
0x1106   :  { %v4830_v5 = vpop.permute.xlu1 %4829  ;;  %v4890_v0 = vsel %vm246_vm0, %v4832_v16, 0.0 }
0x1107   :  { %5013 = vadd.xlane.f32.xlu0 %v5012_v51  ;;  %v4887_v26 = vsel %vm246_vm0, %v4830_v5, 0.0 }
0x1108   :  { %4888 = vadd.xlane.f32.xlu1 %v4887_v26 }
0x1109   :  { %v4960_v57 = vpop.permute.xlu0 %4959 }
0x110a   :  { %v4958_v60 = vpop.permute.xlu1 %4957  ;;  %v5018_v27 = vsel %vm246_vm0, %v4960_v57, 0.0 }
0x110b   :  { %4891 = vadd.xlane.f32.xlu0 %v4890_v0  ;;  %v5015_v38 = vsel %vm246_vm0, %v4958_v60, 0.0 }
0x110c   :  { %5016 = vadd.xlane.f32.xlu1 %v5015_v38 }
0x110d   :  { %v4836_v50 = vpop.permute.xlu0 %4835 }
0x110e   :  { %v4834_v24 = vpop.permute.xlu1 %4833  ;;  %v4896_v39 = vsel %vm246_vm0, %v4836_v50, 0.0 }
0x110f   :  { %5019 = vadd.xlane.f32.xlu0 %v5018_v27  ;;  %v4893_v3 = vsel %vm246_vm0, %v4834_v24, 0.0 }
0x1110   :  { %4894 = vadd.xlane.f32.xlu1 %v4893_v3 }
0x1111   :  { %v4964_v7 = vpop.permute.xlu0 %4963 }
0x1112   :  { %v4962_v8 = vpop.permute.xlu1 %4961  ;;  %v5024_v53 = vsel %vm246_vm0, %v4964_v7, 0.0 }
0x1113   :  { %4897 = vadd.xlane.f32.xlu0 %v4896_v39  ;;  %v5021_v63 = vsel %vm246_vm0, %v4962_v8, 0.0 }
0x1114   :  { %5022 = vadd.xlane.f32.xlu1 %v5021_v63 }
0x1115   :  { %v4840_v59 = vpop.permute.xlu0 %4839 }
0x1116   :  { %v4838_v10 = vpop.permute.xlu1 %4837  ;;  %v4902_v62 = vsel %vm246_vm0, %v4840_v59, 0.0 }
0x1117   :  { %5025 = vadd.xlane.f32.xlu0 %v5024_v53  ;;  %v4899_v55 = vsel %vm246_vm0, %v4838_v10, 0.0 }
0x1118   :  { %4900 = vadd.xlane.f32.xlu1 %v4899_v55 }
0x111a   :  { %v4968_v19 = vpop.permute.xlu1 %4967 }
0x111b   :  { %4903 = vadd.xlane.f32.xlu0 %v4902_v62  ;;  %v5030_v22 = vsel %vm246_vm0, %v4968_v19, 0.0 }
0x111e   :  { %v4966_v41 = vpop.permute.xlu1 %4965 }
0x111f   :  { %5031 = vadd.xlane.f32.xlu0 %v5030_v22  ;;  %v5027_v17 = vsel %vm246_vm0, %v4966_v41, 0.0 }
0x1120   :  { %5028 = vadd.xlane.f32.xlu1 %v5027_v17 }
0x114f   :  { %v4859_v9 = vpop.xlane.xlu0 %4858 }
0x1150   :  { %v5033_v47 = vmul.f32 0.015625, %v4859_v9 }
0x1152   :  { %v5065_v61 = vmul.f32 %v5033_v47, %v5033_v47  ;;  %v5097_v5 = vsub.f32 %v11639_v37, %v5033_v47 }
0x1153   :  { %v4990_v52 = vpop.xlane.xlu0 %4989 }
0x1154   :  { %v5050_v34 = vmul.f32 0.015625, %v4990_v52 }
0x1157   :  { %v4987_v1 = vpop.xlane.xlu0 %4986 }
0x1158   :  { %v5049_v44 = vmul.f32 0.015625, %v4987_v1 }
0x115a   :  { %v5081_v35 = vsub.f32 %v5049_v44, %v5065_v61 }
0x115c   :  { %v5113_v13 = vadd.f32 1e-05, %v5081_v35 }
0x115d   :  { %v4862_v48 = vpop.xlane.xlu1 %4861 }
0x115e   :  { %8525 = vrsqrt.f32 %v5113_v13  ;;  %v5034_v42 = vmul.f32 0.015625, %v4862_v48 }
0x1160   :  { %v5066_v58 = vmul.f32 %v5034_v42, %v5034_v42  ;;  %v5098_v0 = vsub.f32 %v11636_v29, %v5034_v42 }
0x1162   :  { %v5082_v14 = vsub.f32 %v5050_v34, %v5066_v58 }
0x1164   :  { %v5114_v16 = vadd.f32 1e-05, %v5082_v14 }
0x1166   :  { %8527 = vrsqrt.f32 %v5114_v16 }
0x1168   :  { %v8526_v51 = vpop.eup %8525 }
0x1169   :  { %v5145_v26 = vmul.f32 %v8526_v51, %v5097_v5 }
0x116b   :  { %v5169_v57 = vmul.f32 %v11633_v32, %v5145_v26 }
0x116d   :  { %v5193_v60 = vadd.f32 %v11631_v18, %v5169_v57 }
0x116f   :  { %v11800_v38 = vadd.f32 %v5193_v60, %v10582_v49 }
0x1170   :  { %v8528_v50 = vpop.eup %8527 }
0x1171   :  { %v5146_v24 = vmul.f32 %v8528_v50, %v5098_v0  ;;  %5243 = vrot.lane.b32.xlu1 %v11800_v38, %s8649_s9  ;;  %v5339_v41 = vmul.f32 %v11800_v38, %v11800_v38 }
0x1173   :  { %v5170_v27 = vmul.f32 %v11633_v32, %v5146_v24 }
0x1174   :  { %v4868_v3 = vpop.xlane.xlu0 %4867 }
0x1175   :  { %v5194_v37 = vadd.f32 %v11631_v18, %v5170_v27  ;;  %v5036_v39 = vmul.f32 0.015625, %v4868_v3 }
0x1177   :  { %v11807_v7 = vadd.f32 %v5194_v37, %v10597_v11  ;;  %v5068_v55 = vmul.f32 %v5036_v39, %v5036_v39  ;;  %v5100_v3 = vsub.f32 %v11652_v28, %v5036_v39 }
0x1178   :  { %v4865_v8 = vpop.xlane.xlu0 %4864 }
0x1179   :  { %v5035_v63 = vmul.f32 0.015625, %v4865_v8  ;;  %5245 = vrot.lane.b32.xlu0 %v11807_v7, %s8649_s9  ;;  %v4993_v49 = vpop.xlane.xlu1 %4992  ;;  %v5340_v29 = vmul.f32 %v11807_v7, %v11807_v7 }
0x117a   :  { %v5051_v10 = vmul.f32 0.015625, %v4993_v49 }
0x117b   :  { %v5067_v53 = vmul.f32 %v5035_v63, %v5035_v63  ;;  %5373 = vrot.lane.b32.xlu1 %v5340_v29, %s8649_s9  ;;  %v5099_v0 = vsub.f32 %v11655_v23, %v5035_v63 }
0x117c   :  { %v4996_v59 = vpop.xlane.xlu0 %4995 }
0x117d   :  { %v5083_v19 = vsub.f32 %v5051_v10, %v5067_v53  ;;  %v5052_v62 = vmul.f32 0.015625, %v4996_v59  ;;  %v4871_v11 = vpop.xlane.xlu1 %4870 }
0x117e   :  { %v5037_v22 = vmul.f32 0.015625, %v4871_v11 }
0x117f   :  { %v5115_v17 = vadd.f32 1e-05, %v5083_v19  ;;  %v5084_v9 = vsub.f32 %v5052_v62, %v5068_v55  ;;  %5371 = vrot.lane.b32.xlu1 %v5339_v41, %s8649_s9 }
0x1180   :  { %v4874_v52 = vpop.xlane.xlu0 %4873  ;;  %v5069_v44 = vmul.f32 %v5037_v22, %v5037_v22 }
0x1181   :  { %8529 = vrsqrt.f32 %v5115_v17  ;;  %v5116_v47 = vadd.f32 1e-05, %v5084_v9  ;;  %v11817_v1 = vmul.f32 0.015625, %v4874_v52  ;;  %v4999_v61 = vpop.xlane.xlu1 %4998 }
0x1182   :  { %v5053_v35 = vmul.f32 0.015625, %v4999_v61 }
0x1183   :  { %8531 = vrsqrt.f32 %v5116_v47  ;;  %v5070_v42 = vmul.f32 %v11817_v1, %v11817_v1  ;;  %v5101_v47 = vsub.f32 %v11671_v4, %v5037_v22 }
0x1184   :  { %v5085_v13 = vsub.f32 %v5053_v35, %v5069_v44  ;;  %v5002_v48 = vpop.xlane.xlu0 %5001 }
0x1185   :  { %v5054_v34 = vmul.f32 0.015625, %v5002_v48  ;;  %v4877_v58 = vpop.xlane.xlu1 %4876  ;;  %v5102_v48 = vsub.f32 %v11668_v46, %v11817_v1 }
0x1186   :  { %v5117_v14 = vadd.f32 1e-05, %v5085_v13  ;;  %v11821_v16 = vmul.f32 0.015625, %v4877_v58 }
0x1187   :  { %v5086_v5 = vsub.f32 %v5054_v34, %v5070_v42 }
0x1188   :  { %8533 = vrsqrt.f32 %v5117_v14  ;;  %v4880_v51 = vpop.xlane.xlu0 %4879  ;;  %v5071_v50 = vmul.f32 %v11821_v16, %v11821_v16 }
0x1189   :  { %v5118_v26 = vadd.f32 1e-05, %v5086_v5  ;;  %v11823_v57 = vmul.f32 0.015625, %v4880_v51  ;;  %v5005_v60 = vpop.xlane.xlu1 %5004 }
0x118a   :  { %v5055_v24 = vmul.f32 0.015625, %v5005_v60 }
0x118b   :  { %v8530_v27 = vpop.eup %8529  ;;  %8535 = vrsqrt.f32 %v5118_v26  ;;  %v5072_v10 = vmul.f32 %v11823_v57, %v11823_v57 }
0x118c   :  { %v5087_v37 = vsub.f32 %v5055_v24, %v5071_v50  ;;  %v5008_v8 = vpop.xlane.xlu0 %5007  ;;  %v5147_v49 = vmul.f32 %v8530_v27, %v5099_v0 }
0x118d   :  { %v8532_v29 = vpop.eup %8531  ;;  %v5056_v53 = vmul.f32 0.015625, %v5008_v8  ;;  %v4883_v59 = vpop.xlane.xlu1 %4882 }
0x118e   :  { %v5119_v55 = vadd.f32 1e-05, %v5087_v37  ;;  %v11831_v19 = vmul.f32 0.015625, %v4883_v59  ;;  %v5171_v23 = vmul.f32 %v11633_v32, %v5147_v49  ;;  %v5148_v63 = vmul.f32 %v8532_v29, %v5100_v3 }
0x118f   :  { %v5088_v62 = vsub.f32 %v5056_v53, %v5072_v10  ;;  %v5103_v29 = vsub.f32 %v11687_v12, %v11821_v16 }
0x1190   :  { %8537 = vrsqrt.f32 %v5119_v55  ;;  %v4886_v11 = vpop.xlane.xlu0 %4885  ;;  %v5195_v28 = vadd.f32 %v11631_v18, %v5171_v23  ;;  %v5172_v9 = vmul.f32 %v11633_v32, %v5148_v63  ;;  %v5073_v61 = vmul.f32 %v11831_v19, %v11831_v19 }
0x1191   :  { %v5120_v39 = vadd.f32 1e-05, %v5088_v62  ;;  %v11835_v41 = vmul.f32 0.015625, %v4886_v11  ;;  %v5011_v17 = vpop.xlane.xlu1 %5010  ;;  %v5104_v23 = vsub.f32 %v11684_v31, %v11823_v57 }
0x1192   :  { %v8534_v52 = vpop.eup %8533  ;;  %v5057_v44 = vmul.f32 0.015625, %v5011_v17  ;;  %v11842_v35 = vadd.f32 %v5195_v28, %v10586_v2  ;;  %v5196_v13 = vadd.f32 %v11631_v18, %v5172_v9 }
0x1193   :  { %8539 = vrsqrt.f32 %v5120_v39  ;;  %v5149_v58 = vmul.f32 %v8534_v52, %v5101_v47  ;;  %v5074_v22 = vmul.f32 %v11835_v41, %v11835_v41 }
0x1194   :  { %v5089_v42 = vsub.f32 %v5057_v44, %v5073_v61  ;;  %v5014_v34 = vpop.xlane.xlu0 %5013  ;;  %5247 = vrot.lane.b32.xlu1 %v11842_v35, %s8649_s9  ;;  %v11852_v2 = vadd.f32 %v5196_v13, %v10606_v6  ;;  %v5341_v51 = vmul.f32 %v11842_v35, %v11842_v35 }
0x1195   :  { %v8536_v4 = vpop.eup %8535  ;;  %v5058_v14 = vmul.f32 0.015625, %v5014_v34  ;;  %v4889_v5 = vpop.xlane.xlu1 %4888  ;;  %v5173_v1 = vmul.f32 %v11633_v32, %v5149_v58 }
0x1196   :  { %v5121_v26 = vadd.f32 1e-05, %v5089_v42  ;;  %v11856_v46 = vmul.f32 0.015625, %v4889_v5  ;;  %v5150_v60 = vmul.f32 %v8536_v4, %v5102_v48  ;;  %5249 = vrot.lane.b32.xlu0 %v11852_v2, %s8649_s9  ;;  %v5342_v37 = vmul.f32 %v11852_v2, %v11852_v2 }
0x1197   :  { %v5090_v0 = vsub.f32 %v5058_v14, %v5074_v22  ;;  %v5197_v6 = vadd.f32 %v11631_v18, %v5173_v1  ;;  %v5105_v4 = vsub.f32 %v11703_v30, %v11831_v19 }
0x1198   :  { %8541 = vrsqrt.f32 %v5121_v26  ;;  %v4892_v50 = vpop.xlane.xlu0 %4891  ;;  %5375 = vrot.lane.b32.xlu1 %v5341_v51, %s8649_s9  ;;  %v5174_v8 = vmul.f32 %v11633_v32, %v5150_v60  ;;  %v5075_v10 = vmul.f32 %v11856_v46, %v11856_v46  ;;  %v5106_v26 = vsub.f32 %v11700_v33, %v11835_v41 }
0x1199   :  { %v5122_v24 = vadd.f32 1e-05, %v5090_v0  ;;  %v11863_v27 = vmul.f32 0.015625, %v4892_v50  ;;  %v5017_v3 = vpop.xlane.xlu1 %5016  ;;  %v11873_v59 = vadd.f32 %v5197_v6, %v10590_v45 }
0x119a   :  { %v8538_v49 = vpop.eup %8537  ;;  %v5059_v53 = vmul.f32 0.015625, %v5017_v3  ;;  %5377 = vrot.lane.b32.xlu0 %v5342_v37, %s8649_s9  ;;  %v5198_v55 = vadd.f32 %v11631_v18, %v5174_v8 }
0x119b   :  { %8543 = vrsqrt.f32 %v5122_v24  ;;  %v5151_v12 = vmul.f32 %v8538_v49, %v5103_v29  ;;  %v5076_v11 = vmul.f32 %v11863_v27, %v11863_v27  ;;  %v5343_v17 = vmul.f32 %v11873_v59, %v11873_v59 }
0x119c   :  { %v5091_v63 = vsub.f32 %v5059_v53, %v5075_v10  ;;  %v5020_v62 = vpop.xlane.xlu0 %5019  ;;  %5251 = vrot.lane.b32.xlu1 %v11873_v59, %s8649_s9  ;;  %v11884_v39 = vadd.f32 %v5198_v55, %v10615_v21 }
0x119d   :  { %v8540_v16 = vpop.eup %8539  ;;  %v5060_v45 = vmul.f32 0.015625, %v5020_v62  ;;  %v4895_v28 = vpop.xlane.xlu1 %4894  ;;  %v5175_v57 = vmul.f32 %v11633_v32, %v5151_v12  ;;  %v12684_v62 = vld [vmem:[#allocation6_spill] sm:$0xff] }
0x119e   :  { %v5123_v9 = vadd.f32 1e-05, %v5091_v63  ;;  %v11888_v31 = vmul.f32 0.015625, %v4895_v28  ;;  %v5152_v52 = vmul.f32 %v8540_v16, %v5104_v23  ;;  %5253 = vrot.lane.b32.xlu0 %v11884_v39, %s8649_s9  ;;  %v5344_v42 = vmul.f32 %v11884_v39, %v11884_v39 }
0x119f   :  { %v5092_v47 = vsub.f32 %v5060_v45, %v5076_v11  ;;  %v5199_v21 = vadd.f32 %v11631_v18, %v5175_v57  ;;  %v5107_v63 = vsub.f32 %v11719_v15, %v11856_v46  ;;  %v5108_v11 = vsub.f32 %v11716_v36, %v11863_v27 }
0x11a0   :  { %8545 = vrsqrt.f32 %v5123_v9  ;;  %v4898_v61 = vpop.xlane.xlu0 %4897  ;;  %5379 = vrot.lane.b32.xlu1 %v5343_v17, %s8649_s9  ;;  %v5176_v34 = vmul.f32 %v11633_v32, %v5152_v52  ;;  %v5077_v22 = vmul.f32 %v11888_v31, %v11888_v31  ;;  %v12685_v52 = vld [vmem:[#allocation5_spill] sm:$0xff] }
0x11a1   :  { %v5124_v44 = vadd.f32 1e-05, %v5092_v47  ;;  %v11895_v13 = vmul.f32 0.015625, %v4898_v61  ;;  %v5023_v48 = vpop.xlane.xlu1 %5022  ;;  %v11905_v5 = vadd.f32 %v5199_v21, %v10594_v54 }
0x11a2   :  { %v8542_v58 = vpop.eup %8541  ;;  %v5061_v14 = vmul.f32 0.015625, %v5023_v48  ;;  %5381 = vrot.lane.b32.xlu0 %v5344_v42, %s8649_s9  ;;  %v5200_v51 = vadd.f32 %v11631_v18, %v5176_v34 }
0x11a3   :  { %8547 = vrsqrt.f32 %v5124_v44  ;;  %v5153_v30 = vmul.f32 %v8542_v58, %v5105_v4  ;;  %v5078_v0 = vmul.f32 %v11895_v13, %v11895_v13  ;;  %v5345_v3 = vmul.f32 %v11905_v5, %v11905_v5 }
0x11a4   :  { %v5093_v1 = vsub.f32 %v5061_v14, %v5077_v22  ;;  %v5026_v60 = vpop.xlane.xlu0 %5025  ;;  %5255 = vrot.lane.b32.xlu1 %v11905_v5, %s8649_s9  ;;  %v11916_v6 = vadd.f32 %v5200_v51, %v10624_v43  ;;  %v5109_v58 = vsub.f32 %v11735_v25, %v11888_v31  ;;  %v12687_v25 = vld [vmem:[#allocation9_spill] sm:$0xff] }
0x11a5   :  { %v8544_v19 = vpop.eup %8543  ;;  %v5062_v54 = vmul.f32 0.015625, %v5026_v60  ;;  %v4901_v50 = vpop.xlane.xlu1 %4900  ;;  %v5177_v33 = vmul.f32 %v11633_v32, %v5153_v30 }
0x11a6   :  { %v5125_v24 = vadd.f32 1e-05, %v5093_v1  ;;  %v5154_v41 = vmul.f32 %v8544_v19, %v5106_v26  ;;  %5257 = vrot.lane.b32.xlu0 %v11916_v6, %s8649_s9  ;;  %v11923_v8 = vmul.f32 0.015625, %v4901_v50  ;;  %v5346_v53 = vmul.f32 %v11916_v6, %v11916_v6  ;;  %v12686_v26 = vld [vmem:[#allocation7_spill] sm:$0xff] }
0x11a7   :  { %v5094_v37 = vsub.f32 %v5062_v54, %v5078_v0  ;;  %v5201_v43 = vadd.f32 %v11631_v18, %v5177_v33  ;;  %v5110_v19 = vsub.f32 %v11732_v40, %v11895_v13  ;;  %v12688_v33 = vld [vmem:[#allocation8_spill] sm:$0xff] }
0x11a8   :  { %8549 = vrsqrt.f32 %v5125_v24  ;;  %v4904_v49 = vpop.xlane.xlu0 %4903  ;;  %5383 = vrot.lane.b32.xlu1 %v5345_v3, %s8649_s9  ;;  %v5178_v55 = vmul.f32 %v11633_v32, %v5154_v41  ;;  %v5079_v15 = vmul.f32 %v11923_v8, %v11923_v8 }
0x11a9   :  { %v5126_v29 = vadd.f32 1e-05, %v5094_v37  ;;  %v11927_v10 = vmul.f32 0.015625, %v4904_v49  ;;  %v11935_v12 = vadd.f32 %v5201_v43, %v12684_v62  ;;  %v12689_v43 = vld [vmem:[#allocation11_spill] sm:$0xff] }
0x11aa   :  { %v8546_v23 = vpop.eup %8545  ;;  %5385 = vrot.lane.b32.xlu0 %v5346_v53, %s8649_s9  ;;  %v5202_v16 = vadd.f32 %v11631_v18, %v5178_v55  ;;  %v5111_v55 = vsub.f32 %v11751_v20, %v11923_v8 }
0x11ab   :  { %8551 = vrsqrt.f32 %v5126_v29  ;;  %v5155_v28 = vmul.f32 %v8546_v23, %v5107_v63  ;;  %v5080_v46 = vmul.f32 %v11927_v10, %v11927_v10  ;;  %v5347_v36 = vmul.f32 %v11935_v12, %v11935_v12 }
0x11ac   :  { %v5032_v45 = vpop.xlane.xlu0 %5031  ;;  %5259 = vrot.lane.b32.xlu1 %v11935_v12, %s8649_s9  ;;  %v11948_v47 = vadd.f32 %v5202_v16, %v12685_v52  ;;  %v5112_v49 = vsub.f32 %v11748_v56, %v11927_v10 }
0x11ad   :  { %v8548_v17 = vpop.eup %8547  ;;  %v5064_v9 = vmul.f32 0.015625, %v5032_v45  ;;  %v5029_v57 = vpop.xlane.xlu1 %5028  ;;  %v5179_v27 = vmul.f32 %v11633_v32, %v5155_v28  ;;  %v12690_v45 = vld [vmem:[#allocation12_spill] sm:$0xff] }
0x11ae   :  { %v5063_v61 = vmul.f32 0.015625, %v5029_v57  ;;  %v5156_v21 = vmul.f32 %v8548_v17, %v5108_v11  ;;  %5261 = vrot.lane.b32.xlu0 %v11948_v47, %s8649_s9  ;;  %v5348_v22 = vmul.f32 %v11948_v47, %v11948_v47  ;;  %v12691_v17 = vld [vmem:[#allocation10_spill] sm:$0xff] }
0x11af   :  { %v5096_v44 = vsub.f32 %v5064_v9, %v5080_v46  ;;  %v5203_v42 = vadd.f32 %v11631_v18, %v5179_v27 }
0x11b0   :  { %v5095_v48 = vsub.f32 %v5063_v61, %v5079_v15  ;;  %5387 = vrot.lane.b32.xlu1 %v5347_v36, %s8649_s9  ;;  %v5180_v34 = vmul.f32 %v11633_v32, %v5156_v21 }
0x11b1   :  { %v5128_v4 = vadd.f32 1e-05, %v5096_v44  ;;  %v11963_v1 = vadd.f32 %v5203_v42, %v12686_v26 }
0x11b2   :  { %v8550_v14 = vpop.eup %8549  ;;  %v5127_v51 = vadd.f32 1e-05, %v5095_v48  ;;  %v5204_v60 = vadd.f32 %v11631_v18, %v5180_v34  ;;  %5389 = vrot.lane.b32.xlu0 %v5348_v22, %s8649_s9  ;;  %v6928_v48 = vld [vmem:[%s12665_s6 + $0x17] ss:$0 sm:$0xff] }
0x11b3   :  { %8553 = vrsqrt.f32 %v5128_v4  ;;  %v5157_v30 = vmul.f32 %v8550_v14, %v5109_v58  ;;  %v5349_v50 = vmul.f32 %v11963_v1, %v11963_v1 }
0x11b4   :  { %8555 = vrsqrt.f32 %v5127_v51  ;;  %5263 = vrot.lane.b32.xlu1 %v11963_v1, %s8649_s9  ;;  %v11972_v31 = vadd.f32 %v5204_v60, %v12687_v25 }
0x11b5   :  { %v8552_v0 = vpop.eup %8551  ;;  %v5181_v54 = vmul.f32 %v11633_v32, %v5157_v30 }
0x11b6   :  { %v5158_v24 = vmul.f32 %v8552_v0, %v5110_v19  ;;  %5265 = vrot.lane.b32.xlu0 %v11972_v31, %s8649_s9  ;;  %v5350_v13 = vmul.f32 %v11972_v31, %v11972_v31 }
0x11b7   :  { %v5205_v3 = vadd.f32 %v11631_v18, %v5181_v54 }
0x11b8   :  { %5391 = vrot.lane.b32.xlu1 %v5349_v50, %s8649_s9  ;;  %v5182_v40 = vmul.f32 %v11633_v32, %v5158_v24 }
0x11b9   :  { %v11985_v41 = vadd.f32 %v5205_v3, %v12688_v33 }
0x11ba   :  { %v5206_v37 = vadd.f32 %v11631_v18, %v5182_v40  ;;  %5393 = vrot.lane.b32.xlu0 %v5350_v13, %s8649_s9 }
0x11bb   :  { %v5351_v63 = vmul.f32 %v11985_v41, %v11985_v41 }
0x11bc   :  { %5267 = vrot.lane.b32.xlu1 %v11985_v41, %s8649_s9  ;;  %v11994_v29 = vadd.f32 %v5206_v37, %v12689_v43 }
0x11bd   :  { %v8554_v53 = vpop.eup %8553 }
0x11be   :  { %v8556_v23 = vpop.eup %8555  ;;  %v5160_v62 = vmul.f32 %v8554_v53, %v5112_v49  ;;  %5269 = vrot.lane.b32.xlu0 %v11994_v29, %s8649_s9  ;;  %v5352_v10 = vmul.f32 %v11994_v29, %v11994_v29 }
0x11bf   :  { %v5159_v16 = vmul.f32 %v8556_v23, %v5111_v55 }
0x11c0   :  { %5395 = vrot.lane.b32.xlu1 %v5351_v63, %s8649_s9  ;;  %v5184_v56 = vmul.f32 %v11633_v32, %v5160_v62 }
0x11c1   :  { %v5183_v11 = vmul.f32 %v11633_v32, %v5159_v16  ;;  %v6929_v32 = vld [vmem:[%s12665_s6 + $0x18] ss:$0 sm:$0xff] }
0x11c2   :  { %v5208_v20 = vadd.f32 %v11631_v18, %v5184_v56  ;;  %5397 = vrot.lane.b32.xlu0 %v5352_v10, %s8649_s9 }
0x11c3   :  { %v5207_v8 = vadd.f32 %v11631_v18, %v5183_v11 }
0x11c4   :  { %v12011_v28 = vadd.f32 %v5208_v20, %v12690_v45 }
0x11c5   :  { %v12014_v15 = vadd.f32 %v5207_v8, %v12691_v17 }
0x11c6   :  { %5273 = vrot.lane.b32.xlu0 %v12011_v28, %s8649_s9  ;;  %v5354_v46 = vmul.f32 %v12011_v28, %v12011_v28 }
0x11c7   :  { %5271 = vrot.lane.b32.xlu1 %v12014_v15, %s8649_s9  ;;  %v5353_v18 = vmul.f32 %v12014_v15, %v12014_v15 }
0x11ca   :  { %5624 = vrot.lane.b32.xlu0 %v6929_v32, %s8649_s9 }
0x11cb   :  { %5401 = vrot.lane.b32.xlu1 %v5354_v46, %s8649_s9 }
0x11cf   :  { %5399 = vrot.lane.b32.xlu1 %v5353_v18, %s8649_s9 }
0x11e3   :  { %v5244_v9 = vpop.permute.xlu1 %5243 }
0x11e4   :  { %v5291_v57 = vsel %vm246_vm0, %v5244_v9, 0.0 }
0x11e9   :  { %5292 = vadd.xlane.f32.xlu0 %v5291_v57 }
0x11eb   :  { %v5246_v36 = vpop.permute.xlu0 %5245 }
0x11ec   :  { %v5294_v21 = vsel %vm246_vm0, %v5246_v36, 0.0 }
0x11ed   :  { %v5374_v52 = vpop.permute.xlu1 %5373 }
0x11ee   :  { %v5422_v61 = vsel %vm246_vm0, %v5374_v52, 0.0 }
0x11ef   :  { %5423 = vadd.xlane.f32.xlu0 %v5422_v61 }
0x11f1   :  { %v5372_v27 = vpop.permute.xlu1 %5371 }
0x11f2   :  { %v5419_v44 = vsel %vm246_vm0, %v5372_v27, 0.0 }
0x11f3   :  { %5295 = vadd.xlane.f32.xlu1 %v5294_v21  ;;  %5420 = vadd.xlane.f32.xlu0 %v5419_v44 }
0x1204   :  { %5600 = vrot.lane.b32.xlu1 %v6928_v48, %s8649_s9 }
0x1206   :  { %v5248_v42 = vpop.permute.xlu1 %5247 }
0x1207   :  { %v5297_v14 = vsel %vm246_vm0, %v5248_v42, 0.0 }
0x1208   :  { %v5250_v34 = vpop.permute.xlu0 %5249 }
0x1209   :  { %v5300_v58 = vsel %vm246_vm0, %v5250_v34, 0.0 }
0x120a   :  { %v5376_v4 = vpop.permute.xlu1 %5375  ;;  %5301 = vadd.xlane.f32.xlu0 %v5300_v58 }
0x120b   :  { %v5425_v23 = vsel %vm246_vm0, %v5376_v4, 0.0 }
0x120c   :  { %v5378_v22 = vpop.permute.xlu0 %5377 }
0x120d   :  { %v5428_v60 = vsel %vm246_vm0, %v5378_v22, 0.0 }
0x120e   :  { %v5252_v51 = vpop.permute.xlu1 %5251  ;;  %5298 = vadd.xlane.f32.xlu0 %v5297_v14 }
0x120f   :  { %v5303_v56 = vsel %vm246_vm0, %v5252_v51, 0.0 }
0x1210   :  { %v5254_v26 = vpop.permute.xlu0 %5253 }
0x1211   :  { %v5306_v25 = vsel %vm246_vm0, %v5254_v26, 0.0 }
0x1212   :  { %v5380_v30 = vpop.permute.xlu1 %5379  ;;  %5429 = vadd.xlane.f32.xlu0 %v5428_v60 }
0x1213   :  { %v5431_v8 = vsel %vm246_vm0, %v5380_v30, 0.0  ;;  %v6930_v30 = vld [vmem:[%s12663_s4 + $0xc0] sm:$0xff] }
0x1214   :  { %v5382_v19 = vpop.permute.xlu0 %5381 }
0x1215   :  { %v5434_v50 = vsel %vm246_vm0, %v5382_v19, 0.0  ;;  %v6931_v19 = vld [vmem:[%s12663_s4 + $0xc8] sm:$0xff] }
0x1216   :  { %v5256_v0 = vpop.permute.xlu1 %5255  ;;  %5307 = vadd.xlane.f32.xlu0 %v5306_v25  ;;  %v8157_v25 = vpack.c.bf16 %v6931_v19, %v6930_v30 }
0x1217   :  { %v5309_v32 = vsel %vm246_vm0, %v5256_v0, 0.0 }
0x1218   :  { %v5258_v54 = vpop.permute.xlu0 %5257  ;;  %8158 = vmatprep.subr.bf16.mxu1 %v8157_v25 }
0x1219   :  { %v5312_v40 = vsel %vm246_vm0, %v5258_v54, 0.0  ;;  %8160 = vmatpush3.bf16.msra.mxu1 %v8157_v25 }
0x121a   :  { %v5384_v24 = vpop.permute.xlu1 %5383  ;;  %5435 = vadd.xlane.f32.xlu0 %v5434_v50 }
0x121b   :  { %v5437_v57 = vsel %vm246_vm0, %v5384_v24, 0.0  ;;  %v6932_v24 = vld [vmem:[%s12663_s4 + $0xd0] sm:$0xff] }
0x121c   :  { %v5386_v3 = vpop.permute.xlu0 %5385 }
0x121d   :  { %v5440_v37 = vsel %vm246_vm0, %v5386_v3, 0.0  ;;  %v6933_v3 = vld [vmem:[%s12663_s4 + $0xd8] sm:$0xff] }
0x121e   :  { %v5260_v13 = vpop.permute.xlu1 %5259  ;;  %5313 = vadd.xlane.f32.xlu0 %v5312_v40  ;;  %v6934_v40 = vld [vmem:[%s12663_s4 + $0xe0] sm:$0xff] }
0x121f   :  { %v5315_v27 = vsel %vm246_vm0, %v5260_v13, 0.0  ;;  %v8161_v13 = vpack.c.bf16 %v6933_v3, %v6932_v24 }
0x1220   :  { %v5262_v33 = vpop.permute.xlu0 %5261 }
0x1221   :  { %v5318_v53 = vsel %vm246_vm0, %v5262_v33, 0.0  ;;  %v6935_v33 = vld [vmem:[%s12663_s4 + $0xe8] sm:$0xff]  ;;  %8162 = vmatprep.subr.bf16.mxu1 %v8161_v13 }
0x1222   :  { %v5388_v49 = vpop.permute.xlu1 %5387  ;;  %5441 = vadd.xlane.f32.xlu0 %v5440_v37  ;;  %v8165_v37 = vpack.c.bf16 %v6935_v33, %v6934_v40  ;;  %8164 = vmatpush3.bf16.msra.mxu1 %v8161_v13 }
0x1223   :  { %v5443_v48 = vsel %vm246_vm0, %v5388_v49, 0.0  ;;  %v6936_v49 = vld [vmem:[%s12663_s4 + $0xf0] sm:$0xff] }
0x1224   :  { %v5390_v43 = vpop.permute.xlu0 %5389  ;;  %8166 = vmatprep.subr.bf16.mxu1 %v8165_v37 }
0x1225   :  { %v5446_v62 = vsel %vm246_vm0, %v5390_v43, 0.0  ;;  %v6937_v43 = vld [vmem:[%s12663_s4 + $0xf8] sm:$0xff] }
0x1226   :  { %v5264_v55 = vpop.permute.xlu1 %5263  ;;  %5319 = vadd.xlane.f32.xlu0 %v5318_v53  ;;  %8168 = vmatpush3.bf16.msra.mxu1 %v8165_v37 }
0x1227   :  { %v5321_v34 = vsel %vm246_vm0, %v5264_v55, 0.0 }
0x1228   :  { %5426 = vadd.xlane.f32.xlu1 %v5425_v23  ;;  %v5266_v63 = vpop.permute.xlu0 %5265 }
0x1229   :  { %v5324_v11 = vsel %vm246_vm0, %v5266_v63, 0.0 }
0x122a   :  { %v5392_v16 = vpop.permute.xlu1 %5391  ;;  %5447 = vadd.xlane.f32.xlu0 %v5446_v62 }
0x122b   :  { %v5449_v58 = vsel %vm246_vm0, %v5392_v16, 0.0  ;;  %v8169_v16 = vpack.c.bf16 %v6937_v43, %v6936_v49 }
0x122c   :  { %5304 = vadd.xlane.f32.xlu1 %v5303_v56  ;;  %v5394_v10 = vpop.permute.xlu0 %5393 }
0x122d   :  { %v5452_v17 = vsel %vm246_vm0, %v5394_v10, 0.0  ;;  %8170 = vmatprep.subr.bf16.mxu1 %v8169_v16 }
0x122e   :  { %5325 = vadd.xlane.f32.xlu0 %v5324_v11  ;;  %v5268_v20 = vpop.permute.xlu1 %5267  ;;  %8172 = vmatpush3.bf16.msra.mxu1 %v8169_v16 }
0x122f   :  { %v5327_v4 = vsel %vm246_vm0, %v5268_v20, 0.0 }
0x1230   :  { %5432 = vadd.xlane.f32.xlu1 %v5431_v8  ;;  %v5270_v45 = vpop.permute.xlu0 %5269 }
0x1231   :  { %v5330_v9 = vsel %vm246_vm0, %v5270_v45, 0.0 }
0x1232   :  { %5453 = vadd.xlane.f32.xlu0 %v5452_v17  ;;  %v5396_v46 = vpop.permute.xlu1 %5395 }
0x1233   :  { %v5455_v22 = vsel %vm246_vm0, %v5396_v46, 0.0 }
0x1234   :  { %5310 = vadd.xlane.f32.xlu1 %v5309_v32  ;;  %v5398_v18 = vpop.permute.xlu0 %5397 }
0x1235   :  { %v5458_v61 = vsel %vm246_vm0, %v5398_v18, 0.0 }
0x1236   :  { %5331 = vadd.xlane.f32.xlu0 %v5330_v9 }
0x1238   :  { %5438 = vadd.xlane.f32.xlu1 %v5437_v57  ;;  %v5274_v36 = vpop.permute.xlu0 %5273 }
0x1239   :  { %v5272_v52 = vpop.permute.xlu1 %5271  ;;  %v5336_v21 = vsel %vm246_vm0, %v5274_v36, 0.0 }
0x123a   :  { %5459 = vadd.xlane.f32.xlu0 %v5458_v61  ;;  %v5333_v14 = vsel %vm246_vm0, %v5272_v52, 0.0 }
0x123c   :  { %5316 = vadd.xlane.f32.xlu1 %v5315_v27  ;;  %v12066_v60 = vpop.permute.xlu0 %5624 }
0x123d   :  { %v5402_v44 = vpop.permute.xlu1 %5401 }
0x123e   :  { %5337 = vadd.xlane.f32.xlu0 %v5336_v21  ;;  %v5464_v42 = vsel %vm246_vm0, %v5402_v44, 0.0 }
0x1240   :  { %5444 = vadd.xlane.f32.xlu1 %v5443_v48 }
0x1241   :  { %v5400_v51 = vpop.permute.xlu1 %5399 }
0x1242   :  { %5465 = vadd.xlane.f32.xlu0 %v5464_v42  ;;  %v5461_v26 = vsel %vm246_vm0, %v5400_v51, 0.0 }
0x1244   :  { %5322 = vadd.xlane.f32.xlu1 %v5321_v34 }
0x1248   :  { %5450 = vadd.xlane.f32.xlu1 %v5449_v58 }
0x124c   :  { %5328 = vadd.xlane.f32.xlu1 %v5327_v4 }
0x1250   :  { %5456 = vadd.xlane.f32.xlu1 %v5455_v22 }
0x1254   :  { %5334 = vadd.xlane.f32.xlu1 %v5333_v14 }
0x1258   :  { %5462 = vadd.xlane.f32.xlu1 %v5461_v26 }
0x1276   :  { %v5293_v0 = vpop.xlane.xlu0 %5292 }
0x1277   :  { %v5467_v50 = vmul.f32 0.015625, %v5293_v0 }
0x1279   :  { %v5499_v23 = vmul.f32 %v5467_v50, %v5467_v50  ;;  %v5531_v17 = vsub.f32 %v11800_v38, %v5467_v50 }
0x127c   :  { %v5424_v54 = vpop.xlane.xlu0 %5423 }
0x127d   :  { %v5484_v56 = vmul.f32 0.015625, %v5424_v54 }
0x1280   :  { %v5421_v53 = vpop.xlane.xlu0 %5420  ;;  %v5296_v55 = vpop.xlane.xlu1 %5295 }
0x1281   :  { %v5483_v63 = vmul.f32 0.015625, %v5421_v53  ;;  %v5468_v62 = vmul.f32 0.015625, %v5296_v55 }
0x1283   :  { %v5515_v10 = vsub.f32 %v5483_v63, %v5499_v23  ;;  %v5500_v11 = vmul.f32 %v5468_v62, %v5468_v62  ;;  %v5532_v46 = vsub.f32 %v11807_v7, %v5468_v62 }
0x1284   :  { %v12094_v57 = vpop.permute.xlu1 %5600 }
0x1285   :  { %v5547_v20 = vadd.f32 1e-05, %v5515_v10  ;;  %v5516_v8 = vsub.f32 %v5484_v56, %v5500_v11 }
0x1287   :  { %8557 = vrsqrt.f32 %v5547_v20  ;;  %v5548_v45 = vadd.f32 1e-05, %v5516_v8 }
0x1289   :  { %8559 = vrsqrt.f32 %v5548_v45 }
0x1291   :  { %v8558_v32 = vpop.eup %8557 }
0x1292   :  { %v5579_v18 = vmul.f32 %v8558_v32, %v5531_v17 }
0x1293   :  { %v8560_v9 = vpop.eup %8559 }
0x1294   :  { %v5580_v52 = vmul.f32 %v8560_v9, %v5532_v46  ;;  %v5603_v61 = vmul.f32 %v12094_v57, %v5579_v18 }
0x1296   :  { %v12098_v36 = vadd.f32 %v12066_v60, %v5603_v61  ;;  %v5604_v27 = vmul.f32 %v12094_v57, %v5580_v52 }
0x1297   :  { %v5302_v21 = vpop.xlane.xlu0 %5301 }
0x1298   :  { %5674 = vrot.lane.b32.xlu1 %v12098_v36, %s8649_s9  ;;  %v12104_v38 = vadd.f32 %v12066_v60, %v5604_v27  ;;  %v12108_v14 = vmul.f32 0.015625, %v5302_v21 }
0x129a   :  { %5676 = vrot.lane.b32.xlu0 %v12104_v38, %s8649_s9  ;;  %v5502_v25 = vmul.f32 %v12108_v14, %v12108_v14 }
0x129b   :  { %v5299_v7 = vpop.xlane.xlu0 %5298 }
0x129c   :  { %v5469_v24 = vmul.f32 0.015625, %v5299_v7 }
0x129e   :  { %v5501_v43 = vmul.f32 %v5469_v24, %v5469_v24 }
0x129f   :  { %v5430_v44 = vpop.xlane.xlu0 %5429 }
0x12a0   :  { %v5486_v19 = vmul.f32 0.015625, %v5430_v44 }
0x12a2   :  { %v5518_v3 = vsub.f32 %v5486_v19, %v5502_v25 }
0x12a3   :  { %v5308_v48 = vpop.xlane.xlu0 %5307 }
0x12a4   :  { %v5472_v42 = vmul.f32 0.015625, %v5308_v48  ;;  %v5550_v53 = vadd.f32 1e-05, %v5518_v3 }
0x12a6   :  { %v5504_v58 = vmul.f32 %v5472_v42, %v5472_v42  ;;  %v5536_v23 = vsub.f32 %v11884_v39, %v5472_v42 }
0x12a7   :  { %v5436_v34 = vpop.xlane.xlu0 %5435 }
0x12a8   :  { %v5488_v4 = vmul.f32 0.015625, %v5436_v34 }
0x12aa   :  { %v5520_v22 = vsub.f32 %v5488_v4, %v5504_v58 }
0x12ab   :  { %v5314_v51 = vpop.xlane.xlu0 %5313 }
0x12ac   :  { %v5552_v26 = vadd.f32 1e-05, %v5520_v22  ;;  %v5474_v30 = vmul.f32 0.015625, %v5314_v51 }
0x12ae   :  { %8561 = vrsqrt.f32 %v5552_v26  ;;  %v5506_v54 = vmul.f32 %v5474_v30, %v5474_v30  ;;  %v5538_v21 = vsub.f32 %v11916_v6, %v5474_v30  ;;  %v5534_v30 = vsub.f32 %v11852_v2, %v12108_v14 }
0x12af   :  { %v5442_v0 = vpop.xlane.xlu0 %5441 }
0x12b0   :  { %v5490_v50 = vmul.f32 0.015625, %v5442_v0  ;;  %v5533_v0 = vsub.f32 %v11842_v35, %v5469_v24 }
0x12b2   :  { %v5522_v40 = vsub.f32 %v5490_v50, %v5506_v54 }
0x12b3   :  { %v5320_v13 = vpop.xlane.xlu0 %5319 }
0x12b4   :  { %v5554_v33 = vadd.f32 1e-05, %v5522_v40  ;;  %v12112_v37 = vmul.f32 0.015625, %v5320_v13 }
0x12b5   :  { %v5427_v49 = vpop.xlane.xlu1 %5426 }
0x12b6   :  { %v5485_v55 = vmul.f32 0.015625, %v5427_v49  ;;  %8563 = vrsqrt.f32 %v5554_v33  ;;  %v5508_v56 = vmul.f32 %v12112_v37, %v12112_v37  ;;  %v5540_v2 = vsub.f32 %v11948_v47, %v12112_v37 }
0x12b7   :  { %v5448_v62 = vpop.xlane.xlu0 %5447  ;;  %8565 = vrsqrt.f32 %v5550_v53 }
0x12b8   :  { %v5517_v63 = vsub.f32 %v5485_v55, %v5501_v43  ;;  %v8562_v16 = vpop.eup %8561  ;;  %v5492_v10 = vmul.f32 0.015625, %v5448_v62 }
0x12b9   :  { %v5305_v11 = vpop.xlane.xlu1 %5304  ;;  %v5584_v45 = vmul.f32 %v8562_v16, %v5536_v23 }
0x12ba   :  { %v5549_v20 = vadd.f32 1e-05, %v5517_v63  ;;  %v12117_v8 = vmul.f32 0.015625, %v5305_v11  ;;  %v5524_v17 = vsub.f32 %v5492_v10, %v5508_v56 }
0x12bb   :  { %v5326_v32 = vpop.xlane.xlu0 %5325  ;;  %v5608_v46 = vmul.f32 %v12094_v57, %v5584_v45 }
0x12bc   :  { %8567 = vrsqrt.f32 %v5549_v20  ;;  %v5556_v18 = vadd.f32 1e-05, %v5524_v17  ;;  %v12120_v39 = vmul.f32 0.015625, %v5326_v32  ;;  %v5503_v52 = vmul.f32 %v12117_v8, %v12117_v8 }
0x12bd   :  { %v5433_v9 = vpop.xlane.xlu1 %5432  ;;  %v12125_v27 = vadd.f32 %v12066_v60, %v5608_v46  ;;  %v5535_v17 = vsub.f32 %v11873_v59, %v12117_v8 }
0x12be   :  { %v5487_v61 = vmul.f32 0.015625, %v5433_v9  ;;  %8569 = vrsqrt.f32 %v5556_v18  ;;  %v5510_v42 = vmul.f32 %v12120_v39, %v12120_v39  ;;  %v5542_v8 = vsub.f32 %v11972_v31, %v12120_v39 }
0x12bf   :  { %v5454_v44 = vpop.xlane.xlu0 %5453  ;;  %5684 = vrot.lane.b32.xlu0 %v12125_v27, %s8649_s9 }
0x12c0   :  { %v5519_v7 = vsub.f32 %v5487_v61, %v5503_v52  ;;  %v8564_v48 = vpop.eup %8563  ;;  %v5494_v34 = vmul.f32 0.015625, %v5454_v44 }
0x12c1   :  { %v5311_v58 = vpop.xlane.xlu1 %5310  ;;  %v5586_v51 = vmul.f32 %v8564_v48, %v5538_v21  ;;  %v8566_v19 = vpop.eup %8565 }
0x12c2   :  { %v5551_v4 = vadd.f32 1e-05, %v5519_v7  ;;  %v12132_v22 = vmul.f32 0.015625, %v5311_v58  ;;  %v5526_v26 = vsub.f32 %v5494_v34, %v5510_v42  ;;  %v5582_v53 = vmul.f32 %v8566_v19, %v5534_v30 }
0x12c3   :  { %v5332_v25 = vpop.xlane.xlu0 %5331  ;;  %v5610_v6 = vmul.f32 %v12094_v57, %v5586_v51 }
0x12c4   :  { %8571 = vrsqrt.f32 %v5551_v4  ;;  %v5558_v54 = vadd.f32 1e-05, %v5526_v26  ;;  %v12138_v50 = vmul.f32 0.015625, %v5332_v25  ;;  %v5505_v13 = vmul.f32 %v12132_v22, %v12132_v22 }
0x12c5   :  { %v5439_v3 = vpop.xlane.xlu1 %5438  ;;  %v12143_v49 = vadd.f32 %v12066_v60, %v5610_v6  ;;  %v5606_v37 = vmul.f32 %v12094_v57, %v5582_v53  ;;  %v5537_v30 = vsub.f32 %v11905_v5, %v12132_v22 }
0x12c6   :  { %v8568_v40 = vpop.eup %8567  ;;  %v5489_v33 = vmul.f32 0.015625, %v5439_v3  ;;  %8573 = vrsqrt.f32 %v5558_v54  ;;  %v5512_v55 = vmul.f32 %v12138_v50, %v12138_v50  ;;  %v5544_v53 = vsub.f32 %v11994_v29, %v12138_v50 }
0x12c7   :  { %v5581_v43 = vmul.f32 %v8568_v40, %v5533_v0  ;;  %v5460_v35 = vpop.xlane.xlu0 %5459  ;;  %5688 = vrot.lane.b32.xlu0 %v12143_v49, %s8649_s9  ;;  %v12171_v7 = vadd.f32 %v12066_v60, %v5606_v37 }
0x12c8   :  { %v5521_v14 = vsub.f32 %v5489_v33, %v5505_v13  ;;  %v8570_v24 = vpop.eup %8569  ;;  %v5496_v23 = vmul.f32 0.015625, %v5460_v35 }
0x12c9   :  { %v5317_v63 = vpop.xlane.xlu1 %5316  ;;  %v5605_v62 = vmul.f32 %v12094_v57, %v5581_v43  ;;  %v5588_v10 = vmul.f32 %v8570_v24, %v5540_v2 }
0x12ca   :  { %v5553_v16 = vadd.f32 1e-05, %v5521_v14  ;;  %v12152_v56 = vmul.f32 0.015625, %v5317_v63  ;;  %v5528_v11 = vsub.f32 %v5496_v23, %v5512_v55 }
0x12cb   :  { %v12155_v47 = vadd.f32 %v12066_v60, %v5605_v62  ;;  %v5338_v20 = vpop.xlane.xlu0 %5337  ;;  %v5612_v45 = vmul.f32 %v12094_v57, %v5588_v10 }
0x12cc   :  { %8575 = vrsqrt.f32 %v5553_v16  ;;  %v5560_v32 = vadd.f32 1e-05, %v5528_v11  ;;  %v12161_v46 = vmul.f32 0.015625, %v5338_v20  ;;  %v5507_v52 = vmul.f32 %v12152_v56, %v12152_v56 }
0x12cd   :  { %5678 = vrot.lane.b32.xlu1 %v12155_v47, %s8649_s9  ;;  %v5445_v18 = vpop.xlane.xlu1 %5444  ;;  %v12168_v21 = vadd.f32 %v12066_v60, %v5612_v45  ;;  %v5539_v29 = vsub.f32 %v11935_v12, %v12152_v56 }
0x12ce   :  { %v8572_v9 = vpop.eup %8571  ;;  %v5491_v61 = vmul.f32 0.015625, %v5445_v18  ;;  %8577 = vrsqrt.f32 %v5560_v32  ;;  %v5514_v34 = vmul.f32 %v12161_v46, %v12161_v46  ;;  %v5546_v20 = vsub.f32 %v12011_v28, %v12161_v46 }
0x12cf   :  { %v5583_v59 = vmul.f32 %v8572_v9, %v5535_v17  ;;  %v5466_v48 = vpop.xlane.xlu0 %5465  ;;  %5692 = vrot.lane.b32.xlu0 %v12168_v21, %s8649_s9 }
0x12d0   :  { %v5523_v44 = vsub.f32 %v5491_v61, %v5507_v52  ;;  %v8574_v42 = vpop.eup %8573  ;;  %v5498_v58 = vmul.f32 0.015625, %v5466_v48 }
0x12d1   :  { %5680 = vrot.lane.b32.xlu1 %v12171_v7, %s8649_s9  ;;  %v5323_v4 = vpop.xlane.xlu1 %5322  ;;  %v5607_v51 = vmul.f32 %v12094_v57, %v5583_v59  ;;  %v5590_v25 = vmul.f32 %v8574_v42, %v5542_v8 }
0x12d2   :  { %v5555_v26 = vadd.f32 1e-05, %v5523_v44  ;;  %v5477_v19 = vmul.f32 0.015625, %v5323_v4  ;;  %v5530_v31 = vsub.f32 %v5498_v58, %v5514_v34 }
0x12d3   :  { %v12183_v39 = vadd.f32 %v12066_v60, %v5607_v51  ;;  %v5614_v6 = vmul.f32 %v12094_v57, %v5590_v25 }
0x12d4   :  { %8579 = vrsqrt.f32 %v5555_v26  ;;  %v5562_v0 = vadd.f32 1e-05, %v5530_v31  ;;  %v5509_v40 = vmul.f32 %v5477_v19, %v5477_v19  ;;  %v5541_v59 = vsub.f32 %v11963_v1, %v5477_v19  ;;  %v6955_v31 = vld [vmem:[%s12664_s5 + $0x180] sm:$0xff] }
0x12d5   :  { %5682 = vrot.lane.b32.xlu1 %v12183_v39, %s8649_s9  ;;  %v5451_v54 = vpop.xlane.xlu1 %5450  ;;  %v12191_v33 = vadd.f32 %v12066_v60, %v5614_v6  ;;  %v6956_v6 = vld [vmem:[%s12664_s5 + $0x188] sm:$0xff] }
0x12d6   :  { %v8576_v3 = vpop.eup %8575  ;;  %v5493_v13 = vmul.f32 0.015625, %v5451_v54  ;;  %8581 = vrsqrt.f32 %v5562_v0  ;;  %v6958_v0 = vld [vmem:[%s12664_s5 + $0x198] sm:$0xff] }
0x12d7   :  { %v5585_v43 = vmul.f32 %v8576_v3, %v5537_v30  ;;  %5696 = vrot.lane.b32.xlu0 %v12191_v33, %s8649_s9  ;;  %v6957_v30 = vld [vmem:[%s12664_s5 + $0x190] sm:$0xff] }
0x12d8   :  { %v5525_v2 = vsub.f32 %v5493_v13, %v5509_v40  ;;  %v8578_v5 = vpop.eup %8577  ;;  %v8177_v3 = vpack.c.bf16 %v6958_v0, %v6957_v30  ;;  %v6959_v40 = vld [vmem:[%s12664_s5 + $0x1a0] sm:$0xff]  ;;  %v6960_v13 = vld [vmem:[%s12664_s5 + $0x1a8] sm:$0xff] }
0x12d9   :  { %v5329_v22 = vpop.xlane.xlu1 %5328  ;;  %v5609_v14 = vmul.f32 %v12094_v57, %v5585_v43  ;;  %v5592_v55 = vmul.f32 %v8578_v5, %v5544_v53 }
0x12da   :  { %v5557_v35 = vadd.f32 1e-05, %v5525_v2  ;;  %v5479_v24 = vmul.f32 0.015625, %v5329_v22  ;;  %v8181_v2 = vpack.c.bf16 %v6960_v13, %v6959_v40  ;;  %v6961_v22 = vld [vmem:[%s12664_s5 + $0x1b0] sm:$0xff] }
0x12db   :  { %v12199_v23 = vadd.f32 %v12066_v60, %v5609_v14  ;;  %v5616_v63 = vmul.f32 %v12094_v57, %v5592_v55  ;;  %v6962_v14 = vld [vmem:[%s12664_s5 + $0x1b8] sm:$0xff]  ;;  %v6963_v55 = vld [vmem:[%s12664_s5 + $0x1c0] sm:$0xff] }
0x12dc   :  { %8583 = vrsqrt.f32 %v5557_v35  ;;  %v5511_v16 = vmul.f32 %v5479_v24, %v5479_v24  ;;  %v5543_v51 = vsub.f32 %v11985_v41, %v5479_v24  ;;  %v8173_v41 = vpack.c.bf16 %v6956_v6, %v6955_v31 }
0x12dd   :  { %5686 = vrot.lane.b32.xlu1 %v12199_v23, %s8649_s9  ;;  %v5457_v50 = vpop.xlane.xlu1 %5456  ;;  %v12207_v11 = vadd.f32 %v12066_v60, %v5616_v63  ;;  %v6964_v63 = vld [vmem:[%s12664_s5 + $0x1c8] sm:$0xff] }
0x12de   :  { %v8580_v62 = vpop.eup %8579  ;;  %v5495_v10 = vmul.f32 0.015625, %v5457_v50  ;;  %8174 = vmatprep.subr.bf16.mxu0 %v8173_v41 }
0x12df   :  { %v5587_v37 = vmul.f32 %v8580_v62, %v5539_v29  ;;  %5700 = vrot.lane.b32.xlu0 %v12207_v11, %s8649_s9  ;;  %8176 = vmatpush3.bf16.msra.mxu0 %v8173_v41  ;;  %v6965_v29 = vld [vmem:[%s12664_s5 + $0x1d0] sm:$0xff]  ;;  %v6967_v62 = vld [vmem:[%s12664_s5 + $0x1e0] sm:$0xff] }
0x12e0   :  { %v5527_v45 = vsub.f32 %v5495_v10, %v5511_v16  ;;  %v8582_v17 = vpop.eup %8581  ;;  %8178 = vmatprep.subr.bf16.mxu0 %v8177_v3  ;;  %v6968_v16 = vld [vmem:[%s12664_s5 + $0x1e8] sm:$0xff] }
0x12e1   :  { %v5335_v12 = vpop.xlane.xlu1 %5334  ;;  %v5611_v56 = vmul.f32 %v12094_v57, %v5587_v37  ;;  %v5594_v9 = vmul.f32 %v8582_v17, %v5546_v20  ;;  %v8197_v10 = vpack.c.bf16 %v6968_v16, %v6967_v62 }
0x12e2   :  { %v5559_v32 = vadd.f32 1e-05, %v5527_v45  ;;  %v5481_v18 = vmul.f32 0.015625, %v5335_v12 }
0x12e3   :  { %v12215_v52 = vadd.f32 %v12066_v60, %v5611_v56  ;;  %v5618_v61 = vmul.f32 %v12094_v57, %v5594_v9  ;;  %8180 = vmatpush3.bf16.msra.mxu0 %v8177_v3 }
0x12e4   :  { %8585 = vrsqrt.f32 %v5559_v32  ;;  %v5513_v8 = vmul.f32 %v5481_v18, %v5481_v18  ;;  %v5545_v43 = vsub.f32 %v12014_v15, %v5481_v18  ;;  %8182 = vmatprep.subr.bf16.mxu0 %v8181_v2  ;;  %v8185_v15 = vpack.c.bf16 %v6962_v14, %v6961_v22 }
0x12e5   :  { %5690 = vrot.lane.b32.xlu1 %v12215_v52, %s8649_s9  ;;  %v5463_v28 = vpop.xlane.xlu1 %5462  ;;  %v12222_v48 = vadd.f32 %v12066_v60, %v5618_v61 }
0x12e6   :  { %v8584_v46 = vpop.eup %8583  ;;  %v5497_v44 = vmul.f32 0.015625, %v5463_v28 }
0x12e7   :  { %v5589_v42 = vmul.f32 %v8584_v46, %v5541_v59  ;;  %5704 = vrot.lane.b32.xlu0 %v12222_v48, %s8649_s9  ;;  %8184 = vmatpush3.bf16.msra.mxu0 %v8181_v2  ;;  %v6969_v46 = vld [vmem:[%s12664_s5 + $0x1f0] sm:$0xff] }
0x12e8   :  { %v5529_v34 = vsub.f32 %v5497_v44, %v5513_v8  ;;  %8186 = vmatprep.subr.bf16.mxu0 %v8185_v15  ;;  %v6970_v8 = vld [vmem:[%s12664_s5 + $0x1f8] sm:$0xff] }
0x12e9   :  { %v5613_v58 = vmul.f32 %v12094_v57, %v5589_v42  ;;  %v8201_v44 = vpack.c.bf16 %v6970_v8, %v6969_v46 }
0x12ea   :  { %v5561_v4 = vadd.f32 1e-05, %v5529_v34 }
0x12eb   :  { %v12228_v1 = vadd.f32 %v12066_v60, %v5613_v58  ;;  %8188 = vmatpush3.bf16.msra.mxu0 %v8185_v15 }
0x12ec   :  { %8587 = vrsqrt.f32 %v5561_v4 }
0x12ed   :  { %5694 = vrot.lane.b32.xlu1 %v12228_v1, %s8649_s9 }
0x12ee   :  { %v8586_v26 = vpop.eup %8585 }
0x12ef   :  { %v5591_v19 = vmul.f32 %v8586_v26, %v5543_v51  ;;  %v6938_v51 = vld [vmem:[%s12666_s7 + $0x3] ss:$0 sm:$0xff] }
0x12f1   :  { %v5615_v25 = vmul.f32 %v12094_v57, %v5591_v19 }
0x12f3   :  { %v12247_v54 = vadd.f32 %v12066_v60, %v5615_v25 }
0x12f5   :  { %5698 = vrot.lane.b32.xlu1 %v12247_v54, %s8649_s9 }
0x12f6   :  { %v8588_v53 = vpop.eup %8587 }
0x12f7   :  { %v5593_v5 = vmul.f32 %v8588_v53, %v5545_v43 }
0x12f9   :  { %v5617_v35 = vmul.f32 %v12094_v57, %v5593_v5  ;;  %v8189_v57 = vpack.c.bf16 %v6964_v63, %v6963_v55 }
0x12fb   :  { %v12266_v24 = vadd.f32 %v12066_v60, %v5617_v35  ;;  %v6966_v60 = vld [vmem:[%s12664_s5 + $0x1d8] sm:$0xff]  ;;  %8190 = vmatprep.subr.bf16.mxu0 %v8189_v57 }
0x12fc   :  { %v8193_v50 = vpack.c.bf16 %v6966_v60, %v6965_v29  ;;  %8192 = vmatpush3.bf16.msra.mxu0 %v8189_v57 }
0x12fd   :  { %5702 = vrot.lane.b32.xlu1 %v12266_v24, %s8649_s9 }
0x12fe   :  { %8194 = vmatprep.subr.bf16.mxu0 %v8193_v50 }
0x1300   :  { %8196 = vmatpush3.bf16.msra.mxu0 %v8193_v50 }
0x1301   :  { %8198 = vmatprep.subr.bf16.mxu0 %v8197_v10 }
0x1304   :  { %8200 = vmatpush3.bf16.msra.mxu0 %v8197_v10 }
0x1305   :  { %8202 = vmatprep.subr.bf16.mxu0 %v8201_v44 }
0x1308   :  { %8204 = vmatpush3.bf16.msra.mxu0 %v8201_v44 }
0x130a   :  { %v5675_v37 = vpop.permute.xlu1 %5674 }
0x130b   :  { %7818 = vmatprep.mubr.msk.f32.mxu1 %vm246_vm0, %v5675_v37 }
0x130c   :  { %v5677_v20 = vpop.permute.xlu0 %5676 }
0x130d   :  { %7819 = vmatmul.mubr.msk.f32.vlgmr.msra.gmra.mrb[72].mxu1 %vm246_vm0, %v5677_v20 }
0x1331   :  { %v5685_v56 = vpop.permute.xlu0 %5684 }
0x1339   :  { %v5689_v18 = vpop.permute.xlu0 %5688 }
0x133f   :  { %v5679_v45 = vpop.permute.xlu1 %5678 }
0x1340   :  { %7821 = vmatprep.mubr.msk.f32.mxu1 %vm246_vm0, %v5679_v45 }
0x1341   :  { %v5693_v61 = vpop.permute.xlu0 %5692 }
0x1343   :  { %v5681_v17 = vpop.permute.xlu1 %5680 }
0x1344   :  { %7822 = vmatmul.mubr.msk.f32.gmra.mrb[74].mxu1 %vm246_vm0, %v5681_v17 }
0x1347   :  { %v5683_v12 = vpop.permute.xlu1 %5682 }
0x1348   :  { %7824 = vmatprep.mubr.msk.f32.mxu1 %vm246_vm0, %v5683_v12 }
0x1349   :  { %7825 = vmatmul.mubr.msk.f32.gmra.mrb[76].mxu1 %vm246_vm0, %v5685_v56  ;;  %v5697_v28 = vpop.permute.xlu0 %5696 }
0x134f   :  { %v5687_v32 = vpop.permute.xlu1 %5686 }
0x1350   :  { %7827 = vmatprep.mubr.msk.f32.mxu1 %vm246_vm0, %v5687_v32 }
0x1351   :  { %7828 = vmatmul.mubr.msk.f32.gmra.mrb[78].mxu1 %vm246_vm0, %v5689_v18  ;;  %v5701_v34 = vpop.permute.xlu0 %5700 }
0x1357   :  { %v5691_v9 = vpop.permute.xlu1 %5690 }
0x1358   :  { %7830 = vmatprep.mubr.msk.f32.mxu1 %vm246_vm0, %v5691_v9 }
0x1359   :  { %7831 = vmatmul.mubr.msk.f32.gmra.mrb[80].mxu1 %vm246_vm0, %v5693_v61  ;;  %v5705_v4 = vpop.permute.xlu0 %5704 }
0x135f   :  { %v5695_v59 = vpop.permute.xlu1 %5694 }
0x1360   :  { %7833 = vmatprep.mubr.msk.f32.mxu1 %vm246_vm0, %v5695_v59 }
0x1361   :  { %7834 = vmatmul.mubr.msk.f32.gmra.mrb[82].mxu1 %vm246_vm0, %v5697_v28 }
0x1367   :  { %v5699_v42 = vpop.permute.xlu1 %5698 }
0x1368   :  { %7836 = vmatprep.mubr.msk.f32.mxu1 %vm246_vm0, %v5699_v42 }
0x1369   :  { %7837 = vmatmul.mubr.msk.f32.gmra.mrb[84].mxu1 %vm246_vm0, %v5701_v34 }
0x136f   :  { %v5703_v58 = vpop.permute.xlu1 %5702 }
0x1370   :  { %7839 = vmatprep.mubr.msk.f32.mxu1 %vm246_vm0, %v5703_v58 }
0x1371   :  { %7840 = vmatmul.mubr.msk.f32.gmra.mrb[86].mxu1 %vm246_vm0, %v5705_v4 }
0x13e0   :  { %v7820_v26 = vpop.f32.mrb[72].mxu1 }
0x13e1   :  { %v5810_v19 = vadd.f32 %v7820_v26, %v6938_v51  ;;  %v5804_v25 = vpop.f32.mrb[73].mxu1 }
0x13e2   :  { %v5805_v31 = vadd.f32 %v6938_v51, %v5804_v25 }
0x13e3   :  { %v5884_v30 = vmax.f32 %v5810_v19, 0.0  ;;  %v6971_v19 = vld [vmem:[%s12665_s6 + $0x19] ss:$0 sm:$0xff] }
0x13e4   :  { %v5883_v6 = vmax.f32 %v5805_v31, 0.0 }
0x13e6   :  { %7874 = vmatprep.mubr.f32.mxu0 %v5883_v6 }
0x13e7   :  { %7875 = vmatmul.mubr.f32.vlgmr.msra.gmra.mrb[88].mxu0 %v5884_v30 }
0x1417   :  { %v7823_v41 = vpop.f32.mrb[74].mxu1 }
0x1418   :  { %v5820_v0 = vadd.f32 %v7823_v41, %v6938_v51  ;;  %v5814_v3 = vpop.f32.mrb[75].mxu1 }
0x1419   :  { %v5815_v40 = vadd.f32 %v6938_v51, %v5814_v3 }
0x141a   :  { %v5886_v43 = vmax.f32 %v5820_v0, 0.0 }
0x141b   :  { %v5885_v13 = vmax.f32 %v5815_v40, 0.0 }
0x141c   :  { %v7826_v53 = vpop.f32.mrb[76].mxu1 }
0x141d   :  { %v5830_v2 = vadd.f32 %v7826_v53, %v6938_v51  ;;  %v5824_v5 = vpop.f32.mrb[77].mxu1  ;;  %7877 = vmatprep.mubr.f32.mxu0 %v5885_v13 }
0x141e   :  { %v5825_v22 = vadd.f32 %v6938_v51, %v5824_v5  ;;  %7878 = vmatmul.mubr.f32.gmra.mrb[90].mxu0 %v5886_v43 }
0x141f   :  { %v5888_v35 = vmax.f32 %v5830_v2, 0.0 }
0x1420   :  { %v5887_v14 = vmax.f32 %v5825_v22, 0.0 }
0x1422   :  { %7880 = vmatprep.mubr.f32.mxu0 %v5887_v14 }
0x1423   :  { %7881 = vmatmul.mubr.f32.gmra.mrb[92].mxu0 %v5888_v35 }
0x1424   :  { %v7829_v15 = vpop.f32.mrb[78].mxu1 }
0x1425   :  { %v5840_v55 = vadd.f32 %v7829_v15, %v6938_v51  ;;  %v5834_v63 = vpop.f32.mrb[79].mxu1 }
0x1426   :  { %v5835_v57 = vadd.f32 %v6938_v51, %v5834_v63 }
0x1427   :  { %v5890_v60 = vmax.f32 %v5840_v55, 0.0 }
0x1428   :  { %v5889_v29 = vmax.f32 %v5835_v57, 0.0 }
0x142a   :  { %7883 = vmatprep.mubr.f32.mxu0 %v5889_v29 }
0x142b   :  { %7884 = vmatmul.mubr.f32.gmra.mrb[94].mxu0 %v5890_v60 }
0x142c   :  { %v7832_v50 = vpop.f32.mrb[80].mxu1 }
0x142d   :  { %v5850_v62 = vadd.f32 %v7832_v50, %v6938_v51  ;;  %v5844_v16 = vpop.f32.mrb[81].mxu1 }
0x142e   :  { %v5845_v10 = vadd.f32 %v6938_v51, %v5844_v16 }
0x142f   :  { %v5892_v20 = vmax.f32 %v5850_v62, 0.0 }
0x1430   :  { %v5891_v37 = vmax.f32 %v5845_v10, 0.0 }
0x1432   :  { %7886 = vmatprep.mubr.f32.mxu0 %v5891_v37 }
0x1433   :  { %7887 = vmatmul.mubr.f32.gmra.mrb[96].mxu0 %v5892_v20 }
0x1434   :  { %v7835_v45 = vpop.f32.mrb[82].mxu1 }
0x1435   :  { %v5860_v17 = vadd.f32 %v7835_v45, %v6938_v51  ;;  %v5854_v12 = vpop.f32.mrb[83].mxu1 }
0x1436   :  { %v5855_v56 = vadd.f32 %v6938_v51, %v5854_v12 }
0x1437   :  { %v5894_v18 = vmax.f32 %v5860_v17, 0.0 }
0x1438   :  { %v5893_v32 = vmax.f32 %v5855_v56, 0.0 }
0x143a   :  { %7889 = vmatprep.mubr.f32.mxu0 %v5893_v32 }
0x143b   :  { %7890 = vmatmul.mubr.f32.gmra.mrb[98].mxu0 %v5894_v18 }
0x143c   :  { %v7838_v9 = vpop.f32.mrb[84].mxu1 }
0x143d   :  { %v5870_v61 = vadd.f32 %v7838_v9, %v6938_v51  ;;  %v5864_v59 = vpop.f32.mrb[85].mxu1 }
0x143e   :  { %v5865_v28 = vadd.f32 %v6938_v51, %v5864_v59 }
0x143f   :  { %v5896_v8 = vmax.f32 %v5870_v61, 0.0 }
0x1440   :  { %v5895_v46 = vmax.f32 %v5865_v28, 0.0 }
0x1442   :  { %7892 = vmatprep.mubr.f32.mxu0 %v5895_v46 }
0x1443   :  { %7893 = vmatmul.mubr.f32.gmra.mrb[100].mxu0 %v5896_v8 }
0x1444   :  { %v7841_v44 = vpop.f32.mrb[86].mxu1 }
0x1445   :  { %v5880_v42 = vadd.f32 %v7841_v44, %v6938_v51  ;;  %v5874_v34 = vpop.f32.mrb[87].mxu1 }
0x1446   :  { %v5875_v58 = vadd.f32 %v6938_v51, %v5874_v34 }
0x1447   :  { %v5898_v26 = vmax.f32 %v5880_v42, 0.0 }
0x1448   :  { %v5897_v4 = vmax.f32 %v5875_v58, 0.0 }
0x144a   :  { %7895 = vmatprep.mubr.f32.mxu0 %v5897_v4 }
0x144b   :  { %7896 = vmatmul.mubr.f32.gmra.mrb[102].mxu0 %v5898_v26 }
0x14ba   :  { %v7876_v25 = vpop.f32.mrb[88].mxu0 }
0x14bb   :  { %v5992_v31 = vadd.f32 %v7876_v25, %v6971_v19  ;;  %v5986_v6 = vpop.f32.mrb[89].mxu0 }
0x14bc   :  { %v5987_v30 = vadd.f32 %v6971_v19, %v5986_v6 }
0x14bd   :  { %6083 = vrot.lane.b32.xlu0 %v5992_v31, %s8649_s9 }
0x14be   :  { %6081 = vrot.lane.b32.xlu1 %v5987_v30, %s8649_s9 }
0x14f1   :  { %v7879_v41 = vpop.f32.mrb[90].mxu0 }
0x14f2   :  { %v6002_v0 = vadd.f32 %v7879_v41, %v6971_v19  ;;  %v5996_v3 = vpop.f32.mrb[91].mxu0 }
0x14f3   :  { %v5997_v51 = vadd.f32 %v6971_v19, %v5996_v3 }
0x14f4   :  { %6087 = vrot.lane.b32.xlu0 %v6002_v0, %s8649_s9 }
0x14f5   :  { %6085 = vrot.lane.b32.xlu1 %v5997_v51, %s8649_s9 }
0x14f6   :  { %v7882_v40 = vpop.f32.mrb[92].mxu0 }
0x14f7   :  { %v6012_v13 = vadd.f32 %v7882_v40, %v6971_v19  ;;  %v6006_v43 = vpop.f32.mrb[93].mxu0 }
0x14f8   :  { %v6007_v53 = vadd.f32 %v6971_v19, %v6006_v43 }
0x14f9   :  { %6091 = vrot.lane.b32.xlu0 %v6012_v13, %s8649_s9 }
0x14fa   :  { %6089 = vrot.lane.b32.xlu1 %v6007_v53, %s8649_s9 }
0x14fe   :  { %v7885_v2 = vpop.f32.mrb[94].mxu0 }
0x14ff   :  { %v6022_v5 = vadd.f32 %v7885_v2, %v6971_v19  ;;  %v6016_v22 = vpop.f32.mrb[95].mxu0 }
0x1500   :  { %v6017_v14 = vadd.f32 %v6971_v19, %v6016_v22 }
0x1501   :  { %6095 = vrot.lane.b32.xlu0 %v6022_v5, %s8649_s9 }
0x1502   :  { %6093 = vrot.lane.b32.xlu1 %v6017_v14, %s8649_s9 }
0x1506   :  { %v7888_v35 = vpop.f32.mrb[96].mxu0 }
0x1507   :  { %v6032_v15 = vadd.f32 %v7888_v35, %v6971_v19  ;;  %v6026_v55 = vpop.f32.mrb[97].mxu0 }
0x1508   :  { %v6027_v63 = vadd.f32 %v6971_v19, %v6026_v55 }
0x1509   :  { %6099 = vrot.lane.b32.xlu0 %v6032_v15, %s8649_s9 }
0x150a   :  { %6097 = vrot.lane.b32.xlu1 %v6027_v63, %s8649_s9 }
0x150e   :  { %v7891_v57 = vpop.f32.mrb[98].mxu0 }
0x150f   :  { %v6042_v29 = vadd.f32 %v7891_v57, %v6971_v19  ;;  %v6036_v60 = vpop.f32.mrb[99].mxu0  ;;  %v6973_v57 = vld [vmem:[%s12665_s6 + $0x1b] ss:$0 sm:$0xff] }
0x1510   :  { %v6037_v50 = vadd.f32 %v6971_v19, %v6036_v60 }
0x1511   :  { %6103 = vrot.lane.b32.xlu0 %v6042_v29, %s8649_s9  ;;  %v6972_v29 = vld [vmem:[%s12665_s6 + $0x1a] ss:$0 sm:$0xff] }
0x1512   :  { %6101 = vrot.lane.b32.xlu1 %v6037_v50, %s8649_s9 }
0x1516   :  { %v7894_v62 = vpop.f32.mrb[100].mxu0 }
0x1517   :  { %v6052_v16 = vadd.f32 %v7894_v62, %v6971_v19  ;;  %v6046_v10 = vpop.f32.mrb[101].mxu0 }
0x1518   :  { %v6047_v37 = vadd.f32 %v6971_v19, %v6046_v10 }
0x1519   :  { %6107 = vrot.lane.b32.xlu0 %v6052_v16, %s8649_s9 }
0x151a   :  { %6105 = vrot.lane.b32.xlu1 %v6047_v37, %s8649_s9 }
0x151e   :  { %v7897_v20 = vpop.f32.mrb[102].mxu0 }
0x151f   :  { %v6062_v45 = vadd.f32 %v7897_v20, %v6971_v19  ;;  %v6056_v17 = vpop.f32.mrb[103].mxu0 }
0x1520   :  { %v6057_v12 = vadd.f32 %v6971_v19, %v6056_v17 }
0x1521   :  { %6111 = vrot.lane.b32.xlu0 %v6062_v45, %s8649_s9 }
0x1522   :  { %6109 = vrot.lane.b32.xlu1 %v6057_v12, %s8649_s9 }
0x152f   :  { %v6084_v56 = vpop.permute.xlu0 %6083 }
0x1530   :  { %v12333_v32 = vadd.f32 %v6084_v56, %v12104_v38  ;;  %v6082_v18 = vpop.permute.xlu1 %6081 }
0x1531   :  { %v12336_v9 = vadd.f32 %v6082_v18, %v12098_v36 }
0x1532   :  { %6165 = vrot.lane.b32.xlu0 %v12333_v32, %s8649_s9  ;;  %v6260_v61 = vmul.f32 %v12333_v32, %v12333_v32 }
0x1533   :  { %6163 = vrot.lane.b32.xlu1 %v12336_v9, %s8649_s9  ;;  %v6259_v59 = vmul.f32 %v12336_v9, %v12336_v9 }
0x1536   :  { %6293 = vrot.lane.b32.xlu0 %v6260_v61, %s8649_s9 }
0x1537   :  { %6291 = vrot.lane.b32.xlu1 %v6259_v59, %s8649_s9 }
0x1566   :  { %v6088_v38 = vpop.permute.xlu0 %6087 }
0x1567   :  { %v12349_v36 = vadd.f32 %v6088_v38, %v12171_v7  ;;  %v6086_v28 = vpop.permute.xlu1 %6085 }
0x1568   :  { %v12352_v46 = vadd.f32 %v6086_v28, %v12155_v47 }
0x1569   :  { %6169 = vrot.lane.b32.xlu0 %v12349_v36, %s8649_s9  ;;  %v6262_v8 = vmul.f32 %v12349_v36, %v12349_v36 }
0x156a   :  { %6167 = vrot.lane.b32.xlu1 %v12352_v46, %s8649_s9  ;;  %v6261_v44 = vmul.f32 %v12352_v46, %v12352_v46 }
0x156b   :  { %v6092_v42 = vpop.permute.xlu0 %6091 }
0x156c   :  { %v6090_v34 = vpop.permute.xlu1 %6089  ;;  %v12365_v47 = vadd.f32 %v6092_v42, %v12125_v27 }
0x156d   :  { %6297 = vrot.lane.b32.xlu0 %v6262_v8, %s8649_s9  ;;  %v12368_v7 = vadd.f32 %v6090_v34, %v12183_v39 }
0x156e   :  { %6295 = vrot.lane.b32.xlu1 %v6261_v44, %s8649_s9  ;;  %v6264_v58 = vmul.f32 %v12365_v47, %v12365_v47 }
0x156f   :  { %v6263_v4 = vmul.f32 %v12368_v7, %v12368_v7 }
0x1571   :  { %6173 = vrot.lane.b32.xlu0 %v12365_v47, %s8649_s9 }
0x1572   :  { %6171 = vrot.lane.b32.xlu1 %v12368_v7, %s8649_s9 }
0x1573   :  { %v6096_v26 = vpop.permute.xlu0 %6095 }
0x1574   :  { %v6094_v19 = vpop.permute.xlu1 %6093  ;;  %v12381_v27 = vadd.f32 %v6096_v26, %v12143_v49 }
0x1575   :  { %6301 = vrot.lane.b32.xlu0 %v6264_v58, %s8649_s9  ;;  %v12384_v39 = vadd.f32 %v6094_v19, %v12199_v23 }
0x1576   :  { %6299 = vrot.lane.b32.xlu1 %v6263_v4, %s8649_s9  ;;  %v6266_v25 = vmul.f32 %v12381_v27, %v12381_v27 }
0x1577   :  { %v6265_v31 = vmul.f32 %v12384_v39, %v12384_v39 }
0x1579   :  { %6177 = vrot.lane.b32.xlu0 %v12381_v27, %s8649_s9 }
0x157a   :  { %6175 = vrot.lane.b32.xlu1 %v12384_v39, %s8649_s9 }
0x157b   :  { %v6100_v6 = vpop.permute.xlu0 %6099 }
0x157c   :  { %v6098_v30 = vpop.permute.xlu1 %6097  ;;  %v12397_v49 = vadd.f32 %v6100_v6, %v12168_v21 }
0x157d   :  { %6305 = vrot.lane.b32.xlu0 %v6266_v25, %s8649_s9  ;;  %v12400_v23 = vadd.f32 %v6098_v30, %v12215_v52 }
0x157e   :  { %6303 = vrot.lane.b32.xlu1 %v6265_v31, %s8649_s9  ;;  %v6268_v41 = vmul.f32 %v12397_v49, %v12397_v49 }
0x157f   :  { %v6267_v0 = vmul.f32 %v12400_v23, %v12400_v23 }
0x1581   :  { %6181 = vrot.lane.b32.xlu0 %v12397_v49, %s8649_s9 }
0x1582   :  { %6179 = vrot.lane.b32.xlu1 %v12400_v23, %s8649_s9 }
0x1583   :  { %v6104_v3 = vpop.permute.xlu0 %6103 }
0x1584   :  { %v6102_v51 = vpop.permute.xlu1 %6101  ;;  %v12413_v21 = vadd.f32 %v6104_v3, %v12191_v33 }
0x1585   :  { %6309 = vrot.lane.b32.xlu0 %v6268_v41, %s8649_s9  ;;  %v12416_v52 = vadd.f32 %v6102_v51, %v12228_v1 }
0x1586   :  { %6307 = vrot.lane.b32.xlu1 %v6267_v0, %s8649_s9  ;;  %v6270_v40 = vmul.f32 %v12413_v21, %v12413_v21 }
0x1587   :  { %v6269_v13 = vmul.f32 %v12416_v52, %v12416_v52 }
0x1589   :  { %6185 = vrot.lane.b32.xlu0 %v12413_v21, %s8649_s9 }
0x158a   :  { %6183 = vrot.lane.b32.xlu1 %v12416_v52, %s8649_s9 }
0x158b   :  { %v6108_v43 = vpop.permute.xlu0 %6107 }
0x158c   :  { %v6106_v53 = vpop.permute.xlu1 %6105  ;;  %v12429_v33 = vadd.f32 %v6108_v43, %v12207_v11 }
0x158d   :  { %6313 = vrot.lane.b32.xlu0 %v6270_v40, %s8649_s9  ;;  %v12432_v1 = vadd.f32 %v6106_v53, %v12247_v54 }
0x158e   :  { %6311 = vrot.lane.b32.xlu1 %v6269_v13, %s8649_s9  ;;  %v6272_v2 = vmul.f32 %v12429_v33, %v12429_v33 }
0x158f   :  { %v6271_v5 = vmul.f32 %v12432_v1, %v12432_v1 }
0x1591   :  { %6189 = vrot.lane.b32.xlu0 %v12429_v33, %s8649_s9 }
0x1592   :  { %6187 = vrot.lane.b32.xlu1 %v12432_v1, %s8649_s9 }
0x1593   :  { %v6112_v22 = vpop.permute.xlu0 %6111 }
0x1594   :  { %v6110_v14 = vpop.permute.xlu1 %6109  ;;  %v12445_v11 = vadd.f32 %v6112_v22, %v12222_v48 }
0x1595   :  { %6317 = vrot.lane.b32.xlu0 %v6272_v2, %s8649_s9  ;;  %v12448_v54 = vadd.f32 %v6110_v14, %v12266_v24 }
0x1596   :  { %6315 = vrot.lane.b32.xlu1 %v6271_v5, %s8649_s9  ;;  %v6274_v35 = vmul.f32 %v12445_v11, %v12445_v11 }
0x1597   :  { %v6273_v15 = vmul.f32 %v12448_v54, %v12448_v54 }
0x1599   :  { %6193 = vrot.lane.b32.xlu0 %v12445_v11, %s8649_s9 }
0x159a   :  { %6191 = vrot.lane.b32.xlu1 %v12448_v54, %s8649_s9 }
0x159d   :  { %6321 = vrot.lane.b32.xlu0 %v6274_v35, %s8649_s9 }
0x159e   :  { %6319 = vrot.lane.b32.xlu1 %v6273_v15, %s8649_s9 }
0x15a4   :  { %v6166_v48 = vpop.permute.xlu0 %6165 }
0x15a5   :  { %v6214_v24 = vsel %vm246_vm0, %v6166_v48, 0.0  ;;  %v6164_v55 = vpop.permute.xlu1 %6163 }
0x15a6   :  { %v6211_v63 = vsel %vm246_vm0, %v6164_v55, 0.0 }
0x15a8   :  { %v6294_v60 = vpop.permute.xlu0 %6293 }
0x15a9   :  { %v6292_v50 = vpop.permute.xlu1 %6291  ;;  %v6342_v56 = vsel %vm246_vm0, %v6294_v60, 0.0 }
0x15aa   :  { %v6339_v59 = vsel %vm246_vm0, %v6292_v50, 0.0 }
0x15bc   :  { %6215 = vadd.xlane.f32.xlu0 %v6214_v24 }
0x15c2   :  { %6212 = vadd.xlane.f32.xlu1 %v6211_v63 }
0x15d2   :  { %6544 = vrot.lane.b32.xlu0 %v6973_v57, %s8649_s9 }
0x15d3   :  { %6520 = vrot.lane.b32.xlu1 %v6972_v29, %s8649_s9 }
0x15db   :  { %v6170_v62 = vpop.permute.xlu0 %6169 }
0x15dc   :  { %v6168_v16 = vpop.permute.xlu1 %6167  ;;  %v6220_v8 = vsel %vm246_vm0, %v6170_v62, 0.0 }
0x15dd   :  { %v6217_v38 = vsel %vm246_vm0, %v6168_v16, 0.0 }
0x15df   :  { %v6298_v37 = vpop.permute.xlu0 %6297 }
0x15e0   :  { %v6296_v10 = vpop.permute.xlu1 %6295  ;;  %v6348_v34 = vsel %vm246_vm0, %v6298_v37, 0.0 }
0x15e1   :  { %v6345_v42 = vsel %vm246_vm0, %v6296_v10, 0.0 }
0x15e3   :  { %v6174_v45 = vpop.permute.xlu0 %6173 }
0x15e4   :  { %v6172_v20 = vpop.permute.xlu1 %6171  ;;  %v6226_v19 = vsel %vm246_vm0, %v6174_v45, 0.0 }
0x15e5   :  { %v6223_v4 = vsel %vm246_vm0, %v6172_v20, 0.0 }
0x15e7   :  { %v6302_v12 = vpop.permute.xlu0 %6301 }
0x15e8   :  { %v6300_v17 = vpop.permute.xlu1 %6299  ;;  %v6354_v6 = vsel %vm246_vm0, %v6302_v12, 0.0 }
0x15e9   :  { %v6351_v25 = vsel %vm246_vm0, %v6300_v17, 0.0 }
0x15eb   :  { %v6178_v61 = vpop.permute.xlu0 %6177 }
0x15ec   :  { %v6176_v18 = vpop.permute.xlu1 %6175  ;;  %v6232_v0 = vsel %vm246_vm0, %v6178_v61, 0.0 }
0x15ed   :  { %v6229_v41 = vsel %vm246_vm0, %v6176_v18, 0.0 }
0x15ef   :  { %v6306_v44 = vpop.permute.xlu0 %6305 }
0x15f0   :  { %v6304_v28 = vpop.permute.xlu1 %6303  ;;  %v6360_v13 = vsel %vm246_vm0, %v6306_v44, 0.0 }
0x15f1   :  { %6343 = vadd.xlane.f32.xlu0 %v6342_v56  ;;  %v6357_v51 = vsel %vm246_vm0, %v6304_v28, 0.0 }
0x15f3   :  { %v6182_v26 = vpop.permute.xlu0 %6181 }
0x15f4   :  { %v6180_v58 = vpop.permute.xlu1 %6179  ;;  %v6238_v2 = vsel %vm246_vm0, %v6182_v26, 0.0 }
0x15f5   :  { %6340 = vadd.xlane.f32.xlu0 %v6339_v59  ;;  %v6235_v43 = vsel %vm246_vm0, %v6180_v58, 0.0 }
0x15f7   :  { %6218 = vadd.xlane.f32.xlu1 %v6217_v38  ;;  %v6310_v30 = vpop.permute.xlu0 %6309 }
0x15f8   :  { %v6308_v31 = vpop.permute.xlu1 %6307  ;;  %v6366_v14 = vsel %vm246_vm0, %v6310_v30, 0.0 }
0x15f9   :  { %6221 = vadd.xlane.f32.xlu0 %v6220_v8  ;;  %v6363_v22 = vsel %vm246_vm0, %v6308_v31, 0.0 }
0x15fb   :  { %6346 = vadd.xlane.f32.xlu1 %v6345_v42  ;;  %v6186_v40 = vpop.permute.xlu0 %6185 }
0x15fc   :  { %v6184_v3 = vpop.permute.xlu1 %6183  ;;  %v6244_v24 = vsel %vm246_vm0, %v6186_v40, 0.0 }
0x15fd   :  { %6349 = vadd.xlane.f32.xlu0 %v6348_v34  ;;  %v6241_v15 = vsel %vm246_vm0, %v6184_v3, 0.0 }
0x15ff   :  { %6224 = vadd.xlane.f32.xlu1 %v6223_v4  ;;  %v6314_v5 = vpop.permute.xlu0 %6313 }
0x1600   :  { %v6312_v53 = vpop.permute.xlu1 %6311  ;;  %v6372_v57 = vsel %vm246_vm0, %v6314_v5, 0.0 }
0x1601   :  { %6227 = vadd.xlane.f32.xlu0 %v6226_v19  ;;  %v6369_v55 = vsel %vm246_vm0, %v6312_v53, 0.0 }
0x1603   :  { %6352 = vadd.xlane.f32.xlu1 %v6351_v25  ;;  %v6190_v48 = vpop.permute.xlu0 %6189 }
0x1604   :  { %v6188_v35 = vpop.permute.xlu1 %6187  ;;  %v6250_v50 = vsel %vm246_vm0, %v6190_v48, 0.0 }
0x1605   :  { %6355 = vadd.xlane.f32.xlu0 %v6354_v6  ;;  %v6247_v60 = vsel %vm246_vm0, %v6188_v35, 0.0 }
0x1607   :  { %6230 = vadd.xlane.f32.xlu1 %v6229_v41  ;;  %v6318_v29 = vpop.permute.xlu0 %6317 }
0x1608   :  { %v6316_v63 = vpop.permute.xlu1 %6315  ;;  %v6378_v37 = vsel %vm246_vm0, %v6318_v29, 0.0 }
0x1609   :  { %6233 = vadd.xlane.f32.xlu0 %v6232_v0  ;;  %v6375_v16 = vsel %vm246_vm0, %v6316_v63, 0.0 }
0x160b   :  { %6358 = vadd.xlane.f32.xlu1 %v6357_v51  ;;  %v6194_v10 = vpop.permute.xlu0 %6193 }
0x160c   :  { %v6192_v62 = vpop.permute.xlu1 %6191  ;;  %v6256_v17 = vsel %vm246_vm0, %v6194_v10, 0.0 }
0x160d   :  { %6361 = vadd.xlane.f32.xlu0 %v6360_v13  ;;  %v6253_v20 = vsel %vm246_vm0, %v6192_v62, 0.0 }
0x160f   :  { %6236 = vadd.xlane.f32.xlu1 %v6235_v43  ;;  %v6322_v12 = vpop.permute.xlu0 %6321 }
0x1610   :  { %v6320_v45 = vpop.permute.xlu1 %6319  ;;  %v6384_v18 = vsel %vm246_vm0, %v6322_v12, 0.0 }
0x1611   :  { %6239 = vadd.xlane.f32.xlu0 %v6238_v2  ;;  %v6381_v56 = vsel %vm246_vm0, %v6320_v45, 0.0 }
0x1613   :  { %6364 = vadd.xlane.f32.xlu1 %v6363_v22 }
0x1615   :  { %6367 = vadd.xlane.f32.xlu0 %v6366_v14 }
0x1617   :  { %6242 = vadd.xlane.f32.xlu1 %v6241_v15 }
0x1619   :  { %6245 = vadd.xlane.f32.xlu0 %v6244_v24 }
0x161b   :  { %6370 = vadd.xlane.f32.xlu1 %v6369_v55 }
0x161d   :  { %6373 = vadd.xlane.f32.xlu0 %v6372_v57 }
0x161f   :  { %6248 = vadd.xlane.f32.xlu1 %v6247_v60 }
0x1621   :  { %6251 = vadd.xlane.f32.xlu0 %v6250_v50 }
0x1623   :  { %6376 = vadd.xlane.f32.xlu1 %v6375_v16 }
0x1625   :  { %6379 = vadd.xlane.f32.xlu0 %v6378_v37 }
0x1627   :  { %6254 = vadd.xlane.f32.xlu1 %v6253_v20  ;;  %v8650_v20 = vmov 0.0|0.0  }
0x1628   :  { %8205 = vmatprep.subr.bf16.mxu1 %v8650_v20 }
0x1629   :  { %6257 = vadd.xlane.f32.xlu0 %v6256_v17 }
0x162b   :  { %6382 = vadd.xlane.f32.xlu1 %v6381_v56 }
0x162d   :  { %6385 = vadd.xlane.f32.xlu0 %v6384_v18 }
0x1649   :  { %v6216_v61 = vpop.xlane.xlu0 %6215 }
0x164a   :  { %v6388_v28 = vmul.f32 0.015625, %v6216_v61 }
0x164c   :  { %v6420_v44 = vmul.f32 %v6388_v28, %v6388_v28  ;;  %v6452_v24 = vsub.f32 %v12333_v32, %v6388_v28 }
0x164d   :  { %v12500_v59 = vpop.permute.xlu0 %6544 }
0x164f   :  { %v6213_v38 = vpop.xlane.xlu1 %6212 }
0x1650   :  { %v6387_v42 = vmul.f32 0.015625, %v6213_v38 }
0x1652   :  { %v6419_v19 = vmul.f32 %v6387_v42, %v6387_v42  ;;  %v6451_v10 = vsub.f32 %v12336_v9, %v6387_v42 }
0x1653   :  { %v12502_v58 = vpop.permute.xlu1 %6520 }
0x167e   :  { %v6344_v8 = vpop.xlane.xlu0 %6343 }
0x167f   :  { %v6404_v34 = vmul.f32 0.015625, %v6344_v8 }
0x1681   :  { %v6436_v4 = vsub.f32 %v6404_v34, %v6420_v44 }
0x1682   :  { %v6341_v26 = vpop.xlane.xlu0 %6340 }
0x1683   :  { %v6468_v25 = vadd.f32 1e-05, %v6436_v4  ;;  %v6403_v31 = vmul.f32 0.015625, %v6341_v26 }
0x1684   :  { %v6219_v6 = vpop.xlane.xlu1 %6218 }
0x1685   :  { %8589 = vrsqrt.f32 %v6468_v25  ;;  %v6435_v30 = vsub.f32 %v6403_v31, %v6419_v19  ;;  %v6389_v41 = vmul.f32 0.015625, %v6219_v6 }
0x1686   :  { %v6222_v0 = vpop.xlane.xlu0 %6221 }
0x1687   :  { %v6467_v3 = vadd.f32 1e-05, %v6435_v30  ;;  %v6390_v51 = vmul.f32 0.015625, %v6222_v0  ;;  %v6421_v13 = vmul.f32 %v6389_v41, %v6389_v41  ;;  %v6453_v34 = vsub.f32 %v12352_v46, %v6389_v41 }
0x1688   :  { %v6347_v40 = vpop.xlane.xlu1 %6346 }
0x1689   :  { %8591 = vrsqrt.f32 %v6467_v3  ;;  %v6405_v43 = vmul.f32 0.015625, %v6347_v40  ;;  %v6422_v2 = vmul.f32 %v6390_v51, %v6390_v51  ;;  %v6454_v0 = vsub.f32 %v12349_v36, %v6390_v51 }
0x168a   :  { %v6350_v53 = vpop.xlane.xlu0 %6349 }
0x168b   :  { %v6437_v5 = vsub.f32 %v6405_v43, %v6421_v13  ;;  %v6406_v22 = vmul.f32 0.015625, %v6350_v53 }
0x168c   :  { %v6225_v14 = vpop.xlane.xlu1 %6224 }
0x168d   :  { %v6469_v35 = vadd.f32 1e-05, %v6437_v5  ;;  %v6438_v15 = vsub.f32 %v6406_v22, %v6422_v2  ;;  %v12504_v48 = vmul.f32 0.015625, %v6225_v14 }
0x168e   :  { %v6228_v55 = vpop.xlane.xlu0 %6227 }
0x168f   :  { %v8590_v63 = vpop.eup %8589  ;;  %8593 = vrsqrt.f32 %v6469_v35  ;;  %v6470_v57 = vadd.f32 1e-05, %v6438_v15  ;;  %v12507_v29 = vmul.f32 0.015625, %v6228_v55  ;;  %v6423_v62 = vmul.f32 %v12504_v48, %v12504_v48 }
0x1690   :  { %v6353_v60 = vpop.xlane.xlu1 %6352  ;;  %v6500_v50 = vmul.f32 %v8590_v63, %v6452_v24  ;;  %v6455_v55 = vsub.f32 %v12368_v7, %v12504_v48 }
0x1691   :  { %8595 = vrsqrt.f32 %v6470_v57  ;;  %v6407_v16 = vmul.f32 0.015625, %v6353_v60  ;;  %v6424_v45 = vmul.f32 %v12507_v29, %v12507_v29 }
0x1692   :  { %v6356_v37 = vpop.xlane.xlu0 %6355  ;;  %v6524_v61 = vmul.f32 %v12502_v58, %v6500_v50 }
0x1693   :  { %v8592_v32 = vpop.eup %8591  ;;  %v6439_v17 = vsub.f32 %v6407_v16, %v6423_v62  ;;  %v6408_v12 = vmul.f32 0.015625, %v6356_v37  ;;  %v6456_v37 = vsub.f32 %v12365_v47, %v12507_v29 }
0x1694   :  { %v6231_v56 = vpop.xlane.xlu1 %6230  ;;  %v6499_v18 = vmul.f32 %v8592_v32, %v6451_v10  ;;  %v6548_v25 = vadd.f32 %v12500_v59, %v6524_v61 }
0x1695   :  { %v6471_v38 = vadd.f32 1e-05, %v6439_v17  ;;  %v6440_v28 = vsub.f32 %v6408_v12, %v6424_v45  ;;  %v12516_v8 = vmul.f32 0.015625, %v6231_v56 }
0x1696   :  { %v6234_v44 = vpop.xlane.xlu0 %6233  ;;  %v6523_v9 = vmul.f32 %v12502_v58, %v6499_v18 }
0x1697   :  { %8597 = vrsqrt.f32 %v6471_v38  ;;  %v6472_v42 = vadd.f32 1e-05, %v6440_v28  ;;  %v12520_v4 = vmul.f32 0.015625, %v6234_v44  ;;  %v6425_v6 = vmul.f32 %v12516_v8, %v12516_v8 }
0x1698   :  { %v6359_v26 = vpop.xlane.xlu1 %6358  ;;  %v6547_v19 = vadd.f32 %v12500_v59, %v6523_v9 }
0x1699   :  { %v8594_v31 = vpop.eup %8593  ;;  %8599 = vrsqrt.f32 %v6472_v42  ;;  %v6409_v30 = vmul.f32 0.015625, %v6359_v26  ;;  %v6426_v46 = vmul.f32 %v12520_v4, %v12520_v4 }
0x169a   :  { %v6362_v3 = vpop.xlane.xlu0 %6361  ;;  %v8259_v40 = vpack.i.bf16 %v6548_v25, %v6547_v19  ;;  %v6501_v13 = vmul.f32 %v8594_v31, %v6453_v34  ;;  %v6457_v34 = vsub.f32 %v12384_v39, %v12516_v8 }
0x169b   :  { %v8596_v43 = vpop.eup %8595  ;;  %v6441_v41 = vsub.f32 %v6409_v30, %v6425_v6  ;;  %v6410_v53 = vmul.f32 0.015625, %v6362_v3  ;;  %v6458_v3 = vsub.f32 %v12381_v27, %v12520_v4 }
0x169c   :  { %8260 = vrot.lane.b32.xlu1 %v8259_v40, %s8649_s9  ;;  %v6237_v2 = vpop.xlane.xlu1 %6236  ;;  %v6502_v5 = vmul.f32 %v8596_v43, %v6454_v0  ;;  %v6525_v22 = vmul.f32 %v12502_v58, %v6501_v13 }
0x169d   :  { %v6473_v14 = vadd.f32 1e-05, %v6441_v41  ;;  %v6442_v35 = vsub.f32 %v6410_v53, %v6426_v46  ;;  %v12531_v15 = vmul.f32 0.015625, %v6237_v2 }
0x169e   :  { %v6240_v36 = vpop.xlane.xlu0 %6239  ;;  %v6526_v51 = vmul.f32 %v12502_v58, %v6502_v5  ;;  %v6549_v60 = vadd.f32 %v12500_v59, %v6525_v22 }
0x169f   :  { %8601 = vrsqrt.f32 %v6473_v14  ;;  %v6474_v24 = vadd.f32 1e-05, %v6442_v35  ;;  %v12536_v63 = vmul.f32 0.015625, %v6240_v36  ;;  %v6427_v16 = vmul.f32 %v12531_v15, %v12531_v15 }
0x16a0   :  { %v6365_v57 = vpop.xlane.xlu1 %6364  ;;  %v6550_v50 = vadd.f32 %v12500_v59, %v6526_v51  ;;  %v6459_v51 = vsub.f32 %v12400_v23, %v12531_v15 }
0x16a1   :  { %v8598_v62 = vpop.eup %8597  ;;  %8603 = vrsqrt.f32 %v6474_v24  ;;  %v6411_v10 = vmul.f32 0.015625, %v6365_v57  ;;  %v6428_v48 = vmul.f32 %v12536_v63, %v12536_v63 }
0x16a2   :  { %v6368_v32 = vpop.xlane.xlu0 %6367  ;;  %v8264_v45 = vpack.i.bf16 %v6550_v50, %v6549_v60  ;;  %v6503_v17 = vmul.f32 %v8598_v62, %v6455_v55 }
0x16a3   :  { %v8600_v7 = vpop.eup %8599  ;;  %v6443_v12 = vsub.f32 %v6411_v10, %v6427_v16  ;;  %v6412_v56 = vmul.f32 0.015625, %v6368_v32  ;;  %v6460_v10 = vsub.f32 %v12397_v49, %v12536_v63 }
0x16a4   :  { %8265 = vrot.lane.b32.xlu0 %v8264_v45, %s8649_s9  ;;  %v6243_v18 = vpop.xlane.xlu1 %6242  ;;  %v6504_v61 = vmul.f32 %v8600_v7, %v6456_v37  ;;  %v6527_v38 = vmul.f32 %v12502_v58, %v6503_v17 }
0x16a5   :  { %v6475_v28 = vadd.f32 1e-05, %v6443_v12  ;;  %v6444_v44 = vsub.f32 %v6412_v56, %v6428_v48  ;;  %v12548_v9 = vmul.f32 0.015625, %v6243_v18 }
0x16a6   :  { %v6246_v47 = vpop.xlane.xlu0 %6245  ;;  %v6528_v29 = vmul.f32 %v12502_v58, %v6504_v61  ;;  %v6551_v25 = vadd.f32 %v12500_v59, %v6527_v38 }
0x16a7   :  { %8605 = vrsqrt.f32 %v6475_v28  ;;  %v6476_v42 = vadd.f32 1e-05, %v6444_v44  ;;  %v12553_v26 = vmul.f32 0.015625, %v6246_v47  ;;  %v6429_v30 = vmul.f32 %v12548_v9, %v12548_v9 }
0x16a8   :  { %v6371_v19 = vpop.xlane.xlu1 %6370  ;;  %v6552_v31 = vadd.f32 %v12500_v59, %v6528_v29  ;;  %v6461_v44 = vsub.f32 %v12416_v52, %v12548_v9 }
0x16a9   :  { %v8602_v6 = vpop.eup %8601  ;;  %8607 = vrsqrt.f32 %v6476_v42  ;;  %v6413_v0 = vmul.f32 0.015625, %v6371_v19  ;;  %v6430_v8 = vmul.f32 %v12553_v26, %v12553_v26 }
0x16aa   :  { %v6374_v40 = vpop.xlane.xlu0 %6373  ;;  %v8269_v13 = vpack.i.bf16 %v6552_v31, %v6551_v25  ;;  %v6505_v43 = vmul.f32 %v8602_v6, %v6457_v34  ;;  %v6462_v6 = vsub.f32 %v12413_v21, %v12553_v26 }
0x16ab   :  { %v8604_v39 = vpop.eup %8603  ;;  %v6445_v46 = vsub.f32 %v6413_v0, %v6429_v30  ;;  %v6414_v41 = vmul.f32 0.015625, %v6374_v40 }
0x16ac   :  { %8270 = vrot.lane.b32.xlu1 %v8269_v13, %s8649_s9  ;;  %v6249_v53 = vpop.xlane.xlu1 %6248  ;;  %v6506_v2 = vmul.f32 %v8604_v39, %v6458_v3  ;;  %v6529_v5 = vmul.f32 %v12502_v58, %v6505_v43 }
0x16ad   :  { %v6477_v22 = vadd.f32 1e-05, %v6445_v46  ;;  %v6446_v14 = vsub.f32 %v6414_v41, %v6430_v8  ;;  %v12565_v35 = vmul.f32 0.015625, %v6249_v53 }
0x16ae   :  { %v6252_v27 = vpop.xlane.xlu0 %6251  ;;  %v6530_v4 = vmul.f32 %v12502_v58, %v6506_v2  ;;  %v6553_v57 = vadd.f32 %v12500_v59, %v6529_v5 }
0x16af   :  { %8609 = vrsqrt.f32 %v6477_v22  ;;  %v6478_v36 = vadd.f32 1e-05, %v6446_v14  ;;  %v12570_v24 = vmul.f32 0.015625, %v6252_v27  ;;  %v6431_v62 = vmul.f32 %v12565_v35, %v12565_v35 }
0x16b0   :  { %v6377_v55 = vpop.xlane.xlu1 %6376  ;;  %v6554_v60 = vadd.f32 %v12500_v59, %v6530_v4  ;;  %v6463_v21 = vsub.f32 %v12432_v1, %v12565_v35 }
0x16b1   :  { %v8606_v50 = vpop.eup %8605  ;;  %8611 = vrsqrt.f32 %v6478_v36  ;;  %v6415_v16 = vmul.f32 0.015625, %v6377_v55  ;;  %v6432_v15 = vmul.f32 %v12570_v24, %v12570_v24  ;;  %v6464_v22 = vsub.f32 %v12429_v33, %v12570_v24 }
0x16b2   :  { %v6380_v37 = vpop.xlane.xlu0 %6379  ;;  %v8274_v32 = vpack.i.bf16 %v6554_v60, %v6553_v57  ;;  %v6507_v45 = vmul.f32 %v8606_v50, %v6459_v51 }
0x16b3   :  { %v8608_v23 = vpop.eup %8607  ;;  %v6447_v17 = vsub.f32 %v6415_v16, %v6431_v62  ;;  %v6416_v7 = vmul.f32 0.015625, %v6380_v37  ;;  %v8652_v37 = vmov 0.0  }
0x16b4   :  { %8275 = vrot.lane.b32.xlu1 %v8274_v32, %s8649_s9  ;;  %v6255_v48 = vpop.xlane.xlu1 %6254  ;;  %v6508_v12 = vmul.f32 %v8608_v23, %v6460_v10  ;;  %v6531_v56 = vmul.f32 %v12502_v58, %v6507_v45  ;;  %7930 = vmatprep.mubr.msk.f32.mxu1 %vm8651_vm1, %v8652_v37 }
0x16b5   :  { %v6479_v18 = vadd.f32 1e-05, %v6447_v17  ;;  %v6448_v61 = vsub.f32 %v6416_v7, %v6432_v15  ;;  %v6401_v38 = vmul.f32 0.015625, %v6255_v48  ;;  %v8653_v15 = vmov 0  }
0x16b6   :  { %v6258_v28 = vpop.xlane.xlu0 %6257  ;;  %v6532_v49 = vmul.f32 %v12502_v58, %v6508_v12  ;;  %v6555_v42 = vadd.f32 %v12500_v59, %v6531_v56  ;;  %8299 = vset.pattern.permute.xlu1 %v8653_v15  ;;  %8300 = vset.pattern.permute.xlu0 %v8653_v15 }
0x16b7   :  { %8613 = vrsqrt.f32 %v6479_v18  ;;  %v6480_v63 = vadd.f32 1e-05, %v6448_v61  ;;  %v6402_v47 = vmul.f32 0.015625, %v6258_v28  ;;  %v6433_v25 = vmul.f32 %v6401_v38, %v6401_v38 }
0x16b8   :  { %v6383_v29 = vpop.xlane.xlu1 %6382  ;;  %v6556_v34 = vadd.f32 %v12500_v59, %v6532_v49  ;;  %v6465_v1 = vsub.f32 %v12448_v54, %v6401_v38 }
0x16b9   :  { %v8610_v19 = vpop.eup %8609  ;;  %8615 = vrsqrt.f32 %v6480_v63  ;;  %v6417_v31 = vmul.f32 0.015625, %v6383_v29  ;;  %v6434_v13 = vmul.f32 %v6402_v47, %v6402_v47  ;;  %v6466_v50 = vsub.f32 %v12445_v11, %v6402_v47  ;;  %v6568_v11 = vld [vmem:[%s12665_s6 + $0x1d] sm:$0x1] }
0x16ba   :  { %v6386_v30 = vpop.xlane.xlu0 %6385  ;;  %v8279_v0 = vpack.i.bf16 %v6556_v34, %v6555_v42  ;;  %v6509_v3 = vmul.f32 %v8610_v19, %v6461_v44 }
0x16bb   :  { %v8612_v40 = vpop.eup %8611  ;;  %v6449_v43 = vsub.f32 %v6417_v31, %v6433_v25  ;;  %v6418_v52 = vmul.f32 0.015625, %v6386_v30 }
0x16bc   :  { %8280 = vrot.lane.b32.xlu1 %v8279_v0, %s8649_s9  ;;  %v6510_v9 = vmul.f32 %v8612_v40, %v6462_v6  ;;  %v6533_v39 = vmul.f32 %v12502_v58, %v6509_v3 }
0x16bd   :  { %v6481_v8 = vadd.f32 1e-05, %v6449_v43  ;;  %v6450_v46 = vsub.f32 %v6418_v52, %v6434_v13 }
0x16be   :  { %v6534_v41 = vmul.f32 %v12502_v58, %v6510_v9  ;;  %v6557_v26 = vadd.f32 %v12500_v59, %v6533_v39 }
0x16bf   :  { %8617 = vrsqrt.f32 %v6481_v8  ;;  %v6482_v53 = vadd.f32 1e-05, %v6450_v46 }
0x16c0   :  { %v6558_v2 = vadd.f32 %v12500_v59, %v6534_v41  ;;  %v6974_v41 = vld [vmem:[%s12665_s6 + $0x1c] ss:$0 sm:$0xff] }
0x16c1   :  { %v8614_v5 = vpop.eup %8613  ;;  %8619 = vrsqrt.f32 %v6482_v53 }
0x16c2   :  { %v8284_v14 = vpack.i.bf16 %v6558_v2, %v6557_v26  ;;  %v6511_v27 = vmul.f32 %v8614_v5, %v6463_v21 }
0x16c3   :  { %v8616_v4 = vpop.eup %8615 }
0x16c4   :  { %8285 = vrot.lane.b32.xlu0 %v8284_v14, %s8649_s9  ;;  %v6512_v36 = vmul.f32 %v8616_v4, %v6464_v22  ;;  %v6535_v51 = vmul.f32 %v12502_v58, %v6511_v27 }
0x16c6   :  { %v6536_v55 = vmul.f32 %v12502_v58, %v6512_v36  ;;  %v6559_v35 = vadd.f32 %v12500_v59, %v6535_v51 }
0x16c8   :  { %v6560_v57 = vadd.f32 %v12500_v59, %v6536_v55 }
0x16c9   :  { %v8618_v60 = vpop.eup %8617 }
0x16ca   :  { %v8289_v33 = vpack.i.bf16 %v6560_v57, %v6559_v35  ;;  %v6513_v24 = vmul.f32 %v8618_v60, %v6465_v1 }
0x16cb   :  { %v8620_v62 = vpop.eup %8619 }
0x16cc   :  { %8290 = vrot.lane.b32.xlu1 %v8289_v33, %s8649_s9  ;;  %v6514_v16 = vmul.f32 %v8620_v62, %v6466_v50  ;;  %v6537_v10 = vmul.f32 %v12502_v58, %v6513_v24 }
0x16ce   :  { %v6538_v54 = vmul.f32 %v12502_v58, %v6514_v16  ;;  %v6561_v32 = vadd.f32 %v12500_v59, %v6537_v10 }
0x16d0   :  { %v6562_v45 = vadd.f32 %v12500_v59, %v6538_v54  ;;  %6724 = vperm.xlu1 %8299, %v6568_v11  }
0x16d2   :  { %v8294_v23 = vpack.i.bf16 %v6562_v45, %v6561_v32 }
0x16d4   :  { %8295 = vrot.lane.b32.xlu0 %v8294_v23, %s8649_s9 }
0x170e   :  { %v8261_v17 = vpop.permute.xlu1 %8260 }
0x170f   :  { %v8263_v7 = vunpack.i.h.bf16 %v8261_v17  ;;  %v8262_v48 = vunpack.i.l.bf16 %v8261_v17 }
0x1711   :  { %v8206_v59 = vpack.c.bf16 %v8263_v7, %v8262_v48 }
0x1713   :  { %8208 = vmatpush3.bf16.xpose.msk.msra.mxu1 %vm12616_vm2, %v8206_v59 }
0x1714   :  { %8209 = vmatprep.subr.bf16.mxu1 %v8650_v20 }
0x1716   :  { %v8266_v12 = vpop.permute.xlu0 %8265 }
0x1717   :  { %v8268_v56 = vunpack.i.h.bf16 %v8266_v12  ;;  %v8267_v18 = vunpack.i.l.bf16 %v8266_v12 }
0x1719   :  { %v8210_v61 = vpack.c.bf16 %v8268_v56, %v8267_v18 }
0x171b   :  { %8212 = vmatpush3.bf16.xpose.msk.msra.mxu1 %vm12616_vm2, %v8210_v61 }
0x171c   :  { %8213 = vmatprep.subr.bf16.mxu1 %v8650_v20 }
0x171e   :  { %v8271_v38 = vpop.permute.xlu1 %8270 }
0x171f   :  { %v8273_v28 = vunpack.i.h.bf16 %v8271_v38  ;;  %v8272_v49 = vunpack.i.l.bf16 %v8271_v38 }
0x1721   :  { %v8214_v63 = vpack.c.bf16 %v8273_v28, %v8272_v49 }
0x1723   :  { %8216 = vmatpush3.bf16.xpose.msk.msra.mxu1 %vm12616_vm2, %v8214_v63 }
0x1724   :  { %8217 = vmatprep.subr.bf16.mxu1 %v8650_v20 }
0x1726   :  { %v8276_v44 = vpop.permute.xlu1 %8275 }
0x1727   :  { %v8278_v47 = vunpack.i.h.bf16 %v8276_v44  ;;  %v8277_v29 = vunpack.i.l.bf16 %v8276_v44 }
0x1729   :  { %v8218_v42 = vpack.c.bf16 %v8278_v47, %v8277_v29 }
0x172b   :  { %8220 = vmatpush3.bf16.xpose.msk.msra.mxu1 %vm12616_vm2, %v8218_v42 }
0x172c   :  { %8221 = vmatprep.subr.bf16.mxu1 %v8650_v20 }
0x172e   :  { %v8281_v34 = vpop.permute.xlu1 %8280 }
0x172f   :  { %v8283_v19 = vunpack.i.h.bf16 %v8281_v34  ;;  %v8282_v25 = vunpack.i.l.bf16 %v8281_v34 }
0x1731   :  { %v8222_v31 = vpack.c.bf16 %v8283_v19, %v8282_v25 }
0x1733   :  { %8224 = vmatpush3.bf16.xpose.msk.msra.mxu1 %vm12616_vm2, %v8222_v31 }
0x1734   :  { %8225 = vmatprep.subr.bf16.mxu1 %v8650_v20 }
0x1736   :  { %v8286_v6 = vpop.permute.xlu0 %8285 }
0x1737   :  { %v8288_v30 = vunpack.i.h.bf16 %v8286_v6  ;;  %v8287_v0 = vunpack.i.l.bf16 %v8286_v6 }
0x1739   :  { %v8226_v3 = vpack.c.bf16 %v8288_v30, %v8287_v0 }
0x173b   :  { %8228 = vmatpush3.bf16.xpose.msk.msra.mxu1 %vm12616_vm2, %v8226_v3 }
0x173c   :  { %8229 = vmatprep.subr.bf16.mxu1 %v8650_v20 }
0x173e   :  { %v8291_v40 = vpop.permute.xlu1 %8290 }
0x173f   :  { %v8293_v13 = vunpack.i.h.bf16 %v8291_v40  ;;  %v8292_v43 = vunpack.i.l.bf16 %v8291_v40 }
0x1741   :  { %v8230_v52 = vpack.c.bf16 %v8293_v13, %v8292_v43 }
0x1743   :  { %8232 = vmatpush3.bf16.xpose.msk.msra.mxu1 %vm12616_vm2, %v8230_v52 }
0x1744   :  { %8233 = vmatprep.subr.bf16.mxu1 %v8650_v20 }
0x1746   :  { %v8296_v9 = vpop.permute.xlu0 %8295 }
0x1747   :  { %v8298_v39 = vunpack.i.h.bf16 %v8296_v9  ;;  %v8297_v8 = vunpack.i.l.bf16 %v8296_v9 }
0x1749   :  { %v8234_v46 = vpack.c.bf16 %v8298_v39, %v8297_v8 }
0x174b   :  { %8236 = vmatpush3.bf16.xpose.msk.msra.mxu1 %vm12616_vm2, %v8234_v46 }
0x174f   :  { %v6725_v53 = vpop.permute.xlu1 %6724 }
0x1752   :  { %7931 = vmatmul.mubr.msk.f32.vlgmr.msra.gmra.mrb[88].mxu1 %vm246_vm0, %v6974_v41 }
0x1825   :  { %v6718_v21 = vpop.f32.mrb[88].mxu1 }
0x1826   :  { %v6727_v26 = vadd.f32 %v6725_v53, %v6718_v21  ;;  %v7932_v2 = vpop.f32.mrb[89].mxu1 }
0x1828   :  { %v6992_v5 = vmul.f32 -1.442695, %v6727_v26 }
0x182a   :  { %8621 = vpow2.f32 %v6992_v5 }
0x1834   :  { %v8622_v20 = vpop.eup %8621 }
0x1835   :  { %v6731_v22 = vadd.f32 1.0, %v8622_v20 }
0x1837   :  { %8623 = vrcp.f32 %v6731_v22 }
0x1841   :  { %v8624_v14 = vpop.eup %8623 }
0x1842   :  { %6734 = vst [vmem:[#allocation2] sm:$0x1] %v8624_v14 }
0x1843   :  { %8636 = shalt.err (!%p8633_p4)
}
0x1844   :  { %s8637_s19 = scalar_lea.hbm %s12667_s8, 16 }
0x1845   :  { %p8638_p5 = scmp.ne.s32.totalorder %s12667_s8, %s8637_s19  ;;  %p8641_p6 = scmp.lt.u32.totalorder %s8637_s19, %s12667_s8 }
0x1847   :  { %p8643_p7 = pnand %p8641_p6, %p8638_p5 }
0x1849   :  { %8646 = shalt.err (!%p8643_p7)
}
0x184a   :  { %6744 = dma.vmem_to_hbm [thread:$0]  %s6742_s15, 16, %s12667_s8, [#allocation3]  }
0x184b   :  { %8647 = dma.done.wait [#allocation3], 16  }
0x184c   :  { %8648 = vsyncadd [#allocation3], 4294967280 }
0x184d   :  { %6748 = vsyncpa [#allocation3], 1 }

</bundles_post_ra>
